<compile_context>
chip_gen: v7x
topology: tpu7x:2x2x1
jax: 0.10.0
libtpu: 0.0.40
codegen_flags: <defaults>
</compile_context>

<pallas_src>
import functools
import math

import jax
import jax.numpy as jnp
import numpy as np
from jax import lax
from jax.experimental import pallas as pl
from jax.experimental.pallas import tpu as pltpu


def _round_up(x, m):
    return (x + m - 1) // m * m


def _gen_aware_vmem_limit():
    """Scoped-VMEM budget per chip generation (v7x: 64 MiB physical, else 128)."""
    cap = 128 * 1024 * 1024
    try:
        info = pltpu.get_tpu_info()
        cap = getattr(info, "vmem_capacity_bytes", cap) or cap
    except Exception:
        pass
    if cap <= 64 * 1024 * 1024:          # v7x-class: leave headroom for double buffers
        return 28 * 1024 * 1024
    return 80 * 1024 * 1024              # v5e / v6e: allow larger resident tiles


def _pick_row_tile(h, wo):
    """Output rows per grid step: TM*wo is a multiple of 128 (lane-dense
    flattened output blocks), targeting ~1024 output pixels per step."""
    unit = 128 // math.gcd(wo, 128)
    tm = unit * max(1, -(-1024 // (unit * wo)))
    return min(tm, _round_up(h, unit))


# ----------------------------- Pallas kernel --------------------------------
def _up_double_conv_kernel(x2_ref, x1_ref, w1_ref, b1_ref, w2_ref, b2_ref,
                           o_ref, p1_ref, p2_ref, *, h_img, w_img):
    """Fused pad + concat + DoubleConv for one (batch, row-tile) grid step.

    x2_ref : (Hc+4, WQ+2, C2) bf16  whole padded skip image (resident across t)
    x1_ref : (Hc+4, WQ+2, C1) bf16  whole padded upsampled image
    w1_ref : (3, 3*Cin, Cmid_p) bf16  BN1 folded; rows ordered kx-major,
                                      channel-minor (== im2col patch layout)
    b1_ref : (1, Cmid_p) f32
    w2_ref : (3, 3*Cmid_p, Cout_p) bf16  BN2 folded
    b2_ref : (1, Cout_p) f32
    o_ref  : (Cout, TM*WO) bf16   NCHW-flattened output tile (lane-dense)
    p1_ref : (TM+4, WQ, 3*Cin) bf16   scratch: conv1 column-im2col patches
    p2_ref : (TM+2, WO, 3*Cmid_p) bf16 scratch: conv2 patches (holds `h`)
    """
    tm4 = p1_ref.shape[0]                 # TM + 4
    wq = p1_ref.shape[1]
    k1 = p1_ref.shape[2]                  # 3 * Cin
    tmh, wo, k2 = p2_ref.shape            # TM + 2, WO, 3 * Cmid_p
    tm = tmh - 2
    c2 = x2_ref.shape[-1]
    c1 = x1_ref.shape[-1]
    cin = c2 + c1
    cmid_p = k2 // 3
    cout = o_ref.shape[0]

    r0 = pl.multiple_of(pl.program_id(1) * tm, tm)   # first padded input row of the tile

    # ---- column-only im2col of the (virtually concatenated) conv1 input ----
    # Only 3 shifted copies per source (kx = 0,1,2); the ky shifts are free
    # row-offset slices of p1 below, so each conv is 3 deep matmuls instead of
    # 9 shallow K=Cin tap matmuls (MXU accumulates across taps).
    for kx in range(3):
        base = kx * cin
        rows = pl.ds(r0, tm4)
        p1_ref[:, :, base:base + c2] = x2_ref[rows, pl.ds(kx, wq), :]
        p1_ref[:, :, base + c2:base + cin] = x1_ref[rows, pl.ds(kx, wq), :]

    # ---- conv1 + folded BN + ReLU (K = 3*Cin, f32 accumulation) ------------
    acc1 = jnp.zeros((tmh * wq, cmid_p), jnp.float32)
    for ky in range(3):
        lhs = p1_ref[ky:ky + tmh, :, :].reshape(tmh * wq, k1)
        acc1 = acc1 + jnp.dot(lhs, w1_ref[ky], preferred_element_type=jnp.float32)
    h1 = jnp.maximum(acc1 + b1_ref[...], 0.0).reshape(tmh, wq, cmid_p)

    # Zero the halo ring in-kernel (no HBM mask input): the zeroed ring IS
    # conv2's SAME zero padding (also kills any rows beyond the real image).
    gr = r0 + lax.broadcasted_iota(jnp.int32, (tmh, wq, cmid_p), 0)  # padded row
    gc = lax.broadcasted_iota(jnp.int32, (tmh, wq, cmid_p), 1)       # padded col
    valid = (gr >= 1) & (gr <= h_img) & (gc >= 1) & (gc <= w_img)
    h1 = jnp.where(valid, h1, 0.0).astype(p2_ref.dtype)

    # ---- column-only im2col of h, written straight into conv2's patches ----
    # (`h` itself never exists as a separate buffer, let alone in HBM.)
    for kx in range(3):
        p2_ref[:, :, kx * cmid_p:(kx + 1) * cmid_p] = h1[:, kx:kx + wo, :]

    # ---- conv2 + folded BN + ReLU (K = 3*Cmid_p) ----------------------------
    acc2 = jnp.zeros((tm * wo, w2_ref.shape[-1]), jnp.float32)
    for ky in range(3):
        lhs = p2_ref[ky:ky + tm, :, :].reshape(tm * wo, k2)
        acc2 = acc2 + jnp.dot(lhs, w2_ref[ky], preferred_element_type=jnp.float32)
    y = jnp.maximum(acc2 + b2_ref[...], 0.0)

    # Lane-dense bf16 store, already NCHW-flattened: (TM*WO, Cout_p) -> (Cout, TM*WO).
    o_ref[...] = jnp.transpose(y)[:cout, :].astype(o_ref.dtype)


# ------------------------------ host-side prep ------------------------------
def _prep_conv_weight(w_hwio, bn_scale, cin_pad, cout_pad):
    """Fold BN scale, zero-pad channels, reshape to (3, 3*Ci, Co) bf16 where
    the K rows are ordered kx-major / channel-minor (matches the im2col)."""
    kh, kw, cin, cout = w_hwio.shape
    w = w_hwio * bn_scale[None, None, None, :]
    w = jnp.pad(w, ((0, 0), (0, 0), (0, cin_pad - cin), (0, cout_pad - cout)))
    return w.reshape(kh, kw * cin_pad, cout_pad).astype(jnp.bfloat16)


def up_double_conv_pallas(x2_nhwc, x1_nhwc, w1, s1, b1, w2, s2, b2):
    """Fused pad + concat([x2, x1], ch) + DoubleConv; returns NCHW bf16."""
    n, hh, ww, c2 = x2_nhwc.shape
    c1 = x1_nhwc.shape[-1]
    cin = c2 + c1
    cmid, cout = w1.shape[-1], w2.shape[-1]
    cmid_p = _round_up(cmid, 8)
    cout_p = _round_up(cout, 8)

    wo = _round_up(ww, 8)                  # output cols computed per tile
    wq = _round_up(wo + 2, 8)              # conv1 halo-grid cols
    tm = _pick_row_tile(hh, wo)            # output rows per grid step
    t_tiles = pl.cdiv(hh, tm)
    hc = t_tiles * tm                      # covered (row-padded) output rows

    # 2-pixel zero border (conv1 SAME pad + h halo); rows padded to hc, cols
    # padded so every shifted window stays in-bounds.  bf16 halves HBM traffic
    # and feeds the MXU natively.
    def _pad(x):
        return jnp.pad(x, ((0, 0),
                           (2, hc + 2 - hh),
                           (2, wq - ww),
                           (0, 0))).astype(jnp.bfloat16)

    x2p = _pad(x2_nhwc)
    x1p = _pad(x1_nhwc)

    w1p = _prep_conv_weight(w1, s1, cin, cmid_p)      # (3, 3*cin,   cmid_p)
    w2p = _prep_conv_weight(w2, s2, cmid_p, cout_p)   # (3, 3*cmid_p, cout_p)
    b1p = jnp.pad(b1, (0, cmid_p - cmid)).reshape(1, cmid_p).astype(jnp.float32)
    b2p = jnp.pad(b2, (0, cout_p - cout)).reshape(1, cout_p).astype(jnp.float32)

    kernel = functools.partial(_up_double_conv_kernel, h_img=hh, w_img=ww)

    flops = 2 * n * t_tiles * 3 * ((tm + 2) * wq * 3 * cin * cmid_p
                                   + tm * wo * 3 * cmid_p * cout_p)
    bytes_accessed = ((x2p.size + x1p.size) * 2 + (w1p.size + w2p.size) * 2
                      + (b1p.size + b2p.size) * 4 + n * cout * hc * wo * 2)

    out = pl.pallas_call(
        kernel,
        out_shape=jax.ShapeDtypeStruct((n, cout, hc * wo), jnp.bfloat16),
        grid=(n, t_tiles),
        in_specs=[
            # whole padded images: index_map ignores t -> resident across row tiles
            pl.BlockSpec((None, hc + 4, wq + 2, c2), lambda i, t: (i, 0, 0, 0)),
            pl.BlockSpec((None, hc + 4, wq + 2, c1), lambda i, t: (i, 0, 0, 0)),
            pl.BlockSpec((3, 3 * cin, cmid_p), lambda i, t: (0, 0, 0)),
            pl.BlockSpec((1, cmid_p), lambda i, t: (0, 0)),
            pl.BlockSpec((3, 3 * cmid_p, cout_p), lambda i, t: (0, 0, 0)),
            pl.BlockSpec((1, cout_p), lambda i, t: (0, 0)),
        ],
        out_specs=pl.BlockSpec((None, cout, tm * wo), lambda i, t: (i, 0, t)),
        scratch_shapes=[
            pltpu.VMEM((tm + 4, wq, 3 * cin), jnp.bfloat16),      # conv1 patches
            pltpu.VMEM((tm + 2, wo, 3 * cmid_p), jnp.bfloat16),   # conv2 patches
        ],
        compiler_params=pltpu.CompilerParams(
            dimension_semantics=("parallel", "parallel"),
            vmem_limit_bytes=_gen_aware_vmem_limit()),
        cost_estimate=pl.CostEstimate(
            flops=int(flops), transcendentals=0, bytes_accessed=int(bytes_accessed)),
    )(x2p, x1p, w1p, b1p, w2p, b2p)

    # Kernel output is already NCHW (flattened spatial); drop the pad rows/cols.
    return out.reshape(n, cout, hc, wo)[:, :, :hh, :ww]


# --------------------- gather-free bilinear 2x upsample ----------------------
def _interp_matrix(out_size, in_size):
    """Dense 1-D linear-interp matrix, align_corners=True (built at trace time)."""
    m = np.zeros((out_size, in_size), np.float32)
    if in_size == 1 or out_size == 1:
        m[:, 0] = 1.0
    else:
        scale = (in_size - 1) / (out_size - 1)
        for o in range(out_size):
            s = o * scale
            lo = min(int(np.floor(s)), in_size - 1)
            hi = min(lo + 1, in_size - 1)
            w = s - lo
            m[o, lo] += 1.0 - w
            m[o, hi] += w
    return jnp.asarray(m)


def upsample_bilinear_2x_align_corners(x_nhwc):
    """nn.Upsample(scale_factor=2, mode='bilinear', align_corners=True), NHWC."""
    n, h, w, c = x_nhwc.shape
    my = _interp_matrix(2 * h, h)
    mx = _interp_matrix(2 * w, w)
    x = jnp.einsum("oh,nhwc->nowc", my, x_nhwc)
    x = jnp.einsum("pw,nhwc->nhpc", mx, x)
    return x


def fold_bn(gamma, beta, mean, var, eps=1e-5):
    scale = gamma / jnp.sqrt(var + eps)
    bias = beta - mean * scale
    return scale, bias


def up_forward(x1_nchw, x2_nchw, params):
    """Forward pass of `Up` (bilinear=True). Inputs/outputs NCHW."""
    x1 = jnp.transpose(x1_nchw, (0, 2, 3, 1))   # -> NHWC
    x2 = jnp.transpose(x2_nchw, (0, 2, 3, 1))

    # TODO(synk): fold the 2x bilinear upsample into the Pallas kernel so the
    # upsampled x1 never round-trips HBM (two tiny interp matmuls per tile).
    x1 = upsample_bilinear_2x_align_corners(x1)
    diff_y = x2.shape[1] - x1.shape[1]
    diff_x = x2.shape[2] - x1.shape[2]
    x1 = jnp.pad(x1, ((0, 0),
                      (diff_y // 2, diff_y - diff_y // 2),
                      (diff_x // 2, diff_x - diff_x // 2),
                      (0, 0)))

    # torch.cat([x2, x1], dim=1) is fused into the kernel: the two tensors are
    # passed separately and conv1's im2col K axis covers both channel groups.
    o = up_double_conv_pallas(x2, x1,
                              params["w1"], params["s1"], params["b1"],
                              params["w2"], params["s2"], params["b2"])
    return o.astype(jnp.float32)                 # kernel HBM writeback is bf16


# ----------------------- pure-JAX reference (for check) ----------------------
def _ref_upsample_gather(x):
    n, h, w, c = x.shape
    ho, wo = 2 * h, 2 * w

    def coords(o, i):
        if i == 1 or o == 1:
            return jnp.zeros((o,), jnp.float32)
        return jnp.arange(o, dtype=jnp.float32) * (i - 1) / (o - 1)

    sy, sx = coords(ho, h), coords(wo, w)
    y0 = jnp.floor(sy).astype(jnp.int32); y1 = jnp.minimum(y0 + 1, h - 1)
    x0 = jnp.floor(sx).astype(jnp.int32); x1 = jnp.minimum(x0 + 1, w - 1)
    wy = sy - y0.astype(jnp.float32); wx = sx - x0.astype(jnp.float32)
    a = x[:, y0] * (1 - wy)[None, :, None, None] + x[:, y1] * wy[None, :, None, None]
    return (a[:, :, x0] * (1 - wx)[None, None, :, None]
            + a[:, :, x1] * wx[None, None, :, None])


def _ref_conv_bn_relu(x, w, scale, bias):
    we = (w * scale[None, None, None, :]).astype(jnp.bfloat16)
    y = lax.conv_general_dilated(
        x.astype(jnp.bfloat16), we, window_strides=(1, 1), padding="SAME",
        dimension_numbers=("NHWC", "HWIO", "NHWC"),
        preferred_element_type=jnp.float32)
    return jnp.maximum(y + bias, 0.0)


def _ref_up_forward(x1_nchw, x2_nchw, params):
    x1 = jnp.transpose(x1_nchw, (0, 2, 3, 1))
    x2 = jnp.transpose(x2_nchw, (0, 2, 3, 1))
    x1 = _ref_upsample_gather(x1)
    diff_y = x2.shape[1] - x1.shape[1]
    diff_x = x2.shape[2] - x1.shape[2]
    x1 = jnp.pad(x1, ((0, 0),
                      (diff_y // 2, diff_y - diff_y // 2),
                      (diff_x // 2, diff_x - diff_x // 2),
                      (0, 0)))
    x = jnp.concatenate([x2, x1], axis=-1)
    h = _ref_conv_bn_relu(x, params["w1"], params["s1"], params["b1"])
    o = _ref_conv_bn_relu(h, params["w2"], params["s2"], params["b2"])
    return jnp.transpose(o, (0, 3, 1, 2))


if __name__ == "__main__":
    # Up(in_channels=8, out_channels=4, bilinear=True)
    in_channels, out_channels = 8, 4
    mid_channels = in_channels // 2            # DoubleConv mid
    batch = 2
    x1_shape = (batch, in_channels // 2, 8, 8)     # NCHW (low-res, upsampled)
    x2_shape = (batch, in_channels // 2, 16, 16)   # NCHW (skip connection)

    key = jax.random.PRNGKey(0)
    k = jax.random.split(key, 12)
    x1 = jax.random.normal(k[0], x1_shape, dtype=jnp.float32)
    x2 = jax.random.normal(k[1], x2_shape, dtype=jnp.float32)

    # conv1: in_channels -> mid, conv2: mid -> out (HWIO weights)
    w1 = 0.1 * jax.random.normal(k[2], (3, 3, in_channels, mid_channels), jnp.float32)
    w2 = 0.1 * jax.random.normal(k[3], (3, 3, mid_channels, out_channels), jnp.float32)
    # BatchNorm (eval mode) parameters
    g1 = 1.0 + 0.1 * jax.random.normal(k[4], (mid_channels,), jnp.float32)
    be1 = 0.1 * jax.random.normal(k[5], (mid_channels,), jnp.float32)
    m1 = 0.1 * jax.random.normal(k[6], (mid_channels,), jnp.float32)
    v1 = 0.5 + 0.1 * jnp.abs(jax.random.normal(k[7], (mid_channels,), jnp.float32))
    g2 = 1.0 + 0.1 * jax.random.normal(k[8], (out_channels,), jnp.float32)
    be2 = 0.1 * jax.random.normal(k[9], (out_channels,), jnp.float32)
    m2 = 0.1 * jax.random.normal(k[10], (out_channels,), jnp.float32)
    v2 = 0.5 + 0.1 * jnp.abs(jax.random.normal(k[11], (out_channels,), jnp.float32))

    s1, b1 = fold_bn(g1, be1, m1, v1)
    s2, b2 = fold_bn(g2, be2, m2, v2)
    params = {"w1": w1, "s1": s1, "b1": b1, "w2": w2, "s2": s2, "b2": b2}

    out = jax.block_until_ready(jax.jit(up_forward)(x1, x2, params))
    assert out.shape == (batch, out_channels, 16, 16), out.shape

    ref = jax.block_until_ready(_ref_up_forward(x1, x2, params))
    np.testing.assert_allclose(np.asarray(out), np.asarray(ref), rtol=1e-2, atol=1e-2)

    print("KERNEL_OK")
</pallas_src>

<mosaic_0001>
module attributes {stable_mosaic.version = 11 : i64} {
  func.func @_up_double_conv_kernel(%arg0: i32, %arg1: i32, %arg2: memref<1x20x26x4xbf16, #tpu.memory_space<vmem>>, %arg3: memref<1x20x26x4xbf16, #tpu.memory_space<vmem>>, %arg4: memref<3x24x8xbf16, #tpu.memory_space<vmem>>, %arg5: memref<1x8xf32, #tpu.memory_space<vmem>>, %arg6: memref<3x24x8xbf16, #tpu.memory_space<vmem>>, %arg7: memref<1x8xf32, #tpu.memory_space<vmem>>, %arg8: memref<1x4x256xbf16, #tpu.memory_space<vmem>>, %arg9: memref<20x24x24xbf16, #tpu.memory_space<vmem>>, %arg10: memref<18x16x24xbf16, #tpu.memory_space<vmem>>) attributes {dimension_semantics = [#tpu.dimension_semantics<parallel>, #tpu.dimension_semantics<parallel>], iteration_bounds = array<i64: 2, 1>, scalar_prefetch = 0 : i64, scratch_operands = 2 : i64, tpu.core_type = #tpu.core_type<tc>, window_params = [{transform_indices = @transform_0, window_bounds = array<i64: 1, 20, 26, 4>}, {transform_indices = @transform_1, window_bounds = array<i64: 1, 20, 26, 4>}, {pipeline_mode = #tpu.pipeline_mode<synchronous>, transform_indices = @transform_2, window_bounds = array<i64: 3, 24, 8>}, {pipeline_mode = #tpu.pipeline_mode<synchronous>, transform_indices = @transform_3, window_bounds = array<i64: 1, 8>}, {pipeline_mode = #tpu.pipeline_mode<synchronous>, transform_indices = @transform_4, window_bounds = array<i64: 3, 24, 8>}, {pipeline_mode = #tpu.pipeline_mode<synchronous>, transform_indices = @transform_5, window_bounds = array<i64: 1, 8>}, {transform_indices = @transform_6, window_bounds = array<i64: 1, 4, 256>}]} {
    %c16_i32 = arith.constant 16 : i32
    %0 = arith.muli %arg1, %c16_i32 : i32
    %1 = tpu.assume_multiple %0, 16 : i32
    %c0 = arith.constant 0 : index
    %2 = arith.index_cast %1 : i32 to index
    %c0_0 = arith.constant 0 : index
    %c0_1 = arith.constant 0 : index
    %3 = vector.load %arg2[%c0, %2, %c0_0, %c0_1] : memref<1x20x26x4xbf16, #tpu.memory_space<vmem>>, vector<1x20x24x4xbf16>
    %4 = vector.shape_cast %3 : vector<1x20x24x4xbf16> to vector<20x24x4xbf16>
    %c0_2 = arith.constant 0 : index
    %c0_3 = arith.constant 0 : index
    %c0_4 = arith.constant 0 : index
    %5 = vector.load %arg9[%c0_2, %c0_3, %c0_4] : memref<20x24x24xbf16, #tpu.memory_space<vmem>>, vector<20x24x4xbf16>
    tpu.vector_store %arg9[%c0_2, %c0_3, %c0_4], %4 {strides = array<i32>} : memref<20x24x24xbf16, #tpu.memory_space<vmem>>, vector<20x24x4xbf16>,
    %c0_5 = arith.constant 0 : index
    %6 = arith.index_cast %1 : i32 to index
    %c0_6 = arith.constant 0 : index
    %c0_7 = arith.constant 0 : index
    %7 = vector.load %arg3[%c0_5, %6, %c0_6, %c0_7] : memref<1x20x26x4xbf16, #tpu.memory_space<vmem>>, vector<1x20x24x4xbf16>
    %8 = vector.shape_cast %7 : vector<1x20x24x4xbf16> to vector<20x24x4xbf16>
    %c0_8 = arith.constant 0 : index
    %c0_9 = arith.constant 0 : index
    %c4 = arith.constant 4 : index
    %9 = vector.load %arg9[%c0_8, %c0_9, %c4] : memref<20x24x24xbf16, #tpu.memory_space<vmem>>, vector<20x24x4xbf16>
    tpu.vector_store %arg9[%c0_8, %c0_9, %c4], %8 {strides = array<i32>} : memref<20x24x24xbf16, #tpu.memory_space<vmem>>, vector<20x24x4xbf16>,
    %c0_10 = arith.constant 0 : index
    %10 = arith.index_cast %1 : i32 to index
    %c1 = arith.constant 1 : index
    %c0_11 = arith.constant 0 : index
    %11 = vector.load %arg2[%c0_10, %10, %c1, %c0_11] : memref<1x20x26x4xbf16, #tpu.memory_space<vmem>>, vector<1x20x24x4xbf16>
    %12 = vector.shape_cast %11 : vector<1x20x24x4xbf16> to vector<20x24x4xbf16>
    %c0_12 = arith.constant 0 : index
    %c0_13 = arith.constant 0 : index
    %c8 = arith.constant 8 : index
    %13 = vector.load %arg9[%c0_12, %c0_13, %c8] : memref<20x24x24xbf16, #tpu.memory_space<vmem>>, vector<20x24x4xbf16>
    tpu.vector_store %arg9[%c0_12, %c0_13, %c8], %12 {strides = array<i32>} : memref<20x24x24xbf16, #tpu.memory_space<vmem>>, vector<20x24x4xbf16>,
    %c0_14 = arith.constant 0 : index
    %14 = arith.index_cast %1 : i32 to index
    %c1_15 = arith.constant 1 : index
    %c0_16 = arith.constant 0 : index
    %15 = vector.load %arg3[%c0_14, %14, %c1_15, %c0_16] : memref<1x20x26x4xbf16, #tpu.memory_space<vmem>>, vector<1x20x24x4xbf16>
    %16 = vector.shape_cast %15 : vector<1x20x24x4xbf16> to vector<20x24x4xbf16>
    %c0_17 = arith.constant 0 : index
    %c0_18 = arith.constant 0 : index
    %c12 = arith.constant 12 : index
    %17 = vector.load %arg9[%c0_17, %c0_18, %c12] : memref<20x24x24xbf16, #tpu.memory_space<vmem>>, vector<20x24x4xbf16>
    tpu.vector_store %arg9[%c0_17, %c0_18, %c12], %16 {strides = array<i32>} : memref<20x24x24xbf16, #tpu.memory_space<vmem>>, vector<20x24x4xbf16>,
    %c0_19 = arith.constant 0 : index
    %18 = arith.index_cast %1 : i32 to index
    %c2 = arith.constant 2 : index
    %c0_20 = arith.constant 0 : index
    %19 = vector.load %arg2[%c0_19, %18, %c2, %c0_20] : memref<1x20x26x4xbf16, #tpu.memory_space<vmem>>, vector<1x20x24x4xbf16>
    %20 = vector.shape_cast %19 : vector<1x20x24x4xbf16> to vector<20x24x4xbf16>
    %c0_21 = arith.constant 0 : index
    %c0_22 = arith.constant 0 : index
    %c16 = arith.constant 16 : index
    %21 = vector.load %arg9[%c0_21, %c0_22, %c16] : memref<20x24x24xbf16, #tpu.memory_space<vmem>>, vector<20x24x4xbf16>
    tpu.vector_store %arg9[%c0_21, %c0_22, %c16], %20 {strides = array<i32>} : memref<20x24x24xbf16, #tpu.memory_space<vmem>>, vector<20x24x4xbf16>,
    %c0_23 = arith.constant 0 : index
    %22 = arith.index_cast %1 : i32 to index
    %c2_24 = arith.constant 2 : index
    %c0_25 = arith.constant 0 : index
    %23 = vector.load %arg3[%c0_23, %22, %c2_24, %c0_25] : memref<1x20x26x4xbf16, #tpu.memory_space<vmem>>, vector<1x20x24x4xbf16>
    %24 = vector.shape_cast %23 : vector<1x20x24x4xbf16> to vector<20x24x4xbf16>
    %c0_26 = arith.constant 0 : index
    %c0_27 = arith.constant 0 : index
    %c20 = arith.constant 20 : index
    %25 = vector.load %arg9[%c0_26, %c0_27, %c20] : memref<20x24x24xbf16, #tpu.memory_space<vmem>>, vector<20x24x4xbf16>
    tpu.vector_store %arg9[%c0_26, %c0_27, %c20], %24 {strides = array<i32>} : memref<20x24x24xbf16, #tpu.memory_space<vmem>>, vector<20x24x4xbf16>,
    %cst = arith.constant 0.000000e+00 : f32
    %26 = vector.broadcast %cst : f32 to vector<432x8xf32>
    %c0_28 = arith.constant 0 : index
    %c0_29 = arith.constant 0 : index
    %c0_30 = arith.constant 0 : index
    %27 = vector.load %arg9[%c0_28, %c0_29, %c0_30] : memref<20x24x24xbf16, #tpu.memory_space<vmem>>, vector<18x24x24xbf16>
    %28 = vector.shape_cast %27 : vector<18x24x24xbf16> to vector<432x24xbf16>
    %c0_31 = arith.constant 0 : index
    %c0_32 = arith.constant 0 : index
    %c0_33 = arith.constant 0 : index
    %29 = vector.load %arg4[%c0_31, %c0_32, %c0_33] : memref<3x24x8xbf16, #tpu.memory_space<vmem>>, vector<1x24x8xbf16>
    %30 = vector.shape_cast %29 : vector<1x24x8xbf16> to vector<24x8xbf16>
    %cst_34 = arith.constant dense<0.000000e+00> : vector<432x8xf32>
    %31 = tpu.matmul %28, %30, %cst_34 {dimension_numbers = #tpu.dot_dimension_numbers<[1], [0], [0], [1], [0, 0, 1, 1], [], []>} : vector<432x24xbf16>, vector<24x8xbf16>, vector<432x8xf32> -> vector<432x8xf32>
    %32 = arith.addf %26, %31 : vector<432x8xf32>
    %c1_35 = arith.constant 1 : index
    %c0_36 = arith.constant 0 : index
    %c0_37 = arith.constant 0 : index
    %33 = vector.load %arg9[%c1_35, %c0_36, %c0_37] : memref<20x24x24xbf16, #tpu.memory_space<vmem>>, vector<18x24x24xbf16>
    %34 = vector.shape_cast %33 : vector<18x24x24xbf16> to vector<432x24xbf16>
    %c1_38 = arith.constant 1 : index
    %c0_39 = arith.constant 0 : index
    %c0_40 = arith.constant 0 : index
    %35 = vector.load %arg4[%c1_38, %c0_39, %c0_40] : memref<3x24x8xbf16, #tpu.memory_space<vmem>>, vector<1x24x8xbf16>
    %36 = vector.shape_cast %35 : vector<1x24x8xbf16> to vector<24x8xbf16>
    %cst_41 = arith.constant dense<0.000000e+00> : vector<432x8xf32>
    %37 = tpu.matmul %34, %36, %cst_41 {dimension_numbers = #tpu.dot_dimension_numbers<[1], [0], [0], [1], [0, 0, 1, 1], [], []>} : vector<432x24xbf16>, vector<24x8xbf16>, vector<432x8xf32> -> vector<432x8xf32>
    %38 = arith.addf %32, %37 : vector<432x8xf32>
    %c2_42 = arith.constant 2 : index
    %c0_43 = arith.constant 0 : index
    %c0_44 = arith.constant 0 : index
    %39 = vector.load %arg9[%c2_42, %c0_43, %c0_44] : memref<20x24x24xbf16, #tpu.memory_space<vmem>>, vector<18x24x24xbf16>
    %40 = vector.shape_cast %39 : vector<18x24x24xbf16> to vector<432x24xbf16>
    %c2_45 = arith.constant 2 : index
    %c0_46 = arith.constant 0 : index
    %c0_47 = arith.constant 0 : index
    %41 = vector.load %arg4[%c2_45, %c0_46, %c0_47] : memref<3x24x8xbf16, #tpu.memory_space<vmem>>, vector<1x24x8xbf16>
    %42 = vector.shape_cast %41 : vector<1x24x8xbf16> to vector<24x8xbf16>
    %cst_48 = arith.constant dense<0.000000e+00> : vector<432x8xf32>
    %43 = tpu.matmul %40, %42, %cst_48 {dimension_numbers = #tpu.dot_dimension_numbers<[1], [0], [0], [1], [0, 0, 1, 1], [], []>} : vector<432x24xbf16>, vector<24x8xbf16>, vector<432x8xf32> -> vector<432x8xf32>
    %44 = arith.addf %38, %43 : vector<432x8xf32>
    %c0_49 = arith.constant 0 : index
    %c0_50 = arith.constant 0 : index
    %45 = vector.load %arg5[%c0_49, %c0_50] : memref<1x8xf32, #tpu.memory_space<vmem>>, vector<1x8xf32>
    %46 = vector.broadcast %45 : vector<1x8xf32> to vector<432x8xf32>
    %47 = arith.addf %44, %46 : vector<432x8xf32>
    %cst_51 = arith.constant 0.000000e+00 : f32
    %48 = vector.broadcast %cst_51 : f32 to vector<432x8xf32>
    %49 = arith.maximumf %47, %48 : vector<432x8xf32>
    %50 = vector.shape_cast %49 : vector<432x8xf32> to vector<18x24x8xf32>
    %51 = tpu.iota {dimensions = array<i32: 0>} : vector<18x24x8xi32>
    %52 = vector.broadcast %1 : i32 to vector<18x24x8xi32>
    %53 = arith.addi %52, %51 : vector<18x24x8xi32>
    %54 = tpu.iota {dimensions = array<i32: 1>} : vector<18x24x8xi32>
    %c1_i32 = arith.constant 1 : i32
    %55 = vector.broadcast %c1_i32 : i32 to vector<18x24x8xi32>
    %56 = arith.cmpi sge, %53, %55 : vector<18x24x8xi32>
    %c16_i32_52 = arith.constant 16 : i32
    %57 = vector.broadcast %c16_i32_52 : i32 to vector<18x24x8xi32>
    %58 = arith.cmpi sle, %53, %57 : vector<18x24x8xi32>
    %59 = arith.andi %56, %58 : vector<18x24x8xi1>
    %c1_i32_53 = arith.constant 1 : i32
    %60 = vector.broadcast %c1_i32_53 : i32 to vector<18x24x8xi32>
    %61 = arith.cmpi sge, %54, %60 : vector<18x24x8xi32>
    %62 = arith.andi %59, %61 : vector<18x24x8xi1>
    %c16_i32_54 = arith.constant 16 : i32
    %63 = vector.broadcast %c16_i32_54 : i32 to vector<18x24x8xi32>
    %64 = arith.cmpi sle, %54, %63 : vector<18x24x8xi32>
    %65 = arith.andi %62, %64 : vector<18x24x8xi1>
    %cst_55 = arith.constant 0.000000e+00 : f32
    %66 = vector.broadcast %cst_55 : f32 to vector<18x24x8xf32>
    %67 = arith.select %65, %50, %66 : vector<18x24x8xi1>, vector<18x24x8xf32>
    %68 = arith.truncf %67 : vector<18x24x8xf32> to vector<18x24x8xbf16>
    %69 = vector.extract_strided_slice %68 {offsets = [0, 0, 0], sizes = [18, 16, 8], strides = [1, 1, 1]} : vector<18x24x8xbf16> to vector<18x16x8xbf16>
    %c0_56 = arith.constant 0 : index
    %c0_57 = arith.constant 0 : index
    %c0_58 = arith.constant 0 : index
    %70 = vector.load %arg10[%c0_56, %c0_57, %c0_58] : memref<18x16x24xbf16, #tpu.memory_space<vmem>>, vector<18x16x8xbf16>
    tpu.vector_store %arg10[%c0_56, %c0_57, %c0_58], %69 {strides = array<i32>} : memref<18x16x24xbf16, #tpu.memory_space<vmem>>, vector<18x16x8xbf16>,
    %71 = vector.extract_strided_slice %68 {offsets = [0, 1, 0], sizes = [18, 16, 8], strides = [1, 1, 1]} : vector<18x24x8xbf16> to vector<18x16x8xbf16>
    %c0_59 = arith.constant 0 : index
    %c0_60 = arith.constant 0 : index
    %c8_61 = arith.constant 8 : index
    %72 = vector.load %arg10[%c0_59, %c0_60, %c8_61] : memref<18x16x24xbf16, #tpu.memory_space<vmem>>, vector<18x16x8xbf16>
    tpu.vector_store %arg10[%c0_59, %c0_60, %c8_61], %71 {strides = array<i32>} : memref<18x16x24xbf16, #tpu.memory_space<vmem>>, vector<18x16x8xbf16>,
    %73 = vector.extract_strided_slice %68 {offsets = [0, 2, 0], sizes = [18, 16, 8], strides = [1, 1, 1]} : vector<18x24x8xbf16> to vector<18x16x8xbf16>
    %c0_62 = arith.constant 0 : index
    %c0_63 = arith.constant 0 : index
    %c16_64 = arith.constant 16 : index
    %74 = vector.load %arg10[%c0_62, %c0_63, %c16_64] : memref<18x16x24xbf16, #tpu.memory_space<vmem>>, vector<18x16x8xbf16>
    tpu.vector_store %arg10[%c0_62, %c0_63, %c16_64], %73 {strides = array<i32>} : memref<18x16x24xbf16, #tpu.memory_space<vmem>>, vector<18x16x8xbf16>,
    %cst_65 = arith.constant 0.000000e+00 : f32
    %75 = vector.broadcast %cst_65 : f32 to vector<256x8xf32>
    %c0_66 = arith.constant 0 : index
    %c0_67 = arith.constant 0 : index
    %c0_68 = arith.constant 0 : index
    %76 = vector.load %arg10[%c0_66, %c0_67, %c0_68] : memref<18x16x24xbf16, #tpu.memory_space<vmem>>, vector<16x16x24xbf16>
    %77 = vector.shape_cast %76 : vector<16x16x24xbf16> to vector<256x24xbf16>
    %c0_69 = arith.constant 0 : index
    %c0_70 = arith.constant 0 : index
    %c0_71 = arith.constant 0 : index
    %78 = vector.load %arg6[%c0_69, %c0_70, %c0_71] : memref<3x24x8xbf16, #tpu.memory_space<vmem>>, vector<1x24x8xbf16>
    %79 = vector.shape_cast %78 : vector<1x24x8xbf16> to vector<24x8xbf16>
    %cst_72 = arith.constant dense<0.000000e+00> : vector<256x8xf32>
    %80 = tpu.matmul %77, %79, %cst_72 {dimension_numbers = #tpu.dot_dimension_numbers<[1], [0], [0], [1], [0, 0, 1, 1], [], []>} : vector<256x24xbf16>, vector<24x8xbf16>, vector<256x8xf32> -> vector<256x8xf32>
    %81 = arith.addf %75, %80 : vector<256x8xf32>
    %c1_73 = arith.constant 1 : index
    %c0_74 = arith.constant 0 : index
    %c0_75 = arith.constant 0 : index
    %82 = vector.load %arg10[%c1_73, %c0_74, %c0_75] : memref<18x16x24xbf16, #tpu.memory_space<vmem>>, vector<16x16x24xbf16>
    %83 = vector.shape_cast %82 : vector<16x16x24xbf16> to vector<256x24xbf16>
    %c1_76 = arith.constant 1 : index
    %c0_77 = arith.constant 0 : index
    %c0_78 = arith.constant 0 : index
    %84 = vector.load %arg6[%c1_76, %c0_77, %c0_78] : memref<3x24x8xbf16, #tpu.memory_space<vmem>>, vector<1x24x8xbf16>
    %85 = vector.shape_cast %84 : vector<1x24x8xbf16> to vector<24x8xbf16>
    %cst_79 = arith.constant dense<0.000000e+00> : vector<256x8xf32>
    %86 = tpu.matmul %83, %85, %cst_79 {dimension_numbers = #tpu.dot_dimension_numbers<[1], [0], [0], [1], [0, 0, 1, 1], [], []>} : vector<256x24xbf16>, vector<24x8xbf16>, vector<256x8xf32> -> vector<256x8xf32>
    %87 = arith.addf %81, %86 : vector<256x8xf32>
    %c2_80 = arith.constant 2 : index
    %c0_81 = arith.constant 0 : index
    %c0_82 = arith.constant 0 : index
    %88 = vector.load %arg10[%c2_80, %c0_81, %c0_82] : memref<18x16x24xbf16, #tpu.memory_space<vmem>>, vector<16x16x24xbf16>
    %89 = vector.shape_cast %88 : vector<16x16x24xbf16> to vector<256x24xbf16>
    %c2_83 = arith.constant 2 : index
    %c0_84 = arith.constant 0 : index
    %c0_85 = arith.constant 0 : index
    %90 = vector.load %arg6[%c2_83, %c0_84, %c0_85] : memref<3x24x8xbf16, #tpu.memory_space<vmem>>, vector<1x24x8xbf16>
    %91 = vector.shape_cast %90 : vector<1x24x8xbf16> to vector<24x8xbf16>
    %cst_86 = arith.constant dense<0.000000e+00> : vector<256x8xf32>
    %92 = tpu.matmul %89, %91, %cst_86 {dimension_numbers = #tpu.dot_dimension_numbers<[1], [0], [0], [1], [0, 0, 1, 1], [], []>} : vector<256x24xbf16>, vector<24x8xbf16>, vector<256x8xf32> -> vector<256x8xf32>
    %93 = arith.addf %87, %92 : vector<256x8xf32>
    %c0_87 = arith.constant 0 : index
    %c0_88 = arith.constant 0 : index
    %94 = vector.load %arg7[%c0_87, %c0_88] : memref<1x8xf32, #tpu.memory_space<vmem>>, vector<1x8xf32>
    %95 = vector.broadcast %94 : vector<1x8xf32> to vector<256x8xf32>
    %96 = arith.addf %93, %95 : vector<256x8xf32>
    %cst_89 = arith.constant 0.000000e+00 : f32
    %97 = vector.broadcast %cst_89 : f32 to vector<256x8xf32>
    %98 = arith.maximumf %96, %97 : vector<256x8xf32>
    %99 = tpu.transpose %98, [1, 0] : vector<256x8xf32> -> vector<8x256xf32>
    %100 = vector.extract_strided_slice %99 {offsets = [0, 0], sizes = [4, 256], strides = [1, 1]} : vector<8x256xf32> to vector<4x256xf32>
    %101 = arith.truncf %100 : vector<4x256xf32> to vector<4x256xbf16>
    %c0_90 = arith.constant 0 : index
    %c0_91 = arith.constant 0 : index
    %c0_92 = arith.constant 0 : index
    %102 = vector.load %arg8[%c0_90, %c0_91, %c0_92] : memref<1x4x256xbf16, #tpu.memory_space<vmem>>, vector<1x4x256xbf16>
    %103 = vector.shape_cast %102 : vector<1x4x256xbf16> to vector<4x256xbf16>
    %104 = vector.shape_cast %101 : vector<4x256xbf16> to vector<1x4x256xbf16>
    tpu.vector_store %arg8[%c0_90, %c0_91, %c0_92], %104 {strides = array<i32>} : memref<1x4x256xbf16, #tpu.memory_space<vmem>>, vector<1x4x256xbf16>,
    return
  }
  func.func @transform_0(%arg0: i32, %arg1: i32) -> (i32, i32, i32, i32) {
    %c0_i32 = arith.constant 0 : i32
    %c0_i32_0 = arith.constant 0 : i32
    %c0_i32_1 = arith.constant 0 : i32
    %c0_i32_2 = arith.constant 0 : i32
    return %arg0, %c0_i32, %c0_i32_0, %c0_i32_1 : i32, i32, i32, i32
  }
  func.func @transform_1(%arg0: i32, %arg1: i32) -> (i32, i32, i32, i32) {
    %c0_i32 = arith.constant 0 : i32
    %c0_i32_0 = arith.constant 0 : i32
    %c0_i32_1 = arith.constant 0 : i32
    %c0_i32_2 = arith.constant 0 : i32
    return %arg0, %c0_i32, %c0_i32_0, %c0_i32_1 : i32, i32, i32, i32
  }
  func.func @transform_2(%arg0: i32, %arg1: i32) -> (i32, i32, i32) {
    %c0_i32 = arith.constant 0 : i32
    %c0_i32_0 = arith.constant 0 : i32
    %c0_i32_1 = arith.constant 0 : i32
    %c0_i32_2 = arith.constant 0 : i32
    return %c0_i32, %c0_i32_0, %c0_i32_1 : i32, i32, i32
  }
  func.func @transform_3(%arg0: i32, %arg1: i32) -> (i32, i32) {
    %c0_i32 = arith.constant 0 : i32
    %c0_i32_0 = arith.constant 0 : i32
    %c0_i32_1 = arith.constant 0 : i32
    return %c0_i32, %c0_i32_0 : i32, i32
  }
  func.func @transform_4(%arg0: i32, %arg1: i32) -> (i32, i32, i32) {
    %c0_i32 = arith.constant 0 : i32
    %c0_i32_0 = arith.constant 0 : i32
    %c0_i32_1 = arith.constant 0 : i32
    %c0_i32_2 = arith.constant 0 : i32
    return %c0_i32, %c0_i32_0, %c0_i32_1 : i32, i32, i32
  }
  func.func @transform_5(%arg0: i32, %arg1: i32) -> (i32, i32) {
    %c0_i32 = arith.constant 0 : i32
    %c0_i32_0 = arith.constant 0 : i32
    %c0_i32_1 = arith.constant 0 : i32
    return %c0_i32, %c0_i32_0 : i32, i32
  }
  func.func @transform_6(%arg0: i32, %arg1: i32) -> (i32, i32, i32) {
    %c0_i32 = arith.constant 0 : i32
    %c0_i32_0 = arith.constant 0 : i32
    return %arg0, %c0_i32, %arg1 : i32, i32, i32
  }
}

</mosaic_0001>

<bundles_post_ra>
// kernel: up_forward.1
= control target key start
LH: loop header
LB: loop body
LE: loop exit
PB: predicated region body
PF: predicated region fallthrough
CT: control target
= control target key end

     0   :  { %s12451_s0 = inlined_call_operand.hbm [shape: bf16[2,20,26,4], index: 0, kind: input, shape index: {}]   ;;  %s12452_s1 = inlined_call_operand.hbm [shape: bf16[2,20,26,4], index: 1, kind: input, shape index: {}]   ;;  %s12453_s2 = inlined_call_operand.hbm [shape: bf16[3,24,8], index: 2, kind: input, shape index: {}]   ;;  %s12454_s3 = inlined_call_operand.hbm [shape: f32[1,8], index: 3, kind: input, shape index: {}]   ;;  %s12455_s4 = inlined_call_operand.hbm [shape: bf16[3,24,8], index: 4, kind: input, shape index: {}]   ;;  %s12456_s5 = inlined_call_operand.hbm [shape: f32[1,8], index: 5, kind: input, shape index: {}]   ;;  %s12457_s6 = inlined_call_operand.hbm [shape: bf16[2,4,256], index: 6, kind: output, shape index: {}]  }
   0x1   :  { %12477 = sst [smem:[#allocation37_spill]] %s12451_s0 }
   0x2   :  { %12478 = sst [smem:[#allocation38_spill]] %s12453_s2 }
   0x3   :  { %12479 = sst [smem:[#allocation39_spill]] %s12454_s3 }
   0x4   :  { %11 = vsyncpa [#allocation5], 0 }
   0x5   :  { %13 = vsyncpa [#allocation5 + $0x1], 0 }
   0x6   :  { %14 = vsyncpa [#allocation8], 0 }
   0x7   :  { %16 = vsyncpa [#allocation8 + $0x1], 0 }
   0x8   :  { %17 = vsyncpa [#allocation11], 0 }
   0x9   :  { %18 = vsyncpa [#allocation14], 0 }
   0xa   :  { %19 = vsyncpa [#allocation6], 0 }
   0xb   :  { %21 = vsyncpa [#allocation6 + $0x1], 0  ;;  %s9202_s21 = smov 0   ;;  %s9204_s22 = smov 0  }
   0xc   :  { %s9206_s23 = smov 0   ;;  %s9208_s24 = smov 0  }
   0xd   :  { %s9210_s25 = smov 0   ;;  %s9212_s26 = smov 0  }
   0xe LB: > { %12480 = sst [smem:[#allocation22_spill]] %s9127_s21  ;;  %s9233_s27 = sadd.s32 4294967295, %s9147_s26   ;;  %s9147_s26 = sphi %s9212_s26, %s27_s26   ;;  %s9143_s25 = sphi %s9210_s25, %s12545_s25   ;;  %s9139_s24 = sphi %s9208_s24, %s12544_s24   ;;  %s9135_s23 = sphi %s9206_s23, %s12543_s23   ;;  %s9131_s22 = sphi %s9204_s22, %s12542_s22   ;;  %s9127_s21 = sphi %s9202_s21, %s12541_s21  }
   0xf   : > { %s7677_s28 = sadd.s32 4294967294, %s9147_s26   ;;  %p59_p0 = scmp.ne.s32.totalorder %s9131_s22, %s9127_s21 }
  0x10   : > { %p12458_p1 = scmp.eq.s32.totalorder %s9233_s27, 0  ;;  %p201_p3 = scmp.eq.s32.totalorder %s7677_s28, 1 }
  0x11   : > { %p7678_p5 = scmp.ge.s32.totalorder %s9147_s26, 1  ;;  %p208_p7 = scmp.lt.s32.totalorder %s9147_s26, 3 }
  0x12   : > { %p9242_p4 = por %p12458_p1, %p59_p0  ;;  %p9247_p6 = por %p201_p3, %p59_p0 }
  0x13   : > { %p9252_p8 = pnand %p7678_p5, %p208_p7  ;;  %s9149_s8 = smov [#allocation9]  }
  0x14   : > { %s12481_s29 = scalar_select %p9242_p4, 1, 0 }
  0x15   : > { %s12482_s30 = scalar_select %p9247_p6, 1, 0 }
  0x16   : > { %s12484_s7 = scalar_select %p9252_p8, 1, 0 }
  0x17   : > { %12483 = sst [smem:[#allocation23_spill]] %s12482_s30  ;;  %s220_s9 = sshll.u32 %s9149_s8, 4  ;;  %s9256_s9 = int_to_ptr.vmem [resolvable:$true] %s220_s9 }
  0x18   : > { %p8647_p9 = pneg %p9252_p8  ;;  %s9150_s11 = smov [#allocation10]  }
  0x19   : > { %s234_s12 = sshll.u32 %s9150_s11, 4  ;;  %s9151_s13 = smov [#allocation12]   ;;  %s9267_s12 = int_to_ptr.vmem [resolvable:$true] %s234_s12 }
  0x1a   : > { %p9263_p11 = pnand %p8647_p9, %p12458_p1  ;;  %s9269_s14 = sshll.u32 %s9151_s13, 4  ;;  %s245_s14 = int_to_ptr.vmem [resolvable:$true] %s9269_s14 }
  0x1b   : > { %s12486_s2 = sld [smem:[#allocation38_spill]] }
  0x1c   : > { %p9279_p13 = pneg %p9263_p11 }
  0x21   : > { %s8877_s17 = scalar_lea.hbm %s12486_s2, 576 }
  0x22   : > { %p8878_p12 = scmp.ne.s32.totalorder %s12486_s2, %s8877_s17  ;;  %p8884_p5 = scmp.lt.u32.totalorder %s8877_s17, %s12486_s2 }
  0x24   : > { %p8880_p0 = pnand %p9279_p13, %p8878_p12 }
  0x26   : > { %p8881_p3 = pneg %p8880_p0 }
  0x28   : > { %p8886_p7 = pnand %p8884_p5, %p8881_p3 }
  0x2a   : > { %8889 = shalt.err (!%p8886_p7)
}
  0x2b   : > { %s8890_s11 = scalar_lea.vmem %s9256_s9, 576  ;;  %p8898_p2 = scmp.lt.s32.totalorder %s9256_s9, %s9256_s9 }
  0x2c   : > { %p8891_p9 = scmp.ne.s32.totalorder %s9256_s9, %s8890_s11  ;;  %p8899_p6 = scmp.lt.s32.totalorder %s8890_s11, %s8890_s11 }
  0x2e   : > { %p8893_p10 = pnand %p8891_p9, %p9279_p13  ;;  %p8900_p12 = por %p8899_p6, %p8898_p2 }
  0x30   : > { %p8894_p1 = pneg %p8893_p10 }
  0x32   : > { %p8901_p0 = pnand %p8900_p12, %p8894_p1 }
  0x34   : > { %8904 = shalt.err (!%p8901_p0)
}
  0x35   : > { %s12463_s13 = smov 64   ;;  %s9153_s15 = smov 4  }
  0x36   : > { %8650 = dma.hbm_to_vmem [thread:$0]  (!%p9263_p11), %s12486_s2, 576, %s9256_s9, [#allocation8], %s12463_s13, %s12463_s13, %s9153_s15  }
  0x37   : > { %s12488_s3 = sld [smem:[#allocation39_spill]] }
  0x3d   : > { %s8905_s28 = scalar_lea.hbm %s12488_s3, 16 }
  0x3e   : > { %p8906_p1 = scmp.ne.s32.totalorder %s12488_s3, %s8905_s28  ;;  %p8912_p10 = scmp.lt.u32.totalorder %s8905_s28, %s12488_s3 }
  0x40   : > { %p8908_p2 = pnand %p8906_p1, %p9279_p13 }
  0x42   : > { %p8909_p6 = pneg %p8908_p2 }
  0x44   : > { %p8914_p3 = pnand %p8912_p10, %p8909_p6 }
  0x46   : > { %8917 = shalt.err (!%p8914_p3)
}
  0x47   : > { %s8918_s9 = scalar_lea.vmem %s9267_s12, 16  ;;  %s8925_s16 = scalar_lea.vmem %s9267_s12, 32 }
  0x48   : > { %p8919_p5 = scmp.ne.s32.totalorder %s9267_s12, %s8918_s9  ;;  %p8926_p12 = scmp.lt.s32.totalorder %s9267_s12, %s9267_s12 }
  0x49   : > { %p8927_p0 = scmp.lt.s32.totalorder %s8925_s16, %s8918_s9 }
  0x4a   : > { %p8921_p7 = pnand %p8919_p5, %p9279_p13 }
  0x4b   : > { %p8928_p1 = por %p8927_p0, %p8926_p12 }
  0x4c   : > { %p8922_p9 = pneg %p8921_p7 }
  0x4e   : > { %p8929_p2 = pnand %p8928_p1, %p8922_p9 }
  0x50   : > { %8932 = shalt.err (!%p8929_p2)
}
  0x51   : > { %8653 = dma.hbm_to_vmem [thread:$0]  (!%p9263_p11), %s12488_s3, 16, %s9267_s12, [#allocation11]  }
  0x52   : > { %s8933_s19 = scalar_lea.hbm %s12455_s4, 576 }
  0x53   : > { %p8934_p6 = scmp.ne.s32.totalorder %s12455_s4, %s8933_s19  ;;  %p8940_p5 = scmp.lt.u32.totalorder %s8933_s19, %s12455_s4 }
  0x55   : > { %p8936_p10 = pnand %p8934_p6, %p9279_p13 }
  0x57   : > { %p8937_p3 = pneg %p8936_p10 }
  0x59   : > { %p8942_p7 = pnand %p8940_p5, %p8937_p3 }
  0x5b   : > { %8945 = shalt.err (!%p8942_p7)
}
  0x5c   : > { %s8946_s16 = scalar_lea.vmem %s245_s14, 576  ;;  %p8954_p1 = scmp.lt.s32.totalorder %s245_s14, %s245_s14 }
  0x5d   : > { %p8947_p9 = scmp.ne.s32.totalorder %s245_s14, %s8946_s16  ;;  %p8955_p2 = scmp.lt.s32.totalorder %s8946_s16, %s8946_s16 }
  0x5f   : > { %p8949_p12 = pnand %p8947_p9, %p9279_p13  ;;  %p8956_p4 = por %p8955_p2, %p8954_p1 }
  0x61   : > { %p8950_p0 = pneg %p8949_p12 }
  0x63   : > { %p8957_p8 = pnand %p8956_p4, %p8950_p0 }
  0x65   : > { %8960 = shalt.err (!%p8957_p8)
}
  0x66   : > { %8656 = dma.hbm_to_vmem [thread:$0]  (!%p9263_p11), %s12455_s4, 576, %s245_s14, [#allocation11], %s12463_s13, %s12463_s13, %s9153_s15  }
  0x67   : > { %s9154_s30 = smov [#allocation13]   ;;  %s8961_s28 = scalar_lea.hbm %s12456_s5, 16 }
  0x68   : > { %s258_s17 = sshll.u32 %s9154_s30, 4  ;;  %p8962_p4 = scmp.ne.s32.totalorder %s12456_s5, %s8961_s28  ;;  %s259_s17 = int_to_ptr.vmem [resolvable:$true] %s258_s17 }
  0x69   : > { %p8968_p10 = scmp.lt.u32.totalorder %s8961_s28, %s12456_s5 }
  0x6a   : > { %p8964_p8 = pnand %p8962_p4, %p9279_p13 }
  0x6c   : > { %p8965_p6 = pneg %p8964_p8 }
  0x6e   : > { %p8970_p3 = pnand %p8968_p10, %p8965_p6 }
  0x70   : > { %8973 = shalt.err (!%p8970_p3)
}
  0x71   : > { %s8974_s14 = scalar_lea.vmem %s259_s17, 16  ;;  %s8981_s12 = scalar_lea.vmem %s259_s17, 32 }
  0x72   : > { %p8975_p5 = scmp.ne.s32.totalorder %s259_s17, %s8974_s14  ;;  %p8982_p12 = scmp.lt.s32.totalorder %s259_s17, %s259_s17 }
  0x73   : > { %p8983_p0 = scmp.lt.s32.totalorder %s8981_s12, %s8974_s14 }
  0x74   : > { %p8977_p7 = pnand %p8975_p5, %p9279_p13 }
  0x75   : > { %p8984_p1 = por %p8983_p0, %p8982_p12 }
  0x76   : > { %p8978_p9 = pneg %p8977_p7 }
  0x78   : > { %p8985_p2 = pnand %p8984_p1, %p8978_p9 }
  0x7a   : > { %8988 = shalt.err (!%p8985_p2)
}
  0x7b   : > { %8659 = dma.hbm_to_vmem [thread:$0]  (!%p9263_p11), %s12456_s5, 16, %s259_s17, [#allocation14]  }
  0x7c   : > { %s39_s20 = sadd.s32 1, %s9143_s25  ;;  %s46_s18 = sadd.s32 1, %s9135_s23 }
  0x7d   : > { %p41_p13 = scmp.ge.s32.totalorder %s39_s20, 2  ;;  %p53_p4 = scmp.ne.s32.totalorder %s9135_s23, %s9131_s22 }
  0x7e   : > { %p54_p8 = scmp.eq.s32.totalorder %s9147_s26, 0  ;;  %p8675_p6 = scmp.lt.s32.totalorder %s9147_s26, 2 }
  0x7f   : > { %s12547_s20 = smov (%p41_p13, %s39_s20), 0  ;;  %p12489_p3 = scmp.eq.s32.totalorder %s9233_s27, 1 }
  0x80   : > { %p55_p10 = por %p54_p8, %p53_p4  ;;  %s43_s19 = ssub.s32 %s9143_s25, %s12547_s20 }
  0x81   : > { %p9377_p5 = por %p12489_p3, %p53_p4  ;;  %s269_s28 = sand.u32 1, %s9135_s23  }
  0x82   : > { %p44_p11 = scmp.eq.s32.totalorder %s43_s19, 0  ;;  %s9384_s17 = smul.u32 320, %s269_s28 }
  0x83   : > { %p9386_p7 = pnand %p8675_p6, %p55_p10  ;;  %s12465_s9 = smul.u32 5120, %s9143_s25 }
  0x84   : > { %s9391_s11 = scalar_select %p44_p11, %s9135_s23, %s46_s18  }
  0x85   : > { %s273_s16 = scalar_lea.vmem [#allocation4], %s9384_s17  ;;  %s12492_s0 = sld [smem:[#allocation37_spill]] }
  0x86   : > { %s280_s14 = sshll.u32 %s273_s16, 4  ;;  %s9404_s19 = scalar_lea.sflag [#allocation5], %s269_s28  ;;  %s9402_s14 = int_to_ptr.vmem [resolvable:$true] %s280_s14 }
  0x87   : > { %p8991_p12 = pneg %p9386_p7 }
  0x8b   : > { %s9400_s30 = scalar_lea.hbm %s12492_s0, %s12465_s9  ;;  %s8994_s12 = scalar_lea.hbm %s12492_s0, 10240 }
  0x8c   : > { %s8989_s13 = scalar_lea.hbm %s9400_s30, 5120  ;;  %p8995_p2 = scmp.lt.u32.totalorder %s9400_s30, %s12492_s0 }
  0x8d   : > { %p8990_p9 = scmp.ne.s32.totalorder %s9400_s30, %s8989_s13  ;;  %p8996_p13 = scmp.lt.u32.totalorder %s8994_s12, %s8989_s13 }
  0x8e   : > { %p8998_p8 = scmp.lt.u32.totalorder %s8989_s13, %s9400_s30 }
  0x8f   : > { %p8992_p0 = pnand %p8991_p12, %p8990_p9  ;;  %p8997_p4 = por %p8996_p13, %p8995_p2 }
  0x91   : > { %p8993_p1 = pneg %p8992_p0  ;;  %p8999_p6 = por %p8998_p8, %p8997_p4 }
  0x93   : > { %p9000_p10 = pnand %p8999_p6, %p8993_p1 }
  0x95   : > { %9003 = shalt.err (!%p9000_p10)
}
  0x96   : > { %s9004_s28 = scalar_lea.vmem %s9402_s14, 5120  ;;  %s9155_s18 = smov [#allocation4]  }
  0x97   : > { %p9005_p3 = scmp.ne.s32.totalorder %s9402_s14, %s9004_s28  ;;  %s9009_s16 = sshll.u32 %s9155_s18, 4  ;;  %s9010_s16 = int_to_ptr.vmem [resolvable:$false] %s9009_s16 }
  0x98   : > { %s9011_s9 = scalar_lea.vmem %s9010_s16, 10240  ;;  %p9012_p0 = scmp.lt.s32.totalorder %s9402_s14, %s9010_s16 }
  0x99   : > { %p9007_p11 = pnand %p9005_p3, %p8991_p12  ;;  %p9013_p2 = scmp.lt.s32.totalorder %s9011_s9, %s9004_s28 }
  0x9b   : > { %p9008_p9 = pneg %p9007_p11  ;;  %p9014_p13 = por %p9013_p2, %p9012_p0 }
  0x9d   : > { %p9015_p4 = pnand %p9014_p13, %p9008_p9 }
  0x9f   : > { %9018 = shalt.err (!%p9015_p4)
}
  0xa0   : > { %s12493_s13 = smov 64   ;;  %s290_s12 = sand.u32 1, %s9147_s26  }
  0xa1   : > { %8663 = dma.hbm_to_vmem [thread:$0]  (!%p9386_p7), %s9400_s30, 5120, %s9402_s14, %s9404_s19, %s12493_s13, %s12493_s13, %s9153_s15  }
  0xa2   : > { %s12494_s21 = smul.u32 5120, %s9143_s25  ;;  %s294_s9 = scalar_lea.vmem [#allocation7], %s9384_s17 }
  0xa3   : > { %s301_s0 = sshll.u32 %s294_s9, 4  ;;  %s9446_s2 = scalar_lea.sflag [#allocation8], %s290_s12  ;;  %s9444_s0 = int_to_ptr.vmem [resolvable:$true] %s301_s0 }
  0xa4   : > { %s9441_s16 = scalar_lea.hbm %s12452_s1, %s12494_s21  ;;  %s9024_s19 = scalar_lea.hbm %s12452_s1, 10240 }
  0xa5   : > { %s9019_s3 = scalar_lea.hbm %s9441_s16, 5120  ;;  %p9025_p10 = scmp.lt.u32.totalorder %s9441_s16, %s12452_s1 }
  0xa6   : > { %p9020_p1 = scmp.ne.s32.totalorder %s9441_s16, %s9019_s3  ;;  %p9026_p3 = scmp.lt.u32.totalorder %s9024_s19, %s9019_s3 }
  0xa7   : > { %p9028_p9 = scmp.lt.u32.totalorder %s9019_s3, %s9441_s16 }
  0xa8   : > { %p9022_p8 = pnand %p9020_p1, %p8991_p12  ;;  %p9027_p11 = por %p9026_p3, %p9025_p10 }
  0xaa   : > { %p9023_p6 = pneg %p9022_p8  ;;  %p9029_p0 = por %p9028_p9, %p9027_p11 }
  0xac   : > { %p9030_p2 = pnand %p9029_p0, %p9023_p6 }
  0xae   : > { %9033 = shalt.err (!%p9030_p2)
}
  0xaf   : > { %s9034_s17 = scalar_lea.vmem %s9444_s0, 5120  ;;  %s9156_s12 = smov [#allocation7]  }
  0xb0   : > { %p9035_p13 = scmp.ne.s32.totalorder %s9444_s0, %s9034_s17  ;;  %s9039_s28 = sshll.u32 %s9156_s12, 4  ;;  %s9040_s28 = int_to_ptr.vmem [resolvable:$false] %s9039_s28 }
  0xb1   : > { %s9041_s9 = scalar_lea.vmem %s9040_s28, 10240  ;;  %p9042_p8 = scmp.lt.s32.totalorder %s9444_s0, %s9040_s28 }
  0xb2   : > { %p9037_p4 = pnand %p9035_p13, %p8991_p12  ;;  %p9043_p10 = scmp.lt.s32.totalorder %s9041_s9, %s9034_s17 }
  0xb4   : > { %p9038_p1 = pneg %p9037_p4  ;;  %p9044_p3 = por %p9043_p10, %p9042_p8 }
  0xb6   : > { %p9045_p11 = pnand %p9044_p3, %p9038_p1 }
  0xb8   : > { %9048 = shalt.err (!%p9045_p11)
}
  0xb9   : > { %8666 = dma.hbm_to_vmem [thread:$0]  (!%p9386_p7), %s9441_s16, 5120, %s9444_s0, %s9446_s2, %s12493_s13, %s12493_s13, %s9153_s15  }
  0xba   : > { %p12495_p12 = scmp.ne.s32.totalorder %s12484_s7, 0 }
  0xbc   : > { %313 = sbr.rel (%p12495_p12) target bundleno = 1925 (0x785), region = 44 }
  0xc3   : > { %s9478_s3 = sand.u32 1, %s9131_s22   ;;  %p12496_p6 = scmp.ne.s32.totalorder %s12481_s29, 0 }
  0xc4   : > { %s8624_s14 = smul.u32 320, %s9478_s3  ;;  %s316_s30 = scalar_lea.sflag [#allocation5], %s9478_s3 }
  0xc6   : > { %s9482_s19 = scalar_lea.vmem [#allocation4], %s8624_s14 }
  0xc7   : > { %9102 = dma.done.wait (%p12496_p6), %s316_s30, 5120  }
  0xc8   : > { %9104 = vsyncadd (%p12496_p6), %s316_s30, 4294962176  ;;  %s324_s0 = sand.u32 1, %s9233_s27   ;;  %s9489_s7 = scalar_lea.vmem [#allocation7], %s8624_s14 }
  0xc9   : > { %s325_s2 = scalar_lea.sflag [#allocation8], %s324_s0 }
  0xca   : > { %9106 = dma.done.wait (%p12496_p6), %s325_s2, 5120  }
  0xcb   : > { %9108 = vsyncadd (%p12496_p6), %s325_s2, 4294962176  ;;  %p12497_p7 = scmp.eq.s32.totalorder %s9233_s27, 0 }
  0xcd   : > { %9110 = dma.done.wait (%p12497_p7), [#allocation8], 576   ;;  %p12498_p9 = pmov %p12497_p7 }
  0xce   : > { %p12499_p0 = pmov %p12497_p7 }
  0xcf   : > { %9112 = vsyncadd (%p12498_p9), [#allocation8], 4294966720 }
  0xd0   : > { %9114 = dma.done.wait (%p12499_p0), [#allocation11], 592   ;;  %p12500_p2 = pmov %p12499_p0 }
  0xd1   : > { %p12501_p13 = pmov %p12499_p0 }
  0xd2   : > { %9116 = vsyncadd (%p12500_p2), [#allocation11], 4294966704 }
  0xd3   : > { %9118 = dma.done.wait (%p12501_p13), [#allocation14], 16   ;;  %p12502_p4 = pmov %p12499_p0 }
  0xd4   : > { %vm3033_vm0 = vcmask 1042432   ;;  %vm3034_vm1 = vcmask 1046532   ;;  %vm948_vm2 = vsmask.f32 3328  ;;  %vm949_vm3 = vsmask.f32 7440 }
  0xd5   : > { %9120 = vsyncadd (%p12502_p4), [#allocation14], 4294967280  ;;  %v510_v0 = vld [vmem:[%s9489_s7 + $0x10] sm:$0xf]  ;;  %v511_v1 = vld [vmem:[%s9489_s7 + $0x14] sm:$0xf] }
  0xd6   : > { %v2878_v2 = vld [vmem:[%s9482_s19 + $0x14] sm:$0xf]  ;;  %s9157_s29 = smov 4   ;;  %v9512_v3 = vld [vmem:[%s9482_s19 + $0x18] sm:$0xf]  ;;  %vm9515_vm4 = vmor %vm3033_vm0, %vm3034_vm1  ;;  %v12503_v6 = vmov 0 }
  0xd7   : > { %633 = vrot.lane.b32.xlu0 %v510_v0, %s9157_s29  ;;  %v3048_v4 = vrot.slane %v2878_v2, 5  ;;  %v2877_v5 = vld [vmem:[%s9482_s19 + $0x10] sm:$0xe]  ;;  %v12504_v6 = vsel %vm9515_vm4, 4294967295, %v12503_v6  ;;  %v3051_v7 = vrot.slane %v9512_v3, 5  ;;  %s9158_s27 = smov 16   ;;  %vm9550_vm5 = vmor %vm948_vm2, %vm949_vm3 }
  0xd8   : > { %12505 = vst [vmem:[#allocation24_spill] sm:$0xff] %v12504_v6  ;;  %v7693_v8 = vrot.slane %v2877_v5, 9  ;;  %v3482_v9 = vld [vmem:[%s9489_s7 + $0x14] sm:$0xf]  ;;  %v9522_v10 = vld [vmem:[%s9489_s7 + $0x18] sm:$0xf] }
  0xd9   : > { %v3050_v11 = vrot.slane %v3048_v4, 4  ;;  %v3649_v12 = vrot.slane %v3482_v9, 5  ;;  %v3652_v13 = vrot.slane %v9522_v10, 5  ;;  %v3481_v14 = vld [vmem:[%s9489_s7 + $0x10] sm:$0xe]  ;;  %s9159_s15 = smov 20  }
  0xda   : > { %v3049_v15 = vsel %vm9515_vm4, %v7693_v8, %v3048_v4  ;;  %v7713_v16 = vrot.slane %v3481_v14, 9  ;;  %v872_v17 = vld [vmem:[%s9482_s19 + $0x10] sm:$0xf]  ;;  %v873_v18 = vld [vmem:[%s9482_s19 + $0x14] sm:$0xf]  ;;  %v12506_v43 = vmov 0 }
  0xdb   : > { %635 = vrot.lane.b32.xlu0 %v511_v1, %s9157_s29  ;;  %v3052_v19 = vsel %vm9515_vm4, %v3050_v11, %v3051_v7  ;;  %v3651_v20 = vrot.slane %v3649_v12, 4  ;;  %v986_v21 = vshrl.u32 %v872_v17, 16  ;;  %v989_v22 = vshll.u32 %v872_v17, 16  ;;  %v1876_v23 = vld [vmem:[%s9489_s7 + $0x10] sm:$0xf]  ;;  %s9160_s8 = smov 8  }
  0xdc   : > { %3244 = vrot.lane.b32.xlu1 %v3052_v19, %s9158_s27  ;;  %v3650_v24 = vsel %vm9515_vm4, %v7713_v16, %v3649_v12  ;;  %v995_v25 = vshll.u32 %v873_v18, 16  ;;  %v999_v26 = vshrl.u32 %v873_v18, 16  ;;  %v1877_v27 = vld [vmem:[%s9489_s7 + $0x14] sm:$0xf]  ;;  %v1987_v28 = vshrl.u32 %v1876_v23, 16  ;;  %s9161_s13 = smov 12  }
  0xdd   : > { %v3653_v29 = vsel %vm9515_vm4, %v3651_v20, %v3652_v13  ;;  %v988_v30 = vrot.slane %v986_v21, 4  ;;  %v991_v31 = vrot.slane %v989_v22, 5  ;;  %v1990_v32 = vshll.u32 %v1876_v23, 16  ;;  %v874_v33 = vld [vmem:[%s9482_s19 + $0x18] sm:$0xf]  ;;  %s7691_s16 = sshll.u32 %s9478_s3, 2 }
  0xde   : > { %v997_v34 = vrot.slane %v995_v25, 5  ;;  %v1989_v35 = vrot.slane %v1987_v28, 4  ;;  %v1996_v36 = vshll.u32 %v1877_v27, 16  ;;  %v2000_v37 = vshrl.u32 %v1877_v27, 16  ;;  %v1878_v42 = vld [vmem:[%s9489_s7 + $0x18] sm:$0xf] }
  0xdf   : > { %3242 = vrot.lane.b32.xlu0 %v3049_v15, %s9158_s27  ;;  %v992_v38 = vor.u32 %v991_v31, %v988_v30  ;;  %v1992_v39 = vrot.slane %v1990_v32, 5  ;;  %v1001_v40 = vrot.slane %v999_v26, 4  ;;  %v1005_v41 = vshll.u32 %v874_v33, 16  ;;  %v875_v52 = vld [vmem:[%s9482_s19 + $0x1c] sm:$0x1]  ;;  %s7963_s21 = sshll.u32 %s9139_s24, 6 }
  0xe0   : > { %3845 = vrot.lane.b32.xlu1 %v3653_v29, %s9159_s15  ;;  %v12507_v43 = vsel %vm9550_vm5, 4294967295, %v12506_v43  ;;  %v1998_v44 = vrot.slane %v1996_v36, 5  ;;  %v1009_v45 = vshrl.u32 %v874_v33, 16  ;;  %v2002_v46 = vrot.slane %v2000_v37, 4  ;;  %v876_v56 = vld [vmem:[%s9482_s19 + $0x20] sm:$0xf]  ;;  %s12402_s9 = scalar_lea.hbm %s12457_s6, %s7963_s21 }
  0xe1   : > { %12508 = vst [vmem:[#allocation25_spill] sm:$0xff] %v12507_v43  ;;  %v2006_v47 = vshll.u32 %v1878_v42, 16  ;;  %v993_v48 = vrot.slane %v992_v38, 4  ;;  %v1993_v49 = vor.u32 %v1992_v39, %v1989_v35  ;;  %v1002_v50 = vor.u32 %v1001_v40, %v997_v34  ;;  %v1879_v63 = vld [vmem:[%s9489_s7 + $0x1c] sm:$0x1]  ;;  %s377_s18 = scalar_lea.vmem [#allocation15], %s7691_s16 }
  0xe2   : > { %v1007_v51 = vrot.slane %v1005_v41, 5  ;;  %v2003_v53 = vor.u32 %v2002_v46, %v1998_v44  ;;  %v2010_v54 = vshrl.u32 %v1878_v42, 16  ;;  %v1011_v55 = vrot.slane %v1009_v45, 4  ;;  %v1880_v8 = vld [vmem:[%s9489_s7 + $0x20] sm:$0xf]  ;;  %s7530_s17 = sshll.u32 %s377_s18, 4  ;;  %s12404_s17 = int_to_ptr.vmem [resolvable:$true] %s7530_s17 }
  0xe3   : > { %3843 = vrot.lane.b32.xlu0 %v3650_v24, %s9159_s15  ;;  %v998_v57 = vsel %vm9550_vm5, %v993_v48, %v997_v34  ;;  %v1994_v58 = vrot.slane %v1993_v49, 4  ;;  %v1003_v59 = vrot.slane %v1002_v50, 4  ;;  %v2008_v60 = vrot.slane %v2006_v47, 5  ;;  %v877_v9 = vld [vmem:[%s9482_s19 + $0x24] sm:$0xf]  ;;  %s7514_s14 = scalar_lea.sflag [#allocation6], %s9478_s3 }
  0xe4   : > { %1637 = vrot.lane.b32.xlu1 %v998_v57, %s9160_s8  ;;  %v1012_v61 = vor.u32 %v1011_v55, %v1007_v51  ;;  %v1015_v62 = vshll.u32 %v875_v52, 16  ;;  %v2012_v0 = vrot.slane %v2010_v54, 4  ;;  %v2004_v4 = vrot.slane %v2003_v53, 4  ;;  %v512_v15 = vld [vmem:[%s9489_s7 + $0x18] sm:$0xf]  ;;  %s9049_s30 = scalar_lea.vmem %s12404_s17, 64 }
  0xe5   : > { %v1999_v1 = vsel %vm9550_vm5, %v1994_v58, %v1998_v44  ;;  %v1008_v2 = vsel %vm9550_vm5, %v1003_v59, %v1007_v51  ;;  %v1020_v5 = vshrl.u32 %v876_v56, 16  ;;  %v2016_v11 = vshll.u32 %v1879_v63, 16  ;;  %v1881_v24 = vld [vmem:[%s9489_s7 + $0x24] sm:$0xf]  ;;  %v2880_v31 = vld [vmem:[%s9482_s19 + $0x1c] sm:$0x1]  ;;  %p9050_p1 = scmp.ne.s32.totalorder %s12404_s17, %s9049_s30 }
  0xe6   : > { %v1023_v14 = vshll.u32 %v876_v56, 16  ;;  %v1013_v16 = vrot.slane %v1012_v61, 4  ;;  %v1017_v17 = vrot.slane %v1015_v62, 5  ;;  %v2013_v18 = vor.u32 %v2012_v0, %v2008_v60  ;;  %v513_v32 = vld [vmem:[%s9489_s7 + $0x20] sm:$0xf]  ;;  %s9166_s24 = smov [#allocation15]  }
  0xe7   : > { %2638 = vrot.lane.b32.xlu0 %v1999_v1, %s9161_s13  ;;  %v1022_v12 = vrot.slane %v1020_v5, 4  ;;  %v2021_v19 = vshrl.u32 %v1880_v8, 16  ;;  %v2009_v20 = vsel %vm9550_vm5, %v2004_v4, %v2008_v60  ;;  %v1029_v22 = vshll.u32 %v877_v9, 16  ;;  %v3484_v41 = vld [vmem:[%s9489_s7 + $0x1c] sm:$0x1]  ;;  %p9051_p8 = pnand %p9050_p1, %p9377_p5 }
  0xe8   : > { %1639 = vrot.lane.b32.xlu1 %v1008_v2, %s9160_s8  ;;  %v1025_v21 = vrot.slane %v1023_v14, 5  ;;  %v2024_v23 = vshll.u32 %v1880_v8, 16  ;;  %v1018_v28 = vsel %vm9550_vm5, %v1013_v16, %v1017_v17  ;;  %v2014_v29 = vrot.slane %v2013_v18, 4  ;;  %v2881_v46 = vld [vmem:[%s9482_s19 + $0x20] sm:$0xe] }
  0xe9   : > { %v2023_v25 = vrot.slane %v2021_v19, 4  ;;  %v2018_v30 = vrot.slane %v2016_v11, 5  ;;  %v1031_v34 = vrot.slane %v1029_v22, 5  ;;  %v2030_v36 = vshll.u32 %v1881_v24, 16  ;;  %v2882_v47 = vld [vmem:[%s9482_s19 + $0x24] sm:$0xf]  ;;  %p9052_p10 = pneg %p9051_p8 }
  0xea   : > { %v1026_v26 = vor.u32 %v1025_v21, %v1022_v12  ;;  %v2026_v27 = vrot.slane %v2024_v23, 5  ;;  %v3053_v37 = vrot.slane %v3051_v7, 4  ;;  %v3054_v38 = vrot.slane %v2880_v31, 5  ;;  %v878_v3 = vld [vmem:[%s9482_s19 + $0x28] sm:$0xf] }
  0xeb   : > { %637 = vrot.lane.b32.xlu0 %v512_v15, %s9157_s29  ;;  %v2019_v39 = vsel %vm9550_vm5, %v2014_v29, %v2018_v30  ;;  %v1033_v40 = vshrl.u32 %v877_v9, 16  ;;  %v2032_v45 = vrot.slane %v2030_v36, 5  ;;  %v2034_v48 = vshrl.u32 %v1881_v24, 16  ;;  %v3485_v50 = vld [vmem:[%s9489_s7 + $0x20] sm:$0xe] }
  0xec   : > { %2640 = vrot.lane.b32.xlu1 %v2009_v20, %s9161_s13  ;;  %v1027_v33 = vrot.slane %v1026_v26, 4  ;;  %v2027_v35 = vor.u32 %v2026_v27, %v2023_v25  ;;  %v3055_v7 = vsel %vm9515_vm4, %v3053_v37, %v3054_v38  ;;  %v3654_v49 = vrot.slane %v3652_v13, 4  ;;  %v3486_v54 = vld [vmem:[%s9489_s7 + $0x24] sm:$0xf]  ;;  %v1882_v59 = vld [vmem:[%s9489_s7 + $0x28] sm:$0xf] }
  0xed   : > { %v3655_v51 = vrot.slane %v3484_v41, 5  ;;  %v7694_v52 = vrot.slane %v2881_v46, 9  ;;  %v3058_v53 = vrot.slane %v2882_v47, 5  ;;  %v1035_v55 = vrot.slane %v1033_v40, 4  ;;  %v879_v5 = vld [vmem:[%s9482_s19 + $0x2c] sm:$0x1] }
  0xee   : > { %v1032_v42 = vsel %vm9550_vm5, %v1027_v33, %v1031_v34  ;;  %v2028_v44 = vrot.slane %v2027_v35, 4  ;;  %v1039_v57 = vshll.u32 %v878_v3, 16  ;;  %v1043_v58 = vshrl.u32 %v878_v3, 16  ;;  %v514_v8 = vld [vmem:[%s9489_s7 + $0x24] sm:$0xf] }
  0xef   : > { %1641 = vrot.lane.b32.xlu0 %v1018_v28, %s9160_s8  ;;  %v7714_v10 = vrot.slane %v3485_v50, 9  ;;  %v3659_v13 = vrot.slane %v3486_v54, 5  ;;  %v3656_v60 = vsel %vm9515_vm4, %v3654_v49, %v3655_v51  ;;  %v3059_v61 = vsel %vm9515_vm4, %v7694_v52, %v3058_v53  ;;  %v1883_v18 = vld [vmem:[%s9489_s7 + $0x2c] sm:$0x1]  ;;  %v2883_v19 = vld [vmem:[%s9482_s19 + $0x28] sm:$0xf] }
  0xf0   : > { %639 = vrot.lane.b32.xlu1 %v513_v32, %s9157_s29  ;;  %v2033_v56 = vsel %vm9550_vm5, %v2028_v44, %v2032_v45  ;;  %v1036_v62 = vor.u32 %v1035_v55, %v1031_v34  ;;  %v2036_v63 = vrot.slane %v2034_v48, 4  ;;  %v1041_v0 = vrot.slane %v1039_v57, 5  ;;  %v515_v21 = vld [vmem:[%s9489_s7 + $0x28] sm:$0xf]  ;;  %v880_v27 = vld [vmem:[%s9482_s19 + $0x30] sm:$0xf] }
  0xf1   : > { %v2040_v1 = vshll.u32 %v1882_v59, 16  ;;  %v2044_v2 = vshrl.u32 %v1882_v59, 16  ;;  %v1045_v4 = vrot.slane %v1043_v58, 4  ;;  %v3660_v9 = vsel %vm9515_vm4, %v7714_v10, %v3659_v13  ;;  %v3487_v31 = vld [vmem:[%s9489_s7 + $0x28] sm:$0xf] }
  0xf2   : > { %v1037_v11 = vrot.slane %v1036_v62, 4  ;;  %v2037_v12 = vor.u32 %v2036_v63, %v2032_v45  ;;  %v1049_v16 = vshll.u32 %v879_v5, 16  ;;  %v2050_v26 = vshll.u32 %v1883_v18, 16  ;;  %v2884_v32 = vld [vmem:[%s9482_s19 + $0x2c] sm:$0x1] }
  0xf3   : > { %2642 = vrot.lane.b32.xlu0 %v2019_v39, %s9161_s13  ;;  %v2042_v14 = vrot.slane %v2040_v1, 5  ;;  %v1046_v15 = vor.u32 %v1045_v4, %v1041_v0  ;;  %v2046_v17 = vrot.slane %v2044_v2, 4  ;;  %v3060_v28 = vrot.slane %v3058_v53, 4  ;;  %v1884_v38 = vld [vmem:[%s9489_s7 + $0x30] sm:$0xf] }
  0xf4   : > { %1643 = vrot.lane.b32.xlu1 %v1032_v42, %s9160_s8  ;;  %v1042_v20 = vsel %vm9550_vm5, %v1037_v11, %v1041_v0  ;;  %v2038_v22 = vrot.slane %v2037_v12, 4  ;;  %v1051_v24 = vrot.slane %v1049_v16, 5  ;;  %v3061_v29 = vrot.slane %v2883_v19, 5  ;;  %v881_v40 = vld [vmem:[%s9482_s19 + $0x34] sm:$0xf] }
  0xf5   : > { %v1047_v23 = vrot.slane %v1046_v15, 4  ;;  %v2047_v25 = vor.u32 %v2046_v17, %v2042_v14  ;;  %v1054_v33 = vshrl.u32 %v880_v27, 16  ;;  %v1057_v34 = vshll.u32 %v880_v27, 16  ;;  %v3488_v46 = vld [vmem:[%s9489_s7 + $0x2c] sm:$0x1] }
  0xf6   : > { %v2043_v30 = vsel %vm9550_vm5, %v2038_v22, %v2042_v14  ;;  %v2052_v37 = vrot.slane %v2050_v26, 5  ;;  %v3062_v39 = vsel %vm9515_vm4, %v3060_v28, %v3061_v29  ;;  %v3661_v41 = vrot.slane %v3659_v13, 4  ;;  %v1885_v52 = vld [vmem:[%s9489_s7 + $0x34] sm:$0xf]  ;;  %v387_v62 = vld [vmem:[%s9482_s19 + $0x10] sm:$0xf] }
  0xf7   : > { %3246 = vrot.lane.b32.xlu0 %v3055_v7, %s9158_s27  ;;  %v1052_v35 = vsel %vm9550_vm5, %v1047_v23, %v1051_v24  ;;  %v2048_v36 = vrot.slane %v2047_v25, 4  ;;  %v3662_v42 = vrot.slane %v3487_v31, 5  ;;  %v3063_v44 = vrot.slane %v3061_v29, 4  ;;  %v882_v63 = vld [vmem:[%s9482_s19 + $0x38] sm:$0xf] }
  0xf8   : > { %2644 = vrot.lane.b32.xlu1 %v2033_v56, %s9161_s13  ;;  %v3064_v45 = vrot.slane %v2884_v32, 5  ;;  %v1056_v47 = vrot.slane %v1054_v33, 4  ;;  %v1059_v3 = vrot.slane %v1057_v34, 5  ;;  %v2055_v7 = vshrl.u32 %v1884_v38, 16  ;;  %v388_v0 = vld [vmem:[%s9482_s19 + $0x14] sm:$0xf] }
  0xf9   : > { %v2058_v48 = vshll.u32 %v1884_v38, 16  ;;  %v2053_v49 = vsel %vm9550_vm5, %v2048_v36, %v2052_v37  ;;  %v1063_v50 = vshll.u32 %v881_v40, 16  ;;  %v1067_v51 = vshrl.u32 %v881_v40, 16  ;;  %v516_v1 = vld [vmem:[%s9489_s7 + $0x30] sm:$0xf] }
  0xfa   : > { %v3663_v53 = vsel %vm9515_vm4, %v3661_v41, %v3662_v42  ;;  %v3664_v54 = vrot.slane %v3662_v42, 4  ;;  %v3665_v55 = vrot.slane %v3488_v46, 5  ;;  %vm444_vm6 = vcmask 27648   ;;  %v1886_v14 = vld [vmem:[%s9489_s7 + $0x38] sm:$0xf] }
  0xfb   : > { %3847 = vrot.lane.b32.xlu0 %v3656_v60, %s9159_s15  ;;  %v3065_v56 = vsel %vm9515_vm4, %v3063_v44, %v3064_v45  ;;  %v1060_v57 = vor.u32 %v1059_v3, %v1056_v47  ;;  %v2057_v58 = vrot.slane %v2055_v7, 4  ;;  %v2060_v59 = vrot.slane %v2058_v48, 5  ;;  %448 = vst.msk [vmem:[#allocation2 + $0xc] sm:$0xf] %vm444_vm6, %v387_v62  ;;  %449 = vst.msk [vmem:[#allocation2 + $0x10] sm:$0xf] %vm444_vm6, %v388_v0 }
  0xfc   : > { %3248 = vrot.lane.b32.xlu1 %v3059_v61, %s9158_s27  ;;  %v1065_v10 = vrot.slane %v1063_v50, 5  ;;  %v2064_v13 = vshll.u32 %v1885_v52, 16  ;;  %v2068_v60 = vshrl.u32 %v1885_v52, 16  ;;  %v1069_v61 = vrot.slane %v1067_v51, 4  ;;  %v2885_v17 = vld [vmem:[%s9482_s19 + $0x30] sm:$0xe] }
  0xfd   : > { %v3666_v2 = vsel %vm9515_vm4, %v3664_v54, %v3665_v55  ;;  %v1061_v4 = vrot.slane %v1060_v57, 4  ;;  %v2061_v5 = vor.u32 %v2060_v59, %v2057_v58  ;;  %v1073_v11 = vshll.u32 %v882_v63, 16  ;;  %v2886_v18 = vld [vmem:[%s9482_s19 + $0x34] sm:$0xf]  ;;  %v3489_v26 = vld [vmem:[%s9489_s7 + $0x30] sm:$0xe] }
  0xfe   : > { %v2070_v12 = vrot.slane %v2068_v60, 4  ;;  %v517_v19 = vld [vmem:[%s9489_s7 + $0x34] sm:$0xf]  ;;  %v2074_v23 = vshll.u32 %v1886_v14, 16  ;;  %v7695_v24 = vrot.slane %v2885_v17, 9  ;;  %v3068_v25 = vrot.slane %v2886_v18, 5 }
  0xff   : > { %641 = vrot.lane.b32.xlu0 %v514_v8, %s9157_s29  ;;  %v2066_v8 = vrot.slane %v2064_v13, 5  ;;  %v1066_v15 = vsel %vm9550_vm5, %v1061_v4, %v1065_v10  ;;  %v2062_v16 = vrot.slane %v2061_v5, 4  ;;  %v1077_v28 = vshrl.u32 %v882_v63, 16  ;;  %v3490_v29 = vld [vmem:[%s9489_s7 + $0x34] sm:$0xf]  ;;  %v8781_v58 = vld [vmem:[#allocation9 + $0xc] sm:$0xff]  }
 0x100   : > { %3849 = vrot.lane.b32.xlu1 %v3660_v9, %s9159_s15  ;;  %v1070_v9 = vor.u32 %v1069_v61, %v1065_v10  ;;  %v9673_v33 = vrot.slane %v2074_v23, 5  ;;  %v884_v34 = vld [vmem:[%s9482_s19 + $0x40] sm:$0xf]  ;;  %v3069_v36 = vsel %vm9515_vm4, %v7695_v24, %v3068_v25  ;;  %v7715_v37 = vrot.slane %v3489_v26, 9  ;;  %v883_v42 = vld [vmem:[%s9482_s19 + $0x3c] sm:$0x1] }
 0x101   : > { %v2071_v22 = vor.u32 %v2070_v12, %v2066_v8  ;;  %v2067_v27 = vsel %vm9550_vm5, %v2062_v16, %v2066_v8  ;;  %v3669_v38 = vrot.slane %v3490_v29, 5  ;;  %v390_v40 = vld [vmem:[%s9482_s19 + $0x20] sm:$0xf]  ;;  %v2078_v41 = vshrl.u32 %v1886_v14, 16  ;;  %v1887_v54 = vld [vmem:[%s9489_s7 + $0x3c] sm:$0x1] }
 0x102   : > { %v1079_v44 = vrot.slane %v1077_v28, 4  ;;  %v1088_v45 = vshrl.u32 %v884_v34, 16  ;;  %v1091_v46 = vshll.u32 %v884_v34, 16  ;;  %451 = vst.msk [vmem:[#allocation2 + $0x18] sm:$0xf] %vm444_vm6, %v390_v40  ;;  %v3070_v3 = vrot.slane %v3068_v25, 4 }
 0x103   : > { %1645 = vrot.lane.b32.xlu0 %v1042_v20, %s9160_s8  ;;  %v1071_v20 = vrot.slane %v1070_v9, 4  ;;  %v2072_v32 = vrot.slane %v2071_v22, 4  ;;  %v1888_v48 = vld [vmem:[%s9489_s7 + $0x40] sm:$0xf]  ;;  %v3671_v50 = vrot.slane %v3669_v38, 4  ;;  %v1083_v52 = vshll.u32 %v883_v42, 16 }
 0x104   : > { %643 = vrot.lane.b32.xlu1 %v515_v21, %s9157_s29  ;;  %v1075_v21 = vrot.slane %v1073_v11, 5  ;;  %v2080_v55 = vrot.slane %v2078_v41, 4  ;;  %v1093_v57 = vrot.slane %v1091_v46, 5  ;;  %v9704_v10 = vld [vmem:[%s9482_s19 + $0x44] sm:$0xf]  ;;  %v2089_v13 = vshrl.u32 %v1888_v48, 16 }
 0x105   : > { %v2077_v47 = vsel %vm9550_vm5, %v2072_v32, %v9673_v33  ;;  %v2092_v60 = vshll.u32 %v1888_v48, 16  ;;  %v8782_v61 = vld [vmem:[#allocation9 + $0x14] ss:$0 sps:$4 sm:$0xff]   ;;  %v1085_v63 = vrot.slane %v1083_v52, 5  ;;  %v2084_v0 = vshll.u32 %v1887_v54, 16 }
 0x106   : > { %v1076_v31 = vsel %vm9550_vm5, %v1071_v20, %v1075_v21  ;;  %v2081_v4 = vor.u32 %v2080_v55, %v9673_v33  ;;  %v1097_v8 = vshll.u32 %v9704_v10, 16  ;;  %v9162_v9 = vmov 0.0   ;;  %v9718_v14 = vld [vmem:[%s9489_s7 + $0x44] sm:$0xf]  ;;  %v2888_v20 = vld [vmem:[%s9482_s19 + $0x3c] sm:$0x1] }
 0x107   : > { %2646 = vrot.lane.b32.xlu0 %v2043_v30, %s9161_s13  ;;  %v389_v30 = vld [vmem:[%s9482_s19 + $0x18] sm:$0xf]  ;;  %8105 = vmatprep.subr.bf16.mxu0 %v9162_v9  ;;  %v2091_v11 = vrot.slane %v2089_v13, 4  ;;  %v2094_v12 = vrot.slane %v2092_v60, 5  ;;  %vm4420_vm7 = vcmask 1043456   ;;  %vm9163_vm8 = vmmov 0  }
 0x108   : > { %1647 = vrot.lane.b32.xlu1 %v1052_v35, %s9160_s8  ;;  %450 = vst.msk [vmem:[#allocation2 + $0x14] sm:$0xf] %vm444_vm6, %v389_v30  ;;  %v9678_v35 = vld [vmem:[%s9482_s19 + $0x38] sm:$0xf]  ;;  %8106 = vmatpush3.bf16.msra.mxu0 %v8781_v58  ;;  %v391_v16 = vld [vmem:[%s9482_s19 + $0x24] sm:$0xf] }
 0x109   : > { %v3071_v7 = vrot.slane %v9678_v35, 5  ;;  %8549 = vmatprep.subr.bf16.mxu1 %v9162_v9  ;;  %8107 = vmatprep.subr.bf16.mxu0 %v9162_v9  ;;  %v2082_v18 = vrot.slane %v2081_v4, 4  ;;  %452 = vst.msk [vmem:[#allocation2 + $0x1c] sm:$0xf] %vm444_vm6, %v391_v16  ;;  %v1099_v23 = vrot.slane %v1097_v8, 5  ;;  %v2095_v24 = vor.u32 %v2094_v12, %v2091_v11 }
 0x10a   : > { %8109 = vmatprep.mubr.msk.bf16.mxu0 %vm9163_vm8, %v9162_v9  ;;  %8551 = vmatpush3.bf16.msra.mxu1 %v8781_v58  ;;  %v2098_v25 = vshll.u32 %v9718_v14, 16  ;;  %v392_v28 = vld [vmem:[%s9482_s19 + $0x28] sm:$0xf]  ;;  %v1101_v30 = vshrl.u32 %v9704_v10, 16  ;;  %v2889_v35 = vld [vmem:[%s9482_s19 + $0x40] sm:$0xe] }
 0x10b   : > { %3250 = vrot.lane.b32.xlu0 %v3062_v39, %s9158_s27  ;;  %v9684_v39 = vld [vmem:[%s9489_s7 + $0x38] sm:$0xf]  ;;  %v3072_v59 = vsel %vm9515_vm4, %v3070_v3, %v3071_v7  ;;  %8550 = vmatprep.subr.bf16.mxu1 %v9162_v9  ;;  %v3073_v26 = vrot.slane %v3071_v7, 4  ;;  %453 = vst.msk [vmem:[#allocation2 + $0x20] sm:$0xf] %vm444_vm6, %v392_v28  ;;  %v2096_v33 = vrot.slane %v2095_v24, 4 }
 0x10c   : > { %2648 = vrot.lane.b32.xlu1 %v2053_v49, %s9161_s13  ;;  %v3670_v49 = vsel %vm9515_vm4, %v7715_v37, %v3669_v38  ;;  %v3672_v51 = vrot.slane %v9684_v39, 5  ;;  %8213 = vmatprep.mubr.msk.bf16.mxu1 %vm9163_vm8, %v9162_v9  ;;  %v2100_v34 = vrot.slane %v2098_v25, 5  ;;  %v886_v37 = vld [vmem:[%s9482_s19 + $0x48] sm:$0xf]  ;;  %v2102_v40 = vshrl.u32 %v9718_v14, 16 }
 0x10d   : > { %v3493_v42 = vld [vmem:[%s9489_s7 + $0x40] sm:$0xe]  ;;  %v1103_v3 = vrot.slane %v1101_v30, 4  ;;  %v1107_v48 = vshll.u32 %v886_v37, 16  ;;  %v1890_v52 = vld [vmem:[%s9489_s7 + $0x48] sm:$0xf] }
 0x10e   : > { %v3673_v62 = vsel %vm9515_vm4, %v3671_v50, %v3672_v51  ;;  %v3674_v41 = vrot.slane %v3672_v51, 4  ;;  %v2101_v7 = vsel %vm9550_vm5, %v2096_v33, %v2100_v34  ;;  %v393_v50 = vld [vmem:[%s9482_s19 + $0x30] sm:$0xf]  ;;  %v7716_v39 = vrot.slane %v3493_v42, 9  ;;  %v887_v60 = vld [vmem:[%s9482_s19 + $0x4c] sm:$0x1] }
 0x10f   : > { %3851 = vrot.lane.b32.xlu0 %v3663_v53, %s9159_s15  ;;  %v1080_v53 = vor.u32 %v1079_v44, %v1075_v21  ;;  %v519_v21 = vld [vmem:[%s9489_s7 + $0x40] sm:$0xf]  ;;  %454 = vst.msk [vmem:[#allocation2 + $0x24] sm:$0xf] %vm444_vm6, %v393_v50  ;;  %v1109_v58 = vrot.slane %v1107_v48, 5  ;;  %v2112_v10 = vshrl.u32 %v1890_v52, 16 }
 0x110   : > { %3252 = vrot.lane.b32.xlu1 %v3065_v56, %s9158_s27  ;;  %v1090_v56 = vrot.slane %v1088_v45, 4  ;;  %v7696_v45 = vrot.slane %v2889_v35, 9  ;;  %v1117_v4 = vshll.u32 %v887_v60, 16  ;;  %v1891_v8 = vld [vmem:[%s9489_s7 + $0x4c] sm:$0x1]  ;;  %vm807_vm9 = vcmask 60448  }
 0x111   : > { %v2891_v11 = vld [vmem:[%s9482_s19 + $0x48] sm:$0xf]  ;;  %v888_v16 = vld [vmem:[%s9482_s19 + $0x50] sm:$0xf]  ;;  %v396_v33 = vld [vmem:[%s9482_s19 + $0x40] sm:$0xf] }
 0x112   : > { %v1094_v5 = vor.u32 %v1093_v57, %v1090_v56  ;;  %v1104_v56 = vor.u32 %v1103_v3, %v1099_v23  ;;  %v2104_v57 = vrot.slane %v2102_v40, 4  ;;  %v521_v14 = vld [vmem:[%s9489_s7 + $0x48] sm:$0xf]  ;;  %v1125_v28 = vshll.u32 %v888_v16, 16  ;;  %v889_v35 = vld [vmem:[%s9482_s19 + $0x54] sm:$0xf] }
 0x113   : > { %645 = vrot.lane.b32.xlu0 %v516_v1, %s9157_s29  ;;  %v518_v1 = vld [vmem:[%s9489_s7 + $0x38] sm:$0xf]  ;;  %v3495_v25 = vld [vmem:[%s9489_s7 + $0x48] sm:$0xf]  ;;  %457 = vst.msk [vmem:[#allocation2 + $0x30] sm:$0xf] %vm444_vm6, %v396_v33 }
 0x114   : > { %3853 = vrot.lane.b32.xlu1 %v3666_v2, %s9159_s15  ;;  %v1081_v2 = vrot.slane %v1080_v53, 4  ;;  %v1095_v22 = vrot.slane %v1094_v5, 4  ;;  %v394_v53 = vld [vmem:[%s9482_s19 + $0x34] sm:$0xf]  ;;  %v2114_v5 = vrot.slane %v2112_v10, 4  ;;  %v1131_v3 = vshll.u32 %v889_v35, 16 }
 0x115   : > { %455 = vst.msk [vmem:[#allocation2 + $0x28] sm:$0xf] %vm444_vm6, %v394_v53  ;;  %v1893_v48 = vld [vmem:[%s9489_s7 + $0x54] sm:$0xf]  ;;  %v9820_v10 = vld [vmem:[%s9482_s19 + $0x58] sm:$0xf] }
 0x116   : > { %v1086_v17 = vsel %vm9550_vm5, %v1081_v2, %v1085_v63  ;;  %v1100_v32 = vsel %vm9550_vm5, %v1095_v22, %v1099_v23  ;;  %v1105_v63 = vrot.slane %v1104_v56, 4  ;;  %v3081_v23 = vrot.slane %v2891_v11, 5  ;;  %v522_v60 = vld [vmem:[%s9489_s7 + $0x50] sm:$0xf] }
 0x117   : > { %1649 = vrot.lane.b32.xlu0 %v1066_v15, %s9160_s8  ;;  %v4422_v15 = vsel %vm4420_vm7, %v8782_v61, 0  ;;  %v520_v61 = vld [vmem:[%s9489_s7 + $0x44] sm:$0xf]  ;;  %v1133_v56 = vrot.slane %v1131_v3, 5  ;;  %vm1811_vm10 = vcmask 93248   ;;  %vm2812_vm11 = vcmask 126048  }
 0x118   : > { %647 = vrot.lane.b32.xlu1 %v517_v19, %s9157_s29  ;;  %v2086_v19 = vrot.slane %v2084_v0, 5  ;;  %8108 = vmatpush3.bf16.msra.mxu0 %v4422_v15  ;;  %v2105_v0 = vor.u32 %v2104_v57, %v2100_v34  ;;  %v1110_v12 = vsel %vm9550_vm5, %v1105_v63, %v1109_v58  ;;  %v2132_v57 = vshll.u32 %v1893_v48, 16  ;;  %v9878_v3 = vld [vmem:[%s9489_s7 + $0x58] sm:$0xf] }
 0x119   : > { %8329 = vmatprep.subr.bf16.mxu0 %v9162_v9  ;;  %8552 = vmatpush3.bf16.msra.mxu1 %v4422_v15  ;;  %vm3416_vm12 = vcmask 158848   ;;  %vm12476_vm13 = vcmask 191648   ;;  %vm4338_vm14 = vcmask 195584   ;;  %vm6135_vm1 = vcmask 64512  }
 0x11a   : > { %v2087_v29 = vsel %vm9550_vm5, %v2082_v18, %v2086_v19  ;;  %8217 = vmatprep.subr.bf16.mxu1 %v9162_v9  ;;  %v2106_v15 = vrot.slane %v2105_v0, 4  ;;  %v1119_v18 = vrot.slane %v1117_v4, 5  ;;  %v1141_v4 = vshll.u32 %v9820_v10, 16 }
 0x11b   : > { %2650 = vrot.lane.b32.xlu0 %v2067_v27, %s9161_s13  ;;  %v3074_v27 = vrot.slane %v2888_v20, 5  ;;  %v2118_v20 = vshll.u32 %v1891_v8, 16  ;;  %v398_v8 = vld [vmem:[%s9482_s19 + $0x48] sm:$0xf]  ;;  %vm6480_vm2 = vcmask 1046528  }
 0x11c   : > { %1651 = vrot.lane.b32.xlu1 %v1076_v31, %s9160_s8  ;;  %v3492_v31 = vld [vmem:[%s9489_s7 + $0x3c] sm:$0x1]  ;;  %459 = vst.msk [vmem:[#allocation2 + $0x38] sm:$0xf] %vm444_vm6, %v398_v8  ;;  %vm6154_vm3 = vsmask.f32 7424 }
 0x11d   : > { %v3075_v38 = vsel %vm9515_vm4, %v3073_v26, %v3074_v27  ;;  %v3675_v44 = vrot.slane %v3492_v31, 5  ;;  %v2892_v26 = vld [vmem:[%s9482_s19 + $0x4c] sm:$0x1]  ;;  %v1122_v27 = vshrl.u32 %v888_v16, 16  ;;  %v2120_v31 = vrot.slane %v2118_v20, 5 }
 0x11e   : > { %v3084_v40 = vrot.slane %v2892_v26, 5  ;;  %v9844_v20 = vrot.slane %v1141_v4, 5  ;;  %v3498_v26 = vld [vmem:[%s9489_s7 + $0x54] sm:$0xf]  ;;  %v524_v4 = vld [vmem:[%s9489_s7 + $0x58] sm:$0xf] }
 0x11f   : > { %3254 = vrot.lane.b32.xlu0 %v3069_v36, %s9158_s27  ;;  %v2890_v36 = vld [vmem:[%s9482_s19 + $0x44] sm:$0xf]  ;;  %v3676_v54 = vsel %vm9515_vm4, %v3674_v41, %v3675_v44  ;;  %v3496_v41 = vld [vmem:[%s9489_s7 + $0x4c] sm:$0x1]  ;;  %v1124_v42 = vrot.slane %v1122_v27, 4  ;;  %v1127_v44 = vrot.slane %v1125_v28, 5 }
 0x120   : > { %2652 = vrot.lane.b32.xlu1 %v2077_v47, %s9161_s13  ;;  %v3078_v46 = vrot.slane %v2890_v36, 5  ;;  %v9760_v47 = vld [vmem:[%s9489_s7 + $0x44] sm:$0xf]  ;;  %v1145_v28 = vshrl.u32 %v9820_v10, 16 }
 0x121   : > { %v3679_v51 = vrot.slane %v9760_v47, 5 }
 0x122   : > { %v3079_v55 = vsel %vm9515_vm4, %v7696_v45, %v3078_v46  ;;  %v3080_v22 = vrot.slane %v3078_v46, 4 }
 0x123   : > { %3855 = vrot.lane.b32.xlu0 %v3670_v49, %s9159_s15  ;;  %v1111_v49 = vshrl.u32 %v886_v37, 16  ;;  %v3681_v36 = vrot.slane %v3679_v51, 4  ;;  %v3682_v37 = vrot.slane %v3495_v25, 5  ;;  %v3497_v25 = vld [vmem:[%s9489_s7 + $0x50] sm:$0xe] }
 0x124   : > { %3256 = vrot.lane.b32.xlu1 %v3072_v59, %s9158_s27  ;;  %v2108_v59 = vshll.u32 %v1890_v52, 16  ;;  %v3082_v34 = vsel %vm9515_vm4, %v3080_v22, %v3081_v23  ;;  %v3685_v52 = vrot.slane %v3496_v41, 5 }
 0x125   : > { %v1113_v13 = vrot.slane %v1111_v49, 4  ;;  %v3683_v49 = vsel %vm9515_vm4, %v3681_v36, %v3682_v37  ;;  %v3684_v50 = vrot.slane %v3682_v37, 4  ;;  %v9864_v36 = vld [vmem:[%s9482_s19 + $0x58] sm:$0xf] }
 0x127   : > { %649 = vrot.lane.b32.xlu0 %v518_v1, %s9157_s29  ;;  %v2110_v1 = vrot.slane %v2108_v59, 5  ;;  %v1114_v2 = vor.u32 %v1113_v13, %v1109_v58  ;;  %v2136_v58 = vshrl.u32 %v1893_v48, 16  ;;  %v397_v13 = vld [vmem:[%s9482_s19 + $0x44] sm:$0xf] }
 0x128   : > { %3857 = vrot.lane.b32.xlu1 %v3673_v62, %s9159_s15  ;;  %v3680_v62 = vsel %vm9515_vm4, %v7716_v39, %v3679_v51  ;;  %v1128_v51 = vor.u32 %v1127_v44, %v1124_v42  ;;  %458 = vst.msk [vmem:[#allocation2 + $0x34] sm:$0xf] %vm444_vm6, %v397_v13  ;;  %v7717_v42 = vrot.slane %v3497_v25, 9  ;;  %v3689_v44 = vrot.slane %v3498_v26, 5  ;;  %v2896_v26 = vld [vmem:[%s9482_s19 + $0x5c] sm:$0x1] }
 0x129   : > { %v2115_v19 = vor.u32 %v2114_v5, %v2110_v1  ;;  %v2111_v24 = vsel %vm9550_vm5, %v2106_v15, %v2110_v1  ;;  %v2134_v1 = vrot.slane %v2132_v57, 5  ;;  %v2138_v5 = vrot.slane %v2136_v58, 4  ;;  %v523_v15 = vld [vmem:[%s9489_s7 + $0x54] sm:$0xf] }
 0x12b   : > { %1653 = vrot.lane.b32.xlu0 %v1086_v17, %s9160_s8  ;;  %v1115_v17 = vrot.slane %v1114_v2, 4  ;;  %v2116_v30 = vrot.slane %v2115_v19, 4  ;;  %v2139_v22 = vor.u32 %v2138_v5, %v2134_v1 }
 0x12c   : > { %651 = vrot.lane.b32.xlu1 %v519_v21, %s9157_s29  ;;  %v395_v21 = vld [vmem:[%s9482_s19 + $0x38] sm:$0xf] }
 0x12d   : > { %456 = vst.msk [vmem:[#allocation2 + $0x2c] sm:$0xf] %vm444_vm6, %v395_v21  ;;  %v2121_v47 = vsel %vm9550_vm5, %v2116_v30, %v2120_v31  ;;  %v2894_v21 = vld [vmem:[%s9482_s19 + $0x54] sm:$0xf]  ;;  %v399_v31 = vld [vmem:[%s9482_s19 + $0x50] sm:$0xf] }
 0x12e   : > { %v3088_v30 = vrot.slane %v2894_v21, 5  ;;  %460 = vst.msk [vmem:[#allocation2 + $0x3c] sm:$0xf] %vm444_vm6, %v399_v31 }
 0x12f   : > { %2654 = vrot.lane.b32.xlu0 %v2087_v29, %s9161_s13  ;;  %v1120_v29 = vsel %vm9550_vm5, %v1115_v17, %v1119_v18  ;;  %v2893_v17 = vld [vmem:[%s9482_s19 + $0x50] sm:$0xe] }
 0x130   : > { %1655 = vrot.lane.b32.xlu1 %v1100_v32, %s9160_s8  ;;  %v1892_v32 = vld [vmem:[%s9489_s7 + $0x50] sm:$0xf] }
 0x131   : > { %v2123_v45 = vshrl.u32 %v1892_v32, 16  ;;  %v2126_v46 = vshll.u32 %v1892_v32, 16 }
 0x133   : > { %3258 = vrot.lane.b32.xlu0 %v3075_v38, %s9158_s27  ;;  %v3083_v38 = vrot.slane %v3081_v23, 4  ;;  %v2125_v53 = vrot.slane %v2123_v45, 4 }
 0x134   : > { %2656 = vrot.lane.b32.xlu1 %v2101_v7, %s9161_s13  ;;  %v1135_v7 = vshrl.u32 %v889_v35, 16 }
 0x135   : > { %v3085_v39 = vsel %vm9515_vm4, %v3083_v38, %v3084_v40  ;;  %v892_v38 = vld [vmem:[%s9482_s19 + $0x60] sm:$0xf]  ;;  %v400_v40 = vld [vmem:[%s9482_s19 + $0x54] sm:$0xf] }
 0x136   : > { %v1137_v59 = vrot.slane %v1135_v7, 4  ;;  %461 = vst.msk [vmem:[#allocation2 + $0x40] sm:$0xf] %vm444_vm6, %v400_v40  ;;  %v1147_v7 = vrot.slane %v1145_v28, 4 }
 0x137   : > { %3859 = vrot.lane.b32.xlu0 %v3676_v54, %s9159_s15  ;;  %v2128_v54 = vrot.slane %v2126_v46, 5  ;;  %v3090_v46 = vrot.slane %v3088_v30, 4 }
 0x138   : > { %3260 = vrot.lane.b32.xlu1 %v3079_v55, %s9158_s27  ;;  %v1138_v2 = vor.u32 %v1137_v59, %v1133_v56  ;;  %v1148_v58 = vor.u32 %v1147_v7, %v9844_v20  ;;  %v3500_v7 = vld [vmem:[%s9489_s7 + $0x5c] sm:$0x1] }
 0x139   : > { %v2129_v63 = vor.u32 %v2128_v54, %v2125_v53  ;;  %v1896_v53 = vld [vmem:[%s9489_s7 + $0x60] sm:$0xf]  ;;  %v3690_v54 = vsel %vm9515_vm4, %v7717_v42, %v3689_v44 }
 0x13a   : > { %v1139_v19 = vrot.slane %v1138_v2, 4  ;;  %v9902_v2 = vld [vmem:[%s9482_s19 + $0x64] sm:$0xf]  ;;  %v1149_v8 = vrot.slane %v1148_v58, 4 }
 0x13b   : > { %653 = vrot.lane.b32.xlu0 %v520_v61, %s9157_s29  ;;  %v3686_v61 = vsel %vm9515_vm4, %v3684_v50, %v3685_v52  ;;  %v2130_v16 = vrot.slane %v2129_v63, 4  ;;  %v891_v50 = vld [vmem:[%s9482_s19 + $0x5c] sm:$0x1]  ;;  %v1156_v52 = vshrl.u32 %v892_v38, 16  ;;  %v2157_v63 = vshrl.u32 %v1896_v53, 16 }
 0x13c   : > { %3861 = vrot.lane.b32.xlu1 %v3680_v62, %s9159_s15  ;;  %v1129_v62 = vrot.slane %v1128_v51, 4  ;;  %v1144_v33 = vsel %vm9550_vm5, %v1139_v19, %v9844_v20  ;;  %v1151_v59 = vshll.u32 %v891_v50, 16  ;;  %v1165_v19 = vshll.u32 %v9902_v2, 16  ;;  %v403_v58 = vld [vmem:[%s9482_s19 + $0x64] sm:$0xf] }
 0x13d   : > { %v2135_v27 = vsel %vm9550_vm5, %v2130_v16, %v2134_v1  ;;  %v401_v16 = vld [vmem:[%s9482_s19 + $0x58] sm:$0xf]  ;;  %464 = vst.msk [vmem:[#allocation2 + $0x4c] sm:$0xf] %vm444_vm6, %v403_v58 }
 0x13e   : > { %462 = vst.msk [vmem:[#allocation2 + $0x44] sm:$0xf] %vm444_vm6, %v401_v16  ;;  %v9932_v31 = vrot.slane %v1165_v19, 5 }
 0x13f   : > { %1657 = vrot.lane.b32.xlu0 %v1110_v12, %s9160_s8  ;;  %v9835_v12 = vld [vmem:[%s9489_s7 + $0x58] sm:$0xf] }
 0x140   : > { %655 = vrot.lane.b32.xlu1 %v521_v14, %s9157_s29  ;;  %v1134_v14 = vsel %vm9550_vm5, %v1129_v62, %v1133_v56  ;;  %v2142_v23 = vshll.u32 %v9835_v12, 16  ;;  %v2146_v41 = vshrl.u32 %v9835_v12, 16  ;;  %v3692_v56 = vrot.slane %v9878_v3, 5  ;;  %v1898_v3 = vld [vmem:[%s9489_s7 + $0x68] sm:$0xf] }
 0x141   : > { %v1153_v12 = vrot.slane %v1151_v59, 5  ;;  %v2180_v16 = vshrl.u32 %v1898_v3, 16 }
 0x142   : > { %v9861_v35 = vrot.slane %v2142_v23, 5  ;;  %v2148_v10 = vrot.slane %v2146_v41, 4 }
 0x143   : > { %2658 = vrot.lane.b32.xlu0 %v2111_v24, %s9161_s13  ;;  %v1154_v23 = vsel %vm9550_vm5, %v1149_v8, %v1153_v12 }
 0x144   : > { %1659 = vrot.lane.b32.xlu1 %v1120_v29, %s9160_s8  ;;  %v7697_v29 = vrot.slane %v2893_v17, 9 }
 0x146   : > { %v3089_v45 = vsel %vm9515_vm4, %v7697_v29, %v3088_v30  ;;  %v525_v29 = vld [vmem:[%s9489_s7 + $0x60] sm:$0xf] }
 0x147   : > { %3262 = vrot.lane.b32.xlu0 %v3082_v34, %s9158_s27  ;;  %v2140_v34 = vrot.slane %v2139_v22, 4  ;;  %v9922_v22 = vld [vmem:[%s9489_s7 + $0x64] sm:$0xf] }
 0x148   : > { %2660 = vrot.lane.b32.xlu1 %v2121_v47, %s9161_s13  ;;  %v3091_v47 = vrot.slane %v9864_v36, 5  ;;  %v894_v36 = vld [vmem:[%s9482_s19 + $0x68] sm:$0xf] }
 0x149   : > { %v634_v55 = vpop.permute.xlu0 %633 }
 0x14a   : > { %811 = vst.msk [vmem:[#allocation2 + $0xc] sm:$0xf] %vm807_vm9, %v634_v55  ;;  %v3691_v55 = vrot.slane %v3689_v44, 4  ;;  %v3092_v57 = vsel %vm9515_vm4, %v3090_v46, %v3091_v47 }
 0x14b   : > { %3863 = vrot.lane.b32.xlu0 %v3683_v49, %s9159_s15  ;;  %v2145_v49 = vsel %vm9550_vm5, %v2140_v34, %v9861_v35 }
 0x14c   : > { %3264 = vrot.lane.b32.xlu1 %v3085_v39, %s9158_s27  ;;  %v1159_v39 = vshll.u32 %v892_v38, 16  ;;  %v3693_v5 = vsel %vm9515_vm4, %v3691_v55, %v3692_v56  ;;  %v3094_v38 = vrot.slane %v2896_v26, 5  ;;  %v1175_v55 = vshll.u32 %v894_v36, 16  ;;  %v1899_v26 = vld [vmem:[%s9489_s7 + $0x6c] sm:$0x1] }
 0x14d   : > { %v636_v0 = vpop.permute.xlu0 %635 }
 0x14e   : > { %812 = vst.msk [vmem:[#allocation2 + $0x10] sm:$0xf] %vm807_vm9, %v636_v0  ;;  %v9832_v11 = vpop.permute.xlu1 %3244  ;;  %v1161_v62 = vrot.slane %v1159_v39, 5  ;;  %v2160_v0 = vshll.u32 %v1896_v53, 16  ;;  %v3501_v39 = vld [vmem:[%s9489_s7 + $0x60] sm:$0xe] }
 0x14f   : > { %657 = vrot.lane.b32.xlu0 %v522_v60, %s9157_s29  ;;  %v1895_v60 = vld [vmem:[%s9489_s7 + $0x5c] sm:$0x1]  ;;  %v3694_v53 = vrot.slane %v3692_v56, 4  ;;  %v7718_v56 = vrot.slane %v3501_v39, 9 }
 0x150   : > { %3865 = vrot.lane.b32.xlu1 %v3686_v61, %s9159_s15  ;;  %v1158_v61 = vrot.slane %v1156_v52, 4  ;;  %v2162_v20 = vrot.slane %v2160_v0, 5  ;;  %v2170_v52 = vshrl.u32 %v9922_v22, 16  ;;  %v404_v0 = vld [vmem:[%s9482_s19 + $0x68] sm:$0xf] }
 0x151   : > { %v3243_v18 = vpop.permute.xlu0 %3242  ;;  %465 = vst.msk [vmem:[#allocation2 + $0x50] sm:$0xf] %vm444_vm6, %v404_v0 }
 0x152   : > { %v9848_v24 = vpop.permute.xlu1 %3845 }
 0x153   : > { %1661 = vrot.lane.b32.xlu0 %v1134_v14, %s9160_s8  ;;  %v2149_v14 = vor.u32 %v2148_v10, %v9861_v35  ;;  %v1169_v35 = vshrl.u32 %v9902_v2, 16  ;;  %v1177_v2 = vrot.slane %v1175_v55, 5  ;;  %v1900_v55 = vld [vmem:[%s9489_s7 + $0x70] sm:$0xf] }
 0x154   : > { %659 = vrot.lane.b32.xlu1 %v523_v15, %s9157_s29  ;;  %v2152_v15 = vshll.u32 %v1895_v60, 16 }
 0x155   : > { %v3844_v32 = vpop.permute.xlu0 %3843 }
 0x156   : > { %v1638_v37 = vpop.permute.xlu1 %1637  ;;  %v2154_v25 = vrot.slane %v2152_v15, 5  ;;  %v2176_v15 = vshll.u32 %v1898_v3, 16  ;;  %v2191_v3 = vshrl.u32 %v1900_v55, 16 }
 0x157   : > { %1815 = vst.msk [vmem:[#allocation2 + $0xc] sm:$0xf] %vm1811_vm10, %v1638_v37  ;;  %2662 = vrot.lane.b32.xlu0 %v2135_v27, %s9161_s13  ;;  %v402_v27 = vld [vmem:[%s9482_s19 + $0x60] sm:$0xf]  ;;  %v3093_v37 = vrot.slane %v3091_v47, 4 }
 0x158   : > { %1663 = vrot.lane.b32.xlu1 %v1144_v33, %s9160_s8  ;;  %v2166_v33 = vshll.u32 %v9922_v22, 16  ;;  %463 = vst.msk [vmem:[#allocation2 + $0x48] sm:$0xf] %vm444_vm6, %v402_v27  ;;  %v2182_v27 = vrot.slane %v2180_v16, 4 }
 0x159   : > { %v2639_v48 = vpop.permute.xlu0 %2638  ;;  %v3095_v50 = vsel %vm9515_vm4, %v3093_v37, %v3094_v38  ;;  %v2186_v38 = vshll.u32 %v1899_v26, 16  ;;  %v528_v26 = vld [vmem:[%s9489_s7 + $0x70] sm:$0xf] }
 0x15a   : > { %2816 = vst.msk [vmem:[#allocation2 + $0xc] sm:$0xf] %vm2812_vm11, %v2639_v48  ;;  %v1640_v51 = vpop.permute.xlu1 %1639  ;;  %v9948_v46 = vrot.slane %v2166_v33, 5  ;;  %v2897_v48 = vld [vmem:[%s9482_s19 + $0x60] sm:$0xe] }
 0x15b   : > { %3420 = vst.msk [vmem:[#allocation2 + $0xc] sm:$0xf] %vm3416_vm12, %v3243_v18  ;;  %3266 = vrot.lane.b32.xlu0 %v3089_v45, %s9158_s27  ;;  %v1162_v18 = vor.u32 %v1161_v62, %v1158_v61  ;;  %v3502_v62 = vld [vmem:[%s9489_s7 + $0x64] sm:$0xf]  ;;  %v3503_v33 = vld [vmem:[%s9489_s7 + $0x68] sm:$0xf] }
 0x15c   : > { %1816 = vst.msk [vmem:[#allocation2 + $0x10] sm:$0xf] %vm1811_vm10, %v1640_v51  ;;  %2664 = vrot.lane.b32.xlu1 %v2145_v49, %s9161_s13  ;;  %v2898_v49 = vld [vmem:[%s9482_s19 + $0x64] sm:$0xf]  ;;  %v1171_v51 = vrot.slane %v1169_v35, 4 }
 0x15d   : > { %4021 = vst.msk [vmem:[#allocation2 + $0xc] sm:$0xf] %vm12476_vm13, %v3844_v32  ;;  %v638_v13 = vpop.permute.xlu0 %637  ;;  %v1163_v30 = vrot.slane %v1162_v18, 4  ;;  %v3098_v60 = vrot.slane %v2898_v49, 5  ;;  %v897_v49 = vld [vmem:[%s9482_s19 + $0x74] sm:$0xf] }
 0x15e   : > { %813 = vst.msk [vmem:[#allocation2 + $0x14] sm:$0xf] %vm807_vm9, %v638_v13  ;;  %v2641_v1 = vpop.permute.xlu1 %2640  ;;  %v7698_v13 = vrot.slane %v2897_v48, 9 }
 0x15f   : > { %2817 = vst.msk [vmem:[#allocation2 + $0x10] sm:$0xf] %vm2812_vm11, %v2641_v1  ;;  %3867 = vrot.lane.b32.xlu0 %v3690_v54, %s9159_s15  ;;  %v1168_v44 = vsel %vm9550_vm5, %v1163_v30, %v9932_v31  ;;  %v3695_v54 = vrot.slane %v3500_v7, 5  ;;  %v527_v30 = vld [vmem:[%s9489_s7 + $0x68] sm:$0xf] }
 0x160   : > { %3421 = vst.msk [vmem:[#allocation2 + $0x10] sm:$0xf] %vm3416_vm12, %v9832_v11  ;;  %3268 = vrot.lane.b32.xlu1 %v3092_v57, %s9158_s27  ;;  %v2159_v11 = vrot.slane %v2157_v63, 4  ;;  %v1179_v57 = vshrl.u32 %v894_v36, 16  ;;  %v1172_v63 = vor.u32 %v1171_v51, %v9932_v31  ;;  %v3099_v12 = vsel %vm9515_vm4, %v7698_v13, %v3098_v60  ;;  %v2899_v31 = vld [vmem:[%s9482_s19 + $0x68] sm:$0xf] }
 0x161   : > { %4022 = vst.msk [vmem:[#allocation2 + $0x10] sm:$0xf] %vm12476_vm13, %v9848_v24  ;;  %v1642_v17 = vpop.permute.xlu0 %1641  ;;  %v2150_v24 = vrot.slane %v2149_v14, 4  ;;  %v3696_v1 = vsel %vm9515_vm4, %v3694_v53, %v3695_v54  ;;  %v3699_v14 = vrot.slane %v3502_v62, 5  ;;  %v3101_v7 = vrot.slane %v2899_v31, 5 }
 0x162   : > { %1817 = vst.msk [vmem:[#allocation2 + $0x14] sm:$0xf] %vm1811_vm10, %v1642_v17  ;;  %v640_v21 = vpop.permute.xlu1 %639  ;;  %v2163_v32 = vor.u32 %v2162_v20, %v2159_v11  ;;  %v895_v17 = vld [vmem:[%s9482_s19 + $0x6c] sm:$0x1]  ;;  %v1173_v19 = vrot.slane %v1172_v63, 4  ;;  %v2188_v54 = vrot.slane %v2186_v38, 5 }
 0x163   : > { %814 = vst.msk [vmem:[#allocation2 + $0x18] sm:$0xf] %vm807_vm9, %v640_v21  ;;  %661 = vrot.lane.b32.xlu0 %v524_v4, %s9157_s29  ;;  %v2155_v40 = vsel %vm9550_vm5, %v2150_v24, %v2154_v25  ;;  %v2172_v4 = vrot.slane %v2170_v52, 4  ;;  %v526_v11 = vld [vmem:[%s9489_s7 + $0x64] sm:$0xf]  ;;  %v1185_v22 = vshll.u32 %v895_v17, 16  ;;  %v3700_v24 = vsel %vm9515_vm4, %v7718_v56, %v3699_v14 }
 0x164   : > { %3869 = vrot.lane.b32.xlu1 %v3693_v5, %s9159_s15  ;;  %v2164_v45 = vrot.slane %v2163_v32, 4  ;;  %v1181_v5 = vrot.slane %v1179_v57, 4  ;;  %v2178_v25 = vrot.slane %v2176_v15, 5  ;;  %v3100_v32 = vrot.slane %v3098_v60, 4  ;;  %v405_v57 = vld [vmem:[%s9482_s19 + $0x70] sm:$0xf] }
 0x165   : > { %v2643_v28 = vpop.permute.xlu0 %2642  ;;  %v2173_v20 = vor.u32 %v2172_v4, %v9948_v46  ;;  %v1187_v37 = vrot.slane %v1185_v22, 5  ;;  %v3701_v36 = vrot.slane %v3699_v14, 4  ;;  %v3504_v13 = vld [vmem:[%s9489_s7 + $0x6c] sm:$0x1]  ;;  %466 = vst.msk [vmem:[#allocation2 + $0x54] sm:$0xf] %vm444_vm6, %v405_v57 }
 0x166   : > { %2818 = vst.msk [vmem:[#allocation2 + $0x14] sm:$0xf] %vm2812_vm11, %v2643_v28  ;;  %v1644_v34 = vpop.permute.xlu1 %1643  ;;  %v2169_v10 = vsel %vm9550_vm5, %v2164_v45, %v9948_v46  ;;  %v1182_v21 = vor.u32 %v1181_v5, %v1177_v2  ;;  %v3102_v60 = vsel %vm9515_vm4, %v3100_v32, %v3101_v7  ;;  %v2194_v56 = vshll.u32 %v1900_v55, 16  ;;  %v406_v4 = vld [vmem:[%s9482_s19 + $0x74] sm:$0xf] }
 0x167   : > { %1818 = vst.msk [vmem:[#allocation2 + $0x18] sm:$0xf] %vm1811_vm10, %v1644_v34  ;;  %1665 = vrot.lane.b32.xlu0 %v1154_v23, %s9160_s8  ;;  %v2174_v34 = vrot.slane %v2173_v20, 4  ;;  %v3705_v15 = vrot.slane %v3504_v13, 5  ;;  %v2901_v38 = vld [vmem:[%s9482_s19 + $0x70] sm:$0xe] }
 0x168   : > { %663 = vrot.lane.b32.xlu1 %v525_v29, %s9157_s29  ;;  %v8783_v41 = vld [vmem:[#allocation2 + $0xc] sm:$0xff]   ;;  %v1178_v29 = vsel %vm9550_vm5, %v1173_v19, %v1177_v2  ;;  %v1183_v35 = vrot.slane %v1182_v21, 4  ;;  %v1203_v2 = vshrl.u32 %v897_v49, 16  ;;  %467 = vst.msk [vmem:[#allocation2 + $0x58] sm:$0xf] %vm444_vm6, %v406_v4  ;;  %v2196_v19 = vrot.slane %v2194_v56, 5 }
 0x169   : > { %v3247_v42 = vpop.permute.xlu0 %3246  ;;  %8110 = vmatmul.mubr.msk.bf16.vlgmr.msra.gmra.mrb[0].mxu0 %vm4338_vm14, %v8783_v41  ;;  %v2183_v41 = vor.u32 %v2182_v27, %v2178_v25  ;;  %v2179_v48 = vsel %vm9550_vm5, %v2174_v34, %v2178_v25  ;;  %v898_v25 = vld [vmem:[%s9482_s19 + $0x78] sm:$0xf] }
 0x16a   : > { %3422 = vst.msk [vmem:[#allocation2 + $0x14] sm:$0xf] %vm3416_vm12, %v3247_v42  ;;  %v2645_v47 = vpop.permute.xlu1 %2644  ;;  %8113 = vmatprep.mubr.msk.bf16.mxu0 %vm9163_vm8, %v9162_v9  ;;  %v2900_v42 = vld [vmem:[%s9482_s19 + $0x6c] sm:$0x1]  ;;  %v1188_v51 = vsel %vm9550_vm5, %v1183_v35, %v1187_v37  ;;  %v1902_v37 = vld [vmem:[%s9489_s7 + $0x78] sm:$0xf] }
 0x16b   : > { %2819 = vst.msk [vmem:[#allocation2 + $0x18] sm:$0xf] %vm2812_vm11, %v2645_v47  ;;  %2666 = vrot.lane.b32.xlu0 %v2155_v40, %s9161_s13  ;;  %v3702_v47 = vrot.slane %v3503_v33, 5  ;;  %v2184_v53 = vrot.slane %v2183_v41, 4  ;;  %v1209_v33 = vshll.u32 %v898_v25, 16  ;;  %v2214_v56 = vshrl.u32 %v1902_v37, 16 }
 0x16c   : > { %1667 = vrot.lane.b32.xlu1 %v1168_v44, %s9160_s8  ;;  %v896_v44 = vld [vmem:[%s9482_s19 + $0x70] sm:$0xf]  ;;  %v407_v13 = vld [vmem:[%s9482_s19 + $0x78] sm:$0xf] }
 0x16d   : > { %v3848_v59 = vpop.permute.xlu0 %3847  ;;  %v1193_v52 = vshll.u32 %v896_v44, 16  ;;  %v2189_v0 = vsel %vm9550_vm5, %v2184_v53, %v2188_v54  ;;  %v3704_v14 = vrot.slane %v3702_v47, 4  ;;  %v3505_v53 = vld [vmem:[%s9489_s7 + $0x70] sm:$0xe]  ;;  %v3506_v54 = vld [vmem:[%s9489_s7 + $0x74] sm:$0xf] }
 0x16e   : > { %4023 = vst.msk [vmem:[#allocation2 + $0x14] sm:$0xf] %vm12476_vm13, %v3848_v59  ;;  %v3249_v61 = vpop.permute.xlu1 %3248  ;;  %v3103_v59 = vrot.slane %v3101_v7, 4  ;;  %v10059_v7 = vrot.slane %v1209_v33, 5  ;;  %v10091_v4 = vld [vmem:[%s9489_s7 + $0x78] sm:$0xf] }
 0x16f   : > { %3423 = vst.msk [vmem:[#allocation2 + $0x18] sm:$0xf] %vm3416_vm12, %v3249_v61  ;;  %3270 = vrot.lane.b32.xlu0 %v3095_v50, %s9158_s27  ;;  %v1190_v50 = vshrl.u32 %v896_v44, 16  ;;  %v1195_v62 = vrot.slane %v1193_v52, 5  ;;  %v3706_v27 = vsel %vm9515_vm4, %v3704_v14, %v3705_v15  ;;  %v7699_v52 = vrot.slane %v2901_v38, 9 }
 0x170   : > { %2668 = vrot.lane.b32.xlu1 %v2169_v10, %s9161_s13  ;;  %v3104_v10 = vrot.slane %v2900_v42, 5  ;;  %v2902_v42 = vld [vmem:[%s9482_s19 + $0x74] sm:$0xf]  ;;  %468 = vst.msk [vmem:[#allocation2 + $0x5c] sm:$0xf] %vm444_vm6, %v407_v13 }
 0x171   : > { %v642_v8 = vpop.permute.xlu0 %641  ;;  %v1192_v61 = vrot.slane %v1190_v50, 4  ;;  %v1213_v50 = vshrl.u32 %v898_v25, 16 }
 0x172   : > { %815 = vst.msk [vmem:[#allocation2 + $0x1c] sm:$0xf] %vm807_vm9, %v642_v8  ;;  %v3850_v18 = vpop.permute.xlu1 %3849  ;;  %v1901_v8 = vld [vmem:[%s9489_s7 + $0x74] sm:$0xf]  ;;  %v3105_v16 = vsel %vm9515_vm4, %v3103_v59, %v3104_v10  ;;  %v10076_v10 = vld [vmem:[%s9482_s19 + $0x78] sm:$0xf] }
 0x173   : > { %4024 = vst.msk [vmem:[#allocation2 + $0x18] sm:$0xf] %vm12476_vm13, %v3850_v18  ;;  %3871 = vrot.lane.b32.xlu0 %v3696_v1, %s9159_s15  ;;  %v1199_v1 = vshll.u32 %v897_v49, 16  ;;  %v1196_v17 = vor.u32 %v1195_v62, %v1192_v61  ;;  %v2193_v18 = vrot.slane %v2191_v3, 4  ;;  %v2200_v21 = vshll.u32 %v1901_v8, 16 }
 0x174   : > { %3272 = vrot.lane.b32.xlu1 %v3099_v12, %s9158_s27  ;;  %v3703_v12 = vsel %vm9515_vm4, %v3701_v36, %v3702_v47  ;;  %v2204_v22 = vshrl.u32 %v1901_v8, 16  ;;  %v2210_v47 = vshll.u32 %v1902_v37, 16  ;;  %v900_v61 = vld [vmem:[%s9482_s19 + $0x80] sm:$0xf]  ;;  %v1215_v62 = vrot.slane %v1213_v50, 4 }
 0x175   : > { %v1646_v23 = vpop.permute.xlu0 %1645  ;;  %v1201_v20 = vrot.slane %v1199_v1, 5  ;;  %v2202_v31 = vrot.slane %v2200_v21, 5  ;;  %v1224_v14 = vshrl.u32 %v900_v61, 16  ;;  %v1227_v15 = vshll.u32 %v900_v61, 16  ;;  %v2904_v50 = vld [vmem:[%s9482_s19 + $0x7c] sm:$0x1] }
 0x176   : > { %1819 = vst.msk [vmem:[#allocation2 + $0x1c] sm:$0xf] %vm1811_vm10, %v1646_v23  ;;  %v644_v28 = vpop.permute.xlu1 %643  ;;  %v1205_v23 = vrot.slane %v1203_v2, 4  ;;  %v2206_v34 = vrot.slane %v2204_v22, 4  ;;  %v10073_v59 = vrot.slane %v2210_v47, 5  ;;  %v3111_v2 = vrot.slane %v10076_v10, 5 }
 0x177   : > { %816 = vst.msk [vmem:[#allocation2 + $0x20] sm:$0xf] %vm807_vm9, %v644_v28  ;;  %665 = vrot.lane.b32.xlu0 %v526_v11, %s9157_s29  ;;  %v1197_v28 = vrot.slane %v1196_v17, 4 }
 0x178   : > { %3873 = vrot.lane.b32.xlu1 %v3700_v24, %s9159_s15  ;;  %v1206_v32 = vor.u32 %v1205_v23, %v1201_v20  ;;  %v2207_v36 = vor.u32 %v2206_v34, %v2202_v31  ;;  %v530_v34 = vld [vmem:[%s9489_s7 + $0x78] sm:$0xf]  ;;  %v3113_v13 = vrot.slane %v3111_v2, 4 }
 0x179   : > { %v2647_v40 = vpop.permute.xlu0 %2646 }
 0x17a   : > { %2820 = vst.msk [vmem:[#allocation2 + $0x1c] sm:$0xf] %vm2812_vm11, %v2647_v40  ;;  %v1648_v45 = vpop.permute.xlu1 %1647  ;;  %v8784_v46 = vld [vmem:[#allocation2 + $0x14] sm:$0xff]   ;;  %v1202_v40 = vsel %vm9550_vm5, %v1197_v28, %v1201_v20  ;;  %v3712_v20 = vrot.slane %v10091_v4, 5  ;;  %v1229_v28 = vrot.slane %v1227_v15, 5 }
 0x17b   : > { %1820 = vst.msk [vmem:[#allocation2 + $0x20] sm:$0xf] %vm1811_vm10, %v1648_v45  ;;  %1669 = vrot.lane.b32.xlu0 %v1178_v29, %s9160_s8  ;;  %8114 = vmatmul.mubr.msk.bf16.gmra.mrb[4].mxu0 %vm4338_vm14, %v8784_v46  ;;  %v2197_v29 = vor.u32 %v2196_v19, %v2193_v18  ;;  %v529_v45 = vld [vmem:[%s9489_s7 + $0x74] sm:$0xf]  ;;  %v1207_v46 = vrot.slane %v1206_v32, 4  ;;  %v1216_v19 = vor.u32 %v1215_v62, %v10059_v7 }
 0x17c   : > { %667 = vrot.lane.b32.xlu1 %v527_v30, %s9157_s29  ;;  %8117 = vmatprep.mubr.msk.bf16.mxu0 %vm9163_vm8, %v9162_v9  ;;  %v1904_v18 = vld [vmem:[%s9489_s7 + $0x80] sm:$0xf]  ;;  %v10115_v32 = vld [vmem:[%s9482_s19 + $0x84] sm:$0xf]  ;;  %v3508_v62 = vld [vmem:[%s9489_s7 + $0x7c] sm:$0x1] }
 0x17d   : > { %v3251_v39 = vpop.permute.xlu0 %3250  ;;  %v2198_v41 = vrot.slane %v2197_v29, 4  ;;  %v1212_v57 = vsel %vm9550_vm5, %v1207_v46, %v10059_v7  ;;  %v2225_v29 = vshrl.u32 %v1904_v18, 16  ;;  %v1217_v37 = vrot.slane %v1216_v19, 4  ;;  %v3509_v19 = vld [vmem:[%s9489_s7 + $0x80] sm:$0xe] }
 0x17e   : > { %3424 = vst.msk [vmem:[#allocation2 + $0x1c] sm:$0xf] %vm3416_vm12, %v3251_v39  ;;  %v2649_v58 = vpop.permute.xlu1 %2648  ;;  %v3108_v39 = vrot.slane %v2902_v42, 5 }
 0x17f   : > { %2821 = vst.msk [vmem:[#allocation2 + $0x20] sm:$0xf] %vm2812_vm11, %v2649_v58  ;;  %2670 = vrot.lane.b32.xlu0 %v2179_v48, %s9161_s13  ;;  %v2208_v58 = vrot.slane %v2207_v36, 4  ;;  %v10129_v36 = vld [vmem:[%s9489_s7 + $0x84] sm:$0xf] }
 0x180   : > { %1671 = vrot.lane.b32.xlu1 %v1188_v51, %s9160_s8  ;;  %v2203_v51 = vsel %vm9550_vm5, %v2198_v41, %v2202_v31  ;;  %v3109_v3 = vsel %vm9515_vm4, %v7699_v52, %v3108_v39  ;;  %v3110_v1 = vrot.slane %v3108_v39, 4  ;;  %v531_v39 = vld [vmem:[%s9489_s7 + $0x80] sm:$0xf] }
 0x181   : > { %v3852_v63 = vpop.permute.xlu0 %3851  ;;  %v2213_v8 = vsel %vm9550_vm5, %v2208_v58, %v10073_v59 }
 0x182   : > { %4025 = vst.msk [vmem:[#allocation2 + $0x1c] sm:$0xf] %vm12476_vm13, %v3852_v63  ;;  %v3253_v5 = vpop.permute.xlu1 %3252  ;;  %v7719_v63 = vrot.slane %v3505_v53, 9  ;;  %v3112_v22 = vsel %vm9515_vm4, %v3110_v1, %v3111_v2  ;;  %v409_v2 = vld [vmem:[%s9482_s19 + $0x84] sm:$0xf] }
 0x183   : > { %3425 = vst.msk [vmem:[#allocation2 + $0x20] sm:$0xf] %vm3416_vm12, %v3253_v5  ;;  %3274 = vrot.lane.b32.xlu0 %v3102_v60, %s9158_s27 }
 0x184   : > { %2672 = vrot.lane.b32.xlu1 %v2189_v0, %s9161_s13  ;;  %v3709_v0 = vrot.slane %v3506_v54, 5  ;;  %470 = vst.msk [vmem:[#allocation2 + $0x64] sm:$0xf] %vm444_vm6, %v409_v2 }
 0x185   : > { %v646_v11 = vpop.permute.xlu0 %645 }
 0x186   : > { %817 = vst.msk [vmem:[#allocation2 + $0x24] sm:$0xf] %vm807_vm9, %v646_v11  ;;  %v3854_v24 = vpop.permute.xlu1 %3853  ;;  %v2216_v11 = vrot.slane %v2214_v56, 4  ;;  %v3710_v21 = vsel %vm9515_vm4, %v7719_v63, %v3709_v0  ;;  %v3711_v23 = vrot.slane %v3709_v0, 4  ;;  %v10154_v56 = vld [vmem:[%s9482_s19 + $0x84] sm:$0xf] }
 0x187   : > { %4026 = vst.msk [vmem:[#allocation2 + $0x20] sm:$0xf] %vm12476_vm13, %v3854_v24  ;;  %3875 = vrot.lane.b32.xlu0 %v3703_v12, %s9159_s15  ;;  %v899_v12 = vld [vmem:[%s9482_s19 + $0x7c] sm:$0x1] }
 0x188   : > { %3276 = vrot.lane.b32.xlu1 %v3105_v16, %s9158_s27  ;;  %v408_v16 = vld [vmem:[%s9482_s19 + $0x80] sm:$0xf]  ;;  %v1219_v24 = vshll.u32 %v899_v12, 16  ;;  %v2217_v33 = vor.u32 %v2216_v11, %v10073_v59  ;;  %v1237_v59 = vshrl.u32 %v10115_v32, 16  ;;  %v3714_v12 = vrot.slane %v3712_v20, 4 }
 0x189   : > { %v1650_v30 = vpop.permute.xlu0 %1649  ;;  %469 = vst.msk [vmem:[#allocation2 + $0x60] sm:$0xf] %vm444_vm6, %v408_v16  ;;  %v3118_v16 = vrot.slane %v10154_v56, 5 }
 0x18a   : > { %1821 = vst.msk [vmem:[#allocation2 + $0x24] sm:$0xf] %vm1811_vm10, %v1650_v30  ;;  %v648_v35 = vpop.permute.xlu1 %647  ;;  %v2228_v30 = vshll.u32 %v1904_v18, 16  ;;  %v1221_v38 = vrot.slane %v1219_v24, 5  ;;  %v2238_v18 = vshrl.u32 %v10129_v36, 16  ;;  %v1239_v11 = vrot.slane %v1237_v59, 4 }
 0x18b   : > { %818 = vst.msk [vmem:[#allocation2 + $0x28] sm:$0xf] %vm807_vm9, %v648_v35  ;;  %669 = vrot.lane.b32.xlu0 %v528_v26, %s9157_s29  ;;  %v1903_v26 = vld [vmem:[%s9489_s7 + $0x7c] sm:$0x1]  ;;  %v3713_v35 = vsel %vm9515_vm4, %v3711_v23, %v3712_v20  ;;  %v10181_v20 = vld [vmem:[%s9489_s7 + $0x84] sm:$0xf] }
 0x18c   : > { %3877 = vrot.lane.b32.xlu1 %v3706_v27, %s9159_s15  ;;  %v1226_v27 = vrot.slane %v1224_v14, 4  ;;  %v2230_v46 = vrot.slane %v2228_v30, 5  ;;  %v1222_v47 = vsel %vm9550_vm5, %v1217_v37, %v1221_v38  ;;  %v3715_v14 = vrot.slane %v3508_v62, 5  ;;  %v410_v24 = vld [vmem:[%s9482_s19 + $0x88] sm:$0xf] }
 0x18d   : > { %v2651_v44 = vpop.permute.xlu0 %2650  ;;  %471 = vst.msk [vmem:[#allocation2 + $0x68] sm:$0xf] %vm444_vm6, %v410_v24  ;;  %v3719_v30 = vrot.slane %v10181_v20, 5 }
 0x18e   : > { %2822 = vst.msk [vmem:[#allocation2 + $0x24] sm:$0xf] %vm2812_vm11, %v2651_v44  ;;  %v1652_v48 = vpop.permute.xlu1 %1651  ;;  %v8785_v49 = vld [vmem:[#allocation2 + $0x1c] sm:$0xff]   ;;  %v1230_v42 = vor.u32 %v1229_v28, %v1226_v27  ;;  %v1233_v44 = vshll.u32 %v10115_v32, 16  ;;  %v3716_v27 = vsel %vm9515_vm4, %v3714_v12, %v3715_v14  ;;  %v2240_v32 = vrot.slane %v2238_v18, 4 }
 0x18f   : > { %1822 = vst.msk [vmem:[#allocation2 + $0x28] sm:$0xf] %vm1811_vm10, %v1652_v48  ;;  %1673 = vrot.lane.b32.xlu0 %v1202_v40, %s9160_s8  ;;  %8118 = vmatmul.mubr.msk.bf16.gmra.mrb[8].mxu0 %vm4338_vm14, %v8785_v49  ;;  %v2220_v40 = vshll.u32 %v1903_v26, 16  ;;  %v2218_v48 = vrot.slane %v2217_v33, 4  ;;  %v1906_v26 = vld [vmem:[%s9489_s7 + $0x88] sm:$0xf] }
 0x190   : > { %671 = vrot.lane.b32.xlu1 %v529_v45, %s9157_s29  ;;  %8121 = vmatprep.mubr.msk.bf16.mxu0 %vm9163_vm8, %v9162_v9  ;;  %v2227_v45 = vrot.slane %v2225_v29, 4  ;;  %v10138_v53 = vrot.slane %v1233_v44, 5  ;;  %v7720_v29 = vrot.slane %v3509_v19, 9  ;;  %v2248_v37 = vshrl.u32 %v1906_v26, 16  ;;  %v905_v19 = vld [vmem:[%s9482_s19 + $0x94] sm:$0xf] }
 0x191   : > { %v3255_v55 = vpop.permute.xlu0 %3254  ;;  %v2222_v49 = vrot.slane %v2220_v40, 5  ;;  %v3721_v18 = vrot.slane %v3719_v30, 4 }
 0x192   : > { %3426 = vst.msk [vmem:[#allocation2 + $0x24] sm:$0xf] %vm3416_vm12, %v3255_v55  ;;  %v2653_v60 = vpop.permute.xlu1 %2652  ;;  %v2231_v54 = vor.u32 %v2230_v46, %v2227_v45  ;;  %v2234_v55 = vshll.u32 %v10129_v36, 16  ;;  %v3720_v44 = vsel %vm9515_vm4, %v7720_v29, %v3719_v30  ;;  %v1267_v29 = vshll.u32 %v905_v19, 16 }
 0x193   : > { %2823 = vst.msk [vmem:[#allocation2 + $0x28] sm:$0xf] %vm2812_vm11, %v2653_v60  ;;  %2674 = vrot.lane.b32.xlu0 %v2203_v51, %s9161_s13  ;;  %v1231_v51 = vrot.slane %v1230_v42, 4  ;;  %v3114_v60 = vrot.slane %v2904_v50, 5  ;;  %v2223_v61 = vsel %vm9550_vm5, %v2218_v48, %v2222_v49  ;;  %v532_v42 = vld [vmem:[%s9489_s7 + $0x84] sm:$0xf] }
 0x194   : > { %1675 = vrot.lane.b32.xlu1 %v1212_v57, %s9160_s8  ;;  %v2232_v10 = vrot.slane %v2231_v54, 4  ;;  %v10159_v1 = vrot.slane %v2234_v55, 5  ;;  %v2250_v49 = vrot.slane %v2248_v37, 4  ;;  %v2907_v54 = vld [vmem:[%s9482_s19 + $0x88] sm:$0xf]  ;;  %v1271_v30 = vshrl.u32 %v905_v19, 16 }
 0x195   : > { %v3856_v5 = vpop.permute.xlu0 %3855  ;;  %v1236_v0 = vsel %vm9550_vm5, %v1231_v51, %v10138_v53  ;;  %v533_v51 = vld [vmem:[%s9489_s7 + $0x88] sm:$0xf] }
 0x196   : > { %4027 = vst.msk [vmem:[#allocation2 + $0x24] sm:$0xf] %vm12476_vm13, %v3856_v5  ;;  %v3257_v17 = vpop.permute.xlu1 %3256  ;;  %v2237_v4 = vsel %vm9550_vm5, %v2232_v10, %v10159_v1  ;;  %v2241_v46 = vor.u32 %v2240_v32, %v10159_v1  ;;  %v3511_v10 = vld [vmem:[%s9489_s7 + $0x88] sm:$0xf]  ;;  %v2908_v1 = vld [vmem:[%s9482_s19 + $0x8c] sm:$0x1] }
 0x197   : > { %3427 = vst.msk [vmem:[#allocation2 + $0x28] sm:$0xf] %vm3416_vm12, %v3257_v17  ;;  %3278 = vrot.lane.b32.xlu0 %v3109_v3, %s9158_s27  ;;  %v2905_v3 = vld [vmem:[%s9482_s19 + $0x80] sm:$0xe]  ;;  %v3115_v17 = vsel %vm9515_vm4, %v3113_v13, %v3114_v60  ;;  %v904_v60 = vld [vmem:[%s9482_s19 + $0x90] sm:$0xf] }
 0x198   : > { %2676 = vrot.lane.b32.xlu1 %v2213_v8, %s9161_s13  ;;  %v902_v8 = vld [vmem:[%s9482_s19 + $0x88] sm:$0xf]  ;;  %v7700_v15 = vrot.slane %v2905_v3, 9  ;;  %v3120_v3 = vrot.slane %v3118_v16, 4  ;;  %v1258_v2 = vshrl.u32 %v904_v60, 16  ;;  %v3124_v20 = vrot.slane %v2908_v1, 5 }
 0x199   : > { %v650_v25 = vpop.permute.xlu0 %649  ;;  %v1247_v23 = vshrl.u32 %v902_v8, 16 }
 0x19a   : > { %819 = vst.msk [vmem:[#allocation2 + $0x2c] sm:$0xf] %vm807_vm9, %v650_v25  ;;  %v3858_v31 = vpop.permute.xlu1 %3857  ;;  %v3119_v28 = vsel %vm9515_vm4, %v7700_v15, %v3118_v16  ;;  %v1908_v15 = vld [vmem:[%s9489_s7 + $0x90] sm:$0xf] }
 0x19b   : > { %4028 = vst.msk [vmem:[#allocation2 + $0x28] sm:$0xf] %vm12476_vm13, %v3858_v31  ;;  %3879 = vrot.lane.b32.xlu0 %v3710_v21, %s9159_s15  ;;  %v1240_v31 = vor.u32 %v1239_v11, %v10138_v53  ;;  %v1249_v38 = vrot.slane %v1247_v23, 4  ;;  %v2242_v53 = vrot.slane %v2241_v46, 4  ;;  %v411_v16 = vld [vmem:[%s9482_s19 + $0x90] sm:$0xf] }
 0x19c   : > { %3280 = vrot.lane.b32.xlu1 %v3112_v22, %s9158_s27  ;;  %v1243_v22 = vshll.u32 %v902_v8, 16  ;;  %472 = vst.msk [vmem:[#allocation2 + $0x6c] sm:$0xf] %vm444_vm6, %v411_v16  ;;  %v2259_v24 = vshrl.u32 %v1908_v15, 16 }
 0x19d   : > { %v1654_v41 = vpop.permute.xlu0 %1653  ;;  %v1241_v45 = vrot.slane %v1240_v31, 4  ;;  %v412_v31 = vld [vmem:[%s9482_s19 + $0x94] sm:$0xf] }
 0x19e   : > { %1823 = vst.msk [vmem:[#allocation2 + $0x2c] sm:$0xf] %vm1811_vm10, %v1654_v41  ;;  %v652_v7 = vpop.permute.xlu1 %651  ;;  %v903_v41 = vld [vmem:[%s9482_s19 + $0x8c] sm:$0x1] }
 0x19f   : > { %820 = vst.msk [vmem:[#allocation2 + $0x30] sm:$0xf] %vm807_vm9, %v652_v7  ;;  %673 = vrot.lane.b32.xlu0 %v530_v34, %s9157_s29  ;;  %v1245_v34 = vrot.slane %v1243_v22, 5  ;;  %v1253_v48 = vshll.u32 %v903_v41, 16  ;;  %v1260_v22 = vrot.slane %v1258_v2, 4  ;;  %v2261_v41 = vrot.slane %v2259_v24, 4 }
 0x1a0   : > { %3881 = vrot.lane.b32.xlu1 %v3713_v35, %s9159_s15  ;;  %v2244_v35 = vshll.u32 %v1906_v26, 16  ;;  %473 = vst.msk [vmem:[#allocation2 + $0x70] sm:$0xf] %vm444_vm6, %v412_v31 }
 0x1a1   : > { %v2655_v52 = vpop.permute.xlu0 %2654 }
 0x1a2   : > { %2824 = vst.msk [vmem:[#allocation2 + $0x2c] sm:$0xf] %vm2812_vm11, %v2655_v52  ;;  %v1656_v57 = vpop.permute.xlu1 %1655  ;;  %v8786_v58 = vld [vmem:[#allocation2 + $0x24] sm:$0xff]   ;;  %v2246_v36 = vrot.slane %v2244_v35, 5  ;;  %v1907_v52 = vld [vmem:[%s9489_s7 + $0x8c] sm:$0x1] }
 0x1a3   : > { %1824 = vst.msk [vmem:[#allocation2 + $0x30] sm:$0xf] %vm1811_vm10, %v1656_v57  ;;  %1677 = vrot.lane.b32.xlu0 %v1222_v47, %s9160_s8  ;;  %8122 = vmatmul.mubr.msk.bf16.gmra.mrb[12].mxu0 %vm4338_vm14, %v8786_v58  ;;  %v1250_v47 = vor.u32 %v1249_v38, %v1245_v34  ;;  %v1255_v58 = vrot.slane %v1253_v48, 5  ;;  %v2254_v13 = vshll.u32 %v1907_v52, 16  ;;  %v10258_v48 = vld [vmem:[%s9482_s19 + $0x98] sm:$0xf] }
 0x1a4   : > { %675 = vrot.lane.b32.xlu1 %v531_v39, %s9157_s29  ;;  %8125 = vmatprep.mubr.msk.bf16.mxu0 %vm9163_vm8, %v9162_v9  ;;  %v1246_v39 = vsel %vm9550_vm5, %v1241_v45, %v1245_v34  ;;  %v2251_v59 = vor.u32 %v2250_v49, %v2246_v36  ;;  %v1269_v45 = vrot.slane %v1267_v29, 5  ;;  %v534_v49 = vld [vmem:[%s9489_s7 + $0x90] sm:$0xf] }
 0x1a5   : > { %v3259_v63 = vpop.permute.xlu0 %3258  ;;  %v1251_v57 = vrot.slane %v1250_v47, 4  ;;  %v2256_v14 = vrot.slane %v2254_v13, 5  ;;  %v2909_v13 = vld [vmem:[%s9482_s19 + $0x90] sm:$0xe] }
 0x1a6   : > { %3428 = vst.msk [vmem:[#allocation2 + $0x2c] sm:$0xf] %vm3416_vm12, %v3259_v63  ;;  %v2657_v5 = vpop.permute.xlu1 %2656  ;;  %v3121_v63 = vrot.slane %v2907_v54, 5  ;;  %v2252_v56 = vrot.slane %v2251_v59, 4  ;;  %v10269_v59 = vld [vmem:[%s9489_s7 + $0x98] sm:$0xf] }
 0x1a7   : > { %2825 = vst.msk [vmem:[#allocation2 + $0x30] sm:$0xf] %vm2812_vm11, %v2657_v5  ;;  %2678 = vrot.lane.b32.xlu0 %v2223_v61, %s9161_s13  ;;  %v1261_v5 = vshll.u32 %v904_v60, 16  ;;  %v1256_v12 = vsel %vm9550_vm5, %v1251_v57, %v1255_v58  ;;  %v2278_v2 = vshll.u32 %v10269_v59, 16  ;;  %v2282_v29 = vshrl.u32 %v10269_v59, 16 }
 0x1a8   : > { %1679 = vrot.lane.b32.xlu1 %v1236_v0, %s9160_s8  ;;  %v2247_v0 = vsel %vm9550_vm5, %v2242_v53, %v2246_v36  ;;  %v3122_v11 = vsel %vm9515_vm4, %v3120_v3, %v3121_v63  ;;  %v1273_v36 = vrot.slane %v1271_v30, 4  ;;  %v10314_v30 = vld [vmem:[%s9489_s7 + $0x98] sm:$0xf] }
 0x1a9   : > { %v3860_v21 = vpop.permute.xlu0 %3859  ;;  %v1263_v23 = vrot.slane %v1261_v5, 5 }
 0x1aa   : > { %4029 = vst.msk [vmem:[#allocation2 + $0x2c] sm:$0xf] %vm12476_vm13, %v3860_v21  ;;  %v3261_v25 = vpop.permute.xlu1 %3260  ;;  %v3722_v21 = vrot.slane %v3511_v10, 5  ;;  %v1274_v54 = vor.u32 %v1273_v36, %v1269_v45 }
 0x1ab   : > { %3429 = vst.msk [vmem:[#allocation2 + $0x30] sm:$0xf] %vm3416_vm12, %v3261_v25  ;;  %3282 = vrot.lane.b32.xlu0 %v3115_v17, %s9158_s27  ;;  %v2262_v25 = vshll.u32 %v1908_v15, 16  ;;  %v3513_v15 = vld [vmem:[%s9489_s7 + $0x90] sm:$0xe] }
 0x1ac   : > { %2680 = vrot.lane.b32.xlu1 %v2237_v4, %s9161_s13  ;;  %v3123_v4 = vrot.slane %v3121_v63, 4  ;;  %v3723_v34 = vsel %vm9515_vm4, %v3721_v18, %v3722_v21  ;;  %v3724_v37 = vrot.slane %v3722_v21, 4  ;;  %v535_v63 = vld [vmem:[%s9489_s7 + $0x94] sm:$0xf]  ;;  %v10293_v18 = vld [vmem:[%s9482_s19 + $0x98] sm:$0xf] }
 0x1ad   : > { %v654_v33 = vpop.permute.xlu0 %653  ;;  %v7721_v24 = vrot.slane %v3513_v15, 9 }
 0x1ae   : > { %821 = vst.msk [vmem:[#allocation2 + $0x34] sm:$0xf] %vm807_vm9, %v654_v33  ;;  %v3862_v40 = vpop.permute.xlu1 %3861  ;;  %v1909_v33 = vld [vmem:[%s9489_s7 + $0x94] sm:$0xf]  ;;  %v3125_v35 = vsel %vm9515_vm4, %v3123_v4, %v3124_v20  ;;  %v10298_v4 = vrot.slane %v2278_v2, 5 }
 0x1af   : > { %4030 = vst.msk [vmem:[#allocation2 + $0x30] sm:$0xf] %vm12476_vm13, %v3862_v40  ;;  %3883 = vrot.lane.b32.xlu0 %v3716_v27, %s9159_s15  ;;  %v2257_v27 = vsel %vm9550_vm5, %v2252_v56, %v2256_v14  ;;  %v1264_v40 = vor.u32 %v1263_v23, %v1260_v22  ;;  %v2268_v46 = vshll.u32 %v1909_v33, 16  ;;  %v7701_v56 = vrot.slane %v2909_v13, 9  ;;  %v413_v20 = vld [vmem:[%s9482_s19 + $0x98] sm:$0xf] }
 0x1b0   : > { %3284 = vrot.lane.b32.xlu1 %v3119_v28, %s9158_s27  ;;  %v3512_v28 = vld [vmem:[%s9489_s7 + $0x8c] sm:$0x1]  ;;  %v908_v23 = vld [vmem:[%s9482_s19 + $0xa0] sm:$0xf]  ;;  %474 = vst.msk [vmem:[#allocation2 + $0x74] sm:$0xf] %vm444_vm6, %v413_v20 }
 0x1b1   : > { %v1658_v7 = vpop.permute.xlu0 %1657  ;;  %v3725_v38 = vrot.slane %v3512_v28, 5  ;;  %v1265_v52 = vrot.slane %v1264_v40, 4  ;;  %v2270_v53 = vrot.slane %v2268_v46, 5  ;;  %v3732_v46 = vrot.slane %v10314_v30, 5 }
 0x1b2   : > { %1825 = vst.msk [vmem:[#allocation2 + $0x34] sm:$0xf] %vm1811_vm10, %v1658_v7  ;;  %v656_v50 = vpop.permute.xlu1 %655  ;;  %v2272_v7 = vshrl.u32 %v1909_v33, 16 }
 0x1b3   : > { %822 = vst.msk [vmem:[#allocation2 + $0x38] sm:$0xf] %vm807_vm9, %v656_v50  ;;  %677 = vrot.lane.b32.xlu0 %v532_v42, %s9157_s29  ;;  %v2264_v42 = vrot.slane %v2262_v25, 5  ;;  %v3726_v50 = vsel %vm9515_vm4, %v3724_v37, %v3725_v38  ;;  %v1270_v60 = vsel %vm9550_vm5, %v1265_v52, %v1269_v45  ;;  %v1295_v37 = vshll.u32 %v908_v23, 16  ;;  %v414_v38 = vld [vmem:[%s9482_s19 + $0xa0] sm:$0xf] }
 0x1b4   : > { %3885 = vrot.lane.b32.xlu1 %v3720_v44, %s9159_s15  ;;  %v2274_v57 = vrot.slane %v2272_v7, 4  ;;  %475 = vst.msk [vmem:[#allocation2 + $0x78] sm:$0xf] %vm444_vm6, %v414_v38 }
 0x1b5   : > { %v2659_v55 = vpop.permute.xlu0 %2658  ;;  %v1297_v52 = vrot.slane %v1295_v37, 5 }
 0x1b6   : > { %2826 = vst.msk [vmem:[#allocation2 + $0x34] sm:$0xf] %vm2812_vm11, %v2659_v55  ;;  %v1660_v61 = vpop.permute.xlu1 %1659  ;;  %v8787_v62 = vld [vmem:[#allocation2 + $0x2c] sm:$0xff]   ;;  %v1277_v55 = vshll.u32 %v10258_v48, 16  ;;  %v2275_v1 = vor.u32 %v2274_v57, %v2270_v53  ;;  %v536_v57 = vld [vmem:[%s9489_s7 + $0x98] sm:$0xf] }
 0x1b7   : > { %1826 = vst.msk [vmem:[#allocation2 + $0x38] sm:$0xf] %vm1811_vm10, %v1660_v61  ;;  %1681 = vrot.lane.b32.xlu0 %v1246_v39, %s9160_s8  ;;  %8126 = vmatmul.mubr.msk.bf16.gmra.mrb[16].mxu0 %vm4338_vm14, %v8787_v62  ;;  %v2265_v39 = vor.u32 %v2264_v42, %v2261_v41  ;;  %v2910_v62 = vld [vmem:[%s9482_s19 + $0x94] sm:$0xf]  ;;  %v1912_v41 = vld [vmem:[%s9489_s7 + $0xa0] sm:$0xf] }
 0x1b8   : > { %679 = vrot.lane.b32.xlu1 %v533_v51, %s9157_s29  ;;  %8129 = vmatprep.mubr.msk.bf16.mxu0 %vm9163_vm8, %v9162_v9  ;;  %v10279_v10 = vrot.slane %v1277_v55, 5  ;;  %v3128_v14 = vrot.slane %v2910_v62, 5  ;;  %v2276_v21 = vrot.slane %v2275_v1, 4  ;;  %v10352_v1 = vld [vmem:[%s9489_s7 + $0xa4] sm:$0xf] }
 0x1b9   : > { %v3263_v8 = vpop.permute.xlu0 %3262  ;;  %v2266_v61 = vrot.slane %v2265_v39, 4  ;;  %v2293_v39 = vshrl.u32 %v1912_v41, 16 }
 0x1ba   : > { %3430 = vst.msk [vmem:[#allocation2 + $0x34] sm:$0xf] %vm3416_vm12, %v3263_v8  ;;  %v2661_v17 = vpop.permute.xlu1 %2660  ;;  %v3129_v28 = vsel %vm9515_vm4, %v7701_v56, %v3128_v14  ;;  %v2281_v33 = vsel %vm9550_vm5, %v2276_v21, %v10298_v4 }
 0x1bb   : > { %2827 = vst.msk [vmem:[#allocation2 + $0x38] sm:$0xf] %vm2812_vm11, %v2661_v17  ;;  %2682 = vrot.lane.b32.xlu0 %v2247_v0, %s9161_s13  ;;  %v1275_v0 = vrot.slane %v1274_v54, 4  ;;  %v2271_v16 = vsel %vm9550_vm5, %v2266_v61, %v2270_v53  ;;  %v3514_v17 = vld [vmem:[%s9489_s7 + $0x94] sm:$0xf] }
 0x1bc   : > { %1683 = vrot.lane.b32.xlu1 %v1256_v12, %s9160_s8  ;;  %v1281_v12 = vshrl.u32 %v10258_v48, 16  ;;  %v3729_v25 = vrot.slane %v3514_v17, 5  ;;  %v2284_v48 = vrot.slane %v2282_v29, 4  ;;  %v10338_v54 = vld [vmem:[%s9482_s19 + $0xa4] sm:$0xf] }
 0x1bd   : > { %v3864_v26 = vpop.permute.xlu0 %3863 }
 0x1be   : > { %4031 = vst.msk [vmem:[#allocation2 + $0x34] sm:$0xf] %vm12476_vm13, %v3864_v26  ;;  %v3265_v32 = vpop.permute.xlu1 %3264  ;;  %v3130_v26 = vrot.slane %v3128_v14, 4  ;;  %v1283_v31 = vrot.slane %v1281_v12, 4  ;;  %v3730_v42 = vsel %vm9515_vm4, %v7721_v24, %v3729_v25  ;;  %v3731_v45 = vrot.slane %v3729_v25, 4 }
 0x1bf   : > { %3431 = vst.msk [vmem:[#allocation2 + $0x38] sm:$0xf] %vm3416_vm12, %v3265_v32  ;;  %3286 = vrot.lane.b32.xlu0 %v3122_v11, %s9158_s27  ;;  %v1280_v11 = vsel %vm9550_vm5, %v1275_v0, %v10279_v10  ;;  %v2912_v12 = vld [vmem:[%s9482_s19 + $0x9c] sm:$0x1]  ;;  %v537_v14 = vld [vmem:[%s9489_s7 + $0xa0] sm:$0xf] }
 0x1c0   : > { %2684 = vrot.lane.b32.xlu1 %v2257_v27, %s9161_s13  ;;  %v3131_v27 = vrot.slane %v10293_v18, 5  ;;  %v1284_v7 = vor.u32 %v1283_v31, %v10279_v10  ;;  %v3516_v24 = vld [vmem:[%s9489_s7 + $0x9c] sm:$0x1]  ;;  %v2913_v25 = vld [vmem:[%s9482_s19 + $0xa0] sm:$0xe] }
 0x1c1   : > { %v658_v44 = vpop.permute.xlu0 %657  ;;  %v415_v31 = vld [vmem:[%s9482_s19 + $0xa4] sm:$0xf]  ;;  %v7702_v37 = vrot.slane %v2913_v25, 9 }
 0x1c2   : > { %823 = vst.msk [vmem:[#allocation2 + $0x3c] sm:$0xf] %vm807_vm9, %v658_v44  ;;  %v3866_v47 = vpop.permute.xlu1 %3865  ;;  %v3132_v44 = vsel %vm9515_vm4, %v3130_v26, %v3131_v27  ;;  %v1285_v59 = vrot.slane %v1284_v7, 4  ;;  %v3133_v20 = vrot.slane %v3131_v27, 4  ;;  %v10377_v26 = vld [vmem:[%s9482_s19 + $0xa4] sm:$0xf] }
 0x1c3   : > { %4032 = vst.msk [vmem:[#allocation2 + $0x38] sm:$0xf] %vm12476_vm13, %v3866_v47  ;;  %3887 = vrot.lane.b32.xlu0 %v3723_v34, %s9159_s15  ;;  %v907_v34 = vld [vmem:[%s9482_s19 + $0x9c] sm:$0x1]  ;;  %v3138_v38 = vrot.slane %v10377_v26, 5 }
 0x1c4   : > { %3288 = vrot.lane.b32.xlu1 %v3125_v35, %s9158_s27  ;;  %v1292_v35 = vshrl.u32 %v908_v23, 16  ;;  %v1287_v36 = vshll.u32 %v907_v34, 16  ;;  %v1911_v47 = vld [vmem:[%s9489_s7 + $0x9c] sm:$0x1]  ;;  %476 = vst.msk [vmem:[#allocation2 + $0x7c] sm:$0xf] %vm444_vm6, %v415_v31 }
 0x1c5   : > { %v1662_v51 = vpop.permute.xlu0 %1661  ;;  %v2288_v55 = vshll.u32 %v1911_v47, 16  ;;  %v3734_v34 = vrot.slane %v3732_v46, 4  ;;  %v416_v47 = vld [vmem:[%s9482_s19 + $0xa8] sm:$0xf]  ;;  %v1916_v31 = vld [vmem:[%s9489_s7 + $0xb0] sm:$0xf] }
 0x1c6   : > { %1827 = vst.msk [vmem:[#allocation2 + $0x3c] sm:$0xf] %vm1811_vm10, %v1662_v51  ;;  %v660_v58 = vpop.permute.xlu1 %659  ;;  %v2296_v51 = vshll.u32 %v1912_v41, 16  ;;  %v1289_v13 = vrot.slane %v1287_v36, 5  ;;  %v2306_v41 = vshrl.u32 %v10352_v1, 16 }
 0x1c7   : > { %824 = vst.msk [vmem:[#allocation2 + $0x40] sm:$0xf] %vm807_vm9, %v660_v58  ;;  %681 = vrot.lane.b32.xlu0 %v534_v49, %s9157_s29  ;;  %v3733_v58 = vsel %vm9515_vm4, %v3731_v45, %v3732_v46  ;;  %v10404_v46 = vld [vmem:[%s9489_s7 + $0xa4] sm:$0xf] }
 0x1c8   : > { %3889 = vrot.lane.b32.xlu1 %v3726_v50, %s9159_s15  ;;  %v1294_v50 = vrot.slane %v1292_v35, 4  ;;  %v2298_v0 = vrot.slane %v2296_v51, 5  ;;  %v1290_v2 = vsel %vm9550_vm5, %v1285_v59, %v1289_v13  ;;  %v3735_v35 = vrot.slane %v3516_v24, 5  ;;  %477 = vst.msk [vmem:[#allocation2 + $0x80] sm:$0xf] %vm444_vm6, %v416_v47 }
 0x1c9   : > { %v2663_v3 = vpop.permute.xlu0 %2662  ;;  %v3739_v51 = vrot.slane %v10404_v46, 5  ;;  %v911_v13 = vld [vmem:[%s9482_s19 + $0xac] sm:$0x1] }
 0x1ca   : > { %2828 = vst.msk [vmem:[#allocation2 + $0x3c] sm:$0xf] %vm2812_vm11, %v2663_v3  ;;  %v1664_v5 = vpop.permute.xlu1 %1663  ;;  %v8788_v8 = vld [vmem:[#allocation2 + $0x34] sm:$0xff]   ;;  %v1298_v62 = vor.u32 %v1297_v52, %v1294_v50  ;;  %v1301_v3 = vshll.u32 %v10338_v54, 16  ;;  %v3736_v50 = vsel %vm9515_vm4, %v3734_v34, %v3735_v35  ;;  %v3139_v52 = vsel %vm9515_vm4, %v7702_v37, %v3138_v38  ;;  %v2916_v37 = vld [vmem:[%s9482_s19 + $0xac] sm:$0x1] }
 0x1cb   : > { %1828 = vst.msk [vmem:[#allocation2 + $0x40] sm:$0xf] %vm1811_vm10, %v1664_v5  ;;  %1685 = vrot.lane.b32.xlu0 %v1270_v60, %s9160_s8  ;;  %8130 = vmatmul.mubr.msk.bf16.gmra.mrb[20].mxu0 %vm4338_vm14, %v8788_v8  ;;  %v2285_v60 = vor.u32 %v2284_v48, %v10298_v4  ;;  %v2290_v8 = vrot.slane %v2288_v55, 5  ;;  %v1305_v4 = vshrl.u32 %v10338_v54, 16  ;;  %v2308_v54 = vrot.slane %v2306_v41, 4 }
 0x1cc   : > { %683 = vrot.lane.b32.xlu1 %v535_v63, %s9157_s29  ;;  %8133 = vmatprep.mubr.msk.bf16.mxu0 %vm9163_vm8, %v9162_v9  ;;  %v2295_v63 = vrot.slane %v2293_v39, 4  ;;  %v1299_v15 = vrot.slane %v1298_v62, 4  ;;  %v538_v62 = vld [vmem:[%s9489_s7 + $0xa4] sm:$0xf]  ;;  %v3144_v47 = vrot.slane %v2916_v37, 5 }
 0x1cd   : > { %v3267_v19 = vpop.permute.xlu0 %3266  ;;  %v2286_v5 = vrot.slane %v2285_v60, 4  ;;  %v3521_v37 = vld [vmem:[%s9489_s7 + $0xb0] sm:$0xe] }
 0x1ce   : > { %3432 = vst.msk [vmem:[#allocation2 + $0x3c] sm:$0xf] %vm3416_vm12, %v3267_v19  ;;  %v2665_v22 = vpop.permute.xlu1 %2664  ;;  %v2299_v17 = vor.u32 %v2298_v0, %v2295_v63  ;;  %v2302_v19 = vshll.u32 %v10352_v1, 16  ;;  %v1321_v0 = vshll.u32 %v911_v13, 16 }
 0x1cf   : > { %2829 = vst.msk [vmem:[#allocation2 + $0x40] sm:$0xf] %vm2812_vm11, %v2665_v22  ;;  %2686 = vrot.lane.b32.xlu0 %v2271_v16, %s9161_s13  ;;  %v10361_v16 = vrot.slane %v1301_v3, 5  ;;  %v3134_v22 = vrot.slane %v2912_v12, 5  ;;  %v2291_v23 = vsel %vm9550_vm5, %v2286_v5, %v2290_v8 }
 0x1d0   : > { %1687 = vrot.lane.b32.xlu1 %v1280_v11, %s9160_s8  ;;  %v2300_v18 = vrot.slane %v2299_v17, 4  ;;  %v10382_v27 = vrot.slane %v2302_v19, 5  ;;  %v1323_v19 = vrot.slane %v1321_v0, 5 }
 0x1d1   : > { %v3868_v32 = vpop.permute.xlu0 %3867  ;;  %v1304_v29 = vsel %vm9550_vm5, %v1299_v15, %v10361_v16 }
 0x1d2   : > { %4033 = vst.msk [vmem:[#allocation2 + $0x3c] sm:$0xf] %vm12476_vm13, %v3868_v32  ;;  %v3269_v40 = vpop.permute.xlu1 %3268  ;;  %v2305_v30 = vsel %vm9550_vm5, %v2300_v18, %v10382_v27  ;;  %v2309_v63 = vor.u32 %v2308_v54, %v10382_v27 }
 0x1d3   : > { %3433 = vst.msk [vmem:[#allocation2 + $0x40] sm:$0xf] %vm3416_vm12, %v3269_v40  ;;  %3290 = vrot.lane.b32.xlu0 %v3129_v28, %s9158_s27  ;;  %v3135_v40 = vsel %vm9515_vm4, %v3133_v20, %v3134_v22 }
 0x1d4   : > { %2688 = vrot.lane.b32.xlu1 %v2281_v33, %s9161_s13  ;;  %v910_v33 = vld [vmem:[%s9482_s19 + $0xa8] sm:$0xf]  ;;  %v2310_v17 = vrot.slane %v2309_v63, 4 }
 0x1d5   : > { %v662_v49 = vpop.permute.xlu0 %661  ;;  %v1311_v7 = vshll.u32 %v910_v33, 16  ;;  %v1315_v36 = vshrl.u32 %v910_v33, 16 }
 0x1d6   : > { %825 = vst.msk [vmem:[#allocation2 + $0x44] sm:$0xf] %vm807_vm9, %v662_v49  ;;  %v3870_v53 = vpop.permute.xlu1 %3869  ;;  %v1914_v49 = vld [vmem:[%s9489_s7 + $0xa8] sm:$0xf] }
 0x1d7   : > { %4034 = vst.msk [vmem:[#allocation2 + $0x40] sm:$0xf] %vm12476_vm13, %v3870_v53  ;;  %3891 = vrot.lane.b32.xlu0 %v3730_v42, %s9159_s15  ;;  %v3517_v42 = vld [vmem:[%s9489_s7 + $0xa0] sm:$0xe]  ;;  %v2316_v59 = vshrl.u32 %v1914_v49, 16  ;;  %v1317_v60 = vrot.slane %v1315_v36, 4 }
 0x1d8   : > { %3292 = vrot.lane.b32.xlu1 %v3132_v44, %s9158_s27  ;;  %v1307_v44 = vrot.slane %v1305_v4, 4  ;;  %v7722_v39 = vrot.slane %v3517_v42, 9  ;;  %v3140_v4 = vrot.slane %v3138_v38, 4  ;;  %v417_v38 = vld [vmem:[%s9482_s19 + $0xb0] sm:$0xf] }
 0x1d9   : > { %v1666_v61 = vpop.permute.xlu0 %1665  ;;  %v2318_v8 = vrot.slane %v2316_v59, 4  ;;  %v913_v42 = vld [vmem:[%s9482_s19 + $0xb4] sm:$0xf]  ;;  %478 = vst.msk [vmem:[#allocation2 + $0x84] sm:$0xf] %vm444_vm6, %v417_v38 }
 0x1da   : > { %1829 = vst.msk [vmem:[#allocation2 + $0x44] sm:$0xf] %vm1811_vm10, %v1666_v61  ;;  %v664_v10 = vpop.permute.xlu1 %663  ;;  %v1308_v53 = vor.u32 %v1307_v44, %v10361_v16  ;;  %v3740_v1 = vsel %vm9515_vm4, %v7722_v39, %v3739_v51  ;;  %v539_v16 = vld [vmem:[%s9489_s7 + $0xa8] sm:$0xf]  ;;  %v3741_v44 = vrot.slane %v3739_v51, 4  ;;  %v1339_v54 = vshrl.u32 %v913_v42, 16 }
 0x1db   : > { %826 = vst.msk [vmem:[#allocation2 + $0x48] sm:$0xf] %vm807_vm9, %v664_v10  ;;  %685 = vrot.lane.b32.xlu0 %v536_v57, %s9157_s29  ;;  %v1313_v57 = vrot.slane %v1311_v7, 5  ;;  %v2330_v7 = vshll.u32 %v1916_v31, 16  ;;  %v3520_v39 = vld [vmem:[%s9489_s7 + $0xac] sm:$0x1] }
 0x1dc   : > { %3893 = vrot.lane.b32.xlu1 %v3733_v58, %s9159_s15  ;;  %v2312_v58 = vshll.u32 %v1914_v49, 16  ;;  %v1309_v3 = vrot.slane %v1308_v53, 4  ;;  %v1335_v53 = vshll.u32 %v913_v42, 16  ;;  %v1917_v51 = vld [vmem:[%s9489_s7 + $0xb4] sm:$0xf] }
 0x1dd   : > { %v2667_v56 = vpop.permute.xlu0 %2666  ;;  %v1318_v5 = vor.u32 %v1317_v60, %v1313_v57  ;;  %v2332_v59 = vrot.slane %v2330_v7, 5  ;;  %v2336_v0 = vshll.u32 %v1917_v51, 16  ;;  %v916_v7 = vld [vmem:[%s9482_s19 + $0xc0] sm:$0xf] }
 0x1de   : > { %2830 = vst.msk [vmem:[#allocation2 + $0x44] sm:$0xf] %vm2812_vm11, %v2667_v56  ;;  %v1668_v11 = vpop.permute.xlu1 %1667  ;;  %v8789_v21 = vld [vmem:[#allocation2 + $0x3c] sm:$0xff]   ;;  %v1915_v56 = vld [vmem:[%s9489_s7 + $0xac] sm:$0x1]  ;;  %v1314_v15 = vsel %vm9550_vm5, %v1309_v3, %v1313_v57  ;;  %v1337_v63 = vrot.slane %v1335_v53, 5 }
 0x1df   : > { %1830 = vst.msk [vmem:[#allocation2 + $0x48] sm:$0xf] %vm1811_vm10, %v1668_v11  ;;  %1689 = vrot.lane.b32.xlu0 %v1290_v2, %s9160_s8  ;;  %8134 = vmatmul.mubr.msk.bf16.gmra.mrb[24].mxu0 %vm4338_vm14, %v8789_v21  ;;  %v2314_v2 = vrot.slane %v2312_v58, 5  ;;  %v1319_v21 = vrot.slane %v1318_v5, 4  ;;  %v2322_v22 = vshll.u32 %v1915_v56, 16 }
 0x1e0   : > { %687 = vrot.lane.b32.xlu1 %v537_v14, %s9157_s29  ;;  %8137 = vmatprep.mubr.msk.bf16.mxu0 %vm9163_vm8, %v9162_v9  ;;  %v2915_v14 = vld [vmem:[%s9482_s19 + $0xa8] sm:$0xf]  ;;  %v914_v5 = vld [vmem:[%s9482_s19 + $0xb8] sm:$0xf] }
 0x1e1   : > { %v3271_v28 = vpop.permute.xlu0 %3270  ;;  %v2319_v20 = vor.u32 %v2318_v8, %v2314_v2  ;;  %v3141_v26 = vrot.slane %v2915_v14, 5  ;;  %v1324_v33 = vsel %vm9550_vm5, %v1319_v21, %v1323_v19  ;;  %v2324_v35 = vrot.slane %v2322_v22, 5 }
 0x1e2   : > { %3434 = vst.msk [vmem:[#allocation2 + $0x44] sm:$0xf] %vm3416_vm12, %v3271_v28  ;;  %v2669_v32 = vpop.permute.xlu1 %2668  ;;  %v2315_v28 = vsel %vm9550_vm5, %v2310_v17, %v2314_v2  ;;  %v1345_v19 = vshll.u32 %v914_v5, 16 }
 0x1e3   : > { %2831 = vst.msk [vmem:[#allocation2 + $0x48] sm:$0xf] %vm2812_vm11, %v2669_v32  ;;  %2690 = vrot.lane.b32.xlu0 %v2291_v23, %s9161_s13  ;;  %v912_v23 = vld [vmem:[%s9482_s19 + $0xb0] sm:$0xf]  ;;  %v2320_v34 = vrot.slane %v2319_v20, 4  ;;  %v3142_v41 = vsel %vm9515_vm4, %v3140_v4, %v3141_v26  ;;  %v3143_v36 = vrot.slane %v3141_v26, 4 }
 0x1e4   : > { %1691 = vrot.lane.b32.xlu1 %v1304_v29, %s9160_s8  ;;  %v3519_v29 = vld [vmem:[%s9489_s7 + $0xa8] sm:$0xf]  ;;  %v1326_v18 = vshrl.u32 %v912_v23, 16  ;;  %v1329_v27 = vshll.u32 %v912_v23, 16  ;;  %v10489_v4 = vld [vmem:[%s9489_s7 + $0xb8] sm:$0xf] }
 0x1e5   : > { %v3872_v45 = vpop.permute.xlu0 %3871  ;;  %v3145_v13 = vsel %vm9515_vm4, %v3143_v36, %v3144_v47  ;;  %v2917_v23 = vld [vmem:[%s9482_s19 + $0xb0] sm:$0xe]  ;;  %v541_v26 = vld [vmem:[%s9489_s7 + $0xb4] sm:$0xf]  ;;  %v419_v36 = vld [vmem:[%s9482_s19 + $0xb8] sm:$0xf] }
 0x1e6   : > { %4035 = vst.msk [vmem:[#allocation2 + $0x44] sm:$0xf] %vm12476_vm13, %v3872_v45  ;;  %v3273_v48 = vpop.permute.xlu1 %3272  ;;  %v3742_v45 = vrot.slane %v3519_v29, 5  ;;  %v1331_v49 = vrot.slane %v1329_v27, 5  ;;  %v10499_v29 = vrot.slane %v1345_v19, 5  ;;  %v2346_v27 = vshll.u32 %v10489_v4, 16 }
 0x1e7   : > { %3435 = vst.msk [vmem:[#allocation2 + $0x48] sm:$0xf] %vm3416_vm12, %v3273_v48  ;;  %3294 = vrot.lane.b32.xlu0 %v3135_v40, %s9158_s27  ;;  %v1328_v48 = vrot.slane %v1326_v18, 4 }
 0x1e8   : > { %2692 = vrot.lane.b32.xlu1 %v2305_v30, %s9161_s13  ;;  %v2327_v30 = vshrl.u32 %v1916_v31, 16  ;;  %v3743_v57 = vsel %vm9515_vm4, %v3741_v44, %v3742_v45  ;;  %v3744_v60 = vrot.slane %v3742_v45, 4  ;;  %480 = vst.msk [vmem:[#allocation2 + $0x8c] sm:$0xf] %vm444_vm6, %v419_v36 }
 0x1e9   : > { %v666_v55 = vpop.permute.xlu0 %665 }
 0x1ea   : > { %827 = vst.msk [vmem:[#allocation2 + $0x4c] sm:$0xf] %vm807_vm9, %v666_v55  ;;  %v3874_v61 = vpop.permute.xlu1 %3873  ;;  %v418_v55 = vld [vmem:[%s9482_s19 + $0xb4] sm:$0xf]  ;;  %v2329_v58 = vrot.slane %v2327_v30, 4  ;;  %v10517_v30 = vrot.slane %v2346_v27, 5 }
 0x1eb   : > { %4036 = vst.msk [vmem:[#allocation2 + $0x48] sm:$0xf] %vm12476_vm13, %v3874_v61  ;;  %3895 = vrot.lane.b32.xlu0 %v3736_v50, %s9159_s15  ;;  %v3745_v61 = vrot.slane %v3520_v39, 5  ;;  %v2920_v27 = vld [vmem:[%s9482_s19 + $0xbc] sm:$0x1] }
 0x1ec   : > { %3296 = vrot.lane.b32.xlu1 %v3139_v52, %s9158_s27  ;;  %v2325_v52 = vsel %vm9550_vm5, %v2320_v34, %v2324_v35  ;;  %479 = vst.msk [vmem:[#allocation2 + $0x88] sm:$0xf] %vm444_vm6, %v418_v55  ;;  %v2333_v8 = vor.u32 %v2332_v59, %v2329_v58  ;;  %v7703_v34 = vrot.slane %v2917_v23, 9  ;;  %v1360_v55 = vshrl.u32 %v916_v7, 16  ;;  %v915_v58 = vld [vmem:[%s9482_s19 + $0xbc] sm:$0x1] }
 0x1ed   : > { %v1670_v10 = vpop.permute.xlu0 %1669  ;;  %v3746_v56 = vsel %vm9515_vm4, %v3744_v60, %v3745_v61  ;;  %v420_v59 = vld [vmem:[%s9482_s19 + $0xc0] sm:$0xf]  ;;  %v10539_v60 = vld [vmem:[%s9489_s7 + $0xb8] sm:$0xf] }
 0x1ee   : > { %1831 = vst.msk [vmem:[#allocation2 + $0x4c] sm:$0xf] %vm1811_vm10, %v1670_v10  ;;  %v668_v12 = vpop.permute.xlu1 %667  ;;  %v2340_v10 = vshrl.u32 %v1917_v51, 16  ;;  %v2334_v20 = vrot.slane %v2333_v8, 4  ;;  %v1920_v61 = vld [vmem:[%s9489_s7 + $0xc0] sm:$0xf] }
 0x1ef   : > { %828 = vst.msk [vmem:[#allocation2 + $0x50] sm:$0xf] %vm807_vm9, %v668_v12  ;;  %689 = vrot.lane.b32.xlu0 %v538_v62, %s9157_s29  ;;  %v1332_v62 = vor.u32 %v1331_v49, %v1328_v48  ;;  %v540_v12 = vld [vmem:[%s9489_s7 + $0xb0] sm:$0xf]  ;;  %v7723_v48 = vrot.slane %v3521_v37, 9 }
 0x1f0   : > { %3897 = vrot.lane.b32.xlu1 %v3740_v1, %s9159_s15  ;;  %v1341_v1 = vrot.slane %v1339_v54, 4  ;;  %v2350_v54 = vshrl.u32 %v10489_v4, 16  ;;  %481 = vst.msk [vmem:[#allocation2 + $0x90] sm:$0xf] %vm444_vm6, %v420_v59  ;;  %v543_v37 = vld [vmem:[%s9489_s7 + $0xc0] sm:$0xf] }
 0x1f1   : > { %v2671_v11 = vpop.permute.xlu0 %2670  ;;  %v1333_v14 = vrot.slane %v1332_v62, 4 }
 0x1f2   : > { %2832 = vst.msk [vmem:[#allocation2 + $0x4c] sm:$0xf] %vm2812_vm11, %v2671_v11  ;;  %v1672_v24 = vpop.permute.xlu1 %1671  ;;  %v8790_v25 = vld [vmem:[#allocation2 + $0x44] sm:$0xff]   ;;  %v1342_v17 = vor.u32 %v1341_v1, %v1337_v63  ;;  %v2342_v11 = vrot.slane %v2340_v10, 4  ;;  %v2352_v10 = vrot.slane %v2350_v54, 4  ;;  %v1362_v1 = vrot.slane %v1360_v55, 4 }
 0x1f3   : > { %1832 = vst.msk [vmem:[#allocation2 + $0x50] sm:$0xf] %vm1811_vm10, %v1672_v24  ;;  %1693 = vrot.lane.b32.xlu0 %v1314_v15, %s9160_s8  ;;  %8138 = vmatmul.mubr.msk.bf16.gmra.mrb[28].mxu0 %vm4338_vm14, %v8790_v25  ;;  %v1338_v22 = vsel %vm9550_vm5, %v1333_v14, %v1337_v63  ;;  %v2918_v24 = vld [vmem:[%s9482_s19 + $0xb4] sm:$0xf]  ;;  %v2361_v14 = vshrl.u32 %v1920_v61, 16 }
 0x1f4   : > { %691 = vrot.lane.b32.xlu1 %v539_v16, %s9157_s29  ;;  %8141 = vmatprep.mubr.msk.bf16.mxu0 %vm9163_vm8, %v9162_v9  ;;  %v2338_v16 = vrot.slane %v2336_v0, 5  ;;  %v3148_v35 = vrot.slane %v2918_v24, 5  ;;  %v1355_v0 = vshll.u32 %v915_v58, 16  ;;  %v2353_v4 = vor.u32 %v2352_v10, %v10517_v30  ;;  %v918_v54 = vld [vmem:[%s9482_s19 + $0xc8] sm:$0xf] }
 0x1f5   : > { %v3275_v32 = vpop.permute.xlu0 %3274  ;;  %v421_v55 = vld [vmem:[%s9482_s19 + $0xc4] sm:$0xf] }
 0x1f6   : > { %3436 = vst.msk [vmem:[#allocation2 + $0x4c] sm:$0xf] %vm3416_vm12, %v3275_v32  ;;  %v2673_v40 = vpop.permute.xlu1 %2672  ;;  %v2343_v18 = vor.u32 %v2342_v11, %v2338_v16  ;;  %v2339_v38 = vsel %vm9550_vm5, %v2334_v20, %v2338_v16  ;;  %v3149_v53 = vsel %vm9515_vm4, %v7703_v34, %v3148_v35  ;;  %v542_v11 = vld [vmem:[%s9489_s7 + $0xb8] sm:$0xf] }
 0x1f7   : > { %2833 = vst.msk [vmem:[#allocation2 + $0x50] sm:$0xf] %vm2812_vm11, %v2673_v40  ;;  %2694 = vrot.lane.b32.xlu0 %v2315_v28, %s9161_s13  ;;  %v1343_v28 = vrot.slane %v1342_v17, 4  ;;  %v3522_v40 = vld [vmem:[%s9489_s7 + $0xb4] sm:$0xf] }
 0x1f8   : > { %1695 = vrot.lane.b32.xlu1 %v1324_v33, %s9160_s8  ;;  %v1349_v33 = vshrl.u32 %v914_v5, 16  ;;  %v2344_v45 = vrot.slane %v2343_v18, 4  ;;  %v3749_v49 = vrot.slane %v3522_v40, 5  ;;  %v10555_v17 = vld [vmem:[%s9482_s19 + $0xc4] sm:$0xf] }
 0x1f9   : > { %v3876_v50 = vpop.permute.xlu0 %3875  ;;  %v1348_v44 = vsel %vm9550_vm5, %v1343_v28, %v10499_v29  ;;  %v10569_v18 = vld [vmem:[%s9489_s7 + $0xc4] sm:$0xf]  ;;  %482 = vst.msk [vmem:[#allocation2 + $0x94] sm:$0xf] %vm444_vm6, %v421_v55 }
 0x1fa   : > { %4037 = vst.msk [vmem:[#allocation2 + $0x4c] sm:$0xf] %vm12476_vm13, %v3876_v50  ;;  %v3277_v46 = vpop.permute.xlu1 %3276  ;;  %v3150_v50 = vrot.slane %v3148_v35, 4  ;;  %v1351_v39 = vrot.slane %v1349_v33, 4  ;;  %v3750_v62 = vsel %vm9515_vm4, %v7723_v48, %v3749_v49  ;;  %v3751_v8 = vrot.slane %v3749_v49, 4 }
 0x1fb   : > { %3437 = vst.msk [vmem:[#allocation2 + $0x50] sm:$0xf] %vm3416_vm12, %v3277_v46  ;;  %3298 = vrot.lane.b32.xlu0 %v3142_v41, %s9158_s27  ;;  %v10512_v41 = vld [vmem:[%s9482_s19 + $0xb8] sm:$0xf]  ;;  %v1363_v46 = vshll.u32 %v916_v7, 16  ;;  %v1373_v7 = vshrl.u32 %v10555_v17, 16 }
 0x1fc   : > { %2696 = vrot.lane.b32.xlu1 %v2325_v52, %s9161_s13  ;;  %v3151_v52 = vrot.slane %v10512_v41, 5  ;;  %v1352_v63 = vor.u32 %v1351_v39, %v10499_v29  ;;  %v2921_v48 = vld [vmem:[%s9482_s19 + $0xc0] sm:$0xe]  ;;  %v10592_v49 = vld [vmem:[%s9482_s19 + $0xc4] sm:$0xf] }
 0x1fd   : > { %v670_v3 = vpop.permute.xlu0 %669  ;;  %v7704_v59 = vrot.slane %v2921_v48, 9 }
 0x1fe   : > { %829 = vst.msk [vmem:[#allocation2 + $0x54] sm:$0xf] %vm807_vm9, %v670_v3  ;;  %v3878_v2 = vpop.permute.xlu1 %3877  ;;  %v3152_v3 = vsel %vm9515_vm4, %v3150_v50, %v3151_v52  ;;  %v1353_v19 = vrot.slane %v1352_v63, 4  ;;  %v3153_v40 = vrot.slane %v3151_v52, 4  ;;  %v1383_v63 = vshrl.u32 %v918_v54, 16 }
 0x1ff   : > { %4038 = vst.msk [vmem:[#allocation2 + $0x50] sm:$0xf] %vm12476_vm13, %v3878_v2  ;;  %3899 = vrot.lane.b32.xlu0 %v3743_v57, %s9159_s15  ;;  %v2349_v57 = vsel %vm9550_vm5, %v2344_v45, %v10517_v30  ;;  %v1365_v2 = vrot.slane %v1363_v46, 5  ;;  %v3154_v30 = vrot.slane %v2920_v27, 5 }
 0x200   : > { %3300 = vrot.lane.b32.xlu1 %v3145_v13, %s9158_s27 }
 0x201   : > { %v1674_v15 = vpop.permute.xlu0 %1673 }
 0x202   : > { %1833 = vst.msk [vmem:[#allocation2 + $0x54] sm:$0xf] %vm1811_vm10, %v1674_v15  ;;  %v672_v21 = vpop.permute.xlu1 %671  ;;  %v2364_v15 = vshll.u32 %v1920_v61, 16  ;;  %v2374_v61 = vshrl.u32 %v10569_v18, 16 }
 0x203   : > { %830 = vst.msk [vmem:[#allocation2 + $0x58] sm:$0xf] %vm807_vm9, %v672_v21  ;;  %693 = vrot.lane.b32.xlu0 %v540_v12, %s9157_s29  ;;  %v3752_v12 = vrot.slane %v10539_v60, 5  ;;  %v1357_v21 = vrot.slane %v1355_v0, 5  ;;  %v422_v60 = vld [vmem:[%s9482_s19 + $0xc8] sm:$0xf] }
 0x204   : > { %3901 = vrot.lane.b32.xlu1 %v3746_v56, %s9159_s15  ;;  %v1919_v56 = vld [vmem:[%s9489_s7 + $0xbc] sm:$0x1]  ;;  %v2366_v28 = vrot.slane %v2364_v15, 5  ;;  %483 = vst.msk [vmem:[#allocation2 + $0x98] sm:$0xf] %vm444_vm6, %v422_v60 }
 0x205   : > { %v2675_v25 = vpop.permute.xlu0 %2674  ;;  %v2356_v20 = vshll.u32 %v1919_v56, 16  ;;  %v3753_v24 = vsel %vm9515_vm4, %v3751_v8, %v3752_v12  ;;  %v1922_v8 = vld [vmem:[%s9489_s7 + $0xc8] sm:$0xf] }
 0x206   : > { %2834 = vst.msk [vmem:[#allocation2 + $0x54] sm:$0xf] %vm2812_vm11, %v2675_v25  ;;  %v1676_v31 = vpop.permute.xlu1 %1675  ;;  %v8791_v32 = vld [vmem:[#allocation2 + $0x4c] sm:$0xff]   ;;  %v1369_v25 = vshll.u32 %v10555_v17, 16  ;;  %v1385_v17 = vrot.slane %v1383_v63, 4 }
 0x207   : > { %1834 = vst.msk [vmem:[#allocation2 + $0x58] sm:$0xf] %vm1811_vm10, %v1676_v31  ;;  %1697 = vrot.lane.b32.xlu0 %v1338_v22, %s9160_s8  ;;  %8142 = vmatmul.mubr.msk.bf16.gmra.mrb[32].mxu0 %vm4338_vm14, %v8791_v32  ;;  %v1366_v22 = vor.u32 %v1365_v2, %v1362_v1  ;;  %v1358_v31 = vsel %vm9550_vm5, %v1353_v19, %v1357_v21  ;;  %v2354_v32 = vrot.slane %v2353_v4, 4  ;;  %v2358_v33 = vrot.slane %v2356_v20, 5  ;;  %v3525_v2 = vld [vmem:[%s9489_s7 + $0xc0] sm:$0xe] }
 0x208   : > { %695 = vrot.lane.b32.xlu1 %v541_v26, %s9157_s29  ;;  %8145 = vmatprep.mubr.msk.bf16.mxu0 %vm9163_vm8, %v9162_v9  ;;  %v2363_v26 = vrot.slane %v2361_v14, 4  ;;  %v2380_v4 = vshll.u32 %v1922_v8, 16  ;;  %v2384_v20 = vshrl.u32 %v1922_v8, 16 }
 0x209   : > { %v3279_v42 = vpop.permute.xlu0 %3278  ;;  %v1367_v34 = vrot.slane %v1366_v22, 4  ;;  %v2359_v36 = vsel %vm9550_vm5, %v2354_v32, %v2358_v33 }
 0x20a   : > { %3438 = vst.msk [vmem:[#allocation2 + $0x54] sm:$0xf] %vm3416_vm12, %v3279_v42  ;;  %v2677_v47 = vpop.permute.xlu1 %2676  ;;  %v2367_v41 = vor.u32 %v2366_v28, %v2363_v26  ;;  %v2370_v42 = vshll.u32 %v10569_v18, 16  ;;  %v2382_v27 = vrot.slane %v2380_v4, 5  ;;  %v2386_v32 = vrot.slane %v2384_v20, 4 }
 0x20b   : > { %2835 = vst.msk [vmem:[#allocation2 + $0x58] sm:$0xf] %vm2812_vm11, %v2677_v47  ;;  %2698 = vrot.lane.b32.xlu0 %v2339_v38, %s9161_s13  ;;  %v10578_v38 = vrot.slane %v1369_v25, 5  ;;  %v3524_v47 = vld [vmem:[%s9489_s7 + $0xbc] sm:$0x1] }
 0x20c   : > { %1699 = vrot.lane.b32.xlu1 %v1348_v44, %s9160_s8  ;;  %v2368_v39 = vrot.slane %v2367_v41, 4  ;;  %v3755_v58 = vrot.slane %v3524_v47, 5 }
 0x20d   : > { %v3880_v51 = vpop.permute.xlu0 %3879  ;;  %v1372_v52 = vsel %vm9550_vm5, %v1367_v34, %v10578_v38  ;;  %v1923_v34 = vld [vmem:[%s9489_s7 + $0xcc] sm:$0x1] }
 0x20e   : > { %4039 = vst.msk [vmem:[#allocation2 + $0x54] sm:$0xf] %vm12476_vm13, %v3880_v51  ;;  %v3281_v13 = vpop.permute.xlu1 %3280  ;;  %v3155_v51 = vsel %vm9515_vm4, %v3153_v40, %v3154_v30  ;;  %v2387_v30 = vor.u32 %v2386_v32, %v2382_v27  ;;  %v10692_v32 = vld [vmem:[%s9482_s19 + $0xd8] sm:$0xf] }
 0x20f   : > { %3439 = vst.msk [vmem:[#allocation2 + $0x58] sm:$0xf] %vm3416_vm12, %v3281_v13  ;;  %3302 = vrot.lane.b32.xlu0 %v3149_v53, %s9158_s27  ;;  %v10597_v53 = vrot.slane %v2370_v42, 5  ;;  %v3158_v13 = vrot.slane %v10592_v49, 5 }
 0x210   : > { %2700 = vrot.lane.b32.xlu1 %v2349_v57, %s9161_s13  ;;  %v3754_v57 = vrot.slane %v3752_v12, 4 }
 0x211   : > { %v674_v5 = vpop.permute.xlu0 %673  ;;  %v2373_v10 = vsel %vm9550_vm5, %v2368_v39, %v10597_v53  ;;  %v3159_v56 = vsel %vm9515_vm4, %v7704_v59, %v3158_v13  ;;  %v2924_v39 = vld [vmem:[%s9482_s19 + $0xcc] sm:$0x1]  ;;  %v423_v59 = vld [vmem:[%s9482_s19 + $0xd0] sm:$0xf] }
 0x212   : > { %831 = vst.msk [vmem:[#allocation2 + $0x5c] sm:$0xf] %vm807_vm9, %v674_v5  ;;  %v3882_v16 = vpop.permute.xlu1 %3881  ;;  %v10621_v5 = vld [vmem:[%s9489_s7 + $0xc4] sm:$0xf]  ;;  %v3756_v12 = vsel %vm9515_vm4, %v3754_v57, %v3755_v58  ;;  %v1924_v58 = vld [vmem:[%s9489_s7 + $0xd0] sm:$0xf] }
 0x213   : > { %4040 = vst.msk [vmem:[#allocation2 + $0x58] sm:$0xf] %vm12476_vm13, %v3882_v16  ;;  %3903 = vrot.lane.b32.xlu0 %v3750_v62, %s9159_s15  ;;  %v1375_v62 = vrot.slane %v1373_v7, 4  ;;  %v2376_v16 = vrot.slane %v2374_v61, 4  ;;  %v3759_v21 = vrot.slane %v10621_v5, 5  ;;  %v2390_v7 = vshll.u32 %v1923_v34, 16 }
 0x214   : > { %3304 = vrot.lane.b32.xlu1 %v3152_v3, %s9158_s27  ;;  %v1379_v3 = vshll.u32 %v918_v54, 16  ;;  %484 = vst.msk [vmem:[#allocation2 + $0x9c] sm:$0xf] %vm444_vm6, %v423_v59  ;;  %v2398_v5 = vshll.u32 %v1924_v58, 16 }
 0x215   : > { %v1678_v23 = vpop.permute.xlu0 %1677  ;;  %v1376_v14 = vor.u32 %v1375_v62, %v10578_v38  ;;  %v2377_v26 = vor.u32 %v2376_v16, %v10597_v53  ;;  %v545_v38 = vld [vmem:[%s9489_s7 + $0xc8] sm:$0xf]  ;;  %v2392_v57 = vrot.slane %v2390_v7, 5  ;;  %v921_v62 = vld [vmem:[%s9482_s19 + $0xd4] sm:$0xf] }
 0x216   : > { %1835 = vst.msk [vmem:[#allocation2 + $0x5c] sm:$0xf] %vm1811_vm10, %v1678_v23  ;;  %v676_v29 = vpop.permute.xlu1 %675  ;;  %v1381_v15 = vrot.slane %v1379_v3, 5  ;;  %v919_v23 = vld [vmem:[%s9482_s19 + $0xcc] sm:$0x1]  ;;  %v3761_v3 = vrot.slane %v3759_v21, 4 }
 0x217   : > { %832 = vst.msk [vmem:[#allocation2 + $0x60] sm:$0xf] %vm807_vm9, %v676_v29  ;;  %697 = vrot.lane.b32.xlu0 %v542_v11, %s9157_s29  ;;  %v7724_v11 = vrot.slane %v3525_v2, 9  ;;  %v1377_v25 = vrot.slane %v1376_v14, 4  ;;  %v2378_v40 = vrot.slane %v2377_v26, 4  ;;  %v2395_v2 = vshrl.u32 %v1924_v58, 16 }
 0x218   : > { %3905 = vrot.lane.b32.xlu1 %v3753_v24, %s9159_s15  ;;  %v544_v24 = vld [vmem:[%s9489_s7 + $0xc4] sm:$0xf]  ;;  %v1386_v28 = vor.u32 %v1385_v17, %v1381_v15  ;;  %v1403_v14 = vshll.u32 %v921_v62, 16  ;;  %v424_v16 = vld [vmem:[%s9482_s19 + $0xd4] sm:$0xf] }
 0x219   : > { %v2679_v35 = vpop.permute.xlu0 %2678  ;;  %v3760_v18 = vsel %vm9515_vm4, %v7724_v11, %v3759_v21  ;;  %485 = vst.msk [vmem:[#allocation2 + $0xa0] sm:$0xf] %vm444_vm6, %v424_v16 }
 0x21a   : > { %2836 = vst.msk [vmem:[#allocation2 + $0x5c] sm:$0xf] %vm2812_vm11, %v2679_v35  ;;  %v1680_v44 = vpop.permute.xlu1 %1679  ;;  %v8792_v45 = vld [vmem:[#allocation2 + $0x54] sm:$0xff]   ;;  %v2923_v35 = vld [vmem:[%s9482_s19 + $0xc8] sm:$0xf]  ;;  %v1387_v41 = vrot.slane %v1386_v28, 4 }
 0x21b   : > { %1836 = vst.msk [vmem:[#allocation2 + $0x60] sm:$0xf] %vm1811_vm10, %v1680_v44  ;;  %1701 = vrot.lane.b32.xlu0 %v1358_v31, %s9160_s8  ;;  %8146 = vmatmul.mubr.msk.bf16.gmra.mrb[36].mxu0 %vm4338_vm14, %v8792_v45  ;;  %v1389_v31 = vshll.u32 %v919_v23, 16  ;;  %v3160_v45 = vrot.slane %v3158_v13, 4  ;;  %v3161_v49 = vrot.slane %v2923_v35, 5  ;;  %v2397_v23 = vrot.slane %v2395_v2, 4 }
 0x21c   : > { %699 = vrot.lane.b32.xlu1 %v543_v37, %s9157_s29  ;;  %8149 = vmatprep.mubr.msk.bf16.mxu0 %vm9163_vm8, %v9162_v9  ;;  %v1382_v37 = vsel %vm9550_vm5, %v1377_v25, %v1381_v15  ;;  %v1407_v15 = vshrl.u32 %v921_v62, 16  ;;  %v8800_v25 = vld [vmem:[#allocation9 + $0x18] sm:$0xff]   ;;  %v1405_v28 = vrot.slane %v1403_v14, 5 }
 0x21d   : > { %v3283_v50 = vpop.permute.xlu0 %3282  ;;  %v1391_v44 = vrot.slane %v1389_v31, 5  ;;  %v3162_v61 = vsel %vm9515_vm4, %v3160_v45, %v3161_v49  ;;  %8330 = vmatpush3.bf16.msra.mxu0 %v8800_v25 }
 0x21e   : > { %3440 = vst.msk [vmem:[#allocation2 + $0x5c] sm:$0xf] %vm3416_vm12, %v3283_v50  ;;  %v2681_v46 = vpop.permute.xlu1 %2680  ;;  %v2383_v50 = vsel %vm9550_vm5, %v2378_v40, %v2382_v27  ;;  %v1409_v27 = vrot.slane %v1407_v15, 4  ;;  %8331 = vmatprep.subr.bf16.mxu0 %v9162_v9 }
 0x21f   : > { %2837 = vst.msk [vmem:[#allocation2 + $0x60] sm:$0xf] %vm2812_vm11, %v2681_v46  ;;  %2702 = vrot.lane.b32.xlu0 %v2359_v36, %s9161_s13  ;;  %v920_v36 = vld [vmem:[%s9482_s19 + $0xd0] sm:$0xf]  ;;  %v1392_v46 = vsel %vm9550_vm5, %v1387_v41, %v1391_v44  ;;  %v1413_v44 = vshll.u32 %v10692_v32, 16 }
 0x220   : > { %1703 = vrot.lane.b32.xlu1 %v1372_v52, %s9160_s8  ;;  %v3527_v52 = vld [vmem:[%s9489_s7 + $0xc8] sm:$0xf]  ;;  %v1394_v53 = vshrl.u32 %v920_v36, 16  ;;  %v1397_v54 = vshll.u32 %v920_v36, 16  ;;  %v10704_v36 = vld [vmem:[%s9489_s7 + $0xd8] sm:$0xf] }
 0x221   : > { %v3884_v0 = vpop.permute.xlu0 %3883  ;;  %v3762_v63 = vrot.slane %v3527_v52, 5 }
 0x222   : > { %4041 = vst.msk [vmem:[#allocation2 + $0x5c] sm:$0xf] %vm12476_vm13, %v3884_v0  ;;  %v3285_v1 = vpop.permute.xlu1 %3284  ;;  %v3163_v0 = vrot.slane %v3161_v49, 4  ;;  %v1396_v60 = vrot.slane %v1394_v53, 4  ;;  %v2926_v53 = vld [vmem:[%s9482_s19 + $0xd4] sm:$0xf] }
 0x223   : > { %3441 = vst.msk [vmem:[#allocation2 + $0x60] sm:$0xf] %vm3416_vm12, %v3285_v1  ;;  %3306 = vrot.lane.b32.xlu0 %v3155_v51, %s9158_s27  ;;  %v2388_v51 = vrot.slane %v2387_v30, 4  ;;  %v1399_v1 = vrot.slane %v1397_v54, 5  ;;  %v3763_v11 = vsel %vm9515_vm4, %v3761_v3, %v3762_v63  ;;  %v3764_v4 = vrot.slane %v3762_v63, 4 }
 0x224   : > { %2704 = vrot.lane.b32.xlu1 %v2373_v10, %s9161_s13  ;;  %v3164_v10 = vrot.slane %v2924_v39, 5  ;;  %v2925_v39 = vld [vmem:[%s9482_s19 + $0xd0] sm:$0xe]  ;;  %v3168_v62 = vrot.slane %v2926_v53, 5 }
 0x225   : > { %v678_v19 = vpop.permute.xlu0 %677  ;;  %v3529_v63 = vld [vmem:[%s9489_s7 + $0xd0] sm:$0xe] }
 0x226   : > { %833 = vst.msk [vmem:[#allocation2 + $0x64] sm:$0xf] %vm807_vm9, %v678_v19  ;;  %v3886_v22 = vpop.permute.xlu1 %3885  ;;  %v1925_v19 = vld [vmem:[%s9489_s7 + $0xd4] sm:$0xf]  ;;  %v3165_v21 = vsel %vm9515_vm4, %v3163_v0, %v3164_v10  ;;  %v7725_v15 = vrot.slane %v3529_v63, 9 }
 0x227   : > { %4042 = vst.msk [vmem:[#allocation2 + $0x60] sm:$0xf] %vm12476_vm13, %v3886_v22  ;;  %3907 = vrot.lane.b32.xlu0 %v3756_v12, %s9159_s15  ;;  %v2393_v12 = vsel %vm9550_vm5, %v2388_v51, %v2392_v57  ;;  %v1400_v22 = vor.u32 %v1399_v1, %v1396_v60  ;;  %v2414_v57 = vshll.u32 %v10704_v36, 16  ;;  %v3530_v0 = vld [vmem:[%s9489_s7 + $0xd4] sm:$0xf] }
 0x228   : > { %3308 = vrot.lane.b32.xlu1 %v3159_v56, %s9158_s27  ;;  %v3528_v56 = vld [vmem:[%s9489_s7 + $0xcc] sm:$0x1]  ;;  %v3769_v16 = vrot.slane %v3530_v0, 5  ;;  %v2928_v63 = vld [vmem:[%s9482_s19 + $0xdc] sm:$0x1] }
 0x229   : > { %v1682_v29 = vpop.permute.xlu0 %1681  ;;  %v3765_v20 = vrot.slane %v3528_v56, 5  ;;  %v1401_v35 = vrot.slane %v1400_v22, 4  ;;  %v10730_v2 = vrot.slane %v2414_v57, 5  ;;  %v924_v56 = vld [vmem:[%s9482_s19 + $0xe0] sm:$0xf] }
 0x22a   : > { %1837 = vst.msk [vmem:[#allocation2 + $0x64] sm:$0xf] %vm1811_vm10, %v1682_v29  ;;  %v680_v33 = vpop.permute.xlu1 %679  ;;  %v2404_v29 = vshll.u32 %v1925_v19, 16  ;;  %v1431_v25 = vshll.u32 %v924_v56, 16 }
 0x22b   : > { %834 = vst.msk [vmem:[#allocation2 + $0x68] sm:$0xf] %vm807_vm9, %v680_v33  ;;  %701 = vrot.lane.b32.xlu0 %v544_v24, %s9157_s29  ;;  %v2400_v24 = vrot.slane %v2398_v5, 5  ;;  %v546_v33 = vld [vmem:[%s9489_s7 + $0xd0] sm:$0xf]  ;;  %v3766_v34 = vsel %vm9515_vm4, %v3764_v4, %v3765_v20 }
 0x22c   : > { %3909 = vrot.lane.b32.xlu1 %v3760_v18, %s9159_s15  ;;  %v2408_v18 = vshrl.u32 %v1925_v19, 16  ;;  %v2406_v41 = vrot.slane %v2404_v29, 5  ;;  %v10733_v5 = vld [vmem:[%s9482_s19 + $0xd8] sm:$0xf]  ;;  %v3170_v19 = vrot.slane %v3168_v62, 4 }
 0x22d   : > { %v2683_v42 = vpop.permute.xlu0 %2682  ;;  %v1928_v29 = vld [vmem:[%s9489_s7 + $0xe0] sm:$0xf] }
 0x22e   : > { %2838 = vst.msk [vmem:[#allocation2 + $0x64] sm:$0xf] %vm2812_vm11, %v2683_v42  ;;  %v1684_v47 = vpop.permute.xlu1 %1683  ;;  %v8793_v48 = vld [vmem:[#allocation2 + $0x5c] sm:$0xff]   ;;  %v1410_v42 = vor.u32 %v1409_v27, %v1405_v28  ;;  %v2410_v45 = vrot.slane %v2408_v18, 4  ;;  %v3770_v18 = vsel %vm9515_vm4, %v7725_v15, %v3769_v16  ;;  %v3771_v27 = vrot.slane %v3769_v16, 4 }
 0x22f   : > { %1838 = vst.msk [vmem:[#allocation2 + $0x68] sm:$0xf] %vm1811_vm10, %v1684_v47  ;;  %1705 = vrot.lane.b32.xlu0 %v1382_v37, %s9160_s8  ;;  %8150 = vmatmul.mubr.msk.bf16.gmra.mrb[40].mxu0 %vm4338_vm14, %v8793_v48  ;;  %v2401_v37 = vor.u32 %v2400_v24, %v2397_v23  ;;  %v547_v48 = vld [vmem:[%s9489_s7 + $0xd4] sm:$0xf]  ;;  %v923_v23 = vld [vmem:[%s9482_s19 + $0xdc] sm:$0x1] }
 0x230   : > { %703 = vrot.lane.b32.xlu1 %v545_v38, %s9157_s29  ;;  %8153 = vmatprep.mubr.msk.bf16.mxu0 %vm9163_vm8, %v9162_v9  ;;  %v2411_v51 = vor.u32 %v2410_v45, %v2406_v41  ;;  %v1428_v24 = vshrl.u32 %v924_v56, 16  ;;  %v3174_v16 = vrot.slane %v2928_v63, 5 }
 0x231   : > { %v3287_v55 = vpop.permute.xlu0 %3286  ;;  %v2402_v52 = vrot.slane %v2401_v37, 4 }
 0x232   : > { %3442 = vst.msk [vmem:[#allocation2 + $0x64] sm:$0xf] %vm3416_vm12, %v3287_v55  ;;  %v2685_v13 = vpop.permute.xlu1 %2684  ;;  %v1411_v55 = vrot.slane %v1410_v42, 4  ;;  %v2412_v1 = vrot.slane %v2411_v51, 4  ;;  %v2429_v42 = vshrl.u32 %v1928_v29, 16 }
 0x233   : > { %2839 = vst.msk [vmem:[#allocation2 + $0x68] sm:$0xf] %vm2812_vm11, %v2685_v13  ;;  %2706 = vrot.lane.b32.xlu0 %v2383_v50, %s9161_s13  ;;  %v1406_v50 = vsel %vm9550_vm5, %v1401_v35, %v1405_v28  ;;  %v1417_v13 = vshrl.u32 %v10692_v32, 16  ;;  %v2407_v3 = vsel %vm9550_vm5, %v2402_v52, %v2406_v41  ;;  %v1433_v41 = vrot.slane %v1431_v25, 5 }
 0x234   : > { %1707 = vrot.lane.b32.xlu1 %v1392_v46, %s9160_s8  ;;  %v10714_v46 = vrot.slane %v1413_v44, 5  ;;  %v2417_v22 = vsel %vm9550_vm5, %v2412_v1, %v10730_v2  ;;  %v2432_v44 = vshll.u32 %v1928_v29, 16  ;;  %v2431_v51 = vrot.slane %v2429_v42, 4 }
 0x235   : > { %v3888_v8 = vpop.permute.xlu0 %3887  ;;  %v1419_v4 = vrot.slane %v1417_v13, 4  ;;  %v10789_v13 = vld [vmem:[%s9489_s7 + $0xe4] sm:$0xf] }
 0x236   : > { %4043 = vst.msk [vmem:[#allocation2 + $0x64] sm:$0xf] %vm12476_vm13, %v3888_v8  ;;  %v3289_v17 = vpop.permute.xlu1 %3288  ;;  %v1416_v60 = vsel %vm9550_vm5, %v1411_v55, %v10714_v46  ;;  %v425_v8 = vld [vmem:[%s9482_s19 + $0xd8] sm:$0xf]  ;;  %v2434_v57 = vrot.slane %v2432_v44, 5 }
 0x237   : > { %3443 = vst.msk [vmem:[#allocation2 + $0x68] sm:$0xf] %vm3416_vm12, %v3289_v17  ;;  %3310 = vrot.lane.b32.xlu0 %v3162_v61, %s9158_s27  ;;  %v7705_v61 = vrot.slane %v2925_v39, 9  ;;  %v2418_v17 = vshrl.u32 %v10704_v36, 16  ;;  %v10844_v44 = vld [vmem:[%s9489_s7 + $0xe4] sm:$0xf] }
 0x238   : > { %2708 = vrot.lane.b32.xlu1 %v2393_v12, %s9161_s13  ;;  %486 = vst.msk [vmem:[#allocation2 + $0xa4] sm:$0xf] %vm444_vm6, %v425_v8  ;;  %v2438_v8 = vshll.u32 %v10789_v13, 16 }
 0x239   : > { %v682_v26 = vpop.permute.xlu0 %681  ;;  %v3169_v14 = vsel %vm9515_vm4, %v7705_v61, %v3168_v62  ;;  %v2420_v35 = vrot.slane %v2418_v17, 4  ;;  %v3532_v17 = vld [vmem:[%s9489_s7 + $0xdc] sm:$0x1] }
 0x23a   : > { %835 = vst.msk [vmem:[#allocation2 + $0x6c] sm:$0xf] %vm807_vm9, %v682_v26  ;;  %v3890_v31 = vpop.permute.xlu1 %3889  ;;  %v426_v26 = vld [vmem:[%s9482_s19 + $0xe0] sm:$0xf]  ;;  %v3775_v29 = vrot.slane %v3532_v17, 5 }
 0x23b   : > { %4044 = vst.msk [vmem:[#allocation2 + $0x68] sm:$0xf] %vm12476_vm13, %v3890_v31  ;;  %3911 = vrot.lane.b32.xlu0 %v3763_v11, %s9159_s15  ;;  %v3171_v11 = vrot.slane %v10733_v5, 5  ;;  %v2421_v52 = vor.u32 %v2420_v35, %v10730_v2  ;;  %v2435_v2 = vor.u32 %v2434_v57, %v2431_v51 }
 0x23c   : > { %3312 = vrot.lane.b32.xlu1 %v3165_v21, %s9158_s27  ;;  %v4458_v40 = vpop.f32.mrb[0].mxu0  ;;  %v10749_v21 = vld [vmem:[%s9489_s7 + $0xd8] sm:$0xf]  ;;  %487 = vst.msk [vmem:[#allocation2 + $0xa8] sm:$0xf] %vm444_vm6, %v426_v26 }
 0x23d   : > { %v1686_v38 = vpop.permute.xlu0 %1685  ;;  %v8111_v7 = vpop.f32.mrb[1].mxu0  ;;  %v3772_v31 = vrot.slane %v10749_v21, 5  ;;  %v3172_v32 = vsel %vm9515_vm4, %v3170_v19, %v3171_v11  ;;  %v1430_v40 = vrot.slane %v1428_v24, 4  ;;  %v2422_v62 = vrot.slane %v2421_v52, 4  ;;  %v427_v24 = vld [vmem:[%s9482_s19 + $0xe4] sm:$0xf] }
 0x23e   : > { %1839 = vst.msk [vmem:[#allocation2 + $0x6c] sm:$0xf] %vm1811_vm10, %v1686_v38  ;;  %v684_v30 = vpop.permute.xlu1 %683  ;;  %v4461_v47 = vpop.f32.mrb[2].mxu0  ;;  %v1927_v38 = vld [vmem:[%s9489_s7 + $0xdc] sm:$0x1]  ;;  %v3173_v15 = vrot.slane %v3171_v11, 4 }
 0x23f   : > { %836 = vst.msk [vmem:[#allocation2 + $0x70] sm:$0xf] %vm807_vm9, %v684_v30  ;;  %705 = vrot.lane.b32.xlu0 %v546_v33, %s9157_s29  ;;  %v8112_v49 = vpop.f32.mrb[3].mxu0  ;;  %v1420_v33 = vor.u32 %v1419_v4, %v10714_v46  ;;  %v10773_v30 = vld [vmem:[%s9482_s19 + $0xe4] sm:$0xf]  ;;  %v3773_v36 = vsel %vm9515_vm4, %v3771_v27, %v3772_v31  ;;  %v2424_v39 = vshll.u32 %v1927_v38, 16  ;;  %v1434_v55 = vor.u32 %v1433_v41, %v1430_v40 }
 0x240   : > { %3913 = vrot.lane.b32.xlu1 %v3766_v34, %s9159_s15  ;;  %v1423_v34 = vshll.u32 %v923_v23, 16  ;;  %v1437_v46 = vshll.u32 %v10773_v30, 16  ;;  %v2929_v4 = vld [vmem:[%s9482_s19 + $0xe0] sm:$0xe]  ;;  %v2436_v5 = vrot.slane %v2435_v2, 4  ;;  %v10819_v11 = vrot.slane %v2438_v8, 5 }
 0x241   : > { %v2687_v54 = vpop.permute.xlu0 %2686  ;;  %v1421_v49 = vrot.slane %v1420_v33, 4  ;;  %v926_v26 = vld [vmem:[%s9482_s19 + $0xe8] sm:$0xf]  ;;  %488 = vst.msk [vmem:[#allocation2 + $0xac] sm:$0xf] %vm444_vm6, %v427_v24  ;;  %v2442_v33 = vshrl.u32 %v10789_v13, 16 }
 0x242   : > { %2840 = vst.msk [vmem:[#allocation2 + $0x6c] sm:$0xf] %vm2812_vm11, %v2687_v54  ;;  %v1688_v58 = vpop.permute.xlu1 %1687  ;;  %v8794_v59 = vld [vmem:[#allocation2 + $0x64] sm:$0xff]   ;;  %v10798_v1 = vrot.slane %v1437_v46, 5  ;;  %v2441_v21 = vsel %vm9550_vm5, %v2436_v5, %v10819_v11  ;;  %v1451_v38 = vshrl.u32 %v926_v26, 16 }
 0x243   : > { %1840 = vst.msk [vmem:[#allocation2 + $0x70] sm:$0xf] %vm1811_vm10, %v1688_v58  ;;  %1709 = vrot.lane.b32.xlu0 %v1406_v50, %s9160_s8  ;;  %8154 = vmatmul.mubr.msk.bf16.gmra.mrb[44].mxu0 %vm4338_vm14, %v8794_v59  ;;  %v1425_v50 = vrot.slane %v1423_v34, 5  ;;  %v3533_v34 = vld [vmem:[%s9489_s7 + $0xe0] sm:$0xe] }
 0x244   : > { %707 = vrot.lane.b32.xlu1 %v547_v48, %s9157_s29  ;;  %8157 = vmatprep.mubr.msk.bf16.mxu0 %vm9163_vm8, %v9162_v9  ;;  %v548_v48 = vld [vmem:[%s9489_s7 + $0xd8] sm:$0xf]  ;;  %v1930_v40 = vld [vmem:[%s9489_s7 + $0xe8] sm:$0xf]  ;;  %v1931_v8 = vld [vmem:[%s9489_s7 + $0xec] sm:$0x1] }
 0x245   : > { %v3291_v10 = vpop.permute.xlu0 %3290  ;;  %v1426_v61 = vsel %vm9550_vm5, %v1421_v49, %v1425_v50  ;;  %v428_v41 = vld [vmem:[%s9482_s19 + $0xe8] sm:$0xf]  ;;  %v3779_v50 = vrot.slane %v10844_v44, 5 }
 0x246   : > { %3444 = vst.msk [vmem:[#allocation2 + $0x6c] sm:$0xf] %vm3416_vm12, %v3291_v10  ;;  %v2689_v12 = vpop.permute.xlu1 %2688  ;;  %v549_v10 = vld [vmem:[%s9489_s7 + $0xe0] sm:$0xf]  ;;  %v3535_v24 = vld [vmem:[%s9489_s7 + $0xe8] sm:$0xf] }
 0x247   : > { %2841 = vst.msk [vmem:[#allocation2 + $0x70] sm:$0xf] %vm2812_vm11, %v2689_v12  ;;  %2710 = vrot.lane.b32.xlu0 %v2407_v3, %s9161_s13  ;;  %v2426_v3 = vrot.slane %v2424_v39, 5  ;;  %v2452_v39 = vshrl.u32 %v1930_v40, 16 }
 0x248   : > { %1711 = vrot.lane.b32.xlu1 %v1416_v60, %s9160_s8  ;;  %v1435_v60 = vrot.slane %v1434_v55, 4  ;;  %489 = vst.msk [vmem:[#allocation2 + $0xb0] sm:$0xf] %vm444_vm6, %v428_v41  ;;  %v1453_v55 = vrot.slane %v1451_v38, 4  ;;  %v3782_v41 = vrot.slane %v3535_v24, 5 }
 0x249   : > { %v3892_v20 = vpop.permute.xlu0 %3891  ;;  %v2427_v19 = vsel %vm9550_vm5, %v2422_v62, %v2426_v3  ;;  %v10936_v24 = vld [vmem:[%s9489_s7 + $0xf8] sm:$0xf] }
 0x24a   : > { %4045 = vst.msk [vmem:[#allocation2 + $0x6c] sm:$0xf] %vm12476_vm13, %v3892_v20  ;;  %v3293_v28 = vpop.permute.xlu1 %3292  ;;  %v10814_v20 = vld [vmem:[%s9482_s19 + $0xe4] sm:$0xf]  ;;  %v1440_v23 = vsel %vm9550_vm5, %v1435_v60, %v10798_v1  ;;  %v2454_v60 = vrot.slane %v2452_v39, 4 }
 0x24b   : > { %3445 = vst.msk [vmem:[#allocation2 + $0x70] sm:$0xf] %vm3416_vm12, %v3293_v28  ;;  %3314 = vrot.lane.b32.xlu0 %v3169_v14, %s9158_s27  ;;  %v1441_v14 = vshrl.u32 %v10773_v30, 16  ;;  %v3774_v28 = vrot.slane %v3772_v31, 4  ;;  %v3178_v27 = vrot.slane %v10814_v20, 5  ;;  %v1447_v31 = vshll.u32 %v926_v26, 16 }
 0x24c   : > { %2712 = vrot.lane.b32.xlu1 %v2417_v22, %s9161_s13  ;;  %v929_v20 = vld [vmem:[%s9482_s19 + $0xf4] sm:$0xf] }
 0x24d   : > { %v686_v37 = vpop.permute.xlu0 %685  ;;  %v1443_v35 = vrot.slane %v1441_v14, 4  ;;  %v1449_v52 = vrot.slane %v1447_v31, 5  ;;  %v429_v31 = vld [vmem:[%s9482_s19 + $0xf0] sm:$0xf]  ;;  %v430_v39 = vld [vmem:[%s9482_s19 + $0xf4] sm:$0xf] }
 0x24e   : > { %837 = vst.msk [vmem:[#allocation2 + $0x74] sm:$0xf] %vm807_vm9, %v686_v37  ;;  %v3894_v45 = vpop.permute.xlu1 %3893  ;;  %v4466_v7 = vpop.f32.mrb[4].mxu0 }
 0x24f   : > { %4046 = vst.msk [vmem:[#allocation2 + $0x70] sm:$0xf] %vm12476_vm13, %v3894_v45  ;;  %3915 = vrot.lane.b32.xlu0 %v3770_v18, %s9159_s15  ;;  %v8115_v47 = vpop.f32.mrb[5].mxu0  ;;  %v7706_v18 = vrot.slane %v2929_v4, 9  ;;  %v3776_v45 = vsel %vm9515_vm4, %v3774_v28, %v3775_v29  ;;  %v7726_v7 = vrot.slane %v3533_v34, 9  ;;  %v3180_v29 = vrot.slane %v3178_v27, 4 }
 0x250   : > { %3316 = vrot.lane.b32.xlu1 %v3172_v32, %s9158_s27  ;;  %v10784_v54 = vpop.f32.mrb[6].mxu0  ;;  %v3175_v32 = vsel %vm9515_vm4, %v3173_v15, %v3174_v16  ;;  %v2444_v47 = vrot.slane %v2442_v33, 4  ;;  %v928_v15 = vld [vmem:[%s9482_s19 + $0xf0] sm:$0xf]  ;;  %v2931_v4 = vld [vmem:[%s9482_s19 + $0xe8] sm:$0xf] }
 0x251   : > { %v1690_v53 = vpop.permute.xlu0 %1689  ;;  %v8116_v59 = vpop.f32.mrb[7].mxu0  ;;  %v3179_v30 = vsel %vm9515_vm4, %v7706_v18, %v3178_v27  ;;  %v1465_v26 = vshll.u32 %v928_v15, 16  ;;  %v3181_v18 = vrot.slane %v2931_v4, 5  ;;  %490 = vst.msk [vmem:[#allocation2 + $0xb4] sm:$0xf] %vm444_vm6, %v429_v31 }
 0x252   : > { %1841 = vst.msk [vmem:[#allocation2 + $0x74] sm:$0xf] %vm1811_vm10, %v1690_v53  ;;  %v688_v58 = vpop.permute.xlu1 %687  ;;  %v927_v53 = vld [vmem:[%s9482_s19 + $0xec] sm:$0x1]  ;;  %v2445_v13 = vor.u32 %v2444_v47, %v10819_v11 }
 0x253   : > { %838 = vst.msk [vmem:[#allocation2 + $0x78] sm:$0xf] %vm807_vm9, %v688_v58  ;;  %709 = vrot.lane.b32.xlu0 %v548_v48, %s9157_s29  ;;  %v2448_v48 = vshll.u32 %v1930_v40, 16  ;;  %v550_v58 = vld [vmem:[%s9489_s7 + $0xe4] sm:$0xf]  ;;  %v1457_v62 = vshll.u32 %v927_v53, 16 }
 0x254   : > { %3917 = vrot.lane.b32.xlu1 %v3773_v36, %s9159_s15  ;;  %v1444_v36 = vor.u32 %v1443_v35, %v10798_v1  ;;  %v2446_v14 = vrot.slane %v2445_v13, 4  ;;  %v3781_v40 = vrot.slane %v3779_v50, 4  ;;  %v3183_v27 = vrot.slane %v3181_v18, 4  ;;  %491 = vst.msk [vmem:[#allocation2 + $0xb8] sm:$0xf] %vm444_vm6, %v430_v39 }
 0x255   : > { %v2691_v0 = vpop.permute.xlu0 %2690 }
 0x256   : > { %2842 = vst.msk [vmem:[#allocation2 + $0x74] sm:$0xf] %vm2812_vm11, %v2691_v0  ;;  %v1692_v12 = vpop.permute.xlu1 %1691  ;;  %v8795_v56 = vld [vmem:[#allocation2 + $0x6c] sm:$0xff]   ;;  %v1445_v59 = vrot.slane %v1444_v36, 4  ;;  %v3780_v0 = vsel %vm9515_vm4, %v7726_v7, %v3779_v50  ;;  %v1475_v50 = vshrl.u32 %v929_v20, 16 }
 0x257   : > { %1842 = vst.msk [vmem:[#allocation2 + $0x78] sm:$0xf] %vm1811_vm10, %v1692_v12  ;;  %1713 = vrot.lane.b32.xlu0 %v1426_v61, %s9160_s8  ;;  %8158 = vmatmul.mubr.msk.bf16.gmra.mrb[48].mxu0 %vm4338_vm14, %v8795_v56  ;;  %v2450_v61 = vrot.slane %v2448_v48, 5  ;;  %v551_v56 = vld [vmem:[%s9489_s7 + $0xe8] sm:$0xf] }
 0x258   : > { %711 = vrot.lane.b32.xlu1 %v549_v10, %s9157_s29  ;;  %8161 = vmatprep.mubr.msk.bf16.mxu0 %vm9163_vm8, %v9162_v9  ;;  %v1454_v10 = vor.u32 %v1453_v55, %v1449_v52  ;;  %v1450_v12 = vsel %vm9550_vm5, %v1445_v59, %v1449_v52  ;;  %v1933_v52 = vld [vmem:[%s9489_s7 + $0xf4] sm:$0xf]  ;;  %v3536_v55 = vld [vmem:[%s9489_s7 + $0xec] sm:$0x1] }
 0x259   : > { %v3295_v22 = vpop.permute.xlu0 %3294  ;;  %v2451_v28 = vsel %vm9550_vm5, %v2446_v14, %v2450_v61  ;;  %v552_v14 = vld [vmem:[%s9489_s7 + $0xf0] sm:$0xf] }
 0x25a   : > { %3446 = vst.msk [vmem:[#allocation2 + $0x74] sm:$0xf] %vm3416_vm12, %v3295_v22  ;;  %v2693_v25 = vpop.permute.xlu1 %2692  ;;  %v1455_v17 = vrot.slane %v1454_v10, 4  ;;  %v2455_v22 = vor.u32 %v2454_v60, %v2450_v61  ;;  %v2472_v61 = vshll.u32 %v1933_v52, 16  ;;  %v3785_v10 = vrot.slane %v3536_v55, 5 }
 0x25b   : > { %2843 = vst.msk [vmem:[#allocation2 + $0x78] sm:$0xf] %vm2812_vm11, %v2693_v25  ;;  %2714 = vrot.lane.b32.xlu0 %v2427_v19, %s9161_s13  ;;  %v1459_v19 = vrot.slane %v1457_v62, 5  ;;  %v1462_v25 = vshrl.u32 %v928_v15, 16  ;;  %v2476_v62 = vshrl.u32 %v1933_v52, 16 }
 0x25c   : > { %1715 = vrot.lane.b32.xlu1 %v1440_v23, %s9160_s8  ;;  %v2458_v23 = vshll.u32 %v1931_v8, 16  ;;  %v2456_v35 = vrot.slane %v2455_v22, 4  ;;  %v10922_v8 = vld [vmem:[%s9482_s19 + $0xf8] sm:$0xf]  ;;  %v932_v52 = vld [vmem:[%s9482_s19 + $0x100] sm:$0xf] }
 0x25d   : > { %v3896_v37 = vpop.permute.xlu0 %3895  ;;  %v1460_v34 = vsel %vm9550_vm5, %v1455_v17, %v1459_v19  ;;  %v1464_v44 = vrot.slane %v1462_v25, 4  ;;  %v2474_v17 = vrot.slane %v2472_v61, 5  ;;  %v2478_v19 = vrot.slane %v2476_v62, 4 }
 0x25e   : > { %4047 = vst.msk [vmem:[#allocation2 + $0x74] sm:$0xf] %vm12476_vm13, %v3896_v37  ;;  %v3297_v42 = vpop.permute.xlu1 %3296  ;;  %v2460_v37 = vrot.slane %v2458_v23, 5 }
 0x25f   : > { %3447 = vst.msk [vmem:[#allocation2 + $0x78] sm:$0xf] %vm3416_vm12, %v3297_v42  ;;  %3318 = vrot.lane.b32.xlu0 %v3175_v32, %s9158_s27  ;;  %v2932_v32 = vld [vmem:[%s9482_s19 + $0xec] sm:$0x1] }
 0x260   : > { %2716 = vrot.lane.b32.xlu1 %v2441_v21, %s9161_s13  ;;  %v1932_v21 = vld [vmem:[%s9489_s7 + $0xf0] sm:$0xf]  ;;  %v3184_v42 = vrot.slane %v2932_v32, 5  ;;  %v2461_v48 = vsel %vm9550_vm5, %v2456_v35, %v2460_v37  ;;  %v2934_v32 = vld [vmem:[%s9482_s19 + $0xf4] sm:$0xf] }
 0x261   : > { %v690_v49 = vpop.permute.xlu0 %689  ;;  %v2463_v7 = vshrl.u32 %v1932_v21, 16  ;;  %v2466_v36 = vshll.u32 %v1932_v21, 16  ;;  %v553_v37 = vld [vmem:[%s9489_s7 + $0xf4] sm:$0xf] }
 0x262   : > { %839 = vst.msk [vmem:[#allocation2 + $0x7c] sm:$0xf] %vm807_vm9, %v690_v49  ;;  %v3898_v46 = vpop.permute.xlu1 %3897  ;;  %v10862_v51 = vpop.f32.mrb[8].mxu0  ;;  %v1471_v49 = vshll.u32 %v929_v20, 16  ;;  %v3188_v20 = vrot.slane %v2934_v32, 5 }
 0x263   : > { %4048 = vst.msk [vmem:[#allocation2 + $0x78] sm:$0xf] %vm12476_vm13, %v3898_v46  ;;  %3919 = vrot.lane.b32.xlu0 %v3776_v45, %s9159_s15  ;;  %v8119_v57 = vpop.f32.mrb[9].mxu0  ;;  %v1467_v45 = vrot.slane %v1465_v26, 5  ;;  %v3783_v46 = vsel %vm9515_vm4, %v3781_v40, %v3782_v41  ;;  %v2465_v59 = vrot.slane %v2463_v7, 4  ;;  %v2468_v13 = vrot.slane %v2466_v36, 5 }
 0x264   : > { %3320 = vrot.lane.b32.xlu1 %v3179_v30, %s9158_s27  ;;  %v10867_v63 = vpop.f32.mrb[10].mxu0  ;;  %v3182_v30 = vsel %vm9515_vm4, %v3180_v29, %v3181_v18  ;;  %v3185_v57 = vsel %vm9515_vm4, %v3183_v27, %v3184_v42  ;;  %v1473_v60 = vrot.slane %v1471_v49, 5  ;;  %v2933_v18 = vld [vmem:[%s9482_s19 + $0xf0] sm:$0xe]  ;;  %v1485_v42 = vshrl.u32 %v10922_v8, 16 }
 0x265   : > { %v1694_v3 = vpop.permute.xlu0 %1693  ;;  %v8120_v2 = vpop.f32.mrb[11].mxu0  ;;  %v431_v49 = vld [vmem:[%s9482_s19 + $0xf8] sm:$0xf] }
 0x266   : > { %1843 = vst.msk [vmem:[#allocation2 + $0x7c] sm:$0xf] %vm1811_vm10, %v1694_v3  ;;  %v692_v1 = vpop.permute.xlu1 %691 }
 0x267   : > { %840 = vst.msk [vmem:[#allocation2 + $0x80] sm:$0xf] %vm807_vm9, %v692_v1  ;;  %713 = vrot.lane.b32.xlu0 %v550_v58, %s9157_s29  ;;  %v1468_v58 = vor.u32 %v1467_v45, %v1464_v44  ;;  %v1477_v1 = vrot.slane %v1475_v50, 4 }
 0x268   : > { %3921 = vrot.lane.b32.xlu1 %v3780_v0, %s9159_s15  ;;  %v3784_v0 = vrot.slane %v3782_v41, 4  ;;  %v7707_v41 = vrot.slane %v2933_v18, 9  ;;  %492 = vst.msk [vmem:[#allocation2 + $0xbc] sm:$0xf] %vm444_vm6, %v431_v49  ;;  %v554_v18 = vld [vmem:[%s9489_s7 + $0xf8] sm:$0xf] }
 0x269   : > { %v2695_v16 = vpop.permute.xlu0 %2694  ;;  %v1469_v15 = vrot.slane %v1468_v58, 4 }
 0x26a   : > { %2844 = vst.msk [vmem:[#allocation2 + $0x7c] sm:$0xf] %vm2812_vm11, %v2695_v16  ;;  %v1696_v5 = vpop.permute.xlu1 %1695  ;;  %v8796_v11 = vld [vmem:[#allocation2 + $0x74] sm:$0xff]   ;;  %v2469_v16 = vor.u32 %v2468_v13, %v2465_v59  ;;  %v3786_v23 = vsel %vm9515_vm4, %v3784_v0, %v3785_v10  ;;  %v3189_v39 = vsel %vm9515_vm4, %v7707_v41, %v3188_v20  ;;  %v1487_v59 = vrot.slane %v1485_v42, 4  ;;  %v1936_v13 = vld [vmem:[%s9489_s7 + $0x100] sm:$0xf] }
 0x26b   : > { %1844 = vst.msk [vmem:[#allocation2 + $0x80] sm:$0xf] %vm1811_vm10, %v1696_v5  ;;  %1717 = vrot.lane.b32.xlu0 %v1450_v12, %s9160_s8  ;;  %8162 = vmatmul.mubr.msk.bf16.gmra.mrb[52].mxu0 %vm4338_vm14, %v8796_v11  ;;  %v1478_v5 = vor.u32 %v1477_v1, %v1473_v60  ;;  %v1481_v11 = vshll.u32 %v10922_v8, 16  ;;  %v1496_v0 = vshrl.u32 %v932_v52, 16  ;;  %v1499_v10 = vshll.u32 %v932_v52, 16 }
 0x26c   : > { %715 = vrot.lane.b32.xlu1 %v551_v56, %s9157_s29  ;;  %8165 = vmatprep.mubr.msk.bf16.mxu0 %vm9163_vm8, %v9162_v9  ;;  %v2470_v29 = vrot.slane %v2469_v16, 4 }
 0x26d   : > { %v3299_v33 = vpop.permute.xlu0 %3298  ;;  %v1479_v21 = vrot.slane %v1478_v5, 4  ;;  %v10948_v31 = vrot.slane %v1481_v11, 5 }
 0x26e   : > { %3448 = vst.msk [vmem:[#allocation2 + $0x7c] sm:$0xf] %vm3416_vm12, %v3299_v33  ;;  %v2697_v38 = vpop.permute.xlu1 %2696  ;;  %v2479_v33 = vor.u32 %v2478_v19, %v2474_v17  ;;  %v2475_v27 = vsel %vm9550_vm5, %v2470_v29, %v2474_v17 }
 0x26f   : > { %2845 = vst.msk [vmem:[#allocation2 + $0x80] sm:$0xf] %vm2812_vm11, %v2697_v38  ;;  %2718 = vrot.lane.b32.xlu0 %v2451_v28, %s9161_s13  ;;  %v1474_v28 = vsel %vm9550_vm5, %v1469_v15, %v1473_v60  ;;  %v1484_v36 = vsel %vm9550_vm5, %v1479_v21, %v10948_v31  ;;  %v432_v60 = vld [vmem:[%s9482_s19 + $0x100] sm:$0xf]  ;;  %v1488_v17 = vor.u32 %v1487_v59, %v10948_v31 }
 0x270   : > { %1719 = vrot.lane.b32.xlu1 %v1460_v34, %s9160_s8  ;;  %v2482_v34 = vshll.u32 %v10936_v24, 16  ;;  %v2480_v44 = vrot.slane %v2479_v33, 4  ;;  %493 = vst.msk [vmem:[#allocation2 + $0xc0] sm:$0xf] %vm444_vm6, %v432_v60 }
 0x271   : > { %v3900_v47 = vpop.permute.xlu0 %3899  ;;  %v1489_v21 = vrot.slane %v1488_v17, 4 }
 0x272   : > { %4049 = vst.msk [vmem:[#allocation2 + $0x7c] sm:$0xf] %vm12476_vm13, %v3900_v47  ;;  %v3301_v53 = vpop.permute.xlu1 %3300  ;;  %v10958_v45 = vrot.slane %v2482_v34, 5  ;;  %v3538_v47 = vld [vmem:[%s9489_s7 + $0xf4] sm:$0xf] }
 0x273   : > { %3449 = vst.msk [vmem:[#allocation2 + $0x80] sm:$0xf] %vm3416_vm12, %v3301_v53  ;;  %3322 = vrot.lane.b32.xlu0 %v3182_v30, %s9158_s27  ;;  %v3537_v30 = vld [vmem:[%s9489_s7 + $0xf0] sm:$0xe]  ;;  %v2486_v53 = vshrl.u32 %v10936_v24, 16  ;;  %v1498_v24 = vrot.slane %v1496_v0, 4 }
 0x274   : > { %2720 = vrot.lane.b32.xlu1 %v2461_v48, %s9161_s13  ;;  %v10966_v48 = vld [vmem:[%s9482_s19 + $0xf8] sm:$0xf]  ;;  %v7727_v55 = vrot.slane %v3537_v30, 9  ;;  %v2485_v62 = vsel %vm9550_vm5, %v2480_v44, %v10958_v45 }
 0x275   : > { %v694_v3 = vpop.permute.xlu0 %693  ;;  %v3191_v58 = vrot.slane %v10966_v48, 5  ;;  %v2488_v8 = vrot.slane %v2486_v53, 4  ;;  %v2937_v48 = vld [vmem:[%s9482_s19 + $0x100] sm:$0xe] }
 0x276   : > { %841 = vst.msk [vmem:[#allocation2 + $0x84] sm:$0xf] %vm807_vm9, %v694_v3  ;;  %v3902_v2 = vpop.permute.xlu1 %3901  ;;  %v10926_v12 = vpop.f32.mrb[12].mxu0  ;;  %v931_v3 = vld [vmem:[%s9482_s19 + $0xfc] sm:$0x1] }
 0x277   : > { %4050 = vst.msk [vmem:[#allocation2 + $0x80] sm:$0xf] %vm12476_vm13, %v3902_v2  ;;  %3923 = vrot.lane.b32.xlu0 %v3783_v46, %s9159_s15  ;;  %v8123_v56 = vpop.f32.mrb[13].mxu0  ;;  %v3789_v46 = vrot.slane %v3538_v47, 5  ;;  %v10989_v2 = vld [vmem:[%s9489_s7 + $0xf8] sm:$0xf]  ;;  %v2489_v32 = vor.u32 %v2488_v8, %v10958_v45 }
 0x278   : > { %3324 = vrot.lane.b32.xlu1 %v3185_v57, %s9158_s27  ;;  %v10930_v22 = vpop.f32.mrb[14].mxu0  ;;  %v3190_v57 = vrot.slane %v3188_v20, 4  ;;  %v2497_v56 = vshrl.u32 %v1936_v13, 16  ;;  %v1491_v19 = vshll.u32 %v931_v3, 16  ;;  %v3792_v11 = vrot.slane %v10989_v2, 5 }
 0x279   : > { %v1698_v4 = vpop.permute.xlu0 %1697  ;;  %v8124_v26 = vpop.f32.mrb[15].mxu0  ;;  %v3790_v15 = vsel %vm9515_vm4, %v7727_v55, %v3789_v46  ;;  %v3791_v5 = vrot.slane %v3789_v46, 4  ;;  %v2490_v30 = vrot.slane %v2489_v32, 4  ;;  %v433_v8 = vld [vmem:[%s9482_s19 + $0x104] sm:$0xf] }
 0x27a   : > { %1845 = vst.msk [vmem:[#allocation2 + $0x84] sm:$0xf] %vm1811_vm10, %v1698_v4  ;;  %v696_v25 = vpop.permute.xlu1 %695  ;;  %v3192_v16 = vsel %vm9515_vm4, %v3190_v57, %v3191_v58  ;;  %v1935_v4 = vld [vmem:[%s9489_s7 + $0xfc] sm:$0x1]  ;;  %v2499_v34 = vrot.slane %v2497_v56, 4  ;;  %v1493_v31 = vrot.slane %v1491_v19, 5 }
 0x27b   : > { %842 = vst.msk [vmem:[#allocation2 + $0x88] sm:$0xf] %vm807_vm9, %v696_v25  ;;  %717 = vrot.lane.b32.xlu0 %v552_v14, %s9157_s29  ;;  %v2500_v14 = vshll.u32 %v1936_v13, 16  ;;  %v1501_v25 = vrot.slane %v1499_v10, 5  ;;  %v2492_v33 = vshll.u32 %v1935_v4, 16  ;;  %v3793_v20 = vsel %vm9515_vm4, %v3791_v5, %v3792_v11 }
 0x27c   : > { %3925 = vrot.lane.b32.xlu1 %v3786_v23, %s9159_s15  ;;  %v1494_v49 = vsel %vm9550_vm5, %v1489_v21, %v1493_v31  ;;  %v3193_v13 = vrot.slane %v3191_v58, 4  ;;  %v3540_v10 = vld [vmem:[%s9489_s7 + $0xfc] sm:$0x1]  ;;  %v11054_v58 = vld [vmem:[%s9482_s19 + $0x104] sm:$0xf] }
 0x27d   : > { %v2699_v35 = vpop.permute.xlu0 %2698  ;;  %494 = vst.msk [vmem:[#allocation2 + $0xc4] sm:$0xf] %vm444_vm6, %v433_v8  ;;  %v3198_v5 = vrot.slane %v11054_v58, 5  ;;  %v3541_v32 = vld [vmem:[%s9489_s7 + $0x100] sm:$0xe] }
 0x27e   : > { %2846 = vst.msk [vmem:[#allocation2 + $0x84] sm:$0xf] %vm2812_vm11, %v2699_v35  ;;  %v1700_v38 = vpop.permute.xlu1 %1699  ;;  %v8797_v40 = vld [vmem:[#allocation2 + $0x7c] sm:$0xff]   ;;  %v2502_v35 = vrot.slane %v2500_v14, 5  ;;  %v934_v14 = vld [vmem:[%s9482_s19 + $0x108] sm:$0xf] }
 0x27f   : > { %1846 = vst.msk [vmem:[#allocation2 + $0x88] sm:$0xf] %vm1811_vm10, %v1700_v38  ;;  %1721 = vrot.lane.b32.xlu0 %v1474_v28, %s9160_s8  ;;  %8166 = vmatmul.mubr.msk.bf16.gmra.mrb[56].mxu0 %vm4338_vm14, %v8797_v40  ;;  %v11006_v28 = vld [vmem:[%s9482_s19 + $0x104] sm:$0xf] }
 0x280   : > { %719 = vrot.lane.b32.xlu1 %v553_v37, %s9157_s29  ;;  %8169 = vmatprep.mubr.msk.bf16.mxu0 %vm9163_vm8, %v9162_v9  ;;  %v11016_v38 = vld [vmem:[%s9489_s7 + $0x104] sm:$0xf]  ;;  %v1505_v42 = vshll.u32 %v11006_v28, 16  ;;  %v1509_v59 = vshrl.u32 %v11006_v28, 16  ;;  %v434_v28 = vld [vmem:[%s9482_s19 + $0x108] sm:$0xf] }
 0x281   : > { %v3303_v7 = vpop.permute.xlu0 %3302  ;;  %v2506_v47 = vshll.u32 %v11016_v38, 16  ;;  %v2510_v4 = vshrl.u32 %v11016_v38, 16  ;;  %495 = vst.msk [vmem:[#allocation2 + $0xc8] sm:$0xf] %vm444_vm6, %v434_v28  ;;  %v937_v28 = vld [vmem:[%s9482_s19 + $0x114] sm:$0xf] }
 0x282   : > { %3450 = vst.msk [vmem:[#allocation2 + $0x84] sm:$0xf] %vm3416_vm12, %v3303_v7  ;;  %v2701_v50 = vpop.permute.xlu1 %2700  ;;  %v2494_v7 = vrot.slane %v2492_v33, 5  ;;  %v11034_v55 = vrot.slane %v1505_v42, 5  ;;  %v1511_v17 = vrot.slane %v1509_v59, 4 }
 0x283   : > { %2847 = vst.msk [vmem:[#allocation2 + $0x88] sm:$0xf] %vm2812_vm11, %v2701_v50  ;;  %2722 = vrot.lane.b32.xlu0 %v2475_v27, %s9161_s13  ;;  %v1502_v27 = vor.u32 %v1501_v25, %v1498_v24  ;;  %v2936_v50 = vld [vmem:[%s9482_s19 + $0xfc] sm:$0x1]  ;;  %v11042_v3 = vrot.slane %v2506_v47, 5  ;;  %v1519_v25 = vshrl.u32 %v934_v14, 16 }
 0x284   : > { %1723 = vrot.lane.b32.xlu1 %v1484_v36, %s9160_s8  ;;  %v2503_v36 = vor.u32 %v2502_v35, %v2499_v34  ;;  %v2495_v0 = vsel %vm9550_vm5, %v2490_v30, %v2494_v7  ;;  %v11079_v33 = vld [vmem:[%s9489_s7 + $0x104] sm:$0xf]  ;;  %v1512_v35 = vor.u32 %v1511_v17, %v11034_v55  ;;  %v2512_v21 = vrot.slane %v2510_v4, 4  ;;  %v8806_v47 = vld [vmem:[#allocation9 + $0x20] ss:$0 sps:$4 sm:$0xff]  }
 0x285   : > { %v3904_v61 = vpop.permute.xlu0 %3903  ;;  %v1503_v53 = vrot.slane %v1502_v27, 4  ;;  %v3799_v27 = vrot.slane %v11079_v33, 5 }
 0x286   : > { %4051 = vst.msk [vmem:[#allocation2 + $0x84] sm:$0xf] %vm12476_vm13, %v3904_v61  ;;  %v3305_v1 = vpop.permute.xlu1 %3304  ;;  %v3194_v61 = vrot.slane %v2936_v50, 5  ;;  %v556_v50 = vld [vmem:[%s9489_s7 + $0x104] sm:$0xf] }
 0x287   : > { %3451 = vst.msk [vmem:[#allocation2 + $0x88] sm:$0xf] %vm3416_vm12, %v3305_v1  ;;  %3326 = vrot.lane.b32.xlu0 %v3189_v39, %s9158_s27  ;;  %v555_v39 = vld [vmem:[%s9489_s7 + $0x100] sm:$0xf]  ;;  %v1508_v1 = vsel %vm9550_vm5, %v1503_v53, %v11034_v55  ;;  %v3801_v58 = vrot.slane %v3799_v27, 4 }
 0x288   : > { %2724 = vrot.lane.b32.xlu1 %v2485_v62, %s9161_s13  ;;  %v2504_v62 = vrot.slane %v2503_v36, 4  ;;  %v3195_v19 = vsel %vm9515_vm4, %v3193_v13, %v3194_v61  ;;  %v1513_v36 = vrot.slane %v1512_v35, 4  ;;  %v5435_v61 = vsel %vm4420_vm7, %v8806_v47, 0 }
 0x289   : > { %v698_v23 = vpop.permute.xlu0 %697  ;;  %8332 = vmatpush3.bf16.msra.mxu0 %v5435_v61 }
 0x28a   : > { %843 = vst.msk [vmem:[#allocation2 + $0x8c] sm:$0xf] %vm807_vm9, %v698_v23  ;;  %v3906_v26 = vpop.permute.xlu1 %3905  ;;  %v11010_v29 = vpop.f32.mrb[16].mxu0  ;;  %v7708_v23 = vrot.slane %v2937_v48, 9  ;;  %v2509_v2 = vsel %vm9550_vm5, %v2504_v62, %v11042_v3  ;;  %v936_v48 = vld [vmem:[%s9482_s19 + $0x110] sm:$0xf] }
 0x28b   : > { %4052 = vst.msk [vmem:[#allocation2 + $0x88] sm:$0xf] %vm12476_vm13, %v3906_v26  ;;  %3927 = vrot.lane.b32.xlu0 %v3790_v15, %s9159_s15  ;;  %v8127_v37 = vpop.f32.mrb[17].mxu0  ;;  %v3794_v15 = vrot.slane %v3792_v11, 4  ;;  %v1515_v11 = vshll.u32 %v934_v14, 16 }
 0x28c   : > { %3328 = vrot.lane.b32.xlu1 %v3192_v16, %s9158_s27  ;;  %v11018_v41 = vpop.f32.mrb[18].mxu0  ;;  %v3795_v16 = vrot.slane %v3540_v10, 5  ;;  %v1938_v26 = vld [vmem:[%s9489_s7 + $0x108] sm:$0xf]  ;;  %v3199_v37 = vsel %vm9515_vm4, %v7708_v23, %v3198_v5  ;;  %v1530_v23 = vshrl.u32 %v936_v48, 16 }
 0x28d   : > { %v1702_v40 = vpop.permute.xlu0 %1701  ;;  %v8128_v45 = vpop.f32.mrb[19].mxu0  ;;  %v2516_v31 = vshll.u32 %v1938_v26, 16  ;;  %v2520_v38 = vshrl.u32 %v1938_v26, 16  ;;  %v1517_v42 = vrot.slane %v1515_v11, 5  ;;  %v3200_v11 = vrot.slane %v3198_v5, 4 }
 0x28e   : > { %1847 = vst.msk [vmem:[#allocation2 + $0x8c] sm:$0xf] %vm1811_vm10, %v1702_v40  ;;  %v700_v44 = vpop.permute.xlu1 %699  ;;  %v3796_v34 = vsel %vm9515_vm4, %v3794_v15, %v3795_v16  ;;  %v1521_v45 = vrot.slane %v1519_v25, 4  ;;  %v2939_v15 = vld [vmem:[%s9482_s19 + $0x108] sm:$0xf] }
 0x28f   : > { %844 = vst.msk [vmem:[#allocation2 + $0x90] sm:$0xf] %vm807_vm9, %v700_v44  ;;  %721 = vrot.lane.b32.xlu0 %v554_v18, %s9157_s29  ;;  %v935_v44 = vld [vmem:[%s9482_s19 + $0x10c] sm:$0x1]  ;;  %v2522_v55 = vrot.slane %v2520_v38, 4  ;;  %v1518_v10 = vsel %vm9550_vm5, %v1513_v36, %v1517_v42  ;;  %v3201_v25 = vrot.slane %v2939_v15, 5 }
 0x290   : > { %3929 = vrot.lane.b32.xlu1 %v3793_v20, %s9159_s15  ;;  %v7728_v20 = vrot.slane %v3541_v32, 9  ;;  %v1525_v53 = vshll.u32 %v935_v44, 16  ;;  %v1522_v13 = vor.u32 %v1521_v45, %v1517_v42  ;;  %v3543_v26 = vld [vmem:[%s9489_s7 + $0x108] sm:$0xf]  ;;  %v2940_v5 = vld [vmem:[%s9482_s19 + $0x10c] sm:$0x1] }
 0x291   : > { %v2703_v52 = vpop.permute.xlu0 %2702  ;;  %v3802_v38 = vrot.slane %v3543_v26, 5  ;;  %v1539_v42 = vshll.u32 %v937_v28, 16  ;;  %v3202_v33 = vsel %vm9515_vm4, %v3200_v11, %v3201_v25  ;;  %v3203_v47 = vrot.slane %v3201_v25, 4 }
 0x292   : > { %2848 = vst.msk [vmem:[#allocation2 + $0x8c] sm:$0xf] %vm2812_vm11, %v2703_v52  ;;  %v1704_v46 = vpop.permute.xlu1 %1703  ;;  %v8798_v57 = vld [vmem:[#allocation2 + $0x84] sm:$0xff]   ;;  %v2513_v52 = vor.u32 %v2512_v21, %v11042_v3  ;;  %v3800_v59 = vsel %vm9515_vm4, %v7728_v20, %v3799_v27  ;;  %v1527_v14 = vrot.slane %v1525_v53, 5  ;;  %v435_v21 = vld [vmem:[%s9482_s19 + $0x110] sm:$0xf] }
 0x293   : > { %1848 = vst.msk [vmem:[#allocation2 + $0x90] sm:$0xf] %vm1811_vm10, %v1704_v46  ;;  %1725 = vrot.lane.b32.xlu0 %v1494_v49, %s9160_s8  ;;  %8170 = vmatmul.mubr.msk.bf16.gmra.mrb[60].mxu0 %vm4338_vm14, %v8798_v57  ;;  %v1543_v27 = vshrl.u32 %v937_v28, 16  ;;  %v3544_v53 = vld [vmem:[%s9489_s7 + $0x10c] sm:$0x1] }
 0x294   : > { %723 = vrot.lane.b32.xlu1 %v555_v39, %s9157_s29  ;;  %8173 = vmatprep.mubr.msk.bf16.mxu0 %vm9163_vm8, %v9162_v9  ;;  %v2518_v39 = vrot.slane %v2516_v31, 5  ;;  %496 = vst.msk [vmem:[#allocation2 + $0xcc] sm:$0xf] %vm444_vm6, %v435_v21 }
 0x295   : > { %v3307_v60 = vpop.permute.xlu0 %3306 }
 0x296   : > { %3452 = vst.msk [vmem:[#allocation2 + $0x8c] sm:$0xf] %vm3416_vm12, %v3307_v60  ;;  %v2705_v56 = vpop.permute.xlu1 %2704  ;;  %v557_v60 = vld [vmem:[%s9489_s7 + $0x108] sm:$0xf]  ;;  %v2523_v16 = vor.u32 %v2522_v55, %v2518_v39  ;;  %v3803_v55 = vsel %vm9515_vm4, %v3801_v58, %v3802_v38 }
 0x297   : > { %2849 = vst.msk [vmem:[#allocation2 + $0x90] sm:$0xf] %vm2812_vm11, %v2705_v56  ;;  %2726 = vrot.lane.b32.xlu0 %v2495_v0, %s9161_s13  ;;  %v1939_v0 = vld [vmem:[%s9489_s7 + $0x10c] sm:$0x1]  ;;  %v1523_v56 = vrot.slane %v1522_v13, 4 }
 0x298   : > { %1727 = vrot.lane.b32.xlu1 %v1508_v1, %s9160_s8  ;;  %v2514_v1 = vrot.slane %v2513_v52, 4  ;;  %v2526_v17 = vshll.u32 %v1939_v0, 16  ;;  %v436_v52 = vld [vmem:[%s9482_s19 + $0x114] sm:$0xf] }
 0x299   : > { %v3908_v24 = vpop.permute.xlu0 %3907  ;;  %v1528_v32 = vsel %vm9550_vm5, %v1523_v56, %v1527_v14  ;;  %497 = vst.msk [vmem:[#allocation2 + $0xd0] sm:$0xf] %vm444_vm6, %v436_v52 }
 0x29a   : > { %4053 = vst.msk [vmem:[#allocation2 + $0x8c] sm:$0xf] %vm12476_vm13, %v3908_v24  ;;  %v3309_v18 = vpop.permute.xlu1 %3308  ;;  %v1533_v24 = vshll.u32 %v936_v48, 16  ;;  %v2528_v35 = vrot.slane %v2526_v17, 5  ;;  %v558_v17 = vld [vmem:[%s9489_s7 + $0x110] sm:$0xf] }
 0x29b   : > { %3453 = vst.msk [vmem:[#allocation2 + $0x90] sm:$0xf] %vm3416_vm12, %v3309_v18  ;;  %3330 = vrot.lane.b32.xlu0 %v3195_v19, %s9158_s27 }
 0x29c   : > { %2728 = vrot.lane.b32.xlu1 %v2509_v2, %s9161_s13  ;;  %v2519_v2 = vsel %vm9550_vm5, %v2514_v1, %v2518_v39  ;;  %v1535_v20 = vrot.slane %v1533_v24, 5  ;;  %v3805_v1 = vrot.slane %v3544_v53, 5 }
 0x29d   : > { %v702_v40 = vpop.permute.xlu0 %701 }
 0x29e   : > { %845 = vst.msk [vmem:[#allocation2 + $0x94] sm:$0xf] %vm807_vm9, %v702_v40  ;;  %v3910_v30 = vpop.permute.xlu1 %3909  ;;  %v11097_v7 = vpop.f32.mrb[20].mxu0  ;;  %v1532_v40 = vrot.slane %v1530_v23, 4 }
 0x29f   : > { %4054 = vst.msk [vmem:[#allocation2 + $0x90] sm:$0xf] %vm12476_vm13, %v3910_v30  ;;  %3931 = vrot.lane.b32.xlu0 %v3796_v34, %s9159_s15  ;;  %v8131_v49 = vpop.f32.mrb[21].mxu0  ;;  %v2524_v34 = vrot.slane %v2523_v16, 4 }
 0x2a0   : > { %3332 = vrot.lane.b32.xlu1 %v3199_v37, %s9158_s27  ;;  %v11102_v57 = vpop.f32.mrb[22].mxu0  ;;  %v1940_v37 = vld [vmem:[%s9489_s7 + $0x110] sm:$0xf]  ;;  %v3204_v49 = vrot.slane %v2940_v5, 5 }
 0x2a1   : > { %v1706_v46 = vpop.permute.xlu0 %1705  ;;  %v8132_v3 = vpop.f32.mrb[23].mxu0  ;;  %v2531_v44 = vshrl.u32 %v1940_v37, 16  ;;  %v2534_v45 = vshll.u32 %v1940_v37, 16  ;;  %v2529_v36 = vsel %vm9550_vm5, %v2524_v34, %v2528_v35  ;;  %v559_v35 = vld [vmem:[%s9489_s7 + $0x114] sm:$0xf] }
 0x2a2   : > { %1849 = vst.msk [vmem:[#allocation2 + $0x94] sm:$0xf] %vm1811_vm10, %v1706_v46  ;;  %v704_v62 = vpop.permute.xlu1 %703  ;;  %v1536_v46 = vor.u32 %v1535_v20, %v1532_v40  ;;  %v1545_v3 = vrot.slane %v1543_v27, 4  ;;  %v2942_v40 = vld [vmem:[%s9482_s19 + $0x114] sm:$0xf] }
 0x2a3   : > { %846 = vst.msk [vmem:[#allocation2 + $0x98] sm:$0xf] %vm807_vm9, %v704_v62  ;;  %725 = vrot.lane.b32.xlu0 %v556_v50, %s9157_s29  ;;  %v1941_v50 = vld [vmem:[%s9489_s7 + $0x114] sm:$0xf]  ;;  %v2533_v13 = vrot.slane %v2531_v44, 4  ;;  %v2536_v61 = vrot.slane %v2534_v45, 5 }
 0x2a4   : > { %3933 = vrot.lane.b32.xlu1 %v3800_v59, %s9159_s15  ;;  %v1541_v59 = vrot.slane %v1539_v42, 5  ;;  %v2540_v62 = vshll.u32 %v1941_v50, 16  ;;  %v2544_v48 = vshrl.u32 %v1941_v50, 16  ;;  %v1537_v15 = vrot.slane %v1536_v46, 4  ;;  %v3546_v50 = vld [vmem:[%s9489_s7 + $0x114] sm:$0xf] }
 0x2a5   : > { %v2707_v8 = vpop.permute.xlu0 %2706  ;;  %v942_v46 = vld [vmem:[%s9482_s19 + $0x128] sm:$0xf] }
 0x2a6   : > { %2850 = vst.msk [vmem:[#allocation2 + $0x94] sm:$0xf] %vm2812_vm11, %v2707_v8  ;;  %v1708_v19 = vpop.permute.xlu1 %1707  ;;  %v8799_v4 = vld [vmem:[#allocation2 + $0x8c] sm:$0xff]   ;;  %v11161_v8 = vld [vmem:[%s9482_s19 + $0x118] sm:$0xf]  ;;  %v1546_v23 = vor.u32 %v1545_v3, %v1541_v59  ;;  %v2546_v26 = vrot.slane %v2544_v48, 4  ;;  %v1542_v34 = vsel %vm9550_vm5, %v1537_v15, %v1541_v59 }
 0x2a7   : > { %1850 = vst.msk [vmem:[#allocation2 + $0x98] sm:$0xf] %vm1811_vm10, %v1708_v19  ;;  %1729 = vrot.lane.b32.xlu0 %v1518_v10, %s9160_s8  ;;  %8174 = vmatmul.mubr.msk.bf16.gmra.mrb[64].mxu0 %vm4338_vm14, %v8799_v4  ;;  %v3205_v10 = vsel %vm9515_vm4, %v3203_v47, %v3204_v49  ;;  %v2537_v19 = vor.u32 %v2536_v61, %v2533_v13  ;;  %v2542_v4 = vrot.slane %v2540_v62, 5  ;;  %v1549_v24 = vshll.u32 %v11161_v8, 16  ;;  %v3545_v49 = vld [vmem:[%s9489_s7 + $0x110] sm:$0xe] }
 0x2a8   : > { %727 = vrot.lane.b32.xlu1 %v557_v60, %s9157_s29  ;;  %8177 = vmatprep.mubr.msk.bf16.mxu0 %vm9163_vm8, %v9162_v9  ;;  %v3804_v60 = vrot.slane %v3802_v38, 4  ;;  %v1547_v21 = vrot.slane %v1546_v23, 4  ;;  %v2941_v38 = vld [vmem:[%s9482_s19 + $0x110] sm:$0xe]  ;;  %v3208_v47 = vrot.slane %v2942_v40, 5  ;;  %v7729_v62 = vrot.slane %v3545_v49, 9 }
 0x2a9   : > { %v3311_v18 = vpop.permute.xlu0 %3310  ;;  %v2538_v37 = vrot.slane %v2537_v19, 4  ;;  %v11186_v5 = vrot.slane %v1549_v24, 5  ;;  %v2547_v20 = vor.u32 %v2546_v26, %v2542_v4  ;;  %v439_v59 = vld [vmem:[%s9482_s19 + $0x124] sm:$0xf]  ;;  %v11211_v61 = vld [vmem:[%s9482_s19 + $0x118] sm:$0xf] }
 0x2aa   : > { %3454 = vst.msk [vmem:[#allocation2 + $0x94] sm:$0xf] %vm3416_vm12, %v3311_v18  ;;  %v2709_v31 = vpop.permute.xlu1 %2708  ;;  %v3806_v25 = vsel %vm9515_vm4, %v3804_v60, %v3805_v1  ;;  %v3809_v3 = vrot.slane %v3546_v50, 5  ;;  %v1583_v1 = vshll.u32 %v942_v46, 16  ;;  %v1587_v48 = vshrl.u32 %v942_v46, 16 }
 0x2ab   : > { %2851 = vst.msk [vmem:[#allocation2 + $0x98] sm:$0xf] %vm2812_vm11, %v2709_v31  ;;  %2730 = vrot.lane.b32.xlu0 %v2519_v2, %s9161_s13  ;;  %v941_v31 = vld [vmem:[%s9482_s19 + $0x124] sm:$0xf]  ;;  %v2548_v53 = vrot.slane %v2547_v20, 4  ;;  %v3211_v19 = vrot.slane %v11211_v61, 5 }
 0x2ac   : > { %1731 = vrot.lane.b32.xlu1 %v1528_v32, %s9160_s8  ;;  %v11177_v32 = vld [vmem:[%s9489_s7 + $0x118] sm:$0xf]  ;;  %v1573_v44 = vshll.u32 %v941_v31, 16  ;;  %v1577_v45 = vshrl.u32 %v941_v31, 16  ;;  %500 = vst.msk [vmem:[#allocation2 + $0xdc] sm:$0xf] %vm444_vm6, %v439_v59 }
 0x2ad   : > { %v3912_v30 = vpop.permute.xlu0 %3911  ;;  %v2550_v42 = vshll.u32 %v11177_v32, 16  ;;  %v440_v23 = vld [vmem:[%s9482_s19 + $0x128] sm:$0xf]  ;;  %v437_v40 = vld [vmem:[%s9482_s19 + $0x118] sm:$0xf]  ;;  %v1553_v20 = vshrl.u32 %v11161_v8, 16 }
 0x2ae   : > { %4055 = vst.msk [vmem:[#allocation2 + $0x94] sm:$0xf] %vm12476_vm13, %v3912_v30  ;;  %v3313_v39 = vpop.permute.xlu1 %3312  ;;  %v2543_v30 = vsel %vm9550_vm5, %v2538_v37, %v2542_v4  ;;  %v11227_v4 = vld [vmem:[%s9489_s7 + $0x118] sm:$0xf]  ;;  %v1589_v37 = vrot.slane %v1587_v48, 4 }
 0x2af   : > { %3455 = vst.msk [vmem:[#allocation2 + $0x98] sm:$0xf] %vm3416_vm12, %v3313_v39  ;;  %3334 = vrot.lane.b32.xlu0 %v3202_v33, %s9158_s27  ;;  %v1552_v39 = vsel %vm9550_vm5, %v1547_v21, %v11186_v5  ;;  %v438_v59 = vld [vmem:[%s9482_s19 + $0x120] sm:$0xf] }
 0x2b0   : > { %2732 = vrot.lane.b32.xlu1 %v2529_v36, %s9161_s13  ;;  %v7709_v36 = vrot.slane %v2941_v38, 9  ;;  %501 = vst.msk [vmem:[#allocation2 + $0xe0] sm:$0xf] %vm444_vm6, %v440_v23  ;;  %v1946_v38 = vld [vmem:[%s9489_s7 + $0x128] sm:$0xf] }
 0x2b1   : > { %v706_v0 = vpop.permute.xlu0 %705  ;;  %498 = vst.msk [vmem:[#allocation2 + $0xd4] sm:$0xf] %vm444_vm6, %v437_v40  ;;  %v2584_v49 = vshll.u32 %v1946_v38, 16  ;;  %v2588_v50 = vshrl.u32 %v1946_v38, 16  ;;  %499 = vst.msk [vmem:[#allocation2 + $0xd8] sm:$0xf] %vm444_vm6, %v438_v59 }
 0x2b2   : > { %847 = vst.msk [vmem:[#allocation2 + $0x9c] sm:$0xf] %vm807_vm9, %v706_v0  ;;  %v3914_v56 = vpop.permute.xlu1 %3913  ;;  %v11166_v14 = vpop.f32.mrb[24].mxu0  ;;  %v11216_v0 = vrot.slane %v1573_v44, 5  ;;  %v3209_v60 = vsel %vm9515_vm4, %v7709_v36, %v3208_v47  ;;  %v939_v23 = vld [vmem:[%s9482_s19 + $0x11c] sm:$0x1] }
 0x2b3   : > { %4056 = vst.msk [vmem:[#allocation2 + $0x98] sm:$0xf] %vm12476_vm13, %v3914_v56  ;;  %3935 = vrot.lane.b32.xlu0 %v3803_v55, %s9159_s15  ;;  %v8135_v16 = vpop.f32.mrb[25].mxu0  ;;  %v11203_v55 = vrot.slane %v2550_v42, 5  ;;  %v1945_v56 = vld [vmem:[%s9489_s7 + $0x124] sm:$0xf] }
 0x2b4   : > { %3336 = vrot.lane.b32.xlu1 %v3205_v10, %s9158_s27  ;;  %v11171_v11 = vpop.f32.mrb[26].mxu0  ;;  %v1579_v10 = vrot.slane %v1577_v45, 4  ;;  %v2574_v26 = vshll.u32 %v1945_v56, 16  ;;  %v2947_v59 = vld [vmem:[%s9482_s19 + $0x128] sm:$0xf] }
 0x2b5   : > { %v1710_v2 = vpop.permute.xlu0 %1709  ;;  %v8136_v18 = vpop.f32.mrb[27].mxu0  ;;  %v2553_v16 = vsel %vm9550_vm5, %v2548_v53, %v11203_v55 }
 0x2b6   : > { %1851 = vst.msk [vmem:[#allocation2 + $0x9c] sm:$0xf] %vm1811_vm10, %v1710_v2  ;;  %v708_v28 = vpop.permute.xlu1 %707  ;;  %v3810_v2 = vsel %vm9515_vm4, %v7729_v62, %v3809_v3  ;;  %v3811_v18 = vrot.slane %v3809_v3, 4  ;;  %v11254_v45 = vrot.slane %v2574_v26, 5 }
 0x2b7   : > { %848 = vst.msk [vmem:[#allocation2 + $0xa0] sm:$0xf] %vm807_vm9, %v708_v28  ;;  %729 = vrot.lane.b32.xlu0 %v558_v17, %s9157_s29  ;;  %v3210_v17 = vrot.slane %v3208_v47, 4  ;;  %v2578_v28 = vshrl.u32 %v1945_v56, 16 }
 0x2b8   : > { %3937 = vrot.lane.b32.xlu1 %v3806_v25, %s9159_s15  ;;  %v1580_v25 = vor.u32 %v1579_v10, %v11216_v0 }
 0x2b9   : > { %v2711_v58 = vpop.permute.xlu0 %2710  ;;  %v3212_v31 = vsel %vm9515_vm4, %v3210_v17, %v3211_v19 }
 0x2ba   : > { %2852 = vst.msk [vmem:[#allocation2 + $0x9c] sm:$0xf] %vm2812_vm11, %v2711_v58  ;;  %v1712_v33 = vpop.permute.xlu1 %1711  ;;  %v8801_v27 = vld [vmem:[#allocation2 + $0x94] sm:$0xff]   ;;  %v943_v58 = vld [vmem:[%s9482_s19 + $0x12c] sm:$0x1]  ;;  %v1581_v44 = vrot.slane %v1580_v25, 4 }
 0x2bb   : > { %1852 = vst.msk [vmem:[#allocation2 + $0xa0] sm:$0xf] %vm1811_vm10, %v1712_v33  ;;  %1733 = vrot.lane.b32.xlu0 %v1542_v34, %s9160_s8  ;;  %8178 = vmatmul.mubr.msk.bf16.gmra.mrb[68].mxu0 %vm4338_vm14, %v8801_v27  ;;  %v3812_v34 = vrot.slane %v11227_v4, 5  ;;  %v562_v27 = vld [vmem:[%s9489_s7 + $0x124] sm:$0xf]  ;;  %v1593_v47 = vshll.u32 %v943_v58, 16 }
 0x2bc   : > { %731 = vrot.lane.b32.xlu1 %v559_v35, %s9157_s29  ;;  %8181 = vmatprep.mubr.msk.bf16.mxu0 %vm9163_vm8, %v9162_v9  ;;  %v1585_v35 = vrot.slane %v1583_v1, 5  ;;  %v563_v1 = vld [vmem:[%s9489_s7 + $0x128] sm:$0xf] }
 0x2bd   : > { %v3315_v52 = vpop.permute.xlu0 %3314  ;;  %v3813_v46 = vsel %vm9515_vm4, %v3811_v18, %v3812_v34  ;;  %v1595_v56 = vrot.slane %v1593_v47, 5  ;;  %v2554_v18 = vshrl.u32 %v11177_v32, 16  ;;  %v561_v47 = vld [vmem:[%s9489_s7 + $0x120] sm:$0xf]  ;;  %v3814_v61 = vrot.slane %v3812_v34, 4 }
 0x2be   : > { %3456 = vst.msk [vmem:[#allocation2 + $0x9c] sm:$0xf] %vm3416_vm12, %v3315_v52  ;;  %v2713_v13 = vpop.permute.xlu1 %2712  ;;  %v1590_v36 = vor.u32 %v1589_v37, %v1585_v35  ;;  %v940_v52 = vld [vmem:[%s9482_s19 + $0x120] sm:$0xf]  ;;  %v1586_v3 = vsel %vm9550_vm5, %v1581_v44, %v1585_v35 }
 0x2bf   : > { %2853 = vst.msk [vmem:[#allocation2 + $0xa0] sm:$0xf] %vm2812_vm11, %v2713_v13  ;;  %2734 = vrot.lane.b32.xlu0 %v2543_v30, %s9161_s13  ;;  %v2580_v30 = vrot.slane %v2578_v28, 4  ;;  %v1567_v25 = vshll.u32 %v940_v52, 16  ;;  %v1944_v44 = vld [vmem:[%s9489_s7 + $0x120] sm:$0xf] }
 0x2c0   : > { %1735 = vrot.lane.b32.xlu1 %v1552_v39, %s9160_s8  ;;  %v1591_v48 = vrot.slane %v1590_v36, 4  ;;  %v2556_v36 = vrot.slane %v2554_v18, 4 }
 0x2c1   : > { %v3916_v15 = vpop.permute.xlu0 %3915  ;;  %v2581_v10 = vor.u32 %v2580_v30, %v11254_v45 }
 0x2c2   : > { %4057 = vst.msk [vmem:[#allocation2 + $0x9c] sm:$0xf] %vm12476_vm13, %v3916_v15  ;;  %v3317_v24 = vpop.permute.xlu1 %3316  ;;  %v2586_v15 = vrot.slane %v2584_v49, 5  ;;  %v1596_v32 = vsel %vm9550_vm5, %v1591_v48, %v1595_v56 }
 0x2c3   : > { %3457 = vst.msk [vmem:[#allocation2 + $0xa0] sm:$0xf] %vm3416_vm12, %v3317_v24  ;;  %3338 = vrot.lane.b32.xlu0 %v3209_v60, %s9158_s27  ;;  %v1555_v60 = vrot.slane %v1553_v20, 4  ;;  %v1947_v24 = vld [vmem:[%s9489_s7 + $0x12c] sm:$0x1]  ;;  %v2582_v35 = vrot.slane %v2581_v10, 4 }
 0x2c4   : > { %2736 = vrot.lane.b32.xlu1 %v2553_v16, %s9161_s13  ;;  %v2590_v16 = vrot.slane %v2588_v50, 4  ;;  %v2594_v38 = vshll.u32 %v1947_v24, 16  ;;  %v11287_v20 = vld [vmem:[%s9482_s19 + $0x124] sm:$0xf]  ;;  %v2568_v10 = vshll.u32 %v1944_v44, 16 }
 0x2c5   : > { %v710_v21 = vpop.permute.xlu0 %709  ;;  %v1556_v37 = vor.u32 %v1555_v60, %v11186_v5  ;;  %v2587_v30 = vsel %vm9550_vm5, %v2582_v35, %v2586_v15 }
 0x2c6   : > { %849 = vst.msk [vmem:[#allocation2 + $0xa4] sm:$0xf] %vm807_vm9, %v710_v21  ;;  %v3918_v42 = vpop.permute.xlu1 %3917  ;;  %v11251_v33 = vpop.f32.mrb[28].mxu0  ;;  %v560_v21 = vld [vmem:[%s9489_s7 + $0x118] sm:$0xf]  ;;  %v2591_v58 = vor.u32 %v2590_v16, %v2586_v15  ;;  %v3221_v15 = vrot.slane %v2947_v59, 5 }
 0x2c7   : > { %4058 = vst.msk [vmem:[#allocation2 + $0xa0] sm:$0xf] %vm12476_vm13, %v3918_v42  ;;  %3939 = vrot.lane.b32.xlu0 %v3810_v2, %s9159_s15  ;;  %v8139_v8 = vpop.f32.mrb[29].mxu0  ;;  %v1564_v2 = vshrl.u32 %v940_v52, 16  ;;  %v2596_v52 = vrot.slane %v2594_v38, 5 }
 0x2c8   : > { %3340 = vrot.lane.b32.xlu1 %v3212_v31, %s9158_s27  ;;  %v11258_v53 = vpop.f32.mrb[30].mxu0  ;;  %v1559_v31 = vshll.u32 %v939_v23, 16  ;;  %v1557_v8 = vrot.slane %v1556_v37, 4  ;;  %v2592_v50 = vrot.slane %v2591_v58, 4  ;;  %v3223_v58 = vrot.slane %v3221_v15, 4 }
 0x2c9   : > { %v1714_v39 = vpop.permute.xlu0 %1713  ;;  %v8140_v62 = vpop.f32.mrb[31].mxu0  ;;  %v1566_v42 = vrot.slane %v1564_v2, 4  ;;  %v11314_v2 = vld [vmem:[%s9489_s7 + $0x124] sm:$0xf]  ;;  %v3551_v38 = vld [vmem:[%s9489_s7 + $0x128] sm:$0xf] }
 0x2ca   : > { %1853 = vst.msk [vmem:[#allocation2 + $0xa4] sm:$0xf] %vm1811_vm10, %v1714_v39  ;;  %v712_v13 = vpop.permute.xlu1 %711  ;;  %v1561_v49 = vrot.slane %v1559_v31, 5  ;;  %v3218_v39 = vrot.slane %v11287_v20, 5  ;;  %v1943_v62 = vld [vmem:[%s9489_s7 + $0x11c] sm:$0x1]  ;;  %v2597_v23 = vsel %vm9550_vm5, %v2592_v50, %v2596_v52 }
 0x2cb   : > { %850 = vst.msk [vmem:[#allocation2 + $0xa8] sm:$0xf] %vm807_vm9, %v712_v13  ;;  %737 = vrot.lane.b32.xlu0 %v562_v27, %s9157_s29  ;;  %v1569_v27 = vrot.slane %v1567_v25, 5  ;;  %v2560_v16 = vshll.u32 %v1943_v62, 16  ;;  %v2944_v59 = vld [vmem:[%s9482_s19 + $0x11c] sm:$0x1] }
 0x2cc   : > { %3941 = vrot.lane.b32.xlu1 %v3813_v46, %s9159_s15  ;;  %v1562_v48 = vsel %vm9550_vm5, %v1557_v8, %v1561_v49  ;;  %v3220_v56 = vrot.slane %v3218_v39, 4  ;;  %v868_v49 = vld [vmem:[%s9482_s19] sm:$0xf] }
 0x2cd   : > { %v2715_v17 = vpop.permute.xlu0 %2714  ;;  %v1570_v13 = vor.u32 %v1569_v27, %v1566_v42  ;;  %v2562_v31 = vrot.slane %v2560_v16, 5  ;;  %v869_v16 = vld [vmem:[%s9482_s19 + $0x4] sm:$0xf] }
 0x2ce   : > { %2854 = vst.msk [vmem:[#allocation2 + $0xa4] sm:$0xf] %vm2812_vm11, %v2715_v17  ;;  %v1716_v26 = vpop.permute.xlu1 %1715  ;;  %v8802_v28 = vld [vmem:[#allocation2 + $0x9c] sm:$0xff]   ;;  %v965_v34 = vshrl.u32 %v869_v16, 16 }
 0x2cf   : > { %1854 = vst.msk [vmem:[#allocation2 + $0xa8] sm:$0xf] %vm1811_vm10, %v1716_v26  ;;  %1741 = vrot.lane.b32.xlu0 %v1586_v3, %s9160_s8  ;;  %8182 = vmatmul.mubr.msk.bf16.gmra.mrb[72].mxu0 %vm4338_vm14, %v8802_v28  ;;  %v2565_v3 = vshrl.u32 %v1944_v44, 16  ;;  %v1571_v24 = vrot.slane %v1570_v13, 4  ;;  %v2948_v28 = vld [vmem:[%s9482_s19 + $0x12c] sm:$0x1] }
 0x2d0   : > { %739 = vrot.lane.b32.xlu1 %v563_v1, %s9157_s29  ;;  %8185 = vmatprep.mubr.msk.bf16.mxu0 %vm9163_vm8, %v9162_v9  ;;  %v2557_v1 = vor.u32 %v2556_v36, %v11203_v55  ;;  %v2570_v55 = vrot.slane %v2568_v10, 5  ;;  %v3552_v13 = vld [vmem:[%s9489_s7 + $0x12c] sm:$0x1]  ;;  %v952_v10 = vshrl.u32 %v868_v49, 16 }
 0x2d1   : > { %v3319_v40 = vpop.permute.xlu0 %3318  ;;  %v2567_v25 = vrot.slane %v2565_v3, 4  ;;  %v1576_v27 = vsel %vm9550_vm5, %v1571_v24, %v11216_v0 }
 0x2d2   : > { %3458 = vst.msk [vmem:[#allocation2 + $0xa4] sm:$0xf] %vm3416_vm12, %v3319_v40  ;;  %v2717_v5 = vpop.permute.xlu1 %2716  ;;  %v2558_v35 = vrot.slane %v2557_v1, 4  ;;  %v3819_v40 = vrot.slane %v11314_v2, 5 }
 0x2d3   : > { %2855 = vst.msk [vmem:[#allocation2 + $0xa8] sm:$0xf] %vm2812_vm11, %v2717_v5  ;;  %733 = vrot.lane.b32.xlu0 %v560_v21, %s9157_s29  ;;  %v3222_v21 = vsel %vm9515_vm4, %v3220_v56, %v3221_v15  ;;  %v3224_v5 = vrot.slane %v2948_v28, 5  ;;  %v2571_v44 = vor.u32 %v2570_v55, %v2567_v25  ;;  %v3214_v56 = vrot.slane %v2944_v59, 5  ;;  %v3548_v15 = vld [vmem:[%s9489_s7 + $0x11c] sm:$0x1] }
 0x2d4   : > { %1743 = vrot.lane.b32.xlu1 %v1596_v32, %s9160_s8  ;;  %v2563_v36 = vsel %vm9550_vm5, %v2558_v35, %v2562_v31  ;;  %v3821_v0 = vrot.slane %v3819_v40, 4  ;;  %v3825_v25 = vrot.slane %v3552_v13, 5  ;;  %v1872_v55 = vld [vmem:[%s9489_s7] sm:$0xf]  ;;  %v954_v35 = vrot.slane %v952_v10, 4 }
 0x2d5   : > { %v3920_v46 = vpop.permute.xlu0 %3919  ;;  %v3225_v52 = vsel %vm9515_vm4, %v3223_v58, %v3224_v5  ;;  %v384_v28 = vld [vmem:[%s9482_s19] sm:$0xf]  ;;  %v1953_v31 = vshrl.u32 %v1872_v55, 16  ;;  %v1956_v58 = vshll.u32 %v1872_v55, 16  ;;  %v1873_v5 = vld [vmem:[%s9489_s7 + $0x4] sm:$0xf] }
 0x2d6   : > { %4059 = vst.msk [vmem:[#allocation2 + $0xa4] sm:$0xf] %vm12476_vm13, %v3920_v46  ;;  %v3321_v60 = vpop.permute.xlu1 %3320  ;;  %v2572_v46 = vrot.slane %v2571_v44, 4  ;;  %v385_v44 = vld [vmem:[%s9482_s19 + $0x4] sm:$0xf]  ;;  %v1966_v10 = vshrl.u32 %v1873_v5, 16 }
 0x2d7   : > { %3459 = vst.msk [vmem:[#allocation2 + $0xa8] sm:$0xf] %vm3416_vm12, %v3321_v60  ;;  %2742 = vrot.lane.b32.xlu0 %v2587_v30, %s9161_s13  ;;  %v955_v60 = vshll.u32 %v868_v49, 16  ;;  %v967_v49 = vrot.slane %v965_v34, 4  ;;  %v2873_v34 = vld [vmem:[%s9482_s19] sm:$0xe] }
 0x2d8   : > { %735 = vrot.lane.b32.xlu1 %v561_v47, %s9157_s29  ;;  %v3822_v47 = vrot.slane %v3551_v38, 5  ;;  %445 = vst.msk [vmem:[#allocation2] sm:$0xf] %vm444_vm6, %v384_v28  ;;  %446 = vst.msk [vmem:[#allocation2 + $0x4] sm:$0xf] %vm444_vm6, %v385_v44  ;;  %v1968_v55 = vrot.slane %v1966_v10, 4 }
 0x2d9   : > { %v714_v17 = vpop.permute.xlu0 %713  ;;  %v508_v28 = vld [vmem:[%s9489_s7 + $0x4] sm:$0xf]  ;;  %v7692_v44 = vrot.slane %v2873_v34, 9 }
 0x2da   : > { %851 = vst.msk [vmem:[#allocation2 + $0xac] sm:$0xf] %vm807_vm9, %v714_v17  ;;  %v3922_v26 = vpop.permute.xlu1 %3921  ;;  %v11320_v18 = vpop.f32.mrb[32].mxu0  ;;  %v3823_v1 = vsel %vm9515_vm4, %v3821_v0, %v3822_v47  ;;  %v3824_v24 = vrot.slane %v3822_v47, 4 }
 0x2db   : > { %4060 = vst.msk [vmem:[#allocation2 + $0xa8] sm:$0xf] %vm12476_vm13, %v3922_v26  ;;  %1737 = vrot.lane.b32.xlu0 %v1562_v48, %s9160_s8  ;;  %v8143_v37 = vpop.f32.mrb[33].mxu0  ;;  %v3213_v48 = vrot.slane %v3211_v19, 4  ;;  %v2945_v19 = vld [vmem:[%s9482_s19 + $0x120] sm:$0xe] }
 0x2dc   : > { %2744 = vrot.lane.b32.xlu1 %v2597_v23, %s9161_s13  ;;  %v11327_v42 = vpop.f32.mrb[34].mxu0  ;;  %v2577_v23 = vsel %vm9550_vm5, %v2572_v46, %v11254_v45  ;;  %v3815_v45 = vrot.slane %v3548_v15, 5  ;;  %v957_v37 = vrot.slane %v955_v60, 5  ;;  %v1962_v46 = vshll.u32 %v1873_v5, 16 }
 0x2dd   : > { %v1718_v32 = vpop.permute.xlu0 %1717  ;;  %v8144_v8 = vpop.f32.mrb[35].mxu0  ;;  %v3215_v4 = vsel %vm9515_vm4, %v3213_v48, %v3214_v56  ;;  %v507_v56 = vld [vmem:[%s9489_s7] sm:$0xf] }
 0x2de   : > { %1855 = vst.msk [vmem:[#allocation2 + $0xac] sm:$0xf] %vm1811_vm10, %v1718_v32  ;;  %v716_v30 = vpop.permute.xlu1 %715  ;;  %v3826_v32 = vsel %vm9515_vm4, %v3824_v24, %v3825_v25  ;;  %v3549_v8 = vld [vmem:[%s9489_s7 + $0x120] sm:$0xe]  ;;  %v958_v0 = vor.u32 %v957_v37, %v954_v35 }
 0x2df   : > { %852 = vst.msk [vmem:[#allocation2 + $0xb0] sm:$0xf] %vm807_vm9, %v716_v30  ;;  %3346 = vrot.lane.b32.xlu0 %v3222_v21, %s9158_s27  ;;  %v961_v21 = vshll.u32 %v869_v16, 16 }
 0x2e0   : > { %1739 = vrot.lane.b32.xlu1 %v1576_v27, %s9160_s8  ;;  %v7710_v27 = vrot.slane %v2945_v19, 9  ;;  %v959_v48 = vrot.slane %v958_v0, 4  ;;  %v1874_v19 = vld [vmem:[%s9489_s7 + $0x8] sm:$0xf] }
 0x2e1   : > { %v2719_v50 = vpop.permute.xlu0 %2718  ;;  %v963_v47 = vrot.slane %v961_v21, 5 }
 0x2e2   : > { %2856 = vst.msk [vmem:[#allocation2 + $0xac] sm:$0xf] %vm2812_vm11, %v2719_v50  ;;  %v1720_v62 = vpop.permute.xlu1 %1719  ;;  %v8803_v3 = vld [vmem:[#allocation2 + $0xa4] sm:$0xff]   ;;  %v1955_v50 = vrot.slane %v1953_v31, 4  ;;  %v3219_v13 = vsel %vm9515_vm4, %v7710_v27, %v3218_v39  ;;  %v1976_v27 = vshrl.u32 %v1874_v19, 16 }
 0x2e3   : > { %1856 = vst.msk [vmem:[#allocation2 + $0xb0] sm:$0xf] %vm1811_vm10, %v1720_v62  ;;  %2738 = vrot.lane.b32.xlu0 %v2563_v36, %s9161_s13  ;;  %8186 = vmatmul.mubr.msk.bf16.gmra.mrb[76].mxu0 %vm4338_vm14, %v8803_v3  ;;  %v3816_v36 = vsel %vm9515_vm4, %v3814_v61, %v3815_v45  ;;  %v7730_v62 = vrot.slane %v3549_v8, 9  ;;  %v870_v3 = vld [vmem:[%s9482_s19 + $0x8] sm:$0xf]  ;;  %v968_v39 = vor.u32 %v967_v49, %v963_v47 }
 0x2e4   : > { %3348 = vrot.lane.b32.xlu1 %v3225_v52, %s9158_s27  ;;  %8189 = vmatprep.mubr.msk.bf16.mxu0 %vm9163_vm8, %v9162_v9  ;;  %v1958_v52 = vrot.slane %v1956_v58, 5  ;;  %v971_v15 = vshll.u32 %v870_v3, 16  ;;  %v964_v2 = vsel %vm9550_vm5, %v959_v48, %v963_v47  ;;  %v2874_v31 = vld [vmem:[%s9482_s19 + $0x4] sm:$0xf]  ;;  %v3477_v49 = vld [vmem:[%s9489_s7] sm:$0xe] }
 0x2e5   : > { %v3323_v17 = vpop.permute.xlu0 %3322  ;;  %v3820_v25 = vsel %vm9515_vm4, %v7730_v62, %v3819_v40  ;;  %v969_v45 = vrot.slane %v968_v39, 4  ;;  %v386_v62 = vld [vmem:[%s9482_s19 + $0x8] sm:$0xf]  ;;  %v7712_v10 = vrot.slane %v3477_v49, 9  ;;  %v871_v48 = vld [vmem:[%s9482_s19 + $0xc] sm:$0x1] }
 0x2e6   : > { %3460 = vst.msk [vmem:[#allocation2 + $0xac] sm:$0xf] %vm3416_vm12, %v3323_v17  ;;  %v2721_v26 = vpop.permute.xlu1 %2720  ;;  %v1959_v16 = vor.u32 %v1958_v52, %v1955_v50  ;;  %v1964_v17 = vrot.slane %v1962_v46, 5  ;;  %v11411_v37 = vrot.slane %v971_v15, 5  ;;  %v3478_v50 = vld [vmem:[%s9489_s7 + $0x4] sm:$0xf] }
 0x2e7   : > { %2857 = vst.msk [vmem:[#allocation2 + $0xb0] sm:$0xf] %vm2812_vm11, %v2721_v26  ;;  %3947 = vrot.lane.b32.xlu0 %v3823_v1, %s9159_s15  ;;  %v11431_v46 = vld [vmem:[%s9482_s19 + $0x8] sm:$0xf] }
 0x2e8   : > { %2740 = vrot.lane.b32.xlu1 %v2577_v23, %s9161_s13  ;;  %v1960_v40 = vrot.slane %v1959_v16, 4  ;;  %v1969_v21 = vor.u32 %v1968_v55, %v1964_v17  ;;  %447 = vst.msk [vmem:[#allocation2 + $0x8] sm:$0xf] %vm444_vm6, %v386_v62  ;;  %v3041_v16 = vrot.slane %v11431_v46, 5 }
 0x2e9   : > { %v3924_v38 = vpop.permute.xlu0 %3923 }
 0x2ea   : > { %4061 = vst.msk [vmem:[#allocation2 + $0xac] sm:$0xf] %vm12476_vm13, %v3924_v38  ;;  %v3325_v30 = vpop.permute.xlu1 %3324  ;;  %v1965_v5 = vsel %vm9550_vm5, %v1960_v40, %v1964_v17  ;;  %v1970_v0 = vrot.slane %v1969_v21, 4  ;;  %v944_v17 = vld [vmem:[%s9482_s19 + $0x130] sm:$0xf] }
 0x2eb   : > { %3461 = vst.msk [vmem:[#allocation2 + $0xb0] sm:$0xf] %vm3416_vm12, %v3325_v30  ;;  %3342 = vrot.lane.b32.xlu0 %v3215_v4, %s9158_s27  ;;  %v1972_v4 = vshll.u32 %v1874_v19, 16  ;;  %v3038_v30 = vrot.slane %v2874_v31, 5  ;;  %v509_v31 = vld [vmem:[%s9489_s7 + $0x8] sm:$0xf] }
 0x2ec   : > { %3949 = vrot.lane.b32.xlu1 %v3826_v32, %s9159_s15  ;;  %v975_v32 = vshrl.u32 %v870_v3, 16 }
 0x2ed   : > { %v718_v59 = vpop.permute.xlu0 %717  ;;  %v1974_v47 = vrot.slane %v1972_v4, 5  ;;  %v3039_v3 = vsel %vm9515_vm4, %v7692_v44, %v3038_v30  ;;  %v3040_v15 = vrot.slane %v3038_v30, 4  ;;  %v1948_v4 = vld [vmem:[%s9489_s7 + $0x130] sm:$0xf]  ;;  %v3480_v44 = vld [vmem:[%s9489_s7 + $0xc] sm:$0x1] }
 0x2ee   : > { %853 = vst.msk [vmem:[#allocation2 + $0xb4] sm:$0xf] %vm807_vm9, %v718_v59  ;;  %v3926_v60 = vpop.permute.xlu1 %3925  ;;  %v11393_v1 = vpop.f32.mrb[36].mxu0  ;;  %v977_v59 = vrot.slane %v975_v32, 4  ;;  %v2599_v49 = vshrl.u32 %v1948_v4, 16 }
 0x2ef   : > { %4062 = vst.msk [vmem:[#allocation2 + $0xb0] sm:$0xf] %vm12476_vm13, %v3926_v60  ;;  %3943 = vrot.lane.b32.xlu0 %v3816_v36, %s9159_s15  ;;  %v8147_v20 = vpop.f32.mrb[37].mxu0  ;;  %v974_v36 = vsel %vm9550_vm5, %v969_v45, %v11411_v37  ;;  %v3639_v60 = vrot.slane %v3478_v50, 5  ;;  %v1975_v39 = vsel %vm9550_vm5, %v1970_v0, %v1974_v47  ;;  %v1601_v45 = vshll.u32 %v944_v17, 16 }
 0x2f0   : > { %3344 = vrot.lane.b32.xlu1 %v3219_v13, %s9158_s27  ;;  %v11397_v24 = vpop.f32.mrb[38].mxu0  ;;  %v1978_v13 = vrot.slane %v1976_v27, 4  ;;  %v1875_v20 = vld [vmem:[%s9489_s7 + $0xc] sm:$0x1]  ;;  %v978_v55 = vor.u32 %v977_v59, %v11411_v37  ;;  %v2602_v59 = vshll.u32 %v1948_v4, 16 }
 0x2f1   : > { %v1722_v23 = vpop.permute.xlu0 %1721  ;;  %v8148_v61 = vpop.f32.mrb[39].mxu0  ;;  %v1982_v19 = vshll.u32 %v1875_v20, 16  ;;  %v3641_v37 = vrot.slane %v3639_v60, 4  ;;  %v3645_v20 = vrot.slane %v3480_v44, 5  ;;  %v11495_v4 = vld [vmem:[%s9482_s19 + $0x134] sm:$0xf] }
 0x2f2   : > { %1857 = vst.msk [vmem:[#allocation2 + $0xb4] sm:$0xf] %vm1811_vm10, %v1722_v23  ;;  %v720_v26 = vpop.permute.xlu1 %719  ;;  %v1979_v61 = vor.u32 %v1978_v13, %v1974_v47  ;;  %v1603_v47 = vrot.slane %v1601_v45, 5  ;;  %12510 = vst [vmem:[#allocation27_spill] sm:$0xff] %v11495_v4 }
 0x2f3   : > { %854 = vst.msk [vmem:[#allocation2 + $0xb8] sm:$0xf] %vm807_vm9, %v720_v26  ;;  %627 = vrot.lane.b32.xlu0 %v507_v56, %s9157_s29  ;;  %v981_v26 = vshll.u32 %v871_v48, 16 }
 0x2f4   : > { %3945 = vrot.lane.b32.xlu1 %v3820_v25, %s9159_s15  ;;  %v3479_v25 = vld [vmem:[%s9489_s7 + $0x8] sm:$0xf]  ;;  %v1980_v27 = vrot.slane %v1979_v61, 4 }
 0x2f5   : > { %v2723_v35 = vpop.permute.xlu0 %2722  ;;  %v3642_v21 = vrot.slane %v3479_v25, 5  ;;  %v983_v32 = vrot.slane %v981_v26, 5  ;;  %v1949_v25 = vld [vmem:[%s9489_s7 + $0x134] sm:$0xf]  ;;  %v2604_v26 = vrot.slane %v2602_v59, 5 }
 0x2f6   : > { %2858 = vst.msk [vmem:[#allocation2 + $0xb4] sm:$0xf] %vm2812_vm11, %v2723_v35  ;;  %v1724_v58 = vpop.permute.xlu1 %1723  ;;  %v8804_v38 = vld [vmem:[#allocation2 + $0xac] sm:$0xff]   ;;  %v3042_v35 = vsel %vm9515_vm4, %v3040_v15, %v3041_v16 }
 0x2f7   : > { %1858 = vst.msk [vmem:[#allocation2 + $0xb8] sm:$0xf] %vm1811_vm10, %v1724_v58  ;;  %1631 = vrot.lane.b32.xlu0 %v964_v2, %s9160_s8  ;;  %8190 = vmatmul.mubr.msk.bf16.gmra.mrb[80].mxu0 %vm4338_vm14, %v8804_v38  ;;  %v1598_v2 = vshrl.u32 %v944_v17, 16  ;;  %v979_v58 = vrot.slane %v978_v55, 4  ;;  %v3643_v46 = vsel %vm9515_vm4, %v3641_v37, %v3642_v21  ;;  %v3644_v48 = vrot.slane %v3642_v21, 4 }
 0x2f8   : > { %629 = vrot.lane.b32.xlu1 %v508_v28, %s9157_s29  ;;  %8193 = vmatprep.mubr.msk.bf16.mxu0 %vm9163_vm8, %v9162_v9  ;;  %v3640_v28 = vsel %vm9515_vm4, %v7712_v10, %v3639_v60  ;;  %v3043_v17 = vrot.slane %v3041_v16, 4  ;;  %v2601_v55 = vrot.slane %v2599_v49, 4  ;;  %v2608_v37 = vshll.u32 %v1949_v25, 16  ;;  %v2949_v21 = vld [vmem:[%s9482_s19 + $0x130] sm:$0xe] }
 0x2f9   : > { %v3327_v8 = vpop.permute.xlu0 %3326  ;;  %v1600_v0 = vrot.slane %v1598_v2, 4  ;;  %v984_v10 = vsel %vm9550_vm5, %v979_v58, %v983_v32  ;;  %v3646_v16 = vsel %vm9515_vm4, %v3644_v48, %v3645_v20  ;;  %v7711_v58 = vrot.slane %v2949_v21, 9 }
 0x2fa   : > { %3462 = vst.msk [vmem:[#allocation2 + $0xb4] sm:$0xf] %vm3416_vm12, %v3327_v8  ;;  %v2725_v52 = vpop.permute.xlu1 %2724  ;;  %v2876_v8 = vld [vmem:[%s9482_s19 + $0xc] sm:$0x1]  ;;  %v12467_v32 = vrot.slane %v11495_v4, 5 }
 0x2fb   : > { %2859 = vst.msk [vmem:[#allocation2 + $0xb8] sm:$0xf] %vm2812_vm11, %v2725_v52  ;;  %2632 = vrot.lane.b32.xlu0 %v1965_v5, %s9161_s13  ;;  %v1984_v5 = vrot.slane %v1982_v19, 5 }
 0x2fc   : > { %1633 = vrot.lane.b32.xlu1 %v974_v36, %s9160_s8  ;;  %v945_v36 = vld [vmem:[%s9482_s19 + $0x134] sm:$0xf] }
 0x2fd   : > { %v3928_v56 = vpop.permute.xlu0 %3927  ;;  %v1985_v60 = vsel %vm9550_vm5, %v1980_v27, %v1984_v5  ;;  %v564_v5 = vld [vmem:[%s9489_s7 + $0x130] sm:$0xf] }
 0x2fe   : > { %4063 = vst.msk [vmem:[#allocation2 + $0xb4] sm:$0xf] %vm12476_vm13, %v3928_v56  ;;  %v3329_v23 = vpop.permute.xlu1 %3328  ;;  %v1604_v56 = vor.u32 %v1603_v47, %v1600_v0  ;;  %v11513_v0 = vld [vmem:[%s9489_s7 + $0x134] sm:$0xf]  ;;  %v3229_v47 = vsel %vm9515_vm4, %v7711_v58, %v12467_v32 }
 0x2ff   : > { %3463 = vst.msk [vmem:[#allocation2 + $0xb8] sm:$0xf] %vm3416_vm12, %v3329_v23  ;;  %3236 = vrot.lane.b32.xlu0 %v3039_v3, %s9158_s27  ;;  %v441_v3 = vld [vmem:[%s9482_s19 + $0x130] sm:$0xf]  ;;  %v3044_v23 = vrot.slane %v2876_v8, 5  ;;  %12512 = vst [vmem:[#allocation29_spill] sm:$0xff] %v11513_v0 }
 0x300   : > { %2634 = vrot.lane.b32.xlu1 %v1975_v39, %s9161_s13  ;;  %502 = vst.msk [vmem:[#allocation2 + $0xe4] sm:$0xf] %vm444_vm6, %v441_v3  ;;  %v1607_v39 = vshll.u32 %v945_v36, 16  ;;  %v3553_v36 = vld [vmem:[%s9489_s7 + $0x130] sm:$0xe]  ;;  %v12466_v59 = vrot.slane %v11513_v0, 5 }
 0x301   : > { %v722_v40 = vpop.permute.xlu0 %721 }
 0x302   : > { %855 = vst.msk [vmem:[#allocation2 + $0xbc] sm:$0xf] %vm807_vm9, %v722_v40  ;;  %v3930_v34 = vpop.permute.xlu1 %3929  ;;  %v11460_v38 = vpop.f32.mrb[40].mxu0  ;;  %v11489_v2 = vrot.slane %v1607_v39, 5  ;;  %v3045_v40 = vsel %vm9515_vm4, %v3043_v17, %v3044_v23 }
 0x303   : > { %4064 = vst.msk [vmem:[#allocation2 + $0xb8] sm:$0xf] %vm12476_vm13, %v3930_v34  ;;  %3837 = vrot.lane.b32.xlu0 %v3640_v28, %s9159_s15  ;;  %v8151_v30 = vpop.f32.mrb[41].mxu0  ;;  %v1605_v28 = vrot.slane %v1604_v56, 4 }
 0x304   : > { %3238 = vrot.lane.b32.xlu1 %v3042_v35, %s9158_s27  ;;  %v11467_v52 = vpop.f32.mrb[42].mxu0  ;;  %12509 = vst [vmem:[#allocation26_spill] sm:$0xff] %v11489_v2  ;;  %v2605_v35 = vor.u32 %v2604_v26, %v2601_v55  ;;  %v11508_v30 = vrot.slane %v2608_v37, 5 }
 0x305   : > { %v1726_v50 = vpop.permute.xlu0 %1725  ;;  %v8152_v62 = vpop.f32.mrb[43].mxu0 }
 0x306   : > { %1859 = vst.msk [vmem:[#allocation2 + $0xbc] sm:$0xf] %vm1811_vm10, %v1726_v50  ;;  %v724_v13 = vpop.permute.xlu1 %723  ;;  %v2606_v44 = vrot.slane %v2605_v35, 4  ;;  %12511 = vst [vmem:[#allocation28_spill] sm:$0xff] %v11508_v30 }
 0x307   : > { %856 = vst.msk [vmem:[#allocation2 + $0xc0] sm:$0xf] %vm807_vm9, %v724_v13  ;;  %631 = vrot.lane.b32.xlu0 %v509_v31, %s9157_s29  ;;  %v1610_v31 = vsel %vm9550_vm5, %v1605_v28, %v11489_v2 }
 0x308   : > { %3839 = vrot.lane.b32.xlu1 %v3643_v46, %s9159_s15  ;;  %v2611_v50 = vsel %vm9550_vm5, %v2606_v44, %v11508_v30  ;;  %v7731_v46 = vrot.slane %v3553_v36, 9 }
 0x309   : > { %v2727_v15 = vpop.permute.xlu0 %2726 }
 0x30a   : > { %2860 = vst.msk [vmem:[#allocation2 + $0xbc] sm:$0xf] %vm2812_vm11, %v2727_v15  ;;  %v1728_v61 = vpop.permute.xlu1 %1727  ;;  %v8805_v19 = vld [vmem:[#allocation2 + $0xb4] sm:$0xff]   ;;  %v3830_v48 = vsel %vm9515_vm4, %v7731_v46, %v12466_v59 }
 0x30b   : > { %1860 = vst.msk [vmem:[#allocation2 + $0xc0] sm:$0xf] %vm1811_vm10, %v1728_v61  ;;  %2636 = vrot.lane.b32.xlu0 %v1985_v60, %s9161_s13  ;;  %8194 = vmatmul.mubr.msk.bf16.gmra.mrb[84].mxu0 %vm4338_vm14, %v8805_v19 }
 0x30c   : > { %1635 = vrot.lane.b32.xlu1 %v984_v10, %s9160_s8  ;;  %8197 = vmatprep.mubr.msk.bf16.mxu0 %vm9163_vm8, %v9162_v9 }
 0x30d   : > { %v3331_v45 = vpop.permute.xlu0 %3330 }
 0x30e   : > { %3464 = vst.msk [vmem:[#allocation2 + $0xbc] sm:$0xf] %vm3416_vm12, %v3331_v45  ;;  %v2729_v34 = vpop.permute.xlu1 %2728 }
 0x30f   : > { %2861 = vst.msk [vmem:[#allocation2 + $0xc0] sm:$0xf] %vm2812_vm11, %v2729_v34  ;;  %3841 = vrot.lane.b32.xlu0 %v3646_v16, %s9159_s15 }
 0x310   : > { %3240 = vrot.lane.b32.xlu1 %v3045_v40, %s9158_s27 }
 0x311   : > { %v3932_v27 = vpop.permute.xlu0 %3931 }
 0x312   : > { %4065 = vst.msk [vmem:[#allocation2 + $0xbc] sm:$0xf] %vm12476_vm13, %v3932_v27  ;;  %v3333_v8 = vpop.permute.xlu1 %3332 }
 0x313   : > { %3465 = vst.msk [vmem:[#allocation2 + $0xc0] sm:$0xf] %vm3416_vm12, %v3333_v8  ;;  %1745 = vrot.lane.b32.xlu0 %v1610_v31, %s9160_s8 }
 0x314   : > { %741 = vrot.lane.b32.xlu1 %v564_v5, %s9157_s29 }
 0x315   : > { %v726_v49 = vpop.permute.xlu0 %725 }
 0x316   : > { %857 = vst.msk [vmem:[#allocation2 + $0xc4] sm:$0xf] %vm807_vm9, %v726_v49  ;;  %v3934_v13 = vpop.permute.xlu1 %3933  ;;  %v11528_v62 = vpop.f32.mrb[44].mxu0 }
 0x317   : > { %4066 = vst.msk [vmem:[#allocation2 + $0xc0] sm:$0xf] %vm12476_vm13, %v3934_v13  ;;  %3350 = vrot.lane.b32.xlu0 %v3229_v47, %s9158_s27  ;;  %v8155_v3 = vpop.f32.mrb[45].mxu0 }
 0x318   : > { %2746 = vrot.lane.b32.xlu1 %v2611_v50, %s9161_s13  ;;  %v11532_v60 = vpop.f32.mrb[46].mxu0 }
 0x319   : > { %v1730_v10 = vpop.permute.xlu0 %1729  ;;  %v8156_v56 = vpop.f32.mrb[47].mxu0 }
 0x31a   : > { %1861 = vst.msk [vmem:[#allocation2 + $0xc4] sm:$0xf] %vm1811_vm10, %v1730_v10  ;;  %v728_v20 = vpop.permute.xlu1 %727 }
 0x31b   : > { %858 = vst.msk [vmem:[#allocation2 + $0xc8] sm:$0xf] %vm807_vm9, %v728_v20 }
 0x31c   : > { %3951 = vrot.lane.b32.xlu1 %v3830_v48, %s9159_s15 }
 0x31d   : > { %v2731_v39 = vpop.permute.xlu0 %2730 }
 0x31e   : > { %2862 = vst.msk [vmem:[#allocation2 + $0xc4] sm:$0xf] %vm2812_vm11, %v2731_v39  ;;  %v1732_v15 = vpop.permute.xlu1 %1731  ;;  %v8807_v17 = vld [vmem:[#allocation2 + $0xbc] sm:$0xff]  }
 0x31f   : > { %1862 = vst.msk [vmem:[#allocation2 + $0xc8] sm:$0xf] %vm1811_vm10, %v1732_v15  ;;  %8198 = vmatmul.mubr.msk.bf16.gmra.mrb[88].mxu0 %vm4338_vm14, %v8807_v17 }
 0x320   : > { %8201 = vmatprep.mubr.msk.bf16.mxu0 %vm9163_vm8, %v9162_v9 }
 0x321   : > { %v3335_v23 = vpop.permute.xlu0 %3334 }
 0x322   : > { %3466 = vst.msk [vmem:[#allocation2 + $0xc4] sm:$0xf] %vm3416_vm12, %v3335_v23  ;;  %v2733_v25 = vpop.permute.xlu1 %2732 }
 0x323   : > { %2863 = vst.msk [vmem:[#allocation2 + $0xc8] sm:$0xf] %vm2812_vm11, %v2733_v25 }
 0x325   : > { %v3936_v55 = vpop.permute.xlu0 %3935 }
 0x326   : > { %4067 = vst.msk [vmem:[#allocation2 + $0xc4] sm:$0xf] %vm12476_vm13, %v3936_v55  ;;  %v3337_v26 = vpop.permute.xlu1 %3336 }
 0x327   : > { %3467 = vst.msk [vmem:[#allocation2 + $0xc8] sm:$0xf] %vm3416_vm12, %v3337_v26 }
 0x329   : > { %v730_v61 = vpop.permute.xlu0 %729 }
 0x32a   : > { %859 = vst.msk [vmem:[#allocation2 + $0xcc] sm:$0xf] %vm807_vm9, %v730_v61  ;;  %v3938_v19 = vpop.permute.xlu1 %3937  ;;  %v11552_v16 = vpop.f32.mrb[48].mxu0 }
 0x32b   : > { %4068 = vst.msk [vmem:[#allocation2 + $0xc8] sm:$0xf] %vm12476_vm13, %v3938_v19  ;;  %v8159_v28 = vpop.f32.mrb[49].mxu0 }
 0x32c   : > { %v11554_v40 = vpop.f32.mrb[50].mxu0 }
 0x32d   : > { %v1734_v45 = vpop.permute.xlu0 %1733  ;;  %v8160_v37 = vpop.f32.mrb[51].mxu0 }
 0x32e   : > { %1863 = vst.msk [vmem:[#allocation2 + $0xcc] sm:$0xf] %vm1811_vm10, %v1734_v45  ;;  %v732_v35 = vpop.permute.xlu1 %731 }
 0x32f   : > { %860 = vst.msk [vmem:[#allocation2 + $0xd0] sm:$0xf] %vm807_vm9, %v732_v35 }
 0x331   : > { %v2735_v21 = vpop.permute.xlu0 %2734 }
 0x332   : > { %2864 = vst.msk [vmem:[#allocation2 + $0xcc] sm:$0xf] %vm2812_vm11, %v2735_v21  ;;  %v1736_v34 = vpop.permute.xlu1 %1735  ;;  %v8808_v31 = vld [vmem:[#allocation2 + $0xc4] sm:$0xff]  }
 0x333   : > { %1864 = vst.msk [vmem:[#allocation2 + $0xd0] sm:$0xf] %vm1811_vm10, %v1736_v34  ;;  %8202 = vmatmul.mubr.msk.bf16.gmra.mrb[92].mxu0 %vm4338_vm14, %v8808_v31 }
 0x334   : > { %8205 = vmatprep.mubr.msk.bf16.mxu0 %vm9163_vm8, %v9162_v9 }
 0x335   : > { %v3339_v58 = vpop.permute.xlu0 %3338 }
 0x336   : > { %3468 = vst.msk [vmem:[#allocation2 + $0xcc] sm:$0xf] %vm3416_vm12, %v3339_v58  ;;  %v2737_v27 = vpop.permute.xlu1 %2736 }
 0x337   : > { %2865 = vst.msk [vmem:[#allocation2 + $0xd0] sm:$0xf] %vm2812_vm11, %v2737_v27 }
 0x339   : > { %v3940_v5 = vpop.permute.xlu0 %3939 }
 0x33a   : > { %4069 = vst.msk [vmem:[#allocation2 + $0xcc] sm:$0xf] %vm12476_vm13, %v3940_v5  ;;  %v3341_v44 = vpop.permute.xlu1 %3340  ;;  %v8813_v5 = vld [vmem:[#allocation9] sm:$0xff]  }
 0x33b   : > { %3469 = vst.msk [vmem:[#allocation2 + $0xd0] sm:$0xf] %vm3416_vm12, %v3341_v44  ;;  %v8815_v44 = vld [vmem:[#allocation9 + $0x8] ss:$0 sps:$4 sm:$0xff]  }
 0x33d   : > { %v738_v8 = vpop.permute.xlu0 %737 }
 0x33e   : > { %863 = vst.msk [vmem:[#allocation2 + $0xdc] sm:$0xf] %vm807_vm9, %v738_v8  ;;  %v3942_v36 = vpop.permute.xlu1 %3941  ;;  %v11569_v47 = vpop.f32.mrb[52].mxu0 }
 0x33f   : > { %4070 = vst.msk [vmem:[#allocation2 + $0xd0] sm:$0xf] %vm12476_vm13, %v3942_v36  ;;  %v8163_v49 = vpop.f32.mrb[53].mxu0 }
 0x340   : > { %v11571_v46 = vpop.f32.mrb[54].mxu0 }
 0x341   : > { %v1742_v50 = vpop.permute.xlu0 %1741  ;;  %v8164_v3 = vpop.f32.mrb[55].mxu0 }
 0x342   : > { %1867 = vst.msk [vmem:[#allocation2 + $0xdc] sm:$0xf] %vm1811_vm10, %v1742_v50  ;;  %v740_v13 = vpop.permute.xlu1 %739 }
 0x343   : > { %864 = vst.msk [vmem:[#allocation2 + $0xe0] sm:$0xf] %vm807_vm9, %v740_v13 }
 0x345   : > { %v734_v10 = vpop.permute.xlu0 %733 }
 0x346   : > { %861 = vst.msk [vmem:[#allocation2 + $0xd4] sm:$0xf] %vm807_vm9, %v734_v10  ;;  %v1744_v48 = vpop.permute.xlu1 %1743  ;;  %v8809_v20 = vld [vmem:[#allocation2 + $0xcc] sm:$0xff]  }
 0x347   : > { %1868 = vst.msk [vmem:[#allocation2 + $0xe0] sm:$0xf] %vm1811_vm10, %v1744_v48  ;;  %8206 = vmatmul.mubr.msk.bf16.gmra.mrb[96].mxu0 %vm4338_vm14, %v8809_v20  ;;  %v4899_v20 = vsel %vm4420_vm7, %v8815_v44, 0 }
 0x348   : > { %8209 = vmatprep.mubr.msk.bf16.mxu0 %vm9163_vm8, %v9162_v9 }
 0x349   : > { %v2743_v56 = vpop.permute.xlu0 %2742 }
 0x34a   : > { %2868 = vst.msk [vmem:[#allocation2 + $0xdc] sm:$0xf] %vm2812_vm11, %v2743_v56  ;;  %v736_v39 = vpop.permute.xlu1 %735 }
 0x34b   : > { %862 = vst.msk [vmem:[#allocation2 + $0xd8] sm:$0xf] %vm807_vm9, %v736_v39 }
 0x34d   : > { %v1738_v15 = vpop.permute.xlu0 %1737 }
 0x34e   : > { %1865 = vst.msk [vmem:[#allocation2 + $0xd4] sm:$0xf] %vm1811_vm10, %v1738_v15  ;;  %v2745_v17 = vpop.permute.xlu1 %2744 }
 0x34f   : > { %2869 = vst.msk [vmem:[#allocation2 + $0xe0] sm:$0xf] %vm2812_vm11, %v2745_v17 }
 0x351   : > { %v3347_v23 = vpop.permute.xlu0 %3346 }
 0x352   : > { %3472 = vst.msk [vmem:[#allocation2 + $0xdc] sm:$0xf] %vm3416_vm12, %v3347_v23  ;;  %v1740_v25 = vpop.permute.xlu1 %1739  ;;  %v11586_v55 = vpop.f32.mrb[56].mxu0 }
 0x353   : > { %1866 = vst.msk [vmem:[#allocation2 + $0xd8] sm:$0xf] %vm1811_vm10, %v1740_v25  ;;  %v8167_v26 = vpop.f32.mrb[57].mxu0 }
 0x354   : > { %v11588_v19 = vpop.f32.mrb[58].mxu0 }
 0x355   : > { %v2739_v61 = vpop.permute.xlu0 %2738  ;;  %v8168_v45 = vpop.f32.mrb[59].mxu0 }
 0x356   : > { %2866 = vst.msk [vmem:[#allocation2 + $0xd4] sm:$0xf] %vm2812_vm11, %v2739_v61  ;;  %v3349_v28 = vpop.permute.xlu1 %3348  ;;  %v8812_v61 = vld [vmem:[#allocation2 + $0x18] sm:$0xff]  }
 0x357   : > { %3473 = vst.msk [vmem:[#allocation2 + $0xe0] sm:$0xf] %vm3416_vm12, %v3349_v28 }
 0x359   : > { %v3948_v35 = vpop.permute.xlu0 %3947 }
 0x35a   : > { %4073 = vst.msk [vmem:[#allocation2 + $0xdc] sm:$0xf] %vm12476_vm13, %v3948_v35  ;;  %v2741_v37 = vpop.permute.xlu1 %2740 }
 0x35b   : > { %2867 = vst.msk [vmem:[#allocation2 + $0xd8] sm:$0xf] %vm2812_vm11, %v2741_v37 }
 0x35d   : > { %v3343_v21 = vpop.permute.xlu0 %3342 }
 0x35e   : > { %3470 = vst.msk [vmem:[#allocation2 + $0xd4] sm:$0xf] %vm3416_vm12, %v3343_v21  ;;  %v3950_v34 = vpop.permute.xlu1 %3949 }
 0x35f   : > { %4074 = vst.msk [vmem:[#allocation2 + $0xe0] sm:$0xf] %vm12476_vm13, %v3950_v34 }
 0x361   : > { %v3944_v31 = vpop.permute.xlu0 %3943 }
 0x362   : > { %4071 = vst.msk [vmem:[#allocation2 + $0xd4] sm:$0xf] %vm12476_vm13, %v3944_v31  ;;  %v3345_v58 = vpop.permute.xlu1 %3344 }
 0x363   : > { %3471 = vst.msk [vmem:[#allocation2 + $0xd8] sm:$0xf] %vm3416_vm12, %v3345_v58 }
 0x365   : > { %v628_v27 = vpop.permute.xlu0 %627 }
 0x366   : > { %v3946_v8 = vpop.permute.xlu1 %3945  ;;  %808 = vst.msk [vmem:[#allocation2] sm:$0xf] %vm807_vm9, %v628_v27  ;;  %v8810_v36 = vld [vmem:[#allocation2 + $0xdc] sm:$0xff]   ;;  %v11600_v49 = vpop.f32.mrb[60].mxu0 }
 0x367   : > { %4072 = vst.msk [vmem:[#allocation2 + $0xd8] sm:$0xf] %vm12476_vm13, %v3946_v8  ;;  %v8171_v50 = vpop.f32.mrb[61].mxu0  ;;  %8214 = vmatmul.mubr.msk.bf16.vlgmr.msra.gmra.mrb[0].mxu1 %vm4338_vm14, %v8810_v36  ;;  %v8814_v27 = vld [vmem:[#allocation2 + $0x20] sm:$0xff]  }
 0x368   : > { %v11603_v13 = vpop.f32.mrb[62].mxu0  ;;  %8218 = vmatpush3.bf16.msra.mxu1 %v8813_v5  ;;  %8221 = vmatprep.mubr.msk.bf16.mxu1 %vm9163_vm8, %v9162_v9 }
 0x369   : > { %v1632_v3 = vpop.permute.xlu0 %1631  ;;  %v8172_v48 = vpop.f32.mrb[63].mxu0  ;;  %8219 = vmatprep.subr.bf16.mxu1 %v9162_v9  ;;  %v8866_v6 = vld [vmem:[#allocation2 + $0xd0] sm:$0xff]  }
 0x36a   : > { %v630_v10 = vpop.permute.xlu1 %629  ;;  %1812 = vst.msk [vmem:[#allocation2] sm:$0xf] %vm1811_vm10, %v1632_v3  ;;  %v8817_v3 = vld [vmem:[#allocation2 + $0x28] sm:$0xff]  }
 0x36b   : > { %809 = vst.msk [vmem:[#allocation2 + $0x4] sm:$0xf] %vm807_vm9, %v630_v10 }
 0x36c   : > { %8220 = vmatpush3.bf16.msra.mxu1 %v4899_v20 }
 0x36d   : > { %v2633_v56 = vpop.permute.xlu0 %2632 }
 0x36e   : > { %v1634_v39 = vpop.permute.xlu1 %1633  ;;  %2813 = vst.msk [vmem:[#allocation2] sm:$0xf] %vm2812_vm11, %v2633_v56  ;;  %v8811_v15 = vld [vmem:[#allocation2 + $0xd4] sm:$0xff]  }
 0x36f   : > { %1813 = vst.msk [vmem:[#allocation2 + $0x4] sm:$0xf] %vm1811_vm10, %v1634_v39  ;;  %8210 = vmatmul.mubr.msk.bf16.gmra.mrb[100].mxu0 %vm4338_vm14, %v8811_v15  ;;  %v8819_v39 = vld [vmem:[#allocation2 + $0x30] sm:$0xff]  }
 0x370   : > { %8333 = vmatprep.mubr.msk.bf16.mxu0 %vm9163_vm8, %v9162_v9 }
 0x371   : > { %v3237_v17 = vpop.permute.xlu0 %3236 }
 0x372   : > { %v2635_v23 = vpop.permute.xlu1 %2634  ;;  %3417 = vst.msk [vmem:[#allocation2] sm:$0xf] %vm3416_vm12, %v3237_v17 }
 0x373   : > { %2814 = vst.msk [vmem:[#allocation2 + $0x4] sm:$0xf] %vm2812_vm11, %v2635_v23 }
 0x375   : > { %v3838_v25 = vpop.permute.xlu0 %3837 }
 0x376   : > { %v3239_v26 = vpop.permute.xlu1 %3238  ;;  %4018 = vst.msk [vmem:[#allocation2] sm:$0xf] %vm12476_vm13, %v3838_v25 }
 0x377   : > { %3418 = vst.msk [vmem:[#allocation2 + $0x4] sm:$0xf] %vm3416_vm12, %v3239_v26  ;;  %8334 = vmatmul.mubr.msk.bf16.vlgmr.msra.gmra.mrb[104].mxu0 %vm4338_vm14, %v8812_v61  ;;  %v8820_v26 = vld [vmem:[#allocation2 + $0x10] sm:$0xff]   ;;  %v8821_v61 = vld [vmem:[#allocation2 + $0x38] sm:$0xff]  }
 0x378   : > { %8337 = vmatprep.mubr.msk.bf16.mxu0 %vm9163_vm8, %v9162_v9 }
 0x379   : > { %v632_v28 = vpop.permute.xlu0 %631 }
 0x37a   : > { %v3840_v45 = vpop.permute.xlu1 %3839  ;;  %810 = vst.msk [vmem:[#allocation2 + $0x8] sm:$0xf] %vm807_vm9, %v632_v28  ;;  %v11625_v35 = vpop.f32.mrb[64].mxu0  ;;  %v8822_v28 = vld [vmem:[#allocation2 + $0x18] sm:$0xff]  }
 0x37b   : > { %4019 = vst.msk [vmem:[#allocation2 + $0x4] sm:$0xf] %vm12476_vm13, %v3840_v45  ;;  %v8175_v37 = vpop.f32.mrb[65].mxu0  ;;  %v8823_v45 = vld [vmem:[#allocation2 + $0x40] sm:$0xff]  }
 0x37c   : > { %v11627_v21 = vpop.f32.mrb[66].mxu0 }
 0x37d   : > { %v2637_v34 = vpop.permute.xlu0 %2636  ;;  %v8176_v58 = vpop.f32.mrb[67].mxu0 }
 0x37e   : > { %v1636_v31 = vpop.permute.xlu1 %1635 }
 0x37f   : > { %1814 = vst.msk [vmem:[#allocation2 + $0x8] sm:$0xf] %vm1811_vm10, %v1636_v31  ;;  %8338 = vmatmul.mubr.msk.bf16.gmra.mrb[108].mxu0 %vm4338_vm14, %v8814_v27 }
 0x380   : > { %2815 = vst.msk [vmem:[#allocation2 + $0x8] sm:$0xf] %vm2812_vm11, %v2637_v34  ;;  %8341 = vmatprep.mubr.msk.bf16.mxu0 %vm9163_vm8, %v9162_v9  ;;  %v8824_v34 = vld [vmem:[#allocation2 + $0x20] sm:$0xff]  }
 0x381   : > { %v3842_v5 = vpop.permute.xlu0 %3841 }
 0x382   : > { %v3241_v44 = vpop.permute.xlu1 %3240  ;;  %v8816_v8 = vld [vmem:[#allocation2] sm:$0xff]  }
 0x383   : > { %3419 = vst.msk [vmem:[#allocation2 + $0x8] sm:$0xf] %vm3416_vm12, %v3241_v44  ;;  %8222 = vmatmul.mubr.msk.bf16.vlgmr.msra.gmra.mrb[4].mxu1 %vm4338_vm14, %v8816_v8  ;;  %v8826_v44 = vld [vmem:[#allocation2 + $0x28] sm:$0xff]   ;;  %v8827_v8 = vld [vmem:[#allocation2 + $0x50] sm:$0xff]  }
 0x384   : > { %4020 = vst.msk [vmem:[#allocation2 + $0x8] sm:$0xf] %vm12476_vm13, %v3842_v5  ;;  %8225 = vmatprep.mubr.msk.bf16.mxu1 %vm9163_vm8, %v9162_v9  ;;  %v8825_v5 = vld [vmem:[#allocation2 + $0x48] sm:$0xff]  }
 0x385   : > { %v1746_v36 = vpop.permute.xlu0 %1745 }
 0x386   : > { %v742_v50 = vpop.permute.xlu1 %741 }
 0x387   : > { %865 = vst.msk [vmem:[#allocation2 + $0xe4] sm:$0xf] %vm807_vm9, %v742_v50  ;;  %8342 = vmatmul.mubr.msk.bf16.gmra.mrb[112].mxu0 %vm4338_vm14, %v8817_v3  ;;  %v8829_v50 = vld [vmem:[#allocation2 + $0x58] sm:$0xff]  }
 0x388   : > { %1869 = vst.msk [vmem:[#allocation2 + $0xe4] sm:$0xf] %vm1811_vm10, %v1746_v36  ;;  %8345 = vmatprep.mubr.msk.bf16.mxu0 %vm9163_vm8, %v9162_v9  ;;  %v8828_v36 = vld [vmem:[#allocation2 + $0x30] sm:$0xff]  }
 0x389   : > { %v3351_v10 = vpop.permute.xlu0 %3350 }
 0x38a   : > { %v2747_v48 = vpop.permute.xlu1 %2746 }
 0x38b   : > { %2870 = vst.msk [vmem:[#allocation2 + $0xe4] sm:$0xf] %vm2812_vm11, %v2747_v48  ;;  %v8818_v20 = vld [vmem:[#allocation2 + $0x8] sm:$0xff]  }
 0x38c   : > { %3474 = vst.msk [vmem:[#allocation2 + $0xe4] sm:$0xf] %vm3416_vm12, %v3351_v10  ;;  %8226 = vmatmul.mubr.msk.bf16.gmra.mrb[8].mxu1 %vm4338_vm14, %v8818_v20 }
 0x38d   : > { %8229 = vmatprep.mubr.msk.bf16.mxu1 %vm9163_vm8, %v9162_v9 }
 0x38e   : > { %v3952_v56 = vpop.permute.xlu1 %3951  ;;  %v11650_v15 = vpop.f32.mrb[68].mxu0 }
 0x38f   : > { %4075 = vst.msk [vmem:[#allocation2 + $0xe4] sm:$0xf] %vm12476_vm13, %v3952_v56  ;;  %v8179_v17 = vpop.f32.mrb[69].mxu0  ;;  %8346 = vmatmul.mubr.msk.bf16.gmra.mrb[116].mxu0 %vm4338_vm14, %v8819_v39  ;;  %v8830_v56 = vld [vmem:[#allocation2 + $0x38] sm:$0xff]   ;;  %v8831_v39 = vld [vmem:[#allocation2 + $0x60] sm:$0xff]   ;;  %vm6589_vm13 = vcmask 195712  }
 0x390   : > { %v11653_v23 = vpop.f32.mrb[70].mxu0  ;;  %8349 = vmatprep.mubr.msk.bf16.mxu0 %vm9163_vm8, %v9162_v9  ;;  %v8832_v17 = vld [vmem:[#allocation2 + $0x40] sm:$0xff]  }
 0x391   : > { %v8180_v25 = vpop.f32.mrb[71].mxu0 }
 0x392   : > { %v8833_v25 = vld [vmem:[#allocation2 + $0x68] sm:$0xff]  }
 0x394   : > { %8230 = vmatmul.mubr.msk.bf16.gmra.mrb[12].mxu1 %vm4338_vm14, %v8820_v26 }
 0x395   : > { %8233 = vmatprep.mubr.msk.bf16.mxu1 %vm9163_vm8, %v9162_v9 }
 0x397   : > { %8350 = vmatmul.mubr.msk.bf16.gmra.mrb[120].mxu0 %vm4338_vm14, %v8821_v61  ;;  %v8834_v61 = vld [vmem:[#allocation2 + $0x48] sm:$0xff]  }
 0x398   : > { %8353 = vmatprep.mubr.msk.bf16.mxu0 %vm9163_vm8, %v9162_v9 }
 0x39c   : > { %8234 = vmatmul.mubr.msk.bf16.gmra.mrb[16].mxu1 %vm4338_vm14, %v8822_v28 }
 0x39d   : > { %8237 = vmatprep.mubr.msk.bf16.mxu1 %vm9163_vm8, %v9162_v9 }
 0x39f   : > { %8354 = vmatmul.mubr.msk.bf16.gmra.mrb[124].mxu0 %vm4338_vm14, %v8823_v45 }
 0x3a0   : > { %8357 = vmatprep.mubr.msk.bf16.mxu0 %vm9163_vm8, %v9162_v9 }
 0x3a2   : > { %v11669_v37 = vpop.f32.mrb[72].mxu0 }
 0x3a3   : > { %v8183_v31 = vpop.f32.mrb[73].mxu0 }
 0x3a4   : > { %v11671_v58 = vpop.f32.mrb[74].mxu0  ;;  %8238 = vmatmul.mubr.msk.bf16.gmra.mrb[20].mxu1 %vm4338_vm14, %v8824_v34  ;;  %v8835_v31 = vld [vmem:[#allocation2 + $0x70] sm:$0xff]  }
 0x3a5   : > { %v8184_v27 = vpop.f32.mrb[75].mxu0  ;;  %8241 = vmatprep.mubr.msk.bf16.mxu1 %vm9163_vm8, %v9162_v9 }
 0x3a6   : > { %v8836_v27 = vld [vmem:[#allocation2 + $0x50] sm:$0xff]  }
 0x3a7   : > { %8358 = vmatmul.mubr.msk.bf16.gmra.mrb[128].mxu0 %vm4338_vm14, %v8825_v5  ;;  %v8837_v5 = vld [vmem:[#allocation2 + $0x78] sm:$0xff]  }
 0x3a8   : > { %8361 = vmatprep.mubr.msk.bf16.mxu0 %vm9163_vm8, %v9162_v9 }
 0x3ac   : > { %8242 = vmatmul.mubr.msk.bf16.gmra.mrb[24].mxu1 %vm4338_vm14, %v8826_v44  ;;  %v8838_v44 = vld [vmem:[#allocation2 + $0x58] sm:$0xff]  }
 0x3ad   : > { %8245 = vmatprep.mubr.msk.bf16.mxu1 %vm9163_vm8, %v9162_v9 }
 0x3af   : > { %8362 = vmatmul.mubr.msk.bf16.gmra.mrb[132].mxu0 %vm4338_vm14, %v8827_v8  ;;  %v8839_v8 = vld [vmem:[#allocation2 + $0x80] sm:$0xff]  }
 0x3b0   : > { %8365 = vmatprep.mubr.msk.bf16.mxu0 %vm9163_vm8, %v9162_v9 }
 0x3b4   : > { %8246 = vmatmul.mubr.msk.bf16.gmra.mrb[28].mxu1 %vm4338_vm14, %v8828_v36 }
 0x3b5   : > { %8249 = vmatprep.mubr.msk.bf16.mxu1 %vm9163_vm8, %v9162_v9 }
 0x3b6   : > { %v11688_v3 = vpop.f32.mrb[76].mxu0 }
 0x3b7   : > { %v8187_v10 = vpop.f32.mrb[77].mxu0  ;;  %8366 = vmatmul.mubr.msk.bf16.gmra.mrb[136].mxu0 %vm4338_vm14, %v8829_v50 }
 0x3b8   : > { %v11691_v48 = vpop.f32.mrb[78].mxu0  ;;  %8369 = vmatprep.mubr.msk.bf16.mxu0 %vm9163_vm8, %v9162_v9 }
 0x3b9   : > { %v8188_v20 = vpop.f32.mrb[79].mxu0 }
 0x3bc   : > { %8250 = vmatmul.mubr.msk.bf16.gmra.mrb[32].mxu1 %vm4338_vm14, %v8830_v56  ;;  %v8840_v56 = vld [vmem:[#allocation2 + $0x60] sm:$0xff]  }
 0x3bd   : > { %8253 = vmatprep.mubr.msk.bf16.mxu1 %vm9163_vm8, %v9162_v9 }
 0x3bf   : > { %8370 = vmatmul.mubr.msk.bf16.gmra.mrb[140].mxu0 %vm4338_vm14, %v8831_v39  ;;  %v8841_v39 = vld [vmem:[#allocation2 + $0x88] sm:$0xff]  }
 0x3c0   : > { %8373 = vmatprep.mubr.msk.bf16.mxu0 %vm9163_vm8, %v9162_v9 }
 0x3c4   : > { %8254 = vmatmul.mubr.msk.bf16.gmra.mrb[36].mxu1 %vm4338_vm14, %v8832_v17  ;;  %v8842_v17 = vld [vmem:[#allocation2 + $0x68] sm:$0xff]  }
 0x3c5   : > { %8257 = vmatprep.mubr.msk.bf16.mxu1 %vm9163_vm8, %v9162_v9 }
 0x3c7   : > { %8374 = vmatmul.mubr.msk.bf16.gmra.mrb[144].mxu0 %vm4338_vm14, %v8833_v25  ;;  %v8843_v25 = vld [vmem:[#allocation2 + $0x90] sm:$0xff]  }
 0x3c8   : > { %8377 = vmatprep.mubr.msk.bf16.mxu0 %vm9163_vm8, %v9162_v9 }
 0x3ca   : > { %v11707_v26 = vpop.f32.mrb[80].mxu0 }
 0x3cb   : > { %v8191_v28 = vpop.f32.mrb[81].mxu0 }
 0x3cc   : > { %v11709_v45 = vpop.f32.mrb[82].mxu0  ;;  %8258 = vmatmul.mubr.msk.bf16.gmra.mrb[40].mxu1 %vm4338_vm14, %v8834_v61  ;;  %v8844_v28 = vld [vmem:[#allocation2 + $0x70] sm:$0xff]  }
 0x3cd   : > { %v8192_v34 = vpop.f32.mrb[83].mxu0  ;;  %8261 = vmatprep.mubr.msk.bf16.mxu1 %vm9163_vm8, %v9162_v9 }
 0x3cf   : > { %8378 = vmatmul.mubr.msk.bf16.gmra.mrb[148].mxu0 %vm4338_vm14, %v8835_v31 }
 0x3d0   : > { %8381 = vmatprep.mubr.msk.bf16.mxu0 %vm9163_vm8, %v9162_v9 }
 0x3d4   : > { %8262 = vmatmul.mubr.msk.bf16.gmra.mrb[44].mxu1 %vm4338_vm14, %v8836_v27 }
 0x3d5   : > { %8265 = vmatprep.mubr.msk.bf16.mxu1 %vm9163_vm8, %v9162_v9 }
 0x3d7   : > { %8382 = vmatmul.mubr.msk.bf16.gmra.mrb[152].mxu0 %vm4338_vm14, %v8837_v5  ;;  %v8845_v5 = vld [vmem:[#allocation2 + $0x98] sm:$0xff]  }
 0x3d8   : > { %8385 = vmatprep.mubr.msk.bf16.mxu0 %vm9163_vm8, %v9162_v9 }
 0x3dc   : > { %8266 = vmatmul.mubr.msk.bf16.gmra.mrb[48].mxu1 %vm4338_vm14, %v8838_v44  ;;  %v8846_v44 = vld [vmem:[#allocation2 + $0x78] sm:$0xff]  }
 0x3dd   : > { %8269 = vmatprep.mubr.msk.bf16.mxu1 %vm9163_vm8, %v9162_v9 }
 0x3de   : > { %v11726_v36 = vpop.f32.mrb[84].mxu0 }
 0x3df   : > { %v8195_v50 = vpop.f32.mrb[85].mxu0  ;;  %8386 = vmatmul.mubr.msk.bf16.gmra.mrb[156].mxu0 %vm4338_vm14, %v8839_v8  ;;  %v8847_v8 = vld [vmem:[#allocation2 + $0xa0] sm:$0xff]  }
 0x3e0   : > { %v11729_v10 = vpop.f32.mrb[86].mxu0  ;;  %8389 = vmatprep.mubr.msk.bf16.mxu0 %vm9163_vm8, %v9162_v9  ;;  %v8848_v50 = vld [vmem:[#allocation2 + $0x80] sm:$0xff]  }
 0x3e1   : > { %v8196_v20 = vpop.f32.mrb[87].mxu0 }
 0x3e2   : > { %v8849_v20 = vld [vmem:[#allocation2 + $0xa8] sm:$0xff]  }
 0x3e4   : > { %8270 = vmatmul.mubr.msk.bf16.gmra.mrb[52].mxu1 %vm4338_vm14, %v8840_v56 }
 0x3e5   : > { %8273 = vmatprep.mubr.msk.bf16.mxu1 %vm9163_vm8, %v9162_v9 }
 0x3e7   : > { %8390 = vmatmul.mubr.msk.bf16.gmra.mrb[160].mxu0 %vm4338_vm14, %v8841_v39 }
 0x3e8   : > { %8393 = vmatprep.mubr.msk.bf16.mxu0 %vm9163_vm8, %v9162_v9 }
 0x3ec   : > { %8274 = vmatmul.mubr.msk.bf16.gmra.mrb[56].mxu1 %vm4338_vm14, %v8842_v17 }
 0x3ed   : > { %8277 = vmatprep.mubr.msk.bf16.mxu1 %vm9163_vm8, %v9162_v9 }
 0x3ef   : > { %8394 = vmatmul.mubr.msk.bf16.gmra.mrb[164].mxu0 %vm4338_vm14, %v8843_v25 }
 0x3f0   : > { %8397 = vmatprep.mubr.msk.bf16.mxu0 %vm9163_vm8, %v9162_v9 }
 0x3f2   : > { %v11745_v61 = vpop.f32.mrb[88].mxu0 }
 0x3f3   : > { %12513 = vst [vmem:[#allocation30_spill] sm:$0xff] %v11745_v61  ;;  %v8199_v34 = vpop.f32.mrb[89].mxu0 }
 0x3f4   : > { %v11747_v31 = vpop.f32.mrb[90].mxu0  ;;  %8278 = vmatmul.mubr.msk.bf16.gmra.mrb[60].mxu1 %vm4338_vm14, %v8844_v28  ;;  %v8850_v28 = vld [vmem:[#allocation2 + $0x88] sm:$0xff]   ;;  %v8851_v34 = vld [vmem:[#allocation2 + $0xb0] sm:$0xff]  }
 0x3f5   : > { %12514 = vst [vmem:[#allocation31_spill] sm:$0xff] %v11747_v31  ;;  %v8200_v27 = vpop.f32.mrb[91].mxu0  ;;  %8281 = vmatprep.mubr.msk.bf16.mxu1 %vm9163_vm8, %v9162_v9 }
 0x3f6   : > { %v8852_v27 = vld [vmem:[#allocation2 + $0x90] sm:$0xff]  }
 0x3f7   : > { %8398 = vmatmul.mubr.msk.bf16.gmra.mrb[168].mxu0 %vm4338_vm14, %v8845_v5  ;;  %v8853_v5 = vld [vmem:[#allocation2 + $0xb8] sm:$0xff]  }
 0x3f8   : > { %8401 = vmatprep.mubr.msk.bf16.mxu0 %vm9163_vm8, %v9162_v9 }
 0x3fc   : > { %8282 = vmatmul.mubr.msk.bf16.gmra.mrb[64].mxu1 %vm4338_vm14, %v8846_v44 }
 0x3fd   : > { %8285 = vmatprep.mubr.msk.bf16.mxu1 %vm9163_vm8, %v9162_v9 }
 0x3ff   : > { %8402 = vmatmul.mubr.msk.bf16.gmra.mrb[172].mxu0 %vm4338_vm14, %v8847_v8  ;;  %v8854_v8 = vld [vmem:[#allocation2 + $0x98] sm:$0xff]  }
 0x400   : > { %8405 = vmatprep.mubr.msk.bf16.mxu0 %vm9163_vm8, %v9162_v9 }
 0x404   : > { %8286 = vmatmul.mubr.msk.bf16.gmra.mrb[68].mxu1 %vm4338_vm14, %v8848_v50 }
 0x405   : > { %8289 = vmatprep.mubr.msk.bf16.mxu1 %vm9163_vm8, %v9162_v9 }
 0x406   : > { %v11764_v56 = vpop.f32.mrb[92].mxu0 }
 0x407   : > { %12515 = vst [vmem:[#allocation32_spill] sm:$0xff] %v11764_v56  ;;  %v8203_v39 = vpop.f32.mrb[93].mxu0  ;;  %8406 = vmatmul.mubr.msk.bf16.gmra.mrb[176].mxu0 %vm4338_vm14, %v8849_v20 }
 0x408   : > { %v11767_v17 = vpop.f32.mrb[94].mxu0  ;;  %8409 = vmatprep.mubr.msk.bf16.mxu0 %vm9163_vm8, %v9162_v9 }
 0x409   : > { %12516 = vst [vmem:[#allocation33_spill] sm:$0xff] %v11767_v17  ;;  %v8204_v25 = vpop.f32.mrb[95].mxu0 }
 0x40a   : > { %v8855_v25 = vld [vmem:[#allocation2 + $0xc0] sm:$0xff]  }
 0x40c   : > { %8290 = vmatmul.mubr.msk.bf16.gmra.mrb[72].mxu1 %vm4338_vm14, %v8850_v28  ;;  %v8856_v28 = vld [vmem:[#allocation2 + $0xa0] sm:$0xff]  }
 0x40d   : > { %8293 = vmatprep.mubr.msk.bf16.mxu1 %vm9163_vm8, %v9162_v9 }
 0x40f   : > { %8410 = vmatmul.mubr.msk.bf16.gmra.mrb[180].mxu0 %vm4338_vm14, %v8851_v34  ;;  %v8867_v34 = vld [vmem:[#allocation12 + $0xc] sm:$0xff]  }
 0x410   : > { %8413 = vmatprep.mubr.msk.bf16.mxu0 %vm9163_vm8, %v9162_v9  ;;  %8441 = vmatprep.subr.bf16.mxu1 %v8867_v34 }
 0x411   : > { %8442 = vmatpush3.bf16.msra.mxu1 %v8867_v34 }
 0x414   : > { %8294 = vmatmul.mubr.msk.bf16.gmra.mrb[76].mxu1 %vm4338_vm14, %v8852_v27  ;;  %v8857_v27 = vld [vmem:[#allocation2 + $0xc8] sm:$0xff]  }
 0x415   : > { %8297 = vmatprep.mubr.msk.bf16.mxu1 %vm9163_vm8, %v9162_v9 }
 0x417   : > { %8414 = vmatmul.mubr.msk.bf16.gmra.mrb[184].mxu0 %vm4338_vm14, %v8853_v5  ;;  %v8858_v5 = vld [vmem:[#allocation2 + $0xa8] sm:$0xff]  }
 0x418   : > { %8417 = vmatprep.mubr.msk.bf16.mxu0 %vm9163_vm8, %v9162_v9 }
 0x41a   : > { %v11783_v44 = vpop.f32.mrb[96].mxu0 }
 0x41b   : > { %12517 = vst [vmem:[#allocation34_spill] sm:$0xff] %v11783_v44  ;;  %v8207_v50 = vpop.f32.mrb[97].mxu0 }
 0x41c   : > { %v11785_v20 = vpop.f32.mrb[98].mxu0  ;;  %8298 = vmatmul.mubr.msk.bf16.gmra.mrb[80].mxu1 %vm4338_vm14, %v8854_v8  ;;  %v8859_v8 = vld [vmem:[#allocation2 + $0xd0] sm:$0xff]  }
 0x41d   : > { %12518 = vst [vmem:[#allocation35_spill] sm:$0xff] %v11785_v20  ;;  %v8208_v39 = vpop.f32.mrb[99].mxu0  ;;  %8301 = vmatprep.mubr.msk.bf16.mxu1 %vm9163_vm8, %v9162_v9  ;;  %v8860_v50 = vld [vmem:[#allocation2 + $0xb0] sm:$0xff]  }
 0x41e   : > { %v8861_v39 = vld [vmem:[#allocation2 + $0xd8] sm:$0xff]  }
 0x41f   : > { %8418 = vmatmul.mubr.msk.bf16.gmra.mrb[188].mxu0 %vm4338_vm14, %v8855_v25 }
 0x420   : > { %8421 = vmatprep.mubr.msk.bf16.mxu0 %vm9163_vm8, %v9162_v9 }
 0x424   : > { %8302 = vmatmul.mubr.msk.bf16.gmra.mrb[84].mxu1 %vm4338_vm14, %v8856_v28  ;;  %v8862_v28 = vld [vmem:[#allocation2 + $0xb8] sm:$0xff]  }
 0x425   : > { %8305 = vmatprep.mubr.msk.bf16.mxu1 %vm9163_vm8, %v9162_v9 }
 0x427   : > { %8422 = vmatmul.mubr.msk.bf16.gmra.mrb[192].mxu0 %vm4338_vm14, %v8857_v27 }
 0x428   : > { %8425 = vmatprep.mubr.msk.bf16.mxu0 %vm9163_vm8, %v9162_v9 }
 0x42c   : > { %8306 = vmatmul.mubr.msk.bf16.gmra.mrb[88].mxu1 %vm4338_vm14, %v8858_v5 }
 0x42d   : > { %8309 = vmatprep.mubr.msk.bf16.mxu1 %vm9163_vm8, %v9162_v9 }
 0x42f   : > { %8426 = vmatmul.mubr.msk.bf16.gmra.mrb[196].mxu0 %vm4338_vm14, %v8859_v8  ;;  %v8863_v8 = vld [vmem:[#allocation2 + $0xe0] sm:$0xff]  }
 0x430   : > { %8429 = vmatprep.mubr.msk.bf16.mxu0 %vm9163_vm8, %v9162_v9 }
 0x434   : > { %8310 = vmatmul.mubr.msk.bf16.gmra.mrb[92].mxu1 %vm4338_vm14, %v8860_v50 }
 0x435   : > { %8313 = vmatprep.mubr.msk.bf16.mxu1 %vm9163_vm8, %v9162_v9 }
 0x437   : > { %8430 = vmatmul.mubr.msk.bf16.gmra.mrb[200].mxu0 %vm4338_vm14, %v8861_v39  ;;  %v8864_v39 = vld [vmem:[#allocation2 + $0xc0] sm:$0xff]  }
 0x438   : > { %8433 = vmatprep.mubr.msk.bf16.mxu0 %vm9163_vm8, %v9162_v9 }
 0x43a   : > { %v4666_v25 = vpop.f32.mrb[0].mxu1 }
 0x43b   : > { %v8215_v34 = vpop.f32.mrb[1].mxu1 }
 0x43c   : > { %v4669_v27 = vpop.f32.mrb[2].mxu1  ;;  %8314 = vmatmul.mubr.msk.bf16.gmra.mrb[96].mxu1 %vm4338_vm14, %v8862_v28 }
 0x43d   : > { %v8216_v5 = vpop.f32.mrb[3].mxu1  ;;  %8317 = vmatprep.mubr.msk.bf16.mxu1 %vm9163_vm8, %v9162_v9  ;;  %v8865_v27 = vld [vmem:[#allocation2 + $0xc8] sm:$0xff]  }
 0x43f   : > { %8434 = vmatmul.mubr.msk.bf16.gmra.mrb[204].mxu0 %vm4338_vm14, %v8863_v8 }
 0x440   : > { %8437 = vmatprep.mubr.msk.bf16.mxu0 %vm9163_vm8, %v9162_v9 }
 0x442   : > { %v11817_v50 = vpop.f32.mrb[100].mxu0 }
 0x443   : > { %12519 = vst [vmem:[#allocation36_spill] sm:$0xff] %v11817_v50  ;;  %v8211_v59 = vpop.f32.mrb[101].mxu0 }
 0x444   : > { %v4661_v25 = vpop.f32.mrb[102].mxu0  ;;  %8318 = vmatmul.mubr.msk.bf16.gmra.mrb[100].mxu1 %vm4338_vm14, %v8864_v39 }
 0x445   : > { %v8212_v34 = vpop.f32.mrb[103].mxu0  ;;  %8321 = vmatprep.mubr.msk.bf16.mxu1 %vm9163_vm8, %v9162_v9 }
 0x44a   : > { %v5471_v28 = vpop.f32.mrb[104].mxu0 }
 0x44b   : > { %v8335_v5 = vpop.f32.mrb[105].mxu0 }
 0x44c   : > { %8322 = vmatmul.mubr.msk.bf16.gmra.mrb[104].mxu1 %vm4338_vm14, %v8865_v27  ;;  %v5474_v8 = vpop.f32.mrb[106].mxu0 }
 0x44d   : > { %v8336_v32 = vpop.f32.mrb[107].mxu0  ;;  %8325 = vmatprep.mubr.msk.bf16.mxu1 %vm9163_vm8, %v9162_v9  ;;  %vm6425_vm8 = vcmask 130112  }
 0x452   : > { %v5479_v0 = vpop.f32.mrb[108].mxu0 }
 0x453   : > { %v8339_v59 = vpop.f32.mrb[109].mxu0 }
 0x454   : > { %8326 = vmatmul.mubr.msk.bf16.gmra.mrb[108].mxu1 %vm4338_vm14, %v8866_v6  ;;  %v5482_v39 = vpop.f32.mrb[110].mxu0  ;;  %v11827_v6 = vld [vmem:[#allocation10] ss:$0 sm:$0xff] }
 0x455   : > { %v8340_v25 = vpop.f32.mrb[111].mxu0 }
 0x456   : > { %v4935_v34 = vpop.f32.mrb[4].mxu1  ;;  %v5873_v25 = vlaneseq }
 0x457   : > { %v8223_v4 = vpop.f32.mrb[5].mxu1 }
 0x458   : > { %v4938_v30 = vpop.f32.mrb[6].mxu1 }
 0x459   : > { %v8224_v28 = vpop.f32.mrb[7].mxu1 }
 0x45a   : > { %v5487_v43 = vpop.f32.mrb[112].mxu0 }
 0x45b   : > { %v8343_v5 = vpop.f32.mrb[113].mxu0 }
 0x45c   : > { %v5490_v2 = vpop.f32.mrb[114].mxu0  ;;  %v11830_v5 = vshrl.u32 %v5873_v25, 7 }
 0x45d   : > { %v8344_v27 = vpop.f32.mrb[115].mxu0 }
 0x45e   : > { %vm5931_vm15 = vcmp.ge.s32.totalorder %v11830_v5, 1 }
 0x45f   : > { %v4943_v8 = vpop.f32.mrb[8].mxu1 }
 0x460   : > { %v8227_v32 = vpop.f32.mrb[9].mxu1 }
 0x461   : > { %v4946_v50 = vpop.f32.mrb[10].mxu1 }
 0x462   : > { %v4947_v9 = vadd.f32 %v4946_v50, %v10784_v54  ;;  %v8228_v0 = vpop.f32.mrb[11].mxu1  ;;  %v5495_v20 = vpop.f32.mrb[116].mxu0 }
 0x463   : > { %v8347_v59 = vpop.f32.mrb[117].mxu0 }
 0x464   : > { %v5689_v44 = vadd.f32 %v5482_v39, %v4947_v9  ;;  %v5498_v34 = vpop.f32.mrb[118].mxu0  ;;  %v11835_v9 = vadd.s32 16, %v11830_v5 }
 0x465   : > { %v8348_v4 = vpop.f32.mrb[119].mxu0 }
 0x466   : > { %v5750_v30 = vadd.f32 %v11827_v6, %v5689_v44  ;;  %vm5990_vm0 = vcmp.le.s32.totalorder %v11835_v9, 16 }
 0x467   : > { %v4951_v28 = vpop.f32.mrb[12].mxu1 }
 0x468   : > { %v4952_v27 = vadd.f32 %v4951_v28, %v10862_v51  ;;  %v8231_v8 = vpop.f32.mrb[13].mxu1  ;;  %v5804_v39 = vmax.f32 %v5750_v30, 0.0 }
 0x469   : > { %v4954_v32 = vpop.f32.mrb[14].mxu1 }
 0x46a   : > { %v5690_v17 = vadd.f32 %v5487_v43, %v4952_v27  ;;  %v4955_v54 = vadd.f32 %v4954_v32, %v10867_v63  ;;  %v8232_v50 = vpop.f32.mrb[15].mxu1  ;;  %v5503_v0 = vpop.f32.mrb[120].mxu0  ;;  %v6048_v43 = vsel %vm5931_vm15, %v5804_v39, 0.0 }
 0x46b   : > { %v8351_v59 = vpop.f32.mrb[121].mxu0 }
 0x46c   : > { %v5751_v44 = vadd.f32 %v11827_v6, %v5690_v17  ;;  %v5691_v25 = vadd.f32 %v5490_v2, %v4955_v54  ;;  %v5506_v4 = vpop.f32.mrb[122].mxu0 }
 0x46d   : > { %v8352_v56 = vpop.f32.mrb[123].mxu0 }
 0x46e   : > { %v5805_v51 = vmax.f32 %v5751_v44, 0.0  ;;  %v5752_v28 = vadd.f32 %v11827_v6, %v5691_v25 }
 0x46f   : > { %v4959_v63 = vpop.f32.mrb[16].mxu1 }
 0x470   : > { %v6101_v30 = vpack.c.bf16 %v5805_v51, %v6048_v43  ;;  %v5806_v27 = vmax.f32 %v5752_v28, 0.0  ;;  %v4960_v8 = vadd.f32 %v4959_v63, %v10926_v12  ;;  %v8235_v32 = vpop.f32.mrb[17].mxu1 }
 0x471   : > { %v4962_v50 = vpop.f32.mrb[18].mxu1 }
 0x472   : > { %v6050_v2 = vsel %vm5990_vm0, %v5806_v27, 0.0  ;;  %v5692_v56 = vadd.f32 %v5495_v20, %v4960_v8  ;;  %v4963_v17 = vadd.f32 %v4962_v50, %v10930_v22  ;;  %v8236_v54 = vpop.f32.mrb[19].mxu1  ;;  %v5511_v59 = vpop.f32.mrb[124].mxu0  ;;  %6137 = vst.msk [vmem:[#allocation3 + $0x8] sm:$0xff] %vm6135_vm1, %v6101_v30  ;;  %v6170_v25 = vshll.u32 %v6101_v30, 16 }
 0x473   : > { %v6102_v39 = vpack.c.bf16 %v6050_v2, %v6050_v2  ;;  %v8355_v44 = vpop.f32.mrb[125].mxu0  ;;  %v6168_v12 = vshrl.u32 %v6101_v30, 16  ;;  %v6484_v27 = vrot.slane %v6101_v30, 1 }
 0x474   : > { %v5753_v51 = vadd.f32 %v11827_v6, %v5692_v56  ;;  %v5693_v28 = vadd.f32 %v5498_v34, %v4963_v17  ;;  %v5514_v43 = vpop.f32.mrb[126].mxu0  ;;  %v6172_v32 = vrot.slane %v6170_v25, 1 }
 0x475   : > { %v8356_v63 = vpop.f32.mrb[127].mxu0  ;;  %v6175_v31 = vshll.u32 %v6102_v39, 16  ;;  %v6485_v20 = vrot.slane %v6102_v39, 1 }
 0x476   : > { %v5807_v8 = vmax.f32 %v5753_v51, 0.0  ;;  %v5754_v22 = vadd.f32 %v11827_v6, %v5693_v28  ;;  %v6173_v54 = vor.u32 %v6172_v32, %v6168_v12 }
 0x477   : > { %v4967_v50 = vpop.f32.mrb[20].mxu1  ;;  %v6177_v2 = vrot.slane %v6175_v31, 1  ;;  %v6486_v44 = vsel %vm6480_vm2, %v6484_v27, %v6485_v20 }
 0x478   : > { %v6051_v34 = vsel %vm5931_vm15, %v5807_v8, 0.0  ;;  %v5808_v56 = vmax.f32 %v5754_v22, 0.0  ;;  %v4968_v17 = vadd.f32 %v4967_v50, %v11010_v29  ;;  %v8239_v63 = vpop.f32.mrb[21].mxu1 }
 0x479   : > { %v4970_v25 = vpop.f32.mrb[22].mxu1  ;;  %v6178_v30 = vsel %vm6154_vm3, %v6173_v54, %v6177_v2 }
 0x47a   : > { %v6103_v39 = vpack.c.bf16 %v5808_v56, %v6051_v34  ;;  %v5694_v51 = vadd.f32 %v5503_v0, %v4968_v17  ;;  %v4971_v28 = vadd.f32 %v4970_v25, %v11018_v41  ;;  %v5519_v61 = vpop.f32.mrb[128].mxu0  ;;  %6373 = vrot.lane.b32.xlu0 %v6178_v30, %s9160_s8  ;;  %v8240_v31 = vpop.f32.mrb[23].mxu1 }
 0x47b   : > { %v8359_v12 = vpop.f32.mrb[129].mxu0 }
 0x47c   : > { %v5755_v32 = vadd.f32 %v11827_v6, %v5694_v51  ;;  %v5695_v27 = vadd.f32 %v5506_v4, %v4971_v28  ;;  %v5522_v20 = vpop.f32.mrb[130].mxu0  ;;  %6138 = vst.msk [vmem:[#allocation3 + $0x10] sm:$0xff] %vm6135_vm1, %v6103_v39  ;;  %v6182_v8 = vshll.u32 %v6103_v39, 16  ;;  %v6180_v51 = vshrl.u32 %v6103_v39, 16 }
 0x47d   : > { %v8360_v29 = vpop.f32.mrb[131].mxu0  ;;  %v6487_v12 = vrot.slane %v6103_v39, 1 }
 0x47e   : > { %v5809_v22 = vmax.f32 %v5755_v32, 0.0  ;;  %6537 = vrot.lane.b32.xlu0 %v6486_v44, %s9158_s27  ;;  %v5756_v0 = vadd.f32 %v11827_v6, %v5695_v27  ;;  %v6184_v4 = vrot.slane %v6182_v8, 1 }
 0x47f   : > { %v4975_v50 = vpop.f32.mrb[24].mxu1 }
 0x480   : > { %v6053_v41 = vsel %vm5990_vm0, %v5809_v22, 0.0  ;;  %v4976_v54 = vadd.f32 %v4975_v50, %v11097_v7  ;;  %v8243_v2 = vpop.f32.mrb[25].mxu1  ;;  %v5810_v28 = vmax.f32 %v5756_v0, 0.0  ;;  %v6185_v50 = vor.u32 %v6184_v4, %v6180_v51 }
 0x481   : > { %v6104_v34 = vpack.c.bf16 %v6053_v41, %v6053_v41  ;;  %v4978_v56 = vpop.f32.mrb[26].mxu1 }
 0x482   : > { %v5696_v17 = vadd.f32 %v5511_v59, %v4976_v54  ;;  %v4979_v63 = vadd.f32 %v4978_v56, %v11102_v57  ;;  %v8244_v25 = vpop.f32.mrb[27].mxu1  ;;  %v5527_v30 = vpop.f32.mrb[132].mxu0  ;;  %v6054_v54 = vsel %vm5931_vm15, %v5810_v28, 0.0 }
 0x483   : > { %v8363_v44 = vpop.f32.mrb[133].mxu0  ;;  %v6187_v31 = vshll.u32 %v6104_v34, 16  ;;  %v6488_v32 = vrot.slane %v6104_v34, 1 }
 0x484   : > { %v5757_v27 = vadd.f32 %v11827_v6, %v5696_v17  ;;  %v5697_v29 = vadd.f32 %v5514_v43, %v4979_v63  ;;  %v5530_v22 = vpop.f32.mrb[134].mxu0 }
 0x485   : > { %v8364_v7 = vpop.f32.mrb[135].mxu0  ;;  %v6189_v41 = vrot.slane %v6187_v31, 1  ;;  %v6489_v8 = vsel %vm6480_vm2, %v6487_v12, %v6488_v32 }
 0x486   : > { %v5811_v59 = vmax.f32 %v5757_v27, 0.0  ;;  %v5758_v57 = vadd.f32 %v11827_v6, %v5697_v29  ;;  %v8868_v7 = vld [vmem:[#allocation12 + $0x14] ss:$0 sps:$4 sm:$0xff]  }
 0x487   : > { %v4983_v0 = vpop.f32.mrb[28].mxu1  ;;  %v6190_v2 = vsel %vm6154_vm3, %v6185_v50, %v6189_v41  ;;  %8617 = vmatprep.subr.msk.bf16.mxu1 %vm4420_vm7, %v8868_v7 }
 0x488   : > { %v6105_v39 = vpack.c.bf16 %v5811_v59, %v6054_v54  ;;  %v5812_v34 = vmax.f32 %v5758_v57, 0.0  ;;  %v4984_v56 = vadd.f32 %v4983_v0, %v11166_v14  ;;  %6375 = vrot.lane.b32.xlu1 %v6190_v2, %s9160_s8  ;;  %v8247_v43 = vpop.f32.mrb[29].mxu1  ;;  %v6706_v0 = vsel %vm4420_vm7, %v8868_v7, 0 }
 0x489   : > { %v4986_v4 = vpop.f32.mrb[30].mxu1  ;;  %8444 = vmatpush3.bf16.msra.mxu1 %v6706_v0 }
 0x48a   : > { %v6056_v17 = vsel %vm5990_vm0, %v5812_v34, 0.0  ;;  %v5698_v63 = vadd.f32 %v5519_v61, %v4984_v56  ;;  %v4987_v25 = vadd.f32 %v4986_v4, %v11171_v11  ;;  %v8248_v51 = vpop.f32.mrb[31].mxu1  ;;  %v5535_v44 = vpop.f32.mrb[136].mxu0  ;;  %6139 = vst.msk [vmem:[#allocation3 + $0x18] sm:$0xff] %vm6135_vm1, %v6105_v39  ;;  %v6194_v12 = vshll.u32 %v6105_v39, 16 }
 0x48b   : > { %v6106_v28 = vpack.c.bf16 %v6056_v17, %v6056_v17  ;;  %v8367_v31 = vpop.f32.mrb[137].mxu0  ;;  %v6192_v29 = vshrl.u32 %v6105_v39, 16  ;;  %v6490_v59 = vrot.slane %v6105_v39, 1 }
 0x48c   : > { %v5759_v32 = vadd.f32 %v11827_v6, %v5698_v63  ;;  %v5699_v14 = vadd.f32 %v5522_v20, %v4987_v25  ;;  %v5538_v27 = vpop.f32.mrb[138].mxu0  ;;  %6539 = vrot.lane.b32.xlu1 %v6489_v8, %s9158_s27  ;;  %v6196_v41 = vrot.slane %v6194_v12, 1 }
 0x48d   : > { %v8368_v50 = vpop.f32.mrb[139].mxu0  ;;  %v6199_v61 = vshll.u32 %v6106_v28, 16  ;;  %v6491_v11 = vrot.slane %v6106_v28, 1 }
 0x48e   : > { %v5813_v57 = vmax.f32 %v5759_v32, 0.0  ;;  %v5760_v54 = vadd.f32 %v11827_v6, %v5699_v14  ;;  %v6197_v34 = vor.u32 %v6196_v41, %v6192_v29 }
 0x48f   : > { %v4991_v2 = vpop.f32.mrb[32].mxu1  ;;  %v6201_v20 = vrot.slane %v6199_v61, 1  ;;  %v6492_v56 = vsel %vm6480_vm2, %v6490_v59, %v6491_v11 }
 0x490   : > { %v6057_v8 = vsel %vm5931_vm15, %v5813_v57, 0.0  ;;  %v5814_v43 = vmax.f32 %v5760_v54, 0.0  ;;  %v4992_v39 = vadd.f32 %v4991_v2, %v11251_v33  ;;  %v8251_v4 = vpop.f32.mrb[33].mxu1 }
 0x491   : > { %v4994_v17 = vpop.f32.mrb[34].mxu1  ;;  %v6202_v63 = vsel %vm6154_vm3, %v6197_v34, %v6201_v20 }
 0x492   : > { %v6107_v25 = vpack.c.bf16 %v5814_v43, %v6057_v8  ;;  %v5700_v51 = vadd.f32 %v5527_v30, %v4992_v39  ;;  %v4995_v28 = vadd.f32 %v4994_v17, %v11258_v53  ;;  %v5543_v31 = vpop.f32.mrb[140].mxu0  ;;  %6377 = vrot.lane.b32.xlu0 %v6202_v63, %s9160_s8  ;;  %v8252_v12 = vpop.f32.mrb[35].mxu1 }
 0x493   : > { %v8371_v32 = vpop.f32.mrb[141].mxu0 }
 0x494   : > { %v5761_v14 = vadd.f32 %v11827_v6, %v5700_v51  ;;  %v5701_v29 = vadd.f32 %v5530_v22, %v4995_v28  ;;  %v5546_v7 = vpop.f32.mrb[142].mxu0  ;;  %6140 = vst.msk [vmem:[#allocation3 + $0x20] sm:$0xff] %vm6135_vm1, %v6107_v25  ;;  %v6206_v50 = vshll.u32 %v6107_v25, 16  ;;  %v6204_v8 = vshrl.u32 %v6107_v25, 16 }
 0x495   : > { %v8372_v33 = vpop.f32.mrb[143].mxu0  ;;  %v6493_v4 = vrot.slane %v6107_v25, 1 }
 0x496   : > { %v5815_v41 = vmax.f32 %v5761_v14, 0.0  ;;  %6541 = vrot.lane.b32.xlu0 %v6492_v56, %s9158_s27  ;;  %v5762_v30 = vadd.f32 %v11827_v6, %v5701_v29  ;;  %v6208_v22 = vrot.slane %v6206_v50, 1 }
 0x497   : > { %v4999_v61 = vpop.f32.mrb[36].mxu1 }
 0x498   : > { %v6059_v53 = vsel %vm5990_vm0, %v5815_v41, 0.0  ;;  %v5000_v59 = vadd.f32 %v4999_v61, %v11320_v18  ;;  %v8255_v11 = vpop.f32.mrb[37].mxu1  ;;  %v5816_v43 = vmax.f32 %v5762_v30, 0.0  ;;  %v6209_v12 = vor.u32 %v6208_v22, %v6204_v8 }
 0x499   : > { %v6108_v57 = vpack.c.bf16 %v6059_v53, %v6059_v53  ;;  %v5002_v54 = vpop.f32.mrb[38].mxu1 }
 0x49a   : > { %v5702_v0 = vadd.f32 %v5535_v44, %v5000_v59  ;;  %v5003_v2 = vadd.f32 %v5002_v54, %v11327_v42  ;;  %v8256_v34 = vpop.f32.mrb[39].mxu1  ;;  %v5551_v20 = vpop.f32.mrb[144].mxu0  ;;  %v6060_v29 = vsel %vm5931_vm15, %v5816_v43, 0.0 }
 0x49b   : > { %v8375_v56 = vpop.f32.mrb[145].mxu0  ;;  %v6211_v39 = vshll.u32 %v6108_v57, 16  ;;  %v6494_v17 = vrot.slane %v6108_v57, 1 }
 0x49c   : > { %v5763_v63 = vadd.f32 %v11827_v6, %v5702_v0  ;;  %v5703_v51 = vadd.f32 %v5538_v27, %v5003_v2  ;;  %v5554_v28 = vpop.f32.mrb[146].mxu0 }
 0x49d   : > { %v8376_v18 = vpop.f32.mrb[147].mxu0  ;;  %v6213_v32 = vrot.slane %v6211_v39, 1  ;;  %v6495_v14 = vsel %vm6480_vm2, %v6493_v4, %v6494_v17 }
 0x49e   : > { %v5817_v44 = vmax.f32 %v5763_v63, 0.0  ;;  %v5764_v42 = vadd.f32 %v11827_v6, %v5703_v51 }
 0x49f   : > { %v5007_v33 = vpop.f32.mrb[40].mxu1  ;;  %v6214_v50 = vsel %vm6154_vm3, %v6209_v12, %v6213_v32 }
 0x4a0   : > { %v6109_v25 = vpack.c.bf16 %v5817_v44, %v6060_v29  ;;  %v5818_v41 = vmax.f32 %v5764_v42, 0.0  ;;  %v5008_v30 = vadd.f32 %v5007_v33, %v11393_v1  ;;  %6379 = vrot.lane.b32.xlu1 %v6214_v50, %s9160_s8  ;;  %v8259_v27 = vpop.f32.mrb[41].mxu1 }
 0x4a1   : > { %v5010_v61 = vpop.f32.mrb[42].mxu1 }
 0x4a2   : > { %v6062_v53 = vsel %vm5990_vm0, %v5818_v41, 0.0  ;;  %v5704_v59 = vadd.f32 %v5543_v31, %v5008_v30  ;;  %v5011_v11 = vadd.f32 %v5010_v61, %v11397_v24  ;;  %v8260_v57 = vpop.f32.mrb[43].mxu1  ;;  %v5559_v54 = vpop.f32.mrb[148].mxu0  ;;  %6141 = vst.msk [vmem:[#allocation3 + $0x28] sm:$0xff] %vm6135_vm1, %v6109_v25  ;;  %v6218_v2 = vshll.u32 %v6109_v25, 16 }
 0x4a3   : > { %v6110_v22 = vpack.c.bf16 %v6062_v53, %v6062_v53  ;;  %v8379_v0 = vpop.f32.mrb[149].mxu0  ;;  %v6216_v43 = vshrl.u32 %v6109_v25, 16  ;;  %v6496_v31 = vrot.slane %v6109_v25, 1 }
 0x4a4   : > { %v5765_v34 = vadd.f32 %v11827_v6, %v5704_v59  ;;  %v5705_v1 = vadd.f32 %v5546_v7, %v5011_v11  ;;  %v5562_v8 = vpop.f32.mrb[150].mxu0  ;;  %6543 = vrot.lane.b32.xlu1 %v6495_v14, %s9158_s27  ;;  %v6220_v39 = vrot.slane %v6218_v2, 1 }
 0x4a5   : > { %v8380_v56 = vpop.f32.mrb[151].mxu0  ;;  %v6223_v4 = vshll.u32 %v6110_v22, 16  ;;  %v6497_v17 = vrot.slane %v6110_v22, 1 }
 0x4a6   : > { %v5819_v24 = vmax.f32 %v5765_v34, 0.0  ;;  %v5766_v63 = vadd.f32 %v11827_v6, %v5705_v1  ;;  %v6221_v18 = vor.u32 %v6220_v39, %v6216_v43 }
 0x4a7   : > { %v5015_v51 = vpop.f32.mrb[44].mxu1  ;;  %v6225_v12 = vrot.slane %v6223_v4, 1  ;;  %v6498_v32 = vsel %vm6480_vm2, %v6496_v31, %v6497_v17 }
 0x4a8   : > { %v6063_v7 = vsel %vm5931_vm15, %v5819_v24, 0.0  ;;  %v5820_v44 = vmax.f32 %v5766_v63, 0.0  ;;  %v5016_v14 = vadd.f32 %v5015_v51, %v11460_v38  ;;  %v8263_v42 = vpop.f32.mrb[45].mxu1 }
 0x4a9   : > { %v5018_v29 = vpop.f32.mrb[46].mxu1  ;;  %v6226_v33 = vsel %vm6154_vm3, %v6221_v18, %v6225_v12 }
 0x4aa   : > { %v6111_v50 = vpack.c.bf16 %v5820_v44, %v6063_v7  ;;  %v5706_v25 = vadd.f32 %v5551_v20, %v5016_v14  ;;  %v5019_v41 = vadd.f32 %v5018_v29, %v11467_v52  ;;  %v5567_v30 = vpop.f32.mrb[152].mxu0  ;;  %6381 = vrot.lane.b32.xlu0 %v6226_v33, %s9160_s8  ;;  %v8264_v27 = vpop.f32.mrb[47].mxu1 }
 0x4ab   : > { %v8383_v61 = vpop.f32.mrb[153].mxu0 }
 0x4ac   : > { %v5767_v53 = vadd.f32 %v11827_v6, %v5706_v25  ;;  %v5707_v59 = vadd.f32 %v5554_v28, %v5019_v41  ;;  %v5570_v11 = vpop.f32.mrb[154].mxu0  ;;  %6142 = vst.msk [vmem:[#allocation3 + $0x30] sm:$0xff] %vm6135_vm1, %v6111_v50  ;;  %v6230_v57 = vshll.u32 %v6111_v50, 16  ;;  %v6228_v17 = vshrl.u32 %v6111_v50, 16 }
 0x4ad   : > { %v8384_v38 = vpop.f32.mrb[155].mxu0  ;;  %v6499_v18 = vrot.slane %v6111_v50, 1 }
 0x4ae   : > { %v5821_v22 = vmax.f32 %v5767_v53, 0.0  ;;  %6545 = vrot.lane.b32.xlu0 %v6498_v32, %s9158_s27  ;;  %v5768_v20 = vadd.f32 %v11827_v6, %v5707_v59  ;;  %v6232_v28 = vrot.slane %v6230_v57, 1 }
 0x4af   : > { %v5023_v0 = vpop.f32.mrb[48].mxu1 }
 0x4b0   : > { %v6065_v52 = vsel %vm5990_vm0, %v5821_v22, 0.0  ;;  %v5024_v2 = vadd.f32 %v5023_v0, %v11528_v62  ;;  %v8267_v34 = vpop.f32.mrb[49].mxu1  ;;  %v5822_v24 = vmax.f32 %v5768_v20, 0.0  ;;  %v6233_v14 = vor.u32 %v6232_v28, %v6228_v17 }
 0x4b1   : > { %v6112_v1 = vpack.c.bf16 %v6065_v52, %v6065_v52  ;;  %v5026_v43 = vpop.f32.mrb[50].mxu1  ;;  %v9164_v0 = vmov 0.0|0.0  }
 0x4b2   : > { %v5708_v56 = vadd.f32 %v5559_v54, %v5024_v2  ;;  %v5027_v39 = vadd.f32 %v5026_v43, %v11532_v60  ;;  %v8268_v4 = vpop.f32.mrb[51].mxu1  ;;  %v5575_v31 = vpop.f32.mrb[156].mxu0  ;;  %v6066_v33 = vsel %vm5931_vm15, %v5822_v24, 0.0  ;;  %6136 = vst.msk [vmem:[#allocation3] sm:$0xff] %vm6135_vm1, %v9164_v0  ;;  %6153 = vst.msk [vmem:[#allocation3 + $0x88] sm:$0xff] %vm6135_vm1, %v9164_v0 }
 0x4b3   : > { %v8387_v63 = vpop.f32.mrb[157].mxu0  ;;  %v6235_v51 = vshll.u32 %v6112_v1, 16  ;;  %v6500_v12 = vrot.slane %v6112_v1, 1 }
 0x4b4   : > { %v5769_v32 = vadd.f32 %v11827_v6, %v5708_v56  ;;  %v5709_v7 = vadd.f32 %v5562_v8, %v5027_v39  ;;  %v5578_v44 = vpop.f32.mrb[158].mxu0 }
 0x4b5   : > { %v8388_v62 = vpop.f32.mrb[159].mxu0  ;;  %v6237_v42 = vrot.slane %v6235_v51, 1  ;;  %v6501_v29 = vsel %vm6480_vm2, %v6499_v18, %v6500_v12 }
 0x4b6   : > { %v5823_v54 = vmax.f32 %v5769_v32, 0.0  ;;  %v5770_v60 = vadd.f32 %v11827_v6, %v5709_v7 }
 0x4b7   : > { %v5031_v25 = vpop.f32.mrb[52].mxu1  ;;  %v6238_v41 = vsel %vm6154_vm3, %v6233_v14, %v6237_v42 }
 0x4b8   : > { %v6113_v50 = vpack.c.bf16 %v5823_v54, %v6066_v33  ;;  %v5824_v27 = vmax.f32 %v5770_v60, 0.0  ;;  %v5032_v61 = vadd.f32 %v5031_v25, %v11552_v16  ;;  %6383 = vrot.lane.b32.xlu1 %v6238_v41, %s9160_s8  ;;  %v8271_v8 = vpop.f32.mrb[53].mxu1 }
 0x4b9   : > { %v5034_v53 = vpop.f32.mrb[54].mxu1 }
 0x4ba   : > { %v6068_v59 = vsel %vm5990_vm0, %v5824_v27, 0.0  ;;  %v5710_v38 = vadd.f32 %v5567_v30, %v5032_v61  ;;  %v5035_v57 = vadd.f32 %v5034_v53, %v11554_v40  ;;  %v8272_v22 = vpop.f32.mrb[55].mxu1  ;;  %v5583_v20 = vpop.f32.mrb[160].mxu0  ;;  %6143 = vst.msk [vmem:[#allocation3 + $0x38] sm:$0xff] %vm6135_vm1, %v6113_v50  ;;  %v6242_v2 = vshll.u32 %v6113_v50, 16 }
 0x4bb   : > { %v6114_v16 = vpack.c.bf16 %v6068_v59, %v6068_v59  ;;  %v8391_v52 = vpop.f32.mrb[161].mxu0  ;;  %v6240_v40 = vshrl.u32 %v6113_v50, 16  ;;  %v6502_v39 = vrot.slane %v6113_v50, 1 }
 0x4bc   : > { %v5771_v34 = vadd.f32 %v11827_v6, %v5710_v38  ;;  %v5711_v1 = vadd.f32 %v5570_v11, %v5035_v57  ;;  %v5586_v30 = vpop.f32.mrb[162].mxu0  ;;  %6547 = vrot.lane.b32.xlu1 %v6501_v29, %s9158_s27  ;;  %v6244_v28 = vrot.slane %v6242_v2, 1 }
 0x4bd   : > { %v8392_v43 = vpop.f32.mrb[163].mxu0  ;;  %v6247_v56 = vshll.u32 %v6114_v16, 16  ;;  %v6503_v4 = vrot.slane %v6114_v16, 1 }
 0x4be   : > { %v5825_v17 = vmax.f32 %v5771_v34, 0.0  ;;  %v5772_v24 = vadd.f32 %v11827_v6, %v5711_v1  ;;  %v6245_v51 = vor.u32 %v6244_v28, %v6240_v40 }
 0x4bf   : > { %v5039_v63 = vpop.f32.mrb[56].mxu1  ;;  %v6249_v18 = vrot.slane %v6247_v56, 1  ;;  %v6504_v12 = vsel %vm6480_vm2, %v6502_v39, %v6503_v4 }
 0x4c0   : > { %v6069_v11 = vsel %vm5931_vm15, %v5825_v17, 0.0  ;;  %v5826_v32 = vmax.f32 %v5772_v24, 0.0  ;;  %v5040_v7 = vadd.f32 %v5039_v63, %v11569_v47  ;;  %v8275_v62 = vpop.f32.mrb[57].mxu1 }
 0x4c1   : > { %v5042_v14 = vpop.f32.mrb[58].mxu1  ;;  %v6250_v42 = vsel %vm6154_vm3, %v6245_v51, %v6249_v18 }
 0x4c2   : > { %v6115_v29 = vpack.c.bf16 %v5826_v32, %v6069_v11  ;;  %v5712_v54 = vadd.f32 %v5575_v31, %v5040_v7  ;;  %v5043_v60 = vadd.f32 %v5042_v14, %v11571_v46  ;;  %v5591_v33 = vpop.f32.mrb[164].mxu0  ;;  %6385 = vrot.lane.b32.xlu0 %v6250_v42, %s9160_s8  ;;  %v8276_v25 = vpop.f32.mrb[59].mxu1 }
 0x4c3   : > { %v8395_v41 = vpop.f32.mrb[165].mxu0 }
 0x4c4   : > { %v5773_v50 = vadd.f32 %v11827_v6, %v5712_v54  ;;  %v5713_v27 = vadd.f32 %v5578_v44, %v5043_v60  ;;  %v5594_v61 = vpop.f32.mrb[166].mxu0  ;;  %6144 = vst.msk [vmem:[#allocation3 + $0x40] sm:$0xff] %vm6135_vm1, %v6115_v29  ;;  %v6254_v8 = vshll.u32 %v6115_v29, 16  ;;  %v6252_v40 = vshrl.u32 %v6115_v29, 16 }
 0x4c5   : > { %v8396_v47 = vpop.f32.mrb[167].mxu0  ;;  %v6505_v39 = vrot.slane %v6115_v29, 1 }
 0x4c6   : > { %v5827_v53 = vmax.f32 %v5773_v50, 0.0  ;;  %6549 = vrot.lane.b32.xlu0 %v6504_v12, %s9158_s27  ;;  %v5774_v31 = vadd.f32 %v11827_v6, %v5713_v27  ;;  %v6256_v44 = vrot.slane %v6254_v8, 1 }
 0x4c7   : > { %v5047_v59 = vpop.f32.mrb[60].mxu1 }
 0x4c8   : > { %v6071_v46 = vsel %vm5990_vm0, %v5827_v53, 0.0  ;;  %v5048_v38 = vadd.f32 %v5047_v59, %v11586_v55  ;;  %v8279_v57 = vpop.f32.mrb[61].mxu1  ;;  %v5828_v43 = vmax.f32 %v5774_v31, 0.0  ;;  %v6257_v51 = vor.u32 %v6256_v44, %v6252_v40 }
 0x4c9   : > { %v6116_v22 = vpack.c.bf16 %v6071_v46, %v6071_v46  ;;  %v5050_v16 = vpop.f32.mrb[62].mxu1 }
 0x4ca   : > { %v5714_v52 = vadd.f32 %v5583_v20, %v5048_v38  ;;  %v5051_v2 = vadd.f32 %v5050_v16, %v11588_v19  ;;  %v8280_v34 = vpop.f32.mrb[63].mxu1  ;;  %v5599_v1 = vpop.f32.mrb[168].mxu0  ;;  %v6072_v11 = vsel %vm5931_vm15, %v5828_v43, 0.0 }
 0x4cb   : > { %v8399_v28 = vpop.f32.mrb[169].mxu0  ;;  %v6259_v56 = vshll.u32 %v6116_v22, 16  ;;  %v6506_v4 = vrot.slane %v6116_v22, 1 }
 0x4cc   : > { %v5775_v17 = vadd.f32 %v11827_v6, %v5714_v52  ;;  %v5715_v24 = vadd.f32 %v5586_v30, %v5051_v2  ;;  %v5602_v63 = vpop.f32.mrb[170].mxu0 }
 0x4cd   : > { %v8400_v55 = vpop.f32.mrb[171].mxu0  ;;  %v6261_v18 = vrot.slane %v6259_v56, 1  ;;  %v6507_v12 = vsel %vm6480_vm2, %v6505_v39, %v6506_v4 }
 0x4ce   : > { %v5829_v20 = vmax.f32 %v5775_v17, 0.0  ;;  %v5776_v19 = vadd.f32 %v11827_v6, %v5715_v24 }
 0x4cf   : > { %v5055_v32 = vpop.f32.mrb[64].mxu1  ;;  %v6262_v7 = vsel %vm6154_vm3, %v6257_v51, %v6261_v18 }
 0x4d0   : > { %v6117_v62 = vpack.c.bf16 %v5829_v20, %v6072_v11  ;;  %v5830_v14 = vmax.f32 %v5776_v19, 0.0  ;;  %v5056_v42 = vadd.f32 %v5055_v32, %v11600_v49  ;;  %6387 = vrot.lane.b32.xlu1 %v6262_v7, %s9160_s8  ;;  %v8283_v30 = vpop.f32.mrb[65].mxu1 }
 0x4d1   : > { %v5058_v29 = vpop.f32.mrb[66].mxu1 }
 0x4d2   : > { %v6074_v54 = vsel %vm5990_vm0, %v5830_v14, 0.0  ;;  %v5716_v60 = vadd.f32 %v5591_v33, %v5056_v42  ;;  %v5059_v25 = vadd.f32 %v5058_v29, %v11603_v13  ;;  %v8284_v41 = vpop.f32.mrb[67].mxu1  ;;  %v5607_v50 = vpop.f32.mrb[172].mxu0  ;;  %6145 = vst.msk [vmem:[#allocation3 + $0x48] sm:$0xff] %vm6135_vm1, %v6117_v62  ;;  %v6266_v8 = vshll.u32 %v6117_v62, 16 }
 0x4d3   : > { %v6118_v27 = vpack.c.bf16 %v6074_v54, %v6074_v54  ;;  %v8403_v47 = vpop.f32.mrb[173].mxu0  ;;  %v6264_v59 = vshrl.u32 %v6117_v62, 16  ;;  %v6508_v33 = vrot.slane %v6117_v62, 1 }
 0x4d4   : > { %v5777_v53 = vadd.f32 %v11827_v6, %v5716_v60  ;;  %v5717_v49 = vadd.f32 %v5594_v61, %v5059_v25  ;;  %v5610_v31 = vpop.f32.mrb[174].mxu0  ;;  %6551 = vrot.lane.b32.xlu1 %v6507_v12, %s9158_s27  ;;  %v6268_v38 = vrot.slane %v6266_v8, 1 }
 0x4d5   : > { %v8404_v46 = vpop.f32.mrb[175].mxu0  ;;  %v6271_v57 = vshll.u32 %v6118_v27, 16  ;;  %v6509_v22 = vrot.slane %v6118_v27, 1 }
 0x4d6   : > { %v5831_v13 = vmax.f32 %v5777_v53, 0.0  ;;  %v5778_v16 = vadd.f32 %v11827_v6, %v5717_v49  ;;  %v6269_v52 = vor.u32 %v6268_v38, %v6264_v59 }
 0x4d7   : > { %v5063_v44 = vpop.f32.mrb[68].mxu1  ;;  %v6273_v2 = vrot.slane %v6271_v57, 1  ;;  %v6510_v34 = vsel %vm6480_vm2, %v6508_v33, %v6509_v22 }
 0x4d8   : > { %v6075_v61 = vsel %vm5931_vm15, %v5831_v13, 0.0  ;;  %v5832_v40 = vmax.f32 %v5778_v16, 0.0  ;;  %v5064_v43 = vadd.f32 %v5063_v44, %v11625_v35  ;;  %v8287_v28 = vpop.f32.mrb[69].mxu1 }
 0x4d9   : > { %v5066_v56 = vpop.f32.mrb[70].mxu1  ;;  %v6274_v39 = vsel %vm6154_vm3, %v6269_v52, %v6273_v2 }
 0x4da   : > { %v6119_v4 = vpack.c.bf16 %v5832_v40, %v6075_v61  ;;  %v5718_v17 = vadd.f32 %v5599_v1, %v5064_v43  ;;  %v5067_v24 = vadd.f32 %v5066_v56, %v11627_v21  ;;  %v5615_v55 = vpop.f32.mrb[176].mxu0  ;;  %6389 = vrot.lane.b32.xlu0 %v6274_v39, %s9160_s8  ;;  %v8288_v51 = vpop.f32.mrb[71].mxu1 }
 0x4db   : > { %v8407_v18 = vpop.f32.mrb[177].mxu0 }
 0x4dc   : > { %v5779_v12 = vadd.f32 %v11827_v6, %v5718_v17  ;;  %v5719_v20 = vadd.f32 %v5602_v63, %v5067_v24  ;;  %v5618_v19 = vpop.f32.mrb[178].mxu0  ;;  %6146 = vst.msk [vmem:[#allocation3 + $0x50] sm:$0xff] %vm6135_vm1, %v6119_v4  ;;  %v6278_v11 = vshll.u32 %v6119_v4, 16  ;;  %v6276_v41 = vshrl.u32 %v6119_v4, 16 }
 0x4dd   : > { %v8408_v35 = vpop.f32.mrb[179].mxu0  ;;  %v6511_v53 = vrot.slane %v6119_v4, 1 }
 0x4de   : > { %v5833_v32 = vmax.f32 %v5779_v12, 0.0  ;;  %6553 = vrot.lane.b32.xlu0 %v6510_v34, %s9158_s27  ;;  %v5780_v1 = vadd.f32 %v11827_v6, %v5719_v20  ;;  %v6280_v63 = vrot.slane %v6278_v11, 1 }
 0x4df   : > { %v5071_v7 = vpop.f32.mrb[72].mxu1 }
 0x4e0   : > { %v6077_v21 = vsel %vm5990_vm0, %v5833_v32, 0.0  ;;  %v5072_v62 = vadd.f32 %v5071_v7, %v11650_v15  ;;  %v8291_v14 = vpop.f32.mrb[73].mxu1  ;;  %v5834_v27 = vmax.f32 %v5780_v1, 0.0  ;;  %v6281_v57 = vor.u32 %v6280_v63, %v6276_v41 }
 0x4e1   : > { %v6120_v42 = vpack.c.bf16 %v6077_v21, %v6077_v21  ;;  %v5074_v30 = vpop.f32.mrb[74].mxu1 }
 0x4e2   : > { %v5720_v29 = vadd.f32 %v5607_v50, %v5072_v62  ;;  %v5075_v54 = vadd.f32 %v5074_v30, %v11653_v23  ;;  %v8292_v60 = vpop.f32.mrb[75].mxu1  ;;  %v11991_v25 = vpop.f32.mrb[180].mxu0  ;;  %v6078_v13 = vsel %vm5931_vm15, %v5834_v27, 0.0 }
 0x4e3   : > { %v8411_v47 = vpop.f32.mrb[181].mxu0  ;;  %v6283_v8 = vshll.u32 %v6120_v42, 16  ;;  %v6512_v49 = vrot.slane %v6120_v42, 1 }
 0x4e4   : > { %v5781_v59 = vadd.f32 %v11827_v6, %v5720_v29  ;;  %v5721_v46 = vadd.f32 %v5610_v31, %v5075_v54  ;;  %v11994_v15 = vpop.f32.mrb[182].mxu0 }
 0x4e5   : > { %v8412_v38 = vpop.f32.mrb[183].mxu0  ;;  %v6285_v33 = vrot.slane %v6283_v8, 1  ;;  %v6513_v50 = vsel %vm6480_vm2, %v6511_v53, %v6512_v49 }
 0x4e6   : > { %v5835_v23 = vmax.f32 %v5781_v59, 0.0  ;;  %v5782_v22 = vadd.f32 %v11827_v6, %v5721_v46  ;;  %v12022_v46 = vld [vmem:[#allocation12] sm:$0xff]  }
 0x4e7   : > { %v5079_v16 = vpop.f32.mrb[76].mxu1  ;;  %v6286_v44 = vsel %vm6154_vm3, %v6281_v57, %v6285_v33  ;;  %8477 = vmatprep.subr.bf16.mxu1 %v12022_v46 }
 0x4e8   : > { %v6121_v52 = vpack.c.bf16 %v5835_v23, %v6078_v13  ;;  %v5836_v2 = vmax.f32 %v5782_v22, 0.0  ;;  %v5080_v31 = vadd.f32 %v5079_v16, %v11669_v37  ;;  %6391 = vrot.lane.b32.xlu1 %v6286_v44, %s9160_s8  ;;  %v8295_v34 = vpop.f32.mrb[77].mxu1 }
 0x4e9   : > { %v5082_v61 = vpop.f32.mrb[78].mxu1 }
 0x4ea   : > { %v6080_v40 = vsel %vm5990_vm0, %v5836_v2, 0.0  ;;  %v5722_v43 = vadd.f32 %v5615_v55, %v5080_v31  ;;  %v5083_v28 = vadd.f32 %v5082_v61, %v11671_v58  ;;  %v8296_v56 = vpop.f32.mrb[79].mxu1  ;;  %v5631_v39 = vpop.f32.mrb[184].mxu0  ;;  %6147 = vst.msk [vmem:[#allocation3 + $0x58] sm:$0xff] %vm6135_vm1, %v6121_v52  ;;  %v6290_v24 = vshll.u32 %v6121_v52, 16 }
 0x4eb   : > { %v6122_v4 = vpack.c.bf16 %v6080_v40, %v6080_v40  ;;  %v8415_v17 = vpop.f32.mrb[185].mxu0  ;;  %v6288_v20 = vshrl.u32 %v6121_v52, 16  ;;  %v6514_v11 = vrot.slane %v6121_v52, 1 }
 0x4ec   : > { %v5783_v37 = vadd.f32 %v11827_v6, %v5722_v43  ;;  %v5723_v51 = vadd.f32 %v5618_v19, %v5083_v28  ;;  %v12008_v18 = vpop.f32.mrb[186].mxu0  ;;  %v6374_v12 = vpop.permute.xlu0 %6373  ;;  %6555 = vrot.lane.b32.xlu1 %v6513_v50, %s9158_s27  ;;  %v6292_v55 = vrot.slane %v6290_v24, 1  ;;  %v12041_v24 = vld [vmem:[#allocation10] ss:$0 sm:$0xff] }
 0x4ed   : > { %6427 = vst.msk [vmem:[#allocation3 + $0x8] sm:$0xff] %vm6425_vm8, %v6374_v12  ;;  %v8416_v58 = vpop.f32.mrb[187].mxu0  ;;  %v6295_v35 = vshll.u32 %v6122_v4, 16  ;;  %v6515_v32 = vrot.slane %v6122_v4, 1 }
 0x4ee   : > { %v5837_v1 = vmax.f32 %v5783_v37, 0.0  ;;  %v5784_v7 = vadd.f32 %v11827_v6, %v5723_v51  ;;  %v6293_v62 = vor.u32 %v6292_v55, %v6288_v20 }
 0x4ef   : > { %v5087_v21 = vpop.f32.mrb[80].mxu1  ;;  %v6297_v19 = vrot.slane %v6295_v35, 1  ;;  %v6516_v14 = vsel %vm6480_vm2, %v6514_v11, %v6515_v32 }
 0x4f0   : > { %v6081_v42 = vsel %vm5931_vm15, %v5837_v1, 0.0  ;;  %v5838_v30 = vmax.f32 %v5784_v7, 0.0  ;;  %v5088_v63 = vadd.f32 %v5087_v21, %v11688_v3  ;;  %v6538_v29 = vpop.permute.xlu0 %6537  ;;  %v8299_v54 = vpop.f32.mrb[81].mxu1 }
 0x4f1   : > { %6591 = vst.msk [vmem:[#allocation3 + $0x8] sm:$0xff] %vm6589_vm13, %v6538_v29  ;;  %v5090_v60 = vpop.f32.mrb[82].mxu1  ;;  %v6298_v41 = vsel %vm6154_vm3, %v6293_v62, %v6297_v19 }
 0x4f2   : > { %v6123_v27 = vpack.c.bf16 %v5838_v30, %v6081_v42  ;;  %v5724_v47 = vadd.f32 %v11991_v25, %v5088_v63  ;;  %v5091_v8 = vadd.f32 %v5090_v60, %v11691_v48  ;;  %v5639_v53 = vpop.f32.mrb[188].mxu0  ;;  %6393 = vrot.lane.b32.xlu0 %v6298_v41, %s9160_s8  ;;  %v8300_v49 = vpop.f32.mrb[83].mxu1 }
 0x4f3   : > { %v8419_v59 = vpop.f32.mrb[189].mxu0 }
 0x4f4   : > { %6148 = vst.msk [vmem:[#allocation3 + $0x60] sm:$0xff] %vm6135_vm1, %v6123_v27  ;;  %v5785_v3 = vadd.f32 %v11827_v6, %v5724_v47  ;;  %v5725_v38 = vadd.f32 %v11994_v15, %v5091_v8  ;;  %v5642_v57 = vpop.f32.mrb[190].mxu0  ;;  %v6302_v50 = vshll.u32 %v6123_v27, 16  ;;  %v6300_v40 = vshrl.u32 %v6123_v27, 16 }
 0x4f5   : > { %v8420_v33 = vpop.f32.mrb[191].mxu0  ;;  %v6517_v4 = vrot.slane %v6123_v27, 1 }
 0x4f6   : > { %v5839_v25 = vmax.f32 %v5785_v3, 0.0  ;;  %6557 = vrot.lane.b32.xlu0 %v6516_v14, %s9158_s27  ;;  %v5786_v48 = vadd.f32 %v11827_v6, %v5725_v38  ;;  %v6304_v2 = vrot.slane %v6302_v50, 1 }
 0x4f7   : > { %v5095_v23 = vpop.f32.mrb[84].mxu1 }
 0x4f8   : > { %v6083_v22 = vsel %vm5990_vm0, %v5839_v25, 0.0  ;;  %v5096_v13 = vadd.f32 %v5095_v23, %v11707_v26  ;;  %v8303_v16 = vpop.f32.mrb[85].mxu1  ;;  %v12033_v44 = vld [vmem:[#allocation3 + $0x8] sm:$0xff]  ;;  %v5840_v43 = vmax.f32 %v5786_v48, 0.0  ;;  %v6305_v12 = vor.u32 %v6304_v2, %v6300_v40 }
 0x4f9   : > { %v6124_v15 = vpack.c.bf16 %v6083_v22, %v6083_v22  ;;  %v5098_v52 = vpop.f32.mrb[86].mxu1  ;;  %8445 = vmatprep.mubr.msk.bf16.mxu1 %vm4338_vm14, %v12033_v44 }
 0x4fa   : > { %v5726_v31 = vadd.f32 %v5631_v39, %v5096_v13  ;;  %v5099_v34 = vadd.f32 %v5098_v52, %v11709_v45  ;;  %v12038_v61 = vpop.f32.mrb[192].mxu0  ;;  %v6376_v6 = vpop.permute.xlu1 %6375  ;;  %v6084_v32 = vsel %vm5931_vm15, %v5840_v43, 0.0  ;;  %v12520_v52 = vld [vmem:[#allocation30_spill] sm:$0xff] }
 0x4fb   : > { %6428 = vst.msk [vmem:[#allocation3 + $0x10] sm:$0xff] %vm6425_vm8, %v6376_v6  ;;  %v8304_v26 = vpop.f32.mrb[87].mxu1  ;;  %v8423_v28 = vpop.f32.mrb[193].mxu0  ;;  %v6307_v56 = vshll.u32 %v6124_v15, 16  ;;  %v6518_v17 = vrot.slane %v6124_v15, 1 }
 0x4fc   : > { %v5787_v37 = vadd.f32 %v12041_v24, %v5726_v31  ;;  %v5727_v39 = vadd.f32 %v12008_v18, %v5099_v34  ;;  %v12045_v51 = vpop.f32.mrb[194].mxu0  ;;  %v12521_v28 = vld [vmem:[#allocation31_spill] sm:$0xff] }
 0x4fd   : > { %v8424_v45 = vpop.f32.mrb[195].mxu0  ;;  %v6309_v20 = vrot.slane %v6307_v56, 1  ;;  %v6519_v58 = vsel %vm6480_vm2, %v6517_v4, %v6518_v17 }
 0x4fe   : > { %v5841_v55 = vmax.f32 %v5787_v37, 0.0  ;;  %v5788_v35 = vadd.f32 %v12041_v24, %v5727_v39  ;;  %v6540_v11 = vpop.permute.xlu1 %6539 }
 0x4ff   : > { %6592 = vst.msk [vmem:[#allocation3 + $0x10] sm:$0xff] %vm6589_vm13, %v6540_v11  ;;  %v5103_v1 = vpop.f32.mrb[88].mxu1  ;;  %v6310_v7 = vsel %vm6154_vm3, %v6305_v12, %v6309_v20  ;;  %v12522_v11 = vld [vmem:[#allocation32_spill] sm:$0xff] }
 0x500   : > { %v6125_v18 = vpack.c.bf16 %v5841_v55, %v6084_v32  ;;  %v5842_v21 = vmax.f32 %v5788_v35, 0.0  ;;  %v5104_v62 = vadd.f32 %v5103_v1, %v11726_v36  ;;  %6395 = vrot.lane.b32.xlu1 %v6310_v7, %s9160_s8  ;;  %v8307_v19 = vpop.f32.mrb[89].mxu1 }
 0x501   : > { %v5106_v14 = vpop.f32.mrb[90].mxu1  ;;  %v12523_v19 = vld [vmem:[#allocation33_spill] sm:$0xff] }
 0x502   : > { %6149 = vst.msk [vmem:[#allocation3 + $0x68] sm:$0xff] %vm6135_vm1, %v6125_v18  ;;  %v6086_v42 = vsel %vm5990_vm0, %v5842_v21, 0.0  ;;  %v5728_v30 = vadd.f32 %v5639_v53, %v5104_v62  ;;  %v5107_v63 = vadd.f32 %v5106_v14, %v11729_v10  ;;  %v8308_v29 = vpop.f32.mrb[91].mxu1  ;;  %v5655_v54 = vpop.f32.mrb[196].mxu0  ;;  %v6314_v27 = vshll.u32 %v6125_v18, 16 }
 0x503   : > { %v6126_v60 = vpack.c.bf16 %v6086_v42, %v6086_v42  ;;  %v8427_v41 = vpop.f32.mrb[197].mxu0  ;;  %v6312_v59 = vshrl.u32 %v6125_v18, 16  ;;  %v6520_v10 = vrot.slane %v6125_v18, 1 }
 0x504   : > { %v5789_v47 = vadd.f32 %v12041_v24, %v5728_v30  ;;  %v5729_v36 = vadd.f32 %v5642_v57, %v5107_v63  ;;  %v12060_v8 = vpop.f32.mrb[198].mxu0  ;;  %v6378_v49 = vpop.permute.xlu0 %6377  ;;  %6559 = vrot.lane.b32.xlu1 %v6519_v58, %s9158_s27  ;;  %v6316_v53 = vrot.slane %v6314_v27, 1 }
 0x505   : > { %6429 = vst.msk [vmem:[#allocation3 + $0x18] sm:$0xff] %vm6425_vm8, %v6378_v49  ;;  %v8428_v3 = vpop.f32.mrb[199].mxu0  ;;  %v6319_v38 = vshll.u32 %v6126_v60, 16  ;;  %v6521_v33 = vrot.slane %v6126_v60, 1 }
 0x506   : > { %v5843_v50 = vmax.f32 %v5789_v47, 0.0  ;;  %v5790_v25 = vadd.f32 %v12041_v24, %v5729_v36  ;;  %v12065_v48 = vld [vmem:[#allocation3 + $0x10] sm:$0xff]  ;;  %v6317_v57 = vor.u32 %v6316_v53, %v6312_v59 }
 0x507   : > { %v5111_v23 = vpop.f32.mrb[92].mxu1  ;;  %8446 = vmatmul.mubr.msk.bf16.vlgmr.msra.gmra.mrb[112].mxu1 %vm4338_vm14, %v12065_v48  ;;  %v6321_v22 = vrot.slane %v6319_v38, 1  ;;  %v6522_v13 = vsel %vm6480_vm2, %v6520_v10, %v6521_v33  ;;  %v8870_v33 = vld [vmem:[#allocation12 + $0x8] ss:$0 sps:$4 sm:$0xff]  }
 0x508   : > { %v6087_v16 = vsel %vm5931_vm15, %v5843_v50, 0.0  ;;  %v5844_v15 = vmax.f32 %v5790_v25, 0.0  ;;  %v5112_v2 = vadd.f32 %v5111_v23, %v12520_v52  ;;  %v6542_v31 = vpop.permute.xlu0 %6541  ;;  %v8311_v34 = vpop.f32.mrb[93].mxu1  ;;  %8478 = vmatpush3.bf16.msra.mxu1 %v12022_v46  ;;  %v12524_v52 = vld [vmem:[#allocation34_spill] sm:$0xff] }
 0x509   : > { %6593 = vst.msk [vmem:[#allocation3 + $0x18] sm:$0xff] %vm6589_vm13, %v6542_v31  ;;  %v5114_v6 = vpop.f32.mrb[94].mxu1  ;;  %v6322_v40 = vsel %vm6154_vm3, %v6317_v57, %v6321_v22  ;;  %8618 = vmatprep.subr.msk.bf16.mxu1 %vm4420_vm7, %v8870_v33 }
 0x50a   : > { %v6127_v43 = vpack.c.bf16 %v5844_v15, %v6087_v16  ;;  %v5730_v26 = vadd.f32 %v12038_v61, %v5112_v2  ;;  %v5115_v56 = vadd.f32 %v5114_v6, %v12521_v28  ;;  %v5663_v4 = vpop.f32.mrb[200].mxu0  ;;  %6397 = vrot.lane.b32.xlu0 %v6322_v40, %s9160_s8  ;;  %v8312_v17 = vpop.f32.mrb[95].mxu1 }
 0x50b   : > { %v8431_v37 = vpop.f32.mrb[201].mxu0 }
 0x50c   : > { %6150 = vst.msk [vmem:[#allocation3 + $0x70] sm:$0xff] %vm6135_vm1, %v6127_v43  ;;  %v5791_v39 = vadd.f32 %v12041_v24, %v5730_v26  ;;  %v5731_v46 = vadd.f32 %v12045_v51, %v5115_v56  ;;  %v5666_v45 = vpop.f32.mrb[202].mxu0  ;;  %v6326_v20 = vshll.u32 %v6127_v43, 16  ;;  %v6324_v63 = vshrl.u32 %v6127_v43, 16 }
 0x50d   : > { %v8432_v12 = vpop.f32.mrb[203].mxu0  ;;  %v6523_v47 = vrot.slane %v6127_v43, 1  ;;  %v12525_v43 = vld [vmem:[#allocation35_spill] sm:$0xff] }
 0x50e   : > { %v5845_v58 = vmax.f32 %v5791_v39, 0.0  ;;  %6561 = vrot.lane.b32.xlu0 %v6522_v13, %s9158_s27  ;;  %v5792_v61 = vadd.f32 %v12041_v24, %v5731_v46  ;;  %v6328_v51 = vrot.slane %v6326_v20, 1 }
 0x50f   : > { %v5119_v55 = vpop.f32.mrb[96].mxu1 }
 0x510   : > { %v6089_v35 = vsel %vm5990_vm0, %v5845_v58, 0.0  ;;  %v5120_v32 = vadd.f32 %v5119_v55, %v12522_v11  ;;  %v8315_v1 = vpop.f32.mrb[97].mxu1  ;;  %v12087_v7 = vld [vmem:[#allocation3 + $0x18] sm:$0xff]  ;;  %v5846_v29 = vmax.f32 %v5792_v61, 0.0  ;;  %v6329_v53 = vor.u32 %v6328_v51, %v6324_v63 }
 0x511   : > { %v6128_v18 = vpack.c.bf16 %v6089_v35, %v6089_v35  ;;  %v5122_v21 = vpop.f32.mrb[98].mxu1  ;;  %8449 = vmatprep.mubr.msk.bf16.mxu1 %vm4338_vm14, %v12087_v7 }
 0x512   : > { %v5732_v62 = vadd.f32 %v5655_v54, %v5120_v32  ;;  %v5123_v14 = vadd.f32 %v5122_v21, %v12523_v19  ;;  %v12092_v42 = vpop.f32.mrb[204].mxu0  ;;  %v6380_v30 = vpop.permute.xlu1 %6379  ;;  %v6090_v57 = vsel %vm5931_vm15, %v5846_v29, 0.0 }
 0x513   : > { %6430 = vst.msk [vmem:[#allocation3 + $0x20] sm:$0xff] %vm6425_vm8, %v6380_v30  ;;  %v8316_v60 = vpop.f32.mrb[99].mxu1  ;;  %v8435_v41 = vpop.f32.mrb[205].mxu0  ;;  %v6331_v27 = vshll.u32 %v6128_v18, 16  ;;  %v6524_v36 = vrot.slane %v6128_v18, 1 }
 0x514   : > { %v5793_v49 = vadd.f32 %v12041_v24, %v5732_v62  ;;  %v5733_v59 = vadd.f32 %v12060_v8, %v5123_v14  ;;  %v5674_v3 = vpop.f32.mrb[206].mxu0  ;;  %v6927_v8 = vsel %vm4420_vm7, %v8870_v33, 0  ;;  %v12526_v62 = vld [vmem:[#allocation36_spill] sm:$0xff] }
 0x515   : > { %v8436_v54 = vpop.f32.mrb[207].mxu0  ;;  %v6333_v38 = vrot.slane %v6331_v27, 1  ;;  %v6525_v10 = vsel %vm6480_vm2, %v6523_v47, %v6524_v36  ;;  %8480 = vmatpush3.bf16.msra.mxu1 %v6927_v8 }
 0x516   : > { %v5847_v50 = vmax.f32 %v5793_v49, 0.0  ;;  %v5794_v25 = vadd.f32 %v12041_v24, %v5733_v59  ;;  %v6544_v23 = vpop.permute.xlu1 %6543  ;;  %v9165_v49 = vmov 0  }
 0x517   : > { %6594 = vst.msk [vmem:[#allocation3 + $0x20] sm:$0xff] %vm6589_vm13, %v6544_v23  ;;  %v5127_v22 = vpop.f32.mrb[100].mxu1  ;;  %v6334_v13 = vsel %vm6154_vm3, %v6329_v53, %v6333_v38  ;;  %v6160_v59 = vrot.slane %v9165_v49, 1  ;;  %v8876_v49 = vld [vmem:[%s9489_s7 + $0x134] sm:$0xf] }
 0x518   : > { %v6129_v16 = vpack.c.bf16 %v5847_v50, %v6090_v57  ;;  %v5848_v15 = vmax.f32 %v5794_v25, 0.0  ;;  %v5128_v2 = vadd.f32 %v5127_v22, %v12524_v52  ;;  %6399 = vrot.lane.b32.xlu1 %v6334_v13, %s9160_s8  ;;  %v8319_v31 = vpop.f32.mrb[101].mxu1  ;;  %v12143_v52 = vld [vmem:[#allocation12 + $0x18] sm:$0xff]  }
 0x519   : > { %v5130_v34 = vpop.f32.mrb[102].mxu1  ;;  %v6481_v31 = vrot.slane %v9164_v0, 1  ;;  %8513 = vmatprep.subr.bf16.mxu1 %v12143_v52 }
 0x51a   : > { %6151 = vst.msk [vmem:[#allocation3 + $0x78] sm:$0xff] %vm6135_vm1, %v6129_v16  ;;  %v6092_v6 = vsel %vm5990_vm0, %v5848_v15, 0.0  ;;  %v5734_v40 = vadd.f32 %v5663_v4, %v5128_v2  ;;  %v5131_v26 = vadd.f32 %v5130_v34, %v12525_v43  ;;  %v8320_v28 = vpop.f32.mrb[103].mxu1  ;;  %v6338_v17 = vshll.u32 %v6129_v16, 16 }
 0x51b   : > { %v6130_v56 = vpack.c.bf16 %v6092_v6, %v6092_v6  ;;  %v6336_v12 = vshrl.u32 %v6129_v16, 16  ;;  %v6526_v61 = vrot.slane %v6129_v16, 1 }
 0x51c   : > { %v5795_v37 = vadd.f32 %v12041_v24, %v5734_v40  ;;  %v5735_v39 = vadd.f32 %v5666_v45, %v5131_v26  ;;  %v6382_v46 = vpop.permute.xlu0 %6381  ;;  %6563 = vrot.lane.b32.xlu1 %v6525_v10, %s9158_s27  ;;  %v6340_v20 = vrot.slane %v6338_v17, 1 }
 0x51d   : > { %6431 = vst.msk [vmem:[#allocation3 + $0x28] sm:$0xff] %vm6425_vm8, %v6382_v46  ;;  %v6343_v58 = vshll.u32 %v6130_v56, 16  ;;  %v6527_v55 = vrot.slane %v6130_v56, 1 }
 0x51e   : > { %v5849_v35 = vmax.f32 %v5795_v37, 0.0  ;;  %v5796_v4 = vadd.f32 %v12041_v24, %v5735_v39  ;;  %v12115_v11 = vld [vmem:[#allocation3 + $0x20] sm:$0xff]  ;;  %v6341_v45 = vor.u32 %v6340_v20, %v6336_v12 }
 0x51f   : > { %v5135_v32 = vpop.f32.mrb[104].mxu1  ;;  %8450 = vmatmul.mubr.msk.bf16.gmra.mrb[116].mxu1 %vm4338_vm14, %v12115_v11  ;;  %v6345_v1 = vrot.slane %v6343_v58, 1  ;;  %v6528_v18 = vsel %vm6480_vm2, %v6526_v61, %v6527_v55 }
 0x520   : > { %v6093_v21 = vsel %vm5931_vm15, %v5849_v35, 0.0  ;;  %v5850_v51 = vmax.f32 %v5796_v4, 0.0  ;;  %v5136_v19 = vadd.f32 %v5135_v32, %v12526_v62  ;;  %v6546_v14 = vpop.permute.xlu0 %6545  ;;  %v8323_v30 = vpop.f32.mrb[105].mxu1  ;;  %v565_v62 = vld [vmem:[%s9489_s7 + $0x134] sm:$0xf] }
 0x521   : > { %6595 = vst.msk [vmem:[#allocation3 + $0x28] sm:$0xff] %vm6589_vm13, %v6546_v14  ;;  %v5138_v63 = vpop.f32.mrb[106].mxu1  ;;  %v6346_v29 = vsel %vm6154_vm3, %v6341_v45, %v6345_v1  ;;  %v946_v14 = vld [vmem:[%s9482_s19 + $0x138] sm:$0xf] }
 0x522   : > { %v6131_v60 = vpack.c.bf16 %v5850_v51, %v6093_v21  ;;  %v5736_v41 = vadd.f32 %v12092_v42, %v5136_v19  ;;  %6401 = vrot.lane.b32.xlu0 %v6346_v29, %s9160_s8  ;;  %v8324_v27 = vpop.f32.mrb[107].mxu1  ;;  %v566_v19 = vld [vmem:[%s9489_s7 + $0x138] sm:$0xf]  ;;  %v1617_v63 = vshll.u32 %v946_v14, 16  ;;  %v1621_v29 = vshrl.u32 %v946_v14, 16  ;;  %v12533_v14 = vld [vmem:[#allocation29_spill] sm:$0xff] }
 0x523   : > { %v12527_v27 = vld [vmem:[#allocation26_spill] sm:$0xff] }
 0x524   : > { %6152 = vst.msk [vmem:[#allocation3 + $0x80] sm:$0xff] %vm6135_vm1, %v6131_v60  ;;  %v5797_v5 = vadd.f32 %v12041_v24, %v5736_v41  ;;  %v6350_v47 = vshll.u32 %v6131_v60, 16  ;;  %v6348_v25 = vshrl.u32 %v6131_v60, 16  ;;  %v6529_v57 = vrot.slane %v6131_v60, 1  ;;  %v947_v60 = vld [vmem:[%s9482_s19 + $0x13c] sm:$0x1] }
 0x525   : > { %v1627_v41 = vshll.u32 %v947_v60, 16 }
 0x526   : > { %v5851_v36 = vmax.f32 %v5797_v5, 0.0  ;;  %6565 = vrot.lane.b32.xlu0 %v6528_v18, %s9158_s27  ;;  %v6352_v33 = vrot.slane %v6350_v47, 1  ;;  %v8875_v18 = vld [vmem:[%s9482_s19 + $0x134] sm:$0xf]  ;;  %v1619_v47 = vrot.slane %v1617_v63, 5 }
 0x527   : > { %v5143_v3 = vpop.f32.mrb[108].mxu1  ;;  %v1611_v21 = vshrl.u32 %v8875_v18, 16 }
 0x528   : > { %v6095_v54 = vsel %vm5990_vm0, %v5851_v36, 0.0  ;;  %v8327_v53 = vpop.f32.mrb[109].mxu1  ;;  %v12132_v38 = vld [vmem:[#allocation3 + $0x28] sm:$0xff]  ;;  %v6353_v22 = vor.u32 %v6352_v33, %v6348_v25  ;;  %v1623_v36 = vrot.slane %v1621_v29, 4 }
 0x529   : > { %v6132_v42 = vpack.c.bf16 %v6095_v54, %v6095_v54  ;;  %v5146_v10 = vpop.f32.mrb[110].mxu1  ;;  %8453 = vmatprep.mubr.msk.bf16.mxu1 %vm4338_vm14, %v12132_v38  ;;  %v1613_v30 = vrot.slane %v1611_v21, 4  ;;  %v3556_v29 = vld [vmem:[%s9489_s7 + $0x13c] sm:$0x1] }
 0x52a   : > { %v6384_v24 = vpop.permute.xlu1 %6383  ;;  %v8328_v50 = vpop.f32.mrb[111].mxu1  ;;  %6371 = vrot.lane.b32.xlu0 %v6160_v59, %s9160_s8  ;;  %v1624_v53 = vor.u32 %v1623_v36, %v1619_v47 }
 0x52b   : > { %6432 = vst.msk [vmem:[#allocation3 + $0x30] sm:$0xff] %vm6425_vm8, %v6384_v24  ;;  %v6355_v23 = vshll.u32 %v6132_v42, 16  ;;  %v6530_v9 = vrot.slane %v6132_v42, 1  ;;  %v1614_v5 = vor.u32 %v1613_v30, %v12527_v27  ;;  %v1629_v42 = vrot.slane %v1627_v41, 5 }
 0x52c   : > { %v1625_v50 = vrot.slane %v1624_v53, 4  ;;  %v12534_v30 = vrot.slane %v12533_v14, 5 }
 0x52d   : > { %v6357_v13 = vrot.slane %v6355_v23, 1  ;;  %v6531_v8 = vsel %vm6480_vm2, %v6529_v57, %v6530_v9  ;;  %v1615_v54 = vrot.slane %v1614_v5, 4  ;;  %v1950_v23 = vld [vmem:[%s9489_s7 + $0x138] sm:$0xf]  ;;  %v1951_v9 = vld [vmem:[%s9489_s7 + $0x13c] sm:$0x1] }
 0x52e   : > { %v6548_v16 = vpop.permute.xlu1 %6547  ;;  %6405 = vrot.lane.b32.xlu0 %v6160_v59, %s9160_s8  ;;  %v2612_v59 = vshrl.u32 %v8876_v49, 16  ;;  %v3831_v63 = vrot.slane %v12534_v30, 4  ;;  %v3835_v49 = vrot.slane %v3556_v29, 5 }
 0x52f   : > { %6596 = vst.msk [vmem:[#allocation3 + $0x30] sm:$0xff] %vm6589_vm13, %v6548_v16  ;;  %v6358_v15 = vsel %vm6154_vm3, %v6353_v22, %v6357_v13  ;;  %v1620_v24 = vsel %vm9550_vm5, %v1615_v54, %v1619_v47  ;;  %v1630_v22 = vsel %vm9550_vm5, %v1625_v50, %v1629_v42  ;;  %v2618_v13 = vshll.u32 %v1950_v23, 16  ;;  %v443_v50 = vld [vmem:[%s9482_s19 + $0x138] sm:$0xf] }
 0x530   : > { %6403 = vrot.lane.b32.xlu1 %v6358_v15, %s9160_s8  ;;  %v2614_v57 = vrot.slane %v2612_v59, 4  ;;  %v2628_v16 = vshll.u32 %v1951_v9, 16  ;;  %v2951_v15 = vld [vmem:[%s9482_s19 + $0x138] sm:$0xf]  ;;  %504 = vst.msk [vmem:[#allocation2 + $0xec] sm:$0xf] %vm444_vm6, %v443_v50 }
 0x532   : > { %743 = vrot.lane.b32.xlu0 %v565_v62, %s9157_s29 }
 0x534   : > { %v6386_v2 = vpop.permute.xlu0 %6385  ;;  %6567 = vrot.lane.b32.xlu1 %v6531_v8, %s9158_s27  ;;  %v2622_v8 = vshrl.u32 %v1950_v23, 16  ;;  %v8872_v23 = vld [vmem:[#allocation12 + $0x20] ss:$0 sps:$4 sm:$0xff]  }
 0x535   : > { %6433 = vst.msk [vmem:[#allocation3 + $0x38] sm:$0xff] %vm6425_vm8, %v6386_v2  ;;  %v12529_v2 = vld [vmem:[#allocation28_spill] sm:$0xff] }
 0x536   : > { %v12149_v34 = vld [vmem:[#allocation3 + $0x30] sm:$0xff]  ;;  %1747 = vrot.lane.b32.xlu0 %v1620_v24, %s9160_s8  ;;  %v442_v24 = vld [vmem:[%s9482_s19 + $0x134] sm:$0xf] }
 0x537   : > { %8454 = vmatmul.mubr.msk.bf16.gmra.mrb[120].mxu1 %vm4338_vm14, %v12149_v34  ;;  %503 = vst.msk [vmem:[#allocation2 + $0xe8] sm:$0xf] %vm444_vm6, %v442_v24 }
 0x538   : > { %v6550_v6 = vpop.permute.xlu0 %6549  ;;  %6535 = vrot.lane.b32.xlu1 %v6481_v31, %s9158_s27 }
 0x539   : > { %6597 = vst.msk [vmem:[#allocation3 + $0x38] sm:$0xff] %vm6589_vm13, %v6550_v6  ;;  %v2620_v6 = vrot.slane %v2618_v13, 5 }
 0x53c   : > { %6569 = vrot.lane.b32.xlu1 %v6481_v31, %s9158_s27  ;;  %v2615_v31 = vor.u32 %v2614_v57, %v12529_v2  ;;  %v7169_v57 = vsel %vm4420_vm7, %v8872_v23, 0 }
 0x540   : > { %v12156_v40 = vld [vmem:[#allocation3 + $0x38] sm:$0xff]  ;;  %745 = vrot.lane.b32.xlu1 %v566_v19, %s9157_s29  ;;  %v3555_v19 = vld [vmem:[%s9489_s7 + $0x138] sm:$0xf] }
 0x541   : > { %8457 = vmatprep.mubr.msk.bf16.mxu1 %vm4338_vm14, %v12156_v40  ;;  %v3832_v27 = vrot.slane %v3555_v19, 5 }
 0x542   : > { %v6388_v0 = vpop.permute.xlu1 %6387 }
 0x543   : > { %6434 = vst.msk [vmem:[#allocation3 + $0x40] sm:$0xff] %vm6425_vm8, %v6388_v0  ;;  %v2624_v0 = vrot.slane %v2622_v8, 4  ;;  %v3834_v36 = vrot.slane %v3832_v27, 4  ;;  %v3833_v59 = vsel %vm9515_vm4, %v3831_v63, %v3832_v27 }
 0x544   : > { %1749 = vrot.lane.b32.xlu1 %v1630_v22, %s9160_s8 }
 0x545   : > { %v3836_v54 = vsel %vm9515_vm4, %v3834_v36, %v3835_v49 }
 0x546   : > { %v6552_v43 = vpop.permute.xlu1 %6551 }
 0x547   : > { %6598 = vst.msk [vmem:[#allocation3 + $0x40] sm:$0xff] %vm6589_vm13, %v6552_v43  ;;  %v3231_v43 = vrot.slane %v2951_v15, 5 }
 0x54c   : > { %v6390_v26 = vpop.permute.xlu0 %6389 }
 0x54d   : > { %6435 = vst.msk [vmem:[#allocation3 + $0x48] sm:$0xff] %vm6425_vm8, %v6390_v26 }
 0x54e   : > { %v12163_v28 = vld [vmem:[#allocation3 + $0x40] sm:$0xff] }
 0x54f   : > { %8458 = vmatmul.mubr.msk.bf16.gmra.mrb[124].mxu1 %vm4338_vm14, %v12163_v28 }
 0x550   : > { %v6554_v56 = vpop.permute.xlu0 %6553 }
 0x551   : > { %6599 = vst.msk [vmem:[#allocation3 + $0x48] sm:$0xff] %vm6589_vm13, %v6554_v56  ;;  %v2616_v56 = vrot.slane %v2615_v31, 4 }
 0x558   : > { %v12168_v17 = vld [vmem:[#allocation3 + $0x48] sm:$0xff] }
 0x559   : > { %8461 = vmatprep.mubr.msk.bf16.mxu1 %vm4338_vm14, %v12168_v17 }
 0x55a   : > { %v6392_v37 = vpop.permute.xlu1 %6391 }
 0x55b   : > { %6436 = vst.msk [vmem:[#allocation3 + $0x50] sm:$0xff] %vm6425_vm8, %v6392_v37  ;;  %v12530_v37 = vld [vmem:[#allocation27_spill] sm:$0xff] }
 0x55e   : > { %v6556_v39 = vpop.permute.xlu1 %6555 }
 0x55f   : > { %6600 = vst.msk [vmem:[#allocation3 + $0x50] sm:$0xff] %vm6589_vm13, %v6556_v39  ;;  %v12531_v39 = vrot.slane %v12530_v37, 5  ;;  %v12354_v37 = vld [vmem:[#allocation13] ss:$0 sm:$0xff] }
 0x564   : > { %v6394_v46 = vpop.permute.xlu0 %6393 }
 0x565   : > { %6437 = vst.msk [vmem:[#allocation3 + $0x58] sm:$0xff] %vm6425_vm8, %v6394_v46  ;;  %v3230_v46 = vrot.slane %v12531_v39, 4 }
 0x566   : > { %v12175_v12 = vld [vmem:[#allocation3 + $0x50] sm:$0xff] }
 0x567   : > { %8462 = vmatmul.mubr.msk.bf16.gmra.mrb[128].mxu1 %vm4338_vm14, %v12175_v12  ;;  %v3232_v62 = vsel %vm9515_vm4, %v3230_v46, %v3231_v43 }
 0x568   : > { %v6558_v20 = vpop.permute.xlu0 %6557 }
 0x569   : > { %6601 = vst.msk [vmem:[#allocation3 + $0x58] sm:$0xff] %vm6589_vm13, %v6558_v20  ;;  %v2952_v20 = vld [vmem:[%s9482_s19 + $0x13c] sm:$0x1]  ;;  %s9053_s19 = sshll.u32 %s9166_s24, 4  ;;  %s9054_s19 = int_to_ptr.vmem [resolvable:$false] %s9053_s19 }
 0x56a   : > { %v3234_v18 = vrot.slane %v2952_v20, 5  ;;  %s9055_s0 = scalar_lea.vmem %s9054_s19, 128  ;;  %p9056_p3 = scmp.lt.s32.totalorder %s12404_s17, %s9054_s19 }
 0x56b   : > { %p9057_p11 = scmp.lt.s32.totalorder %s9055_s0, %s9049_s30 }
 0x56d   : > { %p9058_p12 = por %p9057_p11, %p9056_p3 }
 0x56f   : > { %p9059_p6 = pnand %p9058_p12, %p9052_p10 }
 0x570   : > { %v12180_v58 = vld [vmem:[#allocation3 + $0x58] sm:$0xff] }
 0x571   : > { %8465 = vmatprep.mubr.msk.bf16.mxu1 %vm4338_vm14, %v12180_v58 }
 0x572   : > { %v6396_v61 = vpop.permute.xlu1 %6395 }
 0x573   : > { %6438 = vst.msk [vmem:[#allocation3 + $0x60] sm:$0xff] %vm6425_vm8, %v6396_v61  ;;  %v2625_v61 = vor.u32 %v2624_v0, %v2620_v6 }
 0x576   : > { %v6560_v55 = vpop.permute.xlu1 %6559 }
 0x577   : > { %6602 = vst.msk [vmem:[#allocation3 + $0x60] sm:$0xff] %vm6589_vm13, %v6560_v55  ;;  %v2630_v55 = vrot.slane %v2628_v16, 5 }
 0x57c   : > { %v6398_v35 = vpop.permute.xlu0 %6397 }
 0x57d   : > { %6439 = vst.msk [vmem:[#allocation3 + $0x68] sm:$0xff] %vm6425_vm8, %v6398_v35  ;;  %v2621_v35 = vsel %vm9550_vm5, %v2616_v56, %v2620_v6 }
 0x57e   : > { %v12187_v4 = vld [vmem:[#allocation3 + $0x60] sm:$0xff]  ;;  %2748 = vrot.lane.b32.xlu0 %v2621_v35, %s9161_s13 }
 0x57f   : > { %8466 = vmatmul.mubr.msk.bf16.gmra.mrb[132].mxu1 %vm4338_vm14, %v12187_v4 }
 0x580   : > { %v6562_v32 = vpop.permute.xlu0 %6561 }
 0x581   : > { %6603 = vst.msk [vmem:[#allocation3 + $0x68] sm:$0xff] %vm6589_vm13, %v6562_v32  ;;  %v2626_v32 = vrot.slane %v2625_v61, 4 }
 0x582   : > { %3352 = vrot.lane.b32.xlu0 %v3232_v62, %s9158_s27 }
 0x583   : > { %v2631_v41 = vsel %vm9550_vm5, %v2626_v32, %v2630_v55 }
 0x584   : > { %2750 = vrot.lane.b32.xlu1 %v2631_v41, %s9161_s13 }
 0x586   : > { %3953 = vrot.lane.b32.xlu0 %v3833_v59, %s9159_s15 }
 0x588   : > { %v12192_v45 = vld [vmem:[#allocation3 + $0x68] sm:$0xff] }
 0x589   : > { %8469 = vmatprep.mubr.msk.bf16.mxu1 %vm4338_vm14, %v12192_v45 }
 0x58a   : > { %v6400_v1 = vpop.permute.xlu1 %6399 }
 0x58b   : > { %6440 = vst.msk [vmem:[#allocation3 + $0x70] sm:$0xff] %vm6425_vm8, %v6400_v1  ;;  %v3233_v1 = vrot.slane %v3231_v43, 4 }
 0x58d   : > { %v3235_v47 = vsel %vm9515_vm4, %v3233_v1, %v3234_v18  ;;  %vm12535_vm4 = vcmask 191648  }
 0x58e   : > { %v6564_v51 = vpop.permute.xlu1 %6563  ;;  %3354 = vrot.lane.b32.xlu1 %v3235_v47, %s9158_s27  ;;  %vm12536_vm5 = vmmov %vm12535_vm4 }
 0x58f   : > { %6604 = vst.msk [vmem:[#allocation3 + $0x70] sm:$0xff] %vm6589_vm13, %v6564_v51 }
 0x592   : > { %3955 = vrot.lane.b32.xlu1 %v3836_v54, %s9159_s15 }
 0x594   : > { %v6402_v3 = vpop.permute.xlu0 %6401 }
 0x595   : > { %6441 = vst.msk [vmem:[#allocation3 + $0x78] sm:$0xff] %vm6425_vm8, %v6402_v3 }
 0x596   : > { %v12208_v10 = vld [vmem:[#allocation3 + $0x70] sm:$0xff] }
 0x597   : > { %8470 = vmatmul.mubr.msk.bf16.gmra.mrb[136].mxu1 %vm4338_vm14, %v12208_v10 }
 0x598   : > { %v6566_v25 = vpop.permute.xlu0 %6565 }
 0x599   : > { %6605 = vst.msk [vmem:[#allocation3 + $0x78] sm:$0xff] %vm6589_vm13, %v6566_v25 }
 0x59c   : > { %v6372_v26 = vpop.permute.xlu0 %6371 }
 0x59d   : > { %6426 = vst.msk [vmem:[#allocation3] sm:$0xff] %vm6425_vm8, %v6372_v26 }
 0x5a0   : > { %v12230_v21 = vld [vmem:[#allocation3 + $0x78] sm:$0xff]  ;;  %v6406_v60 = vpop.permute.xlu0 %6405 }
 0x5a1   : > { %8473 = vmatprep.mubr.msk.bf16.mxu1 %vm4338_vm14, %v12230_v21  ;;  %6443 = vst.msk [vmem:[#allocation3 + $0x88] sm:$0xff] %vm6425_vm8, %v6406_v60 }
 0x5a2   : > { %v6404_v5 = vpop.permute.xlu1 %6403 }
 0x5a3   : > { %6442 = vst.msk [vmem:[#allocation3 + $0x80] sm:$0xff] %vm6425_vm8, %v6404_v5 }
 0x5a6   : > { %v6568_v3 = vpop.permute.xlu1 %6567 }
 0x5a7   : > { %6606 = vst.msk [vmem:[#allocation3 + $0x80] sm:$0xff] %vm6589_vm13, %v6568_v3 }
 0x5aa   : > { %v6536_v53 = vpop.permute.xlu1 %6535 }
 0x5ab   : > { %6590 = vst.msk [vmem:[#allocation3] sm:$0xff] %vm6589_vm13, %v6536_v53 }
 0x5ae   : > { %v12257_v42 = vld [vmem:[#allocation3 + $0x80] sm:$0xff]  ;;  %v6570_v33 = vpop.permute.xlu1 %6569 }
 0x5af   : > { %8474 = vmatmul.mubr.msk.bf16.gmra.mrb[140].mxu1 %vm4338_vm14, %v12257_v42  ;;  %6607 = vst.msk [vmem:[#allocation3 + $0x88] sm:$0xff] %vm6589_vm13, %v6570_v33 }
 0x5b2   : > { %v6608_v25 = vld [vmem:[#allocation3] sm:$0xff] }
 0x5b3   : > { %8481 = vmatprep.mubr.msk.bf16.mxu1 %vm4338_vm14, %v6608_v25 }
 0x5b7   : > { %8482 = vmatmul.mubr.msk.bf16.vlgmr.msra.gmra.mrb[112].mxu1 %vm4338_vm14, %v12033_v44  ;;  %v744_v44 = vpop.permute.xlu0 %743 }
 0x5b8   : > { %8514 = vmatpush3.bf16.msra.mxu1 %v12143_v52  ;;  %8485 = vmatprep.mubr.msk.bf16.mxu1 %vm4338_vm14, %v12065_v48  ;;  %v746_v52 = vpop.permute.xlu1 %745  ;;  %866 = vst.msk [vmem:[#allocation2 + $0xe8] sm:$0xf] %vm807_vm9, %v744_v44 }
 0x5b9   : > { %8619 = vmatprep.subr.msk.bf16.mxu1 %vm4420_vm7, %v8872_v23  ;;  %867 = vst.msk [vmem:[#allocation2 + $0xec] sm:$0xf] %vm807_vm9, %v746_v52 }
 0x5bc   : > { %8516 = vmatpush3.bf16.msra.mxu1 %v7169_v57 }
 0x5bf   : > { %8486 = vmatmul.mubr.msk.bf16.gmra.mrb[116].mxu1 %vm4338_vm14, %v12087_v7 }
 0x5c0   : > { %8489 = vmatprep.mubr.msk.bf16.mxu1 %vm4338_vm14, %v12115_v11 }
 0x5c7   : > { %8490 = vmatmul.mubr.msk.bf16.gmra.mrb[120].mxu1 %vm4338_vm14, %v12132_v38 }
 0x5c8   : > { %8493 = vmatprep.mubr.msk.bf16.mxu1 %vm4338_vm14, %v12149_v34 }
 0x5cf   : > { %8494 = vmatmul.mubr.msk.bf16.gmra.mrb[124].mxu1 %vm4338_vm14, %v12156_v40 }
 0x5d0   : > { %8497 = vmatprep.mubr.msk.bf16.mxu1 %vm4338_vm14, %v12163_v28 }
 0x5d7   : > { %8498 = vmatmul.mubr.msk.bf16.gmra.mrb[128].mxu1 %vm4338_vm14, %v12168_v17 }
 0x5d8   : > { %8501 = vmatprep.mubr.msk.bf16.mxu1 %vm4338_vm14, %v12175_v12 }
 0x5df   : > { %8502 = vmatmul.mubr.msk.bf16.gmra.mrb[132].mxu1 %vm4338_vm14, %v12180_v58 }
 0x5e0   : > { %8505 = vmatprep.mubr.msk.bf16.mxu1 %vm4338_vm14, %v12187_v4 }
 0x5e7   : > { %8506 = vmatmul.mubr.msk.bf16.gmra.mrb[136].mxu1 %vm4338_vm14, %v12192_v45 }
 0x5e8   : > { %8509 = vmatprep.mubr.msk.bf16.mxu1 %vm4338_vm14, %v12208_v10 }
 0x5ef   : > { %8510 = vmatmul.mubr.msk.bf16.gmra.mrb[140].mxu1 %vm4338_vm14, %v12230_v21 }
 0x5f0   : > { %8517 = vmatprep.mubr.msk.bf16.mxu1 %vm4338_vm14, %v12065_v48  ;;  %v1748_v48 = vpop.permute.xlu0 %1747 }
 0x5f1   : > { %1870 = vst.msk [vmem:[#allocation2 + $0xe8] sm:$0xf] %vm1811_vm10, %v1748_v48 }
 0x5f7   : > { %8518 = vmatmul.mubr.msk.bf16.vlgmr.msra.gmra.mrb[112].mxu1 %vm4338_vm14, %v12087_v7  ;;  %v1750_v7 = vpop.permute.xlu1 %1749 }
 0x5f8   : > { %8521 = vmatprep.mubr.msk.bf16.mxu1 %vm4338_vm14, %v12115_v11  ;;  %1871 = vst.msk [vmem:[#allocation2 + $0xec] sm:$0xf] %vm1811_vm10, %v1750_v7  ;;  %v2749_v11 = vpop.permute.xlu0 %2748 }
 0x5f9   : > { %2871 = vst.msk [vmem:[#allocation2 + $0xe8] sm:$0xf] %vm2812_vm11, %v2749_v11 }
 0x5ff   : > { %8522 = vmatmul.mubr.msk.bf16.gmra.mrb[116].mxu1 %vm4338_vm14, %v12132_v38  ;;  %v2751_v38 = vpop.permute.xlu1 %2750 }
 0x600   : > { %8525 = vmatprep.mubr.msk.bf16.mxu1 %vm4338_vm14, %v12149_v34  ;;  %2872 = vst.msk [vmem:[#allocation2 + $0xec] sm:$0xf] %vm2812_vm11, %v2751_v38  ;;  %v3353_v34 = vpop.permute.xlu0 %3352 }
 0x601   : > { %3475 = vst.msk [vmem:[#allocation2 + $0xe8] sm:$0xf] %vm3416_vm12, %v3353_v34 }
 0x607   : > { %8526 = vmatmul.mubr.msk.bf16.gmra.mrb[120].mxu1 %vm4338_vm14, %v12156_v40  ;;  %v3355_v40 = vpop.permute.xlu1 %3354 }
 0x608   : > { %8529 = vmatprep.mubr.msk.bf16.mxu1 %vm4338_vm14, %v12163_v28  ;;  %3476 = vst.msk [vmem:[#allocation2 + $0xec] sm:$0xf] %vm3416_vm12, %v3355_v40  ;;  %v3954_v28 = vpop.permute.xlu0 %3953 }
 0x609   : > { %4076 = vst.msk [vmem:[#allocation2 + $0xe8] sm:$0xf] %vm12535_vm4, %v3954_v28 }
 0x60f   : > { %8530 = vmatmul.mubr.msk.bf16.gmra.mrb[124].mxu1 %vm4338_vm14, %v12168_v17  ;;  %v3956_v17 = vpop.permute.xlu1 %3955 }
 0x610   : > { %8533 = vmatprep.mubr.msk.bf16.mxu1 %vm4338_vm14, %v12175_v12  ;;  %4077 = vst.msk [vmem:[#allocation2 + $0xec] sm:$0xf] %vm12536_vm5, %v3956_v17 }
 0x617   : > { %8534 = vmatmul.mubr.msk.bf16.gmra.mrb[128].mxu1 %vm4338_vm14, %v12180_v58  ;;  %v8873_v12 = vld [vmem:[#allocation2 + $0xe8] sm:$0xff]   ;;  %v7106_v58 = vld [vmem:[#allocation3 + $0x88] sm:$0xff] }
 0x618   : > { %8537 = vmatprep.mubr.msk.bf16.mxu1 %vm4338_vm14, %v12187_v4  ;;  %8438 = vmatmul.mubr.msk.bf16.gmra.mrb[208].mxu0 %vm4338_vm14, %v8873_v12 }
 0x61f   : > { %8538 = vmatmul.mubr.msk.bf16.gmra.mrb[132].mxu1 %vm4338_vm14, %v12192_v45 }
 0x620   : > { %8541 = vmatprep.mubr.msk.bf16.mxu1 %vm4338_vm14, %v12208_v10 }
 0x627   : > { %8542 = vmatmul.mubr.msk.bf16.gmra.mrb[136].mxu1 %vm4338_vm14, %v12230_v21 }
 0x628   : > { %8545 = vmatprep.mubr.msk.bf16.mxu1 %vm4338_vm14, %v12257_v42 }
 0x62f   : > { %8546 = vmatmul.mubr.msk.bf16.gmra.mrb[140].mxu1 %vm4338_vm14, %v7106_v58 }
 0x6ca   : > { %v8519_v4 = vpop.f32.mrb[112].mxu1 }
 0x6cb   : > { %v7205_v9 = vpop.f32.mrb[113].mxu1  ;;  %v7373_v39 = vadd.f32 %v8519_v4, %v12354_v37 }
 0x6cc   : > { %v8520_v22 = vpop.f32.mrb[114].mxu1  ;;  %v7371_v46 = vadd.f32 %v12354_v37, %v7205_v9 }
 0x6cd   : > { %v7208_v13 = vpop.f32.mrb[115].mxu1  ;;  %v7374_v61 = vadd.f32 %v8520_v22, %v12354_v37  ;;  %v7405_v21 = vmax.f32 %v7373_v39, 0.0 }
 0x6ce   : > { %v7372_v32 = vadd.f32 %v12354_v37, %v7208_v13  ;;  %v7403_v14 = vmax.f32 %v7371_v46, 0.0 }
 0x6cf   : > { %v7406_v29 = vmax.f32 %v7374_v61, 0.0 }
 0x6d0   : > { %v7404_v27 = vmax.f32 %v7372_v32, 0.0 }
 0x6d2   : > { %v8523_v45 = vpop.f32.mrb[116].mxu1 }
 0x6d3   : > { %v7221_v8 = vpop.f32.mrb[117].mxu1  ;;  %v7377_v36 = vadd.f32 %v8523_v45, %v12354_v37 }
 0x6d4   : > { %v8524_v16 = vpop.f32.mrb[118].mxu1  ;;  %v7375_v59 = vadd.f32 %v12354_v37, %v7221_v8 }
 0x6d5   : > { %v7224_v10 = vpop.f32.mrb[119].mxu1  ;;  %v7378_v53 = vadd.f32 %v8524_v16, %v12354_v37  ;;  %v7409_v23 = vmax.f32 %v7377_v36, 0.0 }
 0x6d6   : > { %v7376_v24 = vadd.f32 %v12354_v37, %v7224_v10  ;;  %v7407_v48 = vmax.f32 %v7375_v59, 0.0 }
 0x6d7   : > { %v7410_v38 = vmax.f32 %v7378_v53, 0.0 }
 0x6d8   : > { %v7408_v28 = vmax.f32 %v7376_v24, 0.0 }
 0x6da   : > { %v8527_v15 = vpop.f32.mrb[120].mxu1 }
 0x6db   : > { %v7237_v2 = vpop.f32.mrb[121].mxu1  ;;  %v7381_v58 = vadd.f32 %v8527_v15, %v12354_v37 }
 0x6dc   : > { %v12342_v31 = vpop.f32.mrb[122].mxu1  ;;  %v7379_v22 = vadd.f32 %v12354_v37, %v7237_v2 }
 0x6dd   : > { %v12344_v6 = vpop.f32.mrb[123].mxu1  ;;  %v7382_v16 = vadd.f32 %v12342_v31, %v12354_v37 }
 0x6e2   : > { %v12346_v0 = vpop.f32.mrb[124].mxu1 }
 0x6e3   : > { %v12348_v43 = vpop.f32.mrb[125].mxu1 }
 0x6e4   : > { %v12350_v26 = vpop.f32.mrb[126].mxu1 }
 0x6e5   : > { %v12352_v56 = vpop.f32.mrb[127].mxu1 }
 0x6ea   : > { %v8535_v20 = vpop.f32.mrb[128].mxu1 }
 0x6eb   : > { %v7389_v55 = vadd.f32 %v8535_v20, %v12354_v37  ;;  %v7269_v35 = vpop.f32.mrb[129].mxu1  ;;  %v5679_v9 = vpop.f32.mrb[208].mxu0  ;;  %v7380_v20 = vadd.f32 %v12354_v37, %v12344_v6 }
 0x6ec   : > { %v7387_v1 = vadd.f32 %v12354_v37, %v7269_v35  ;;  %v8536_v18 = vpop.f32.mrb[130].mxu1  ;;  %v8439_v8 = vpop.f32.mrb[209].mxu0  ;;  %v7413_v35 = vmax.f32 %v7381_v58, 0.0 }
 0x6ed   : > { %v7421_v51 = vmax.f32 %v7389_v55, 0.0  ;;  %v7390_v62 = vadd.f32 %v8536_v18, %v12354_v37  ;;  %v7272_v19 = vpop.f32.mrb[131].mxu1  ;;  %v5682_v46 = vpop.f32.mrb[210].mxu0  ;;  %v7411_v18 = vmax.f32 %v7379_v22, 0.0 }
 0x6ee   : > { %v7419_v30 = vmax.f32 %v7387_v1, 0.0  ;;  %v7388_v63 = vadd.f32 %v12354_v37, %v7272_v19  ;;  %v8440_v55 = vpop.f32.mrb[211].mxu0 }
 0x6ef   : > { %v8748_v60 = vpack.i.bf16 %v7421_v51, %v7405_v21  ;;  %v7422_v41 = vmax.f32 %v7390_v62, 0.0  ;;  %v7414_v51 = vmax.f32 %v7382_v16, 0.0 }
 0x6f0   : > { %v8744_v5 = vpack.i.bf16 %v7419_v30, %v7403_v14  ;;  %v7420_v47 = vmax.f32 %v7388_v63, 0.0  ;;  %v7412_v14 = vmax.f32 %v7380_v20, 0.0  ;;  %v7385_v63 = vadd.f32 %v12346_v0, %v12354_v37 }
 0x6f1   : > { %v8750_v49 = vpack.i.bf16 %v7422_v41, %v7406_v29 }
 0x6f2   : > { %v8746_v3 = vpack.i.bf16 %v7420_v47, %v7404_v27  ;;  %8745 = vxpose.xlu0.b32.start [1/16] (narrow) %v8744_v5, 8  ;;  %v8539_v54 = vpop.f32.mrb[132].mxu1  ;;  %v7386_v5 = vadd.f32 %v12350_v26, %v12354_v37  ;;  %v7417_v0 = vmax.f32 %v7385_v63, 0.0 }
 0x6f3   : > { %v7393_v42 = vadd.f32 %v8539_v54, %v12354_v37  ;;  %v7285_v33 = vpop.f32.mrb[133].mxu1 }
 0x6f4   : > { %v7391_v50 = vadd.f32 %v12354_v37, %v7285_v33  ;;  %v8540_v25 = vpop.f32.mrb[134].mxu1  ;;  %v7418_v26 = vmax.f32 %v7386_v5, 0.0 }
 0x6f5   : > { %v7425_v57 = vmax.f32 %v7393_v42, 0.0  ;;  %v7394_v44 = vadd.f32 %v8540_v25, %v12354_v37  ;;  %v7288_v52 = vpop.f32.mrb[135].mxu1 }
 0x6f6   : > { %v7423_v7 = vmax.f32 %v7391_v50, 0.0  ;;  %v7392_v11 = vadd.f32 %v12354_v37, %v7288_v52  ;;  %8747 = vxpose.xlu0.b32.cont [2/16] (narrow) %v8746_v3, 8 }
 0x6f7   : > { %v12372_v34 = vpack.i.bf16 %v7425_v57, %v7409_v23  ;;  %v7426_v40 = vmax.f32 %v7394_v44, 0.0 }
 0x6f8   : > { %v8752_v17 = vpack.i.bf16 %v7423_v7, %v7407_v48  ;;  %v7424_v12 = vmax.f32 %v7392_v11, 0.0 }
 0x6f9   : > { %v8758_v4 = vpack.i.bf16 %v7426_v40, %v7410_v38 }
 0x6fa   : > { %v8754_v13 = vpack.i.bf16 %v7424_v12, %v7408_v28  ;;  %8749 = vxpose.xlu0.b32.cont [3/16] (narrow) %v8748_v60, 8  ;;  %v8543_v45 = vpop.f32.mrb[136].mxu1  ;;  %v7383_v60 = vadd.f32 %v12354_v37, %v12348_v43 }
 0x6fb   : > { %v7397_v10 = vadd.f32 %v8543_v45, %v12354_v37  ;;  %v7301_v39 = vpop.f32.mrb[137].mxu1 }
 0x6fc   : > { %v7395_v15 = vadd.f32 %v12354_v37, %v7301_v39  ;;  %v8544_v61 = vpop.f32.mrb[138].mxu1  ;;  %v7415_v42 = vmax.f32 %v7383_v60, 0.0 }
 0x6fd   : > { %v7429_v2 = vmax.f32 %v7397_v10, 0.0  ;;  %v7398_v32 = vadd.f32 %v8544_v61, %v12354_v37  ;;  %v7304_v1 = vpop.f32.mrb[139].mxu1 }
 0x6fe   : > { %v7427_v21 = vmax.f32 %v7395_v15, 0.0  ;;  %v7396_v31 = vadd.f32 %v12354_v37, %v7304_v1  ;;  %8751 = vxpose.xlu0.b32.cont [4/16] (narrow) %v8750_v49, 8  ;;  %v7384_v49 = vadd.f32 %v12354_v37, %v12352_v56 }
 0x6ff   : > { %v8764_v62 = vpack.i.bf16 %v7429_v2, %v7413_v35  ;;  %v7430_v19 = vmax.f32 %v7398_v32, 0.0 }
 0x700   : > { %v8760_v30 = vpack.i.bf16 %v7427_v21, %v7411_v18  ;;  %v7428_v6 = vmax.f32 %v7396_v31, 0.0  ;;  %v7416_v23 = vmax.f32 %v7384_v49, 0.0 }
 0x701   : > { %v8766_v29 = vpack.i.bf16 %v7430_v19, %v7414_v51 }
 0x702   : > { %v8762_v41 = vpack.i.bf16 %v7428_v6, %v7412_v14  ;;  %8753 = vxpose.xlu0.b32.cont [5/16] (narrow) %v8752_v17, 8  ;;  %v8547_v27 = vpop.f32.mrb[140].mxu1 }
 0x703   : > { %v7401_v47 = vadd.f32 %v8547_v27, %v12354_v37  ;;  %v7317_v36 = vpop.f32.mrb[141].mxu1 }
 0x704   : > { %v7399_v59 = vadd.f32 %v12354_v37, %v7317_v36  ;;  %v8548_v3 = vpop.f32.mrb[142].mxu1 }
 0x705   : > { %v7433_v54 = vmax.f32 %v7401_v47, 0.0  ;;  %v7402_v53 = vadd.f32 %v8548_v3, %v12354_v37  ;;  %v7320_v43 = vpop.f32.mrb[143].mxu1 }
 0x706   : > { %v7431_v33 = vmax.f32 %v7399_v59, 0.0  ;;  %v7400_v24 = vadd.f32 %v12354_v37, %v7320_v43  ;;  %8755 = vxpose.xlu0.b32.cont [6/16] (narrow) %v8754_v13, 8 }
 0x707   : > { %v8772_v50 = vpack.i.bf16 %v7433_v54, %v7417_v0  ;;  %v7434_v25 = vmax.f32 %v7402_v53, 0.0 }
 0x708   : > { %v8768_v57 = vpack.i.bf16 %v7431_v33, %v7415_v42  ;;  %v7432_v56 = vmax.f32 %v7400_v24, 0.0 }
 0x709   : > { %v8774_v44 = vpack.i.bf16 %v7434_v25, %v7418_v26 }
 0x70a   : > { %v8770_v52 = vpack.i.bf16 %v7432_v56, %v7416_v23  ;;  %8757 = vxpose.xlu0.b32.cont [7/16] (narrow) %v12372_v34, 8 }
 0x70e   : > { %8759 = vxpose.xlu0.b32.cont [8/16] (narrow) %v8758_v4, 8 }
 0x712   : > { %8761 = vxpose.xlu0.b32.cont [9/16] (narrow) %v8760_v30, 8 }
 0x716   : > { %8763 = vxpose.xlu0.b32.cont [10/16] (narrow) %v8762_v41, 8 }
 0x71a   : > { %8765 = vxpose.xlu0.b32.cont [11/16] (narrow) %v8764_v62, 8 }
 0x71e   : > { %8767 = vxpose.xlu0.b32.cont [12/16] (narrow) %v8766_v29, 8 }
 0x722   : > { %8769 = vxpose.xlu0.b32.cont [13/16] (narrow) %v8768_v57, 8 }
 0x726   : > { %8771 = vxpose.xlu0.b32.cont [14/16] (narrow) %v8770_v52, 8 }
 0x72a   : > { %8773 = vxpose.xlu0.b32.cont [15/16] (narrow) %v8772_v50, 8 }
 0x72e   : > { %8775 = vxpose.xlu0.b32.end [16/16] (narrow) %v8774_v44, 8 }
 0x772   : > { %v8776_v37 = vpop.trf.xlu0 }
 0x773   : > { %v8780_v48 = vunpack.i.h.bf16 %v8776_v37  ;;  %v8777_v7 = vunpack.i.l.bf16 %v8776_v37 }
 0x775   : > { %v7956_v11 = vpack.c.bf16 %v8780_v48, %v8777_v7 }
 0x777   : > { %7957 = vst.sshfl [vmem:[%s377_s18] sm:$0x33 pattern:$0x76325410] %v7956_v11 }
 0x778   : > { %9062 = shalt.err (!%p9059_p6)
}
 0x779   : > { %s9063_s3 = scalar_lea.hbm %s12402_s9, 64  ;;  %s9067_s29 = scalar_lea.hbm %s12457_s6, 128 }
 0x77a   : > { %p9064_p7 = scmp.ne.s32.totalorder %s12402_s9, %s9063_s3  ;;  %p9068_p2 = scmp.lt.u32.totalorder %s12402_s9, %s12457_s6 }
 0x77b   : > { %p9069_p13 = scmp.lt.u32.totalorder %s9067_s29, %s9063_s3  ;;  %p9071_p1 = scmp.lt.u32.totalorder %s9063_s3, %s12402_s9 }
 0x77c   : > { %p9065_p9 = pnand %p9064_p7, %p9377_p5 }
 0x77d   : > { %p9070_p4 = por %p9069_p13, %p9068_p2 }
 0x77e   : > { %p9066_p0 = pneg %p9065_p9 }
 0x77f   : > { %p9072_p8 = por %p9071_p1, %p9070_p4 }
 0x781   : > { %p9073_p10 = pnand %p9072_p8, %p9066_p0 }
 0x783   : > { %9076 = shalt.err (!%p9073_p10)
}
 0x784   : > { %8645 = dma.vmem_to_hbm [thread:$0]  (%p9377_p5), %s12404_s17, 64, %s12402_s9, %s7514_s14  }
 0x785 PF: > { %s12537_s8 = sld [smem:[#allocation22_spill]]  ;;  %s12538_s13 = sld [smem:[#allocation23_spill]] }
 0x786   : > { %p12540_p11 = scmp.ge.s32.totalorder %s9147_s26, 2 }
 0x78b   : > { %s7542_s16 = sand.u32 1, %s12537_s8   ;;  %p12539_p3 = scmp.ne.s32.totalorder %s12538_s13, 0 }
 0x78c   : > { %s7543_s21 = scalar_lea.sflag [#allocation6], %s7542_s16 }
 0x78d   : > { %p8668_p12 = pnand %p12540_p11, %p12539_p3 }
 0x78f   : > { %9122 = dma.done.wait (!%p8668_p12), %s7543_s21, 64  }
 0x790   : > { %9124 = vsyncadd (!%p8668_p12), %s7543_s21, 4294967232  ;;  %s27_s26 = sadd.s32 1, %s9147_s26   ;;  %s12541_s21 = smov %s9131_s22 }
 0x791   : > { %p24_p6 = scmp.ge.s32.totalorder %s27_s26, 4   ;;  %s12542_s22 = smov %s9135_s23 }
 0x792   : > { %s12543_s23 = smov %s9391_s11  ;;  %s12544_s24 = smov %s9143_s25 }
 0x793   : > { %s12545_s25 = smov %s12547_s20  ;;  %26 = sbr.rel (!%p24_p6) target bundleno = 14 (0xe), region = 128 }
 0x79a   :  { %7548 = vsyncpa [#allocation5], 1 }
 0x79b   :  { %7550 = vsyncpa [#allocation5 + $0x1], 1 }
 0x79c   :  { %7551 = vsyncpa [#allocation8], 1 }
 0x79d   :  { %7553 = vsyncpa [#allocation8 + $0x1], 1 }
 0x79e   :  { %7554 = vsyncpa [#allocation11], 1 }
 0x79f   :  { %7555 = vsyncpa [#allocation14], 1 }
 0x7a0   :  { %7556 = vsyncpa [#allocation6], 1 }
 0x7a1   :  { %7558 = vsyncpa [#allocation6 + $0x1], 1 }

</bundles_post_ra>
